<compile_context>
chip_gen: v6e
topology: v6e:2x2x1
jax: 0.10.0
libtpu: 0.0.40
codegen_flags: <defaults>
</compile_context>

<pallas_src>
import functools

import jax
import jax.numpy as jnp
from jax import lax
from jax.experimental import pallas as pl
from jax.experimental.pallas import tpu as pltpu


# ------------------------------ Pallas kernels ------------------------------

def _conv_pos_kernel(r3_ref, w13_ref, b13_ref, w23_ref, b23_ref,
                     r5_ref, w15_ref, b15_ref, w25_ref, b25_ref,
                     r7_ref, w17_ref, b17_ref, w27_ref, b27_ref,
                     pos_ref, out_ref):
    # Three fused conv branches (kxk conv as matmul -> ReLU -> 1x1 conv as
    # matmul), concatenated along lanes, plus positional embedding.
    def branch(r_ref, w1_ref, b1_ref, w2_ref, b2_ref):
        h = jnp.dot(r_ref[...], w1_ref[...], preferred_element_type=jnp.float32)
        h = jnp.maximum(h + b1_ref[...], 0.0)
        return jnp.dot(h, w2_ref[...], preferred_element_type=jnp.float32) + b2_ref[...]

    f3 = branch(r3_ref, w13_ref, b13_ref, w23_ref, b23_ref)
    f5 = branch(r5_ref, w15_ref, b15_ref, w25_ref, b25_ref)
    f7 = branch(r7_ref, w17_ref, b17_ref, w27_ref, b27_ref)
    seq = jnp.concatenate([f3, f5, f7], axis=-1) + pos_ref[...]   # (B*S, E)
    out_ref[...] = seq.astype(out_ref.dtype)


def conv_pos_fused(rows3, rows5, rows7, c3, c5, c7, pos):
    """rows_k: (B*S, C*k*k), c_k: (w1, b1, w2, b2), pos: (B*S, E) -> (B*S, E)."""
    N = rows3.shape[0]
    E = pos.shape[1]
    return pl.pallas_call(
        _conv_pos_kernel,
        out_shape=jax.ShapeDtypeStruct((N, E), jnp.float32),
    )(rows3, *c3, rows5, *c5, rows7, *c7, pos)


def _layernorm(x, w, b, eps=1e-5):
    mu = jnp.mean(x, axis=-1, keepdims=True)
    var = jnp.mean(jnp.square(x - mu), axis=-1, keepdims=True)
    return (x - mu) * lax.rsqrt(var + eps) * w + b


def _transformer_stack_kernel(seq_ref, wqkv_ref, bqkv_ref, wo_ref, bo_ref,
                              n1w_ref, n1b_ref, w1_ref, b1_ref, w2_ref, b2_ref,
                              n2w_ref, n2b_ref, wl_ref, bl_ref,
                              out_ref, x_sc, attn_sc,
                              *, num_heads, head_dim, batch, seq_len):
    # One grid step == one PyTorch nn.TransformerEncoderLayer (batch_first,
    # post-norm, ReLU FFN).  Activation slab (B*S, E) stays resident in x_sc.
    l = pl.program_id(0)
    E = num_heads * head_dim
    S = seq_len
    scale = 1.0 / (float(head_dim) ** 0.5)

    @pl.when(l == 0)
    def _():
        x_sc[...] = seq_ref[...]

    x = x_sc[...]                                                 # (B*S, E)

    # ---- self attention ----
    qkv = jnp.dot(x, wqkv_ref[0], preferred_element_type=jnp.float32) + bqkv_ref[0]
    for b in range(batch):
        rb = slice(b * S, (b + 1) * S)
        for h in range(num_heads):
            cq = slice(h * head_dim, (h + 1) * head_dim)
            ck = slice(E + h * head_dim, E + (h + 1) * head_dim)
            cv = slice(2 * E + h * head_dim, 2 * E + (h + 1) * head_dim)
            qh = qkv[rb, cq] * scale                              # (S, dh)
            kh = qkv[rb, ck]
            vh = qkv[rb, cv]
            s = lax.dot_general(qh, kh, (((1,), (1,)), ((), ())),
                                preferred_element_type=jnp.float32)  # (S, S)
            s = s - jnp.max(s, axis=-1, keepdims=True)
            p = jnp.exp(s)
            p = p * (1.0 / jnp.sum(p, axis=-1, keepdims=True))
            # Write head output straight into its slice (no concat relayout).
            attn_sc[rb, cq] = jnp.dot(p, vh, preferred_element_type=jnp.float32)

    attn = jnp.dot(attn_sc[...], wo_ref[0],
                   preferred_element_type=jnp.float32) + bo_ref[0]
    y = _layernorm(x + attn, n1w_ref[0], n1b_ref[0])              # post-norm 1

    # ---- FFN (runs on the full B*S slab) ----
    hdn = jnp.maximum(
        jnp.dot(y, w1_ref[0], preferred_element_type=jnp.float32) + b1_ref[0], 0.0)
    ff = jnp.dot(hdn, w2_ref[0], preferred_element_type=jnp.float32) + b2_ref[0]
    z = _layernorm(y + ff, n2w_ref[0], n2b_ref[0])                # post-norm 2
    x_sc[...] = z

    # ---- logits head, only on the last layer ----
    @pl.when(l == pl.num_programs(0) - 1)
    def _():
        center = S // 2
        xc = jnp.concatenate(
            [z[b * S + center:b * S + center + 1, :] for b in range(batch)],
            axis=0)                                               # (B, E)
        out_ref[...] = (jnp.dot(xc, wl_ref[...], preferred_element_type=jnp.float32)
                        + bl_ref[...]).astype(out_ref.dtype)


def transformer_stack(seq, prep, num_heads, batch, seq_len):
    """seq: (B*S, E) -> center logits (B, num_colors). One pallas_call."""
    N, E = seq.shape
    L = prep["wqkv"].shape[0]
    FF = prep["w1"].shape[2]
    C = prep["wl"].shape[1]
    head_dim = E // num_heads

    const = lambda shape: pl.BlockSpec(shape, lambda l, _n=len(shape): (0,) * _n)
    per_layer = lambda d1, d2: pl.BlockSpec((1, d1, d2), lambda l: (l, 0, 0))

    in_arrays = (seq, prep["wqkv"], prep["bqkv"], prep["wo"], prep["bo"],
                 prep["n1w"], prep["n1b"], prep["w1"], prep["b1"],
                 prep["w2"], prep["b2"], prep["n2w"], prep["n2b"],
                 prep["wl"], prep["bl"])

    flops = int(L * (2 * N * E * (3 * E)                      # qkv proj
                     + batch * num_heads * 4 * seq_len * seq_len * head_dim  # attn
                     + 2 * N * E * E                          # out proj
                     + 4 * N * E * FF)                        # FFN
                + 2 * batch * E * C)                          # head
    transcendentals = int(L * (batch * num_heads * seq_len * seq_len + 4 * N))
    bytes_accessed = int(sum(int(a.size) for a in in_arrays) * 4 + batch * C * 4)

    kern = functools.partial(_transformer_stack_kernel,
                             num_heads=num_heads, head_dim=head_dim,
                             batch=batch, seq_len=seq_len)
    return pl.pallas_call(
        kern,
        out_shape=jax.ShapeDtypeStruct((batch, C), jnp.float32),
        grid=(L,),
        in_specs=[
            const((N, E)),                                    # resident sequence
            per_layer(E, 3 * E), per_layer(1, 3 * E),         # qkv
            per_layer(E, E), per_layer(1, E),                 # out proj
            per_layer(1, E), per_layer(1, E),                 # norm1
            per_layer(E, FF), per_layer(1, FF),               # ffn lin1
            per_layer(FF, E), per_layer(1, E),                # ffn lin2
            per_layer(1, E), per_layer(1, E),                 # norm2
            const((E, C)), const((1, C)),                     # logits head
        ],
        out_specs=pl.BlockSpec((batch, C), lambda l: (0, 0)),
        scratch_shapes=[pltpu.VMEM((N, E), jnp.float32),      # resident activation
                        pltpu.VMEM((N, E), jnp.float32)],     # attention heads
        compiler_params=pltpu.CompilerParams(dimension_semantics=("arbitrary",)),
        cost_estimate=pl.CostEstimate(flops=flops,
                                      transcendentals=transcendentals,
                                      bytes_accessed=bytes_accessed),
    )(*in_arrays)


# --------------------------------- JAX glue ---------------------------------

def _im2col_same(x, k):
    """x: (B, C, H, W) NCHW -> rows (B*H*W, C*k*k), 'same' padding.

    Feature order is (C, ki, kj), matching PyTorch conv weight
    (O, C, ki, kj).reshape(O, -1).
    """
    B, C, H, W = x.shape
    pad = k // 2
    patches = lax.conv_general_dilated_patches(
        x, filter_shape=(k, k), window_strides=(1, 1),
        padding=[(pad, pad), (pad, pad)],
        dimension_numbers=("NCHW", "OIHW", "NCHW"))           # (B, C*k*k, H, W)
    return patches.transpose(0, 2, 3, 1).reshape(B * H * W, C * k * k)


def init_params(key, num_colors, branch_channels, max_patches, num_heads,
                num_layers, dim_ff=2048):
    E = branch_channels * 3
    keys = iter(jax.random.split(key, 128))

    def nrm(shape, scale=0.05):
        return scale * jax.random.normal(next(keys), shape, dtype=jnp.float32)

    params = {}
    for k in (3, 5, 7):
        params[f"conv{k}"] = dict(
            w1=nrm((32, num_colors, k, k), 0.1), b1=nrm((32,), 0.1),
            w2=nrm((branch_channels, 32, 1, 1), 0.1), b2=nrm((branch_channels,), 0.1))
    # PyTorch init is zeros; use small random values to exercise the add path.
    params["pos"] = nrm((1, max_patches, E), 0.02)
    layers = []
    for _ in range(num_layers):
        layers.append(dict(
            in_proj_w=nrm((3 * E, E)), in_proj_b=nrm((3 * E,)),
            out_proj_w=nrm((E, E)), out_proj_b=nrm((E,)),
            lin1_w=nrm((dim_ff, E)), lin1_b=nrm((dim_ff,)),
            lin2_w=nrm((E, dim_ff)), lin2_b=nrm((E,)),
            n1_w=jnp.ones((E,), jnp.float32), n1_b=jnp.zeros((E,), jnp.float32),
            n2_w=jnp.ones((E,), jnp.float32), n2_b=jnp.zeros((E,), jnp.float32)))
    params["layers"] = layers
    params["logits_w"] = nrm((num_colors, E))
    params["logits_b"] = nrm((num_colors,))
    return params


def preprocess_params(params):
    """One-time transpose/reshape/stack into kernel-ready layouts (hoisted
    out of the forward hot path)."""
    prep = {}
    for k in (3, 5, 7):
        p = params[f"conv{k}"]
        prep[f"conv{k}"] = (
            p["w1"].reshape(p["w1"].shape[0], -1).T,          # (C*k*k, 32)
            p["b1"].reshape(1, -1),                           # (1, 32)
            p["w2"].reshape(p["w2"].shape[0], -1).T,          # (32, BC)
            p["b2"].reshape(1, -1))                           # (1, BC)
    prep["pos"] = params["pos"][0]                            # (max_patches, E)

    def stk(f):
        return jnp.stack([f(lp) for lp in params["layers"]], axis=0)

    prep["wqkv"] = stk(lambda lp: lp["in_proj_w"].T)          # (L, E, 3E)
    prep["bqkv"] = stk(lambda lp: lp["in_proj_b"].reshape(1, -1))
    prep["wo"] = stk(lambda lp: lp["out_proj_w"].T)           # (L, E, E)
    prep["bo"] = stk(lambda lp: lp["out_proj_b"].reshape(1, -1))
    prep["n1w"] = stk(lambda lp: lp["n1_w"].reshape(1, -1))
    prep["n1b"] = stk(lambda lp: lp["n1_b"].reshape(1, -1))
    prep["w1"] = stk(lambda lp: lp["lin1_w"].T)               # (L, E, FF)
    prep["b1"] = stk(lambda lp: lp["lin1_b"].reshape(1, -1))
    prep["w2"] = stk(lambda lp: lp["lin2_w"].T)               # (L, FF, E)
    prep["b2"] = stk(lambda lp: lp["lin2_b"].reshape(1, -1))
    prep["n2w"] = stk(lambda lp: lp["n2_w"].reshape(1, -1))
    prep["n2b"] = stk(lambda lp: lp["n2_b"].reshape(1, -1))
    prep["wl"] = params["logits_w"].T                         # (E, num_colors)
    prep["bl"] = params["logits_b"].reshape(1, -1)            # (1, num_colors)
    return prep


def forward(prep, onehot_patch, num_heads):
    B, C, H, W = onehot_patch.shape
    S = H * W
    rows3 = _im2col_same(onehot_patch, 3)
    rows5 = _im2col_same(onehot_patch, 5)
    rows7 = _im2col_same(onehot_patch, 7)
    pos = jnp.tile(prep["pos"][:S], (B, 1))                   # (B*S, E)

    seq = conv_pos_fused(rows3, rows5, rows7,
                         prep["conv3"], prep["conv5"], prep["conv7"], pos)
    return transformer_stack(seq, prep, num_heads, B, S)      # (B, num_colors)


# Pure-JAX reference (uses real convolutions + jnp transformer) as a check.
def _ref_forward(params, x, num_heads):
    B, C, H, W = x.shape
    dn = ("NCHW", "OIHW", "NCHW")
    feats = []
    for k in (3, 5, 7):
        p = params[f"conv{k}"]
        pad = k // 2
        h1 = lax.conv_general_dilated(x, p["w1"], (1, 1),
                                      [(pad, pad), (pad, pad)],
                                      dimension_numbers=dn)
        h1 = jnp.maximum(h1 + p["b1"][None, :, None, None], 0.0)
        h2 = lax.conv_general_dilated(h1, p["w2"], (1, 1), [(0, 0), (0, 0)],
                                      dimension_numbers=dn)
        feats.append(h2 + p["b2"][None, :, None, None])
    features = jnp.concatenate(feats, axis=1)                 # (B, E, H, W)
    seq = features.reshape(B, -1, H * W).transpose(0, 2, 1)   # (B, S, E)
    seq = seq + params["pos"][:, :H * W, :]
    E = seq.shape[-1]
    dh = E // num_heads

    def ln(t, w, b):
        mu = t.mean(-1, keepdims=True)
        var = ((t - mu) ** 2).mean(-1, keepdims=True)
        return (t - mu) / jnp.sqrt(var + 1e-5) * w + b

    for lp in params["layers"]:
        qkv = seq @ lp["in_proj_w"].T + lp["in_proj_b"]
        q, k_, v = jnp.split(qkv, 3, axis=-1)
        toh = lambda t: t.reshape(B, -1, num_heads, dh).transpose(0, 2, 1, 3)
        qh, kh, vh = toh(q), toh(k_), toh(v)
        s = jnp.einsum("bhqd,bhkd->bhqk", qh, kh) / jnp.sqrt(dh)
        p_ = jax.nn.softmax(s, axis=-1)
        a = jnp.einsum("bhqk,bhkd->bhqd", p_, vh).transpose(0, 2, 1, 3).reshape(B, -1, E)
        a = a @ lp["out_proj_w"].T + lp["out_proj_b"]
        seq = ln(seq + a, lp["n1_w"], lp["n1_b"])
        ff = jnp.maximum(seq @ lp["lin1_w"].T + lp["lin1_b"], 0.0) @ lp["lin2_w"].T + lp["lin2_b"]
        seq = ln(seq + ff, lp["n2_w"], lp["n2_b"])
    center = seq[:, (H * W) // 2, :]
    return center @ params["logits_w"].T + params["logits_b"]


if __name__ == "__main__":
    # Small shapes consistent with the module's forward.
    B, num_colors, P = 2, 4, 8                 # patch is P x P -> S = 64 tokens
    branch_channels, num_heads, num_layers = 8, 4, 2
    max_patches = P * P

    key = jax.random.PRNGKey(0)
    kp, kx = jax.random.split(key)
    params = init_params(kp, num_colors, branch_channels, max_patches,
                         num_heads, num_layers)
    prep = preprocess_params(params)

    # Deterministic one-hot input patch, then NCHW like the PyTorch module.
    labels = jax.random.randint(kx, (B, P, P), 0, num_colors)
    onehot = jax.nn.one_hot(labels, num_colors, dtype=jnp.float32)   # (B, P, P, C)
    onehot_patch = jnp.transpose(onehot, (0, 3, 1, 2))               # (B, C, P, P)

    fwd = jax.jit(forward, static_argnums=(2,))
    out = jax.block_until_ready(fwd(prep, onehot_patch, num_heads))
    assert out.shape == (B, num_colors), out.shape

    ref = _ref_forward(params, onehot_patch, num_heads)
    assert jnp.allclose(out, ref, rtol=1e-3, atol=1e-3), (out, ref)

    print("KERNEL_OK")
</pallas_src>

<mosaic_0001>
module attributes {stable_mosaic.version = 11 : i64} {
  func.func @_conv_pos_kernel(%arg0: memref<128x36xf32, #tpu.memory_space<vmem>>, %arg1: memref<36x32xf32, #tpu.memory_space<vmem>>, %arg2: memref<1x32xf32, #tpu.memory_space<vmem>>, %arg3: memref<32x8xf32, #tpu.memory_space<vmem>>, %arg4: memref<1x8xf32, #tpu.memory_space<vmem>>, %arg5: memref<128x100xf32, #tpu.memory_space<vmem>>, %arg6: memref<100x32xf32, #tpu.memory_space<vmem>>, %arg7: memref<1x32xf32, #tpu.memory_space<vmem>>, %arg8: memref<32x8xf32, #tpu.memory_space<vmem>>, %arg9: memref<1x8xf32, #tpu.memory_space<vmem>>, %arg10: memref<128x196xf32, #tpu.memory_space<vmem>>, %arg11: memref<196x32xf32, #tpu.memory_space<vmem>>, %arg12: memref<1x32xf32, #tpu.memory_space<vmem>>, %arg13: memref<32x8xf32, #tpu.memory_space<vmem>>, %arg14: memref<1x8xf32, #tpu.memory_space<vmem>>, %arg15: memref<128x24xf32, #tpu.memory_space<vmem>>, %arg16: memref<128x24xf32, #tpu.memory_space<vmem>>) attributes {dimension_semantics = [], scalar_prefetch = 0 : i64, scratch_operands = 0 : i64, tpu.core_type = #tpu.core_type<tc>} {
    %c0 = arith.constant 0 : index
    %c0_0 = arith.constant 0 : index
    %0 = vector.load %arg0[%c0, %c0_0] : memref<128x36xf32, #tpu.memory_space<vmem>>, vector<128x36xf32>
    %c0_1 = arith.constant 0 : index
    %c0_2 = arith.constant 0 : index
    %1 = vector.load %arg1[%c0_1, %c0_2] : memref<36x32xf32, #tpu.memory_space<vmem>>, vector<36x32xf32>
    %cst = arith.constant dense<0.000000e+00> : vector<128x32xf32>
    %2 = tpu.matmul %0, %1, %cst {dimension_numbers = #tpu.dot_dimension_numbers<[1], [0], [0], [1], [0, 0, 1, 1], [], []>} : vector<128x36xf32>, vector<36x32xf32>, vector<128x32xf32> -> vector<128x32xf32>
    %c0_3 = arith.constant 0 : index
    %c0_4 = arith.constant 0 : index
    %3 = vector.load %arg2[%c0_3, %c0_4] : memref<1x32xf32, #tpu.memory_space<vmem>>, vector<1x32xf32>
    %4 = vector.broadcast %3 : vector<1x32xf32> to vector<128x32xf32>
    %5 = arith.addf %2, %4 : vector<128x32xf32>
    %cst_5 = arith.constant 0.000000e+00 : f32
    %6 = vector.broadcast %cst_5 : f32 to vector<128x32xf32>
    %7 = arith.maximumf %5, %6 : vector<128x32xf32>
    %c0_6 = arith.constant 0 : index
    %c0_7 = arith.constant 0 : index
    %8 = vector.load %arg3[%c0_6, %c0_7] : memref<32x8xf32, #tpu.memory_space<vmem>>, vector<32x8xf32>
    %cst_8 = arith.constant dense<0.000000e+00> : vector<128x8xf32>
    %9 = tpu.matmul %7, %8, %cst_8 {dimension_numbers = #tpu.dot_dimension_numbers<[1], [0], [0], [1], [0, 0, 1, 1], [], []>} : vector<128x32xf32>, vector<32x8xf32>, vector<128x8xf32> -> vector<128x8xf32>
    %c0_9 = arith.constant 0 : index
    %c0_10 = arith.constant 0 : index
    %10 = vector.load %arg4[%c0_9, %c0_10] : memref<1x8xf32, #tpu.memory_space<vmem>>, vector<1x8xf32>
    %11 = vector.broadcast %10 : vector<1x8xf32> to vector<128x8xf32>
    %12 = arith.addf %9, %11 : vector<128x8xf32>
    %c0_11 = arith.constant 0 : index
    %c0_12 = arith.constant 0 : index
    %13 = vector.load %arg5[%c0_11, %c0_12] : memref<128x100xf32, #tpu.memory_space<vmem>>, vector<128x100xf32>
    %c0_13 = arith.constant 0 : index
    %c0_14 = arith.constant 0 : index
    %14 = vector.load %arg6[%c0_13, %c0_14] : memref<100x32xf32, #tpu.memory_space<vmem>>, vector<100x32xf32>
    %cst_15 = arith.constant dense<0.000000e+00> : vector<128x32xf32>
    %15 = tpu.matmul %13, %14, %cst_15 {dimension_numbers = #tpu.dot_dimension_numbers<[1], [0], [0], [1], [0, 0, 1, 1], [], []>} : vector<128x100xf32>, vector<100x32xf32>, vector<128x32xf32> -> vector<128x32xf32>
    %c0_16 = arith.constant 0 : index
    %c0_17 = arith.constant 0 : index
    %16 = vector.load %arg7[%c0_16, %c0_17] : memref<1x32xf32, #tpu.memory_space<vmem>>, vector<1x32xf32>
    %17 = vector.broadcast %16 : vector<1x32xf32> to vector<128x32xf32>
    %18 = arith.addf %15, %17 : vector<128x32xf32>
    %cst_18 = arith.constant 0.000000e+00 : f32
    %19 = vector.broadcast %cst_18 : f32 to vector<128x32xf32>
    %20 = arith.maximumf %18, %19 : vector<128x32xf32>
    %c0_19 = arith.constant 0 : index
    %c0_20 = arith.constant 0 : index
    %21 = vector.load %arg8[%c0_19, %c0_20] : memref<32x8xf32, #tpu.memory_space<vmem>>, vector<32x8xf32>
    %cst_21 = arith.constant dense<0.000000e+00> : vector<128x8xf32>
    %22 = tpu.matmul %20, %21, %cst_21 {dimension_numbers = #tpu.dot_dimension_numbers<[1], [0], [0], [1], [0, 0, 1, 1], [], []>} : vector<128x32xf32>, vector<32x8xf32>, vector<128x8xf32> -> vector<128x8xf32>
    %c0_22 = arith.constant 0 : index
    %c0_23 = arith.constant 0 : index
    %23 = vector.load %arg9[%c0_22, %c0_23] : memref<1x8xf32, #tpu.memory_space<vmem>>, vector<1x8xf32>
    %24 = vector.broadcast %23 : vector<1x8xf32> to vector<128x8xf32>
    %25 = arith.addf %22, %24 : vector<128x8xf32>
    %c0_24 = arith.constant 0 : index
    %c0_25 = arith.constant 0 : index
    %26 = vector.load %arg10[%c0_24, %c0_25] : memref<128x196xf32, #tpu.memory_space<vmem>>, vector<128x196xf32>
    %c0_26 = arith.constant 0 : index
    %c0_27 = arith.constant 0 : index
    %27 = vector.load %arg11[%c0_26, %c0_27] : memref<196x32xf32, #tpu.memory_space<vmem>>, vector<196x32xf32>
    %cst_28 = arith.constant dense<0.000000e+00> : vector<128x32xf32>
    %28 = tpu.matmul %26, %27, %cst_28 {dimension_numbers = #tpu.dot_dimension_numbers<[1], [0], [0], [1], [0, 0, 1, 1], [], []>} : vector<128x196xf32>, vector<196x32xf32>, vector<128x32xf32> -> vector<128x32xf32>
    %c0_29 = arith.constant 0 : index
    %c0_30 = arith.constant 0 : index
    %29 = vector.load %arg12[%c0_29, %c0_30] : memref<1x32xf32, #tpu.memory_space<vmem>>, vector<1x32xf32>
    %30 = vector.broadcast %29 : vector<1x32xf32> to vector<128x32xf32>
    %31 = arith.addf %28, %30 : vector<128x32xf32>
    %cst_31 = arith.constant 0.000000e+00 : f32
    %32 = vector.broadcast %cst_31 : f32 to vector<128x32xf32>
    %33 = arith.maximumf %31, %32 : vector<128x32xf32>
    %c0_32 = arith.constant 0 : index
    %c0_33 = arith.constant 0 : index
    %34 = vector.load %arg13[%c0_32, %c0_33] : memref<32x8xf32, #tpu.memory_space<vmem>>, vector<32x8xf32>
    %cst_34 = arith.constant dense<0.000000e+00> : vector<128x8xf32>
    %35 = tpu.matmul %33, %34, %cst_34 {dimension_numbers = #tpu.dot_dimension_numbers<[1], [0], [0], [1], [0, 0, 1, 1], [], []>} : vector<128x32xf32>, vector<32x8xf32>, vector<128x8xf32> -> vector<128x8xf32>
    %c0_35 = arith.constant 0 : index
    %c0_36 = arith.constant 0 : index
    %36 = vector.load %arg14[%c0_35, %c0_36] : memref<1x8xf32, #tpu.memory_space<vmem>>, vector<1x8xf32>
    %37 = vector.broadcast %36 : vector<1x8xf32> to vector<128x8xf32>
    %38 = arith.addf %35, %37 : vector<128x8xf32>
    %39 = tpu.concatenate %12, %25, %38 in 1 : vector<128x8xf32>, vector<128x8xf32>, vector<128x8xf32> -> vector<128x24xf32>
    %c0_37 = arith.constant 0 : index
    %c0_38 = arith.constant 0 : index
    %40 = vector.load %arg15[%c0_37, %c0_38] : memref<128x24xf32, #tpu.memory_space<vmem>>, vector<128x24xf32>
    %41 = arith.addf %39, %40 : vector<128x24xf32>
    %c0_39 = arith.constant 0 : index
    %c0_40 = arith.constant 0 : index
    %42 = vector.load %arg16[%c0_39, %c0_40] : memref<128x24xf32, #tpu.memory_space<vmem>>, vector<128x24xf32>
    tpu.vector_store %arg16[%c0_39, %c0_40], %41 {strides = array<i32>} : memref<128x24xf32, #tpu.memory_space<vmem>>, vector<128x24xf32>,
    return
  }
}

module attributes {stable_mosaic.version = 11 : i64} {
  func.func @_transformer_stack_kernel(%arg0: i32, %arg1: memref<128x24xf32, #tpu.memory_space<vmem>>, %arg2: memref<1x24x72xf32, #tpu.memory_space<vmem>>, %arg3: memref<1x1x72xf32, #tpu.memory_space<vmem>>, %arg4: memref<1x24x24xf32, #tpu.memory_space<vmem>>, %arg5: memref<1x1x24xf32, #tpu.memory_space<vmem>>, %arg6: memref<1x1x24xf32, #tpu.memory_space<vmem>>, %arg7: memref<1x1x24xf32, #tpu.memory_space<vmem>>, %arg8: memref<1x24x2048xf32, #tpu.memory_space<vmem>>, %arg9: memref<1x1x2048xf32, #tpu.memory_space<vmem>>, %arg10: memref<1x2048x24xf32, #tpu.memory_space<vmem>>, %arg11: memref<1x1x24xf32, #tpu.memory_space<vmem>>, %arg12: memref<1x1x24xf32, #tpu.memory_space<vmem>>, %arg13: memref<1x1x24xf32, #tpu.memory_space<vmem>>, %arg14: memref<24x4xf32, #tpu.memory_space<vmem>>, %arg15: memref<1x4xf32, #tpu.memory_space<vmem>>, %arg16: memref<2x4xf32, #tpu.memory_space<vmem>>, %arg17: memref<128x24xf32, #tpu.memory_space<vmem>>, %arg18: memref<128x24xf32, #tpu.memory_space<vmem>>) attributes {dimension_semantics = [#tpu.dimension_semantics<arbitrary>], iteration_bounds = array<i64: 2>, scalar_prefetch = 0 : i64, scratch_operands = 2 : i64, tpu.core_type = #tpu.core_type<tc>, window_params = [{pipeline_mode = #tpu.pipeline_mode<synchronous>, transform_indices = @transform_0, window_bounds = array<i64: 128, 24>}, {transform_indices = @transform_1, window_bounds = array<i64: 1, 24, 72>}, {transform_indices = @transform_2, window_bounds = array<i64: 1, 1, 72>}, {transform_indices = @transform_3, window_bounds = array<i64: 1, 24, 24>}, {transform_indices = @transform_4, window_bounds = array<i64: 1, 1, 24>}, {transform_indices = @transform_5, window_bounds = array<i64: 1, 1, 24>}, {transform_indices = @transform_6, window_bounds = array<i64: 1, 1, 24>}, {transform_indices = @transform_7, window_bounds = array<i64: 1, 24, 2048>}, {transform_indices = @transform_8, window_bounds = array<i64: 1, 1, 2048>}, {transform_indices = @transform_9, window_bounds = array<i64: 1, 2048, 24>}, {transform_indices = @transform_10, window_bounds = array<i64: 1, 1, 24>}, {transform_indices = @transform_11, window_bounds = array<i64: 1, 1, 24>}, {transform_indices = @transform_12, window_bounds = array<i64: 1, 1, 24>}, {pipeline_mode = #tpu.pipeline_mode<synchronous>, transform_indices = @transform_13, window_bounds = array<i64: 24, 4>}, {pipeline_mode = #tpu.pipeline_mode<synchronous>, transform_indices = @transform_14, window_bounds = array<i64: 1, 4>}, {pipeline_mode = #tpu.pipeline_mode<synchronous>, transform_indices = @transform_15, window_bounds = array<i64: 2, 4>}]} {
    %c0_i32 = arith.constant 0 : i32
    %0 = arith.cmpi eq, %arg0, %c0_i32 : i32
    %1 = arith.extui %0 : i1 to i32
    %c0_i32_0 = arith.constant 0 : i32
    %2 = arith.cmpi ne, %1, %c0_i32_0 : i32
    scf.if %2 {
      %c0_117 = arith.constant 0 : index
      %c0_118 = arith.constant 0 : index
      %245 = vector.load %arg1[%c0_117, %c0_118] : memref<128x24xf32, #tpu.memory_space<vmem>>, vector<128x24xf32>
      %c0_119 = arith.constant 0 : index
      %c0_120 = arith.constant 0 : index
      %246 = vector.load %arg17[%c0_119, %c0_120] : memref<128x24xf32, #tpu.memory_space<vmem>>, vector<128x24xf32>
      tpu.vector_store %arg17[%c0_119, %c0_120], %245 {strides = array<i32>} : memref<128x24xf32, #tpu.memory_space<vmem>>, vector<128x24xf32>,
    } else {
    }
    %c0 = arith.constant 0 : index
    %c0_1 = arith.constant 0 : index
    %3 = vector.load %arg17[%c0, %c0_1] : memref<128x24xf32, #tpu.memory_space<vmem>>, vector<128x24xf32>
    %c0_2 = arith.constant 0 : index
    %c0_3 = arith.constant 0 : index
    %c0_4 = arith.constant 0 : index
    %4 = vector.load %arg2[%c0_2, %c0_3, %c0_4] : memref<1x24x72xf32, #tpu.memory_space<vmem>>, vector<1x24x72xf32>
    %5 = vector.shape_cast %4 : vector<1x24x72xf32> to vector<24x72xf32>
    %cst = arith.constant dense<0.000000e+00> : vector<128x72xf32>
    %6 = tpu.matmul %3, %5, %cst {dimension_numbers = #tpu.dot_dimension_numbers<[1], [0], [0], [1], [0, 0, 1, 1], [], []>} : vector<128x24xf32>, vector<24x72xf32>, vector<128x72xf32> -> vector<128x72xf32>
    %c0_5 = arith.constant 0 : index
    %c0_6 = arith.constant 0 : index
    %c0_7 = arith.constant 0 : index
    %7 = vector.load %arg3[%c0_5, %c0_6, %c0_7] : memref<1x1x72xf32, #tpu.memory_space<vmem>>, vector<1x1x72xf32>
    %8 = vector.shape_cast %7 : vector<1x1x72xf32> to vector<1x72xf32>
    %9 = vector.broadcast %8 : vector<1x72xf32> to vector<128x72xf32>
    %10 = arith.addf %6, %9 : vector<128x72xf32>
    %11 = vector.extract_strided_slice %10 {offsets = [0, 0], sizes = [64, 6], strides = [1, 1]} : vector<128x72xf32> to vector<64x6xf32>
    %cst_8 = arith.constant 0.408248305 : f32
    %12 = vector.broadcast %cst_8 : f32 to vector<64x6xf32>
    %13 = arith.mulf %11, %12 : vector<64x6xf32>
    %14 = vector.extract_strided_slice %10 {offsets = [0, 24], sizes = [64, 6], strides = [1, 1]} : vector<128x72xf32> to vector<64x6xf32>
    %15 = vector.extract_strided_slice %10 {offsets = [0, 48], sizes = [64, 6], strides = [1, 1]} : vector<128x72xf32> to vector<64x6xf32>
    %cst_9 = arith.constant dense<0.000000e+00> : vector<64x64xf32>
    %16 = tpu.matmul %13, %14, %cst_9 {dimension_numbers = #tpu.dot_dimension_numbers<[1], [1], [0], [0], [0, 0, 1, 0], [], []>} : vector<64x6xf32>, vector<64x6xf32>, vector<64x64xf32> -> vector<64x64xf32>
    %cst_10 = arith.constant dense<0xFF800000> : vector<64xf32>
    %17 = vector.multi_reduction <maximumf>, %16, %cst_10 [1] : vector<64x64xf32> to vector<64xf32>
    %18 = vector.shape_cast %17 : vector<64xf32> to vector<64x1xf32>
    %19 = vector.broadcast %18 : vector<64x1xf32> to vector<64x64xf32>
    %20 = arith.subf %16, %19 : vector<64x64xf32>
    %21 = math.exp %20 : vector<64x64xf32>
    %cst_11 = arith.constant dense<0.000000e+00> : vector<64xf32>
    %22 = vector.multi_reduction <add>, %21, %cst_11 [1] : vector<64x64xf32> to vector<64xf32>
    %23 = vector.shape_cast %22 : vector<64xf32> to vector<64x1xf32>
    %cst_12 = arith.constant 1.000000e+00 : f32
    %24 = vector.broadcast %cst_12 : f32 to vector<64x1xf32>
    %25 = arith.divf %24, %23 : vector<64x1xf32>
    %26 = vector.broadcast %25 : vector<64x1xf32> to vector<64x64xf32>
    %27 = arith.mulf %21, %26 : vector<64x64xf32>
    %cst_13 = arith.constant dense<0.000000e+00> : vector<64x6xf32>
    %28 = tpu.matmul %27, %15, %cst_13 {dimension_numbers = #tpu.dot_dimension_numbers<[1], [0], [0], [1], [0, 0, 1, 1], [], []>} : vector<64x64xf32>, vector<64x6xf32>, vector<64x6xf32> -> vector<64x6xf32>
    %c0_14 = arith.constant 0 : index
    %c0_15 = arith.constant 0 : index
    %29 = vector.load %arg18[%c0_14, %c0_15] : memref<128x24xf32, #tpu.memory_space<vmem>>, vector<64x6xf32>
    tpu.vector_store %arg18[%c0_14, %c0_15], %28 {strides = array<i32>} : memref<128x24xf32, #tpu.memory_space<vmem>>, vector<64x6xf32>,
    %30 = vector.extract_strided_slice %10 {offsets = [0, 6], sizes = [64, 6], strides = [1, 1]} : vector<128x72xf32> to vector<64x6xf32>
    %cst_16 = arith.constant 0.408248305 : f32
    %31 = vector.broadcast %cst_16 : f32 to vector<64x6xf32>
    %32 = arith.mulf %30, %31 : vector<64x6xf32>
    %33 = vector.extract_strided_slice %10 {offsets = [0, 30], sizes = [64, 6], strides = [1, 1]} : vector<128x72xf32> to vector<64x6xf32>
    %34 = vector.extract_strided_slice %10 {offsets = [0, 54], sizes = [64, 6], strides = [1, 1]} : vector<128x72xf32> to vector<64x6xf32>
    %cst_17 = arith.constant dense<0.000000e+00> : vector<64x64xf32>
    %35 = tpu.matmul %32, %33, %cst_17 {dimension_numbers = #tpu.dot_dimension_numbers<[1], [1], [0], [0], [0, 0, 1, 0], [], []>} : vector<64x6xf32>, vector<64x6xf32>, vector<64x64xf32> -> vector<64x64xf32>
    %cst_18 = arith.constant dense<0xFF800000> : vector<64xf32>
    %36 = vector.multi_reduction <maximumf>, %35, %cst_18 [1] : vector<64x64xf32> to vector<64xf32>
    %37 = vector.shape_cast %36 : vector<64xf32> to vector<64x1xf32>
    %38 = vector.broadcast %37 : vector<64x1xf32> to vector<64x64xf32>
    %39 = arith.subf %35, %38 : vector<64x64xf32>
    %40 = math.exp %39 : vector<64x64xf32>
    %cst_19 = arith.constant dense<0.000000e+00> : vector<64xf32>
    %41 = vector.multi_reduction <add>, %40, %cst_19 [1] : vector<64x64xf32> to vector<64xf32>
    %42 = vector.shape_cast %41 : vector<64xf32> to vector<64x1xf32>
    %cst_20 = arith.constant 1.000000e+00 : f32
    %43 = vector.broadcast %cst_20 : f32 to vector<64x1xf32>
    %44 = arith.divf %43, %42 : vector<64x1xf32>
    %45 = vector.broadcast %44 : vector<64x1xf32> to vector<64x64xf32>
    %46 = arith.mulf %40, %45 : vector<64x64xf32>
    %cst_21 = arith.constant dense<0.000000e+00> : vector<64x6xf32>
    %47 = tpu.matmul %46, %34, %cst_21 {dimension_numbers = #tpu.dot_dimension_numbers<[1], [0], [0], [1], [0, 0, 1, 1], [], []>} : vector<64x64xf32>, vector<64x6xf32>, vector<64x6xf32> -> vector<64x6xf32>
    %c0_22 = arith.constant 0 : index
    %c6 = arith.constant 6 : index
    %48 = vector.load %arg18[%c0_22, %c6] : memref<128x24xf32, #tpu.memory_space<vmem>>, vector<64x6xf32>
    tpu.vector_store %arg18[%c0_22, %c6], %47 {strides = array<i32>} : memref<128x24xf32, #tpu.memory_space<vmem>>, vector<64x6xf32>,
    %49 = vector.extract_strided_slice %10 {offsets = [0, 12], sizes = [64, 6], strides = [1, 1]} : vector<128x72xf32> to vector<64x6xf32>
    %cst_23 = arith.constant 0.408248305 : f32
    %50 = vector.broadcast %cst_23 : f32 to vector<64x6xf32>
    %51 = arith.mulf %49, %50 : vector<64x6xf32>
    %52 = vector.extract_strided_slice %10 {offsets = [0, 36], sizes = [64, 6], strides = [1, 1]} : vector<128x72xf32> to vector<64x6xf32>
    %53 = vector.extract_strided_slice %10 {offsets = [0, 60], sizes = [64, 6], strides = [1, 1]} : vector<128x72xf32> to vector<64x6xf32>
    %cst_24 = arith.constant dense<0.000000e+00> : vector<64x64xf32>
    %54 = tpu.matmul %51, %52, %cst_24 {dimension_numbers = #tpu.dot_dimension_numbers<[1], [1], [0], [0], [0, 0, 1, 0], [], []>} : vector<64x6xf32>, vector<64x6xf32>, vector<64x64xf32> -> vector<64x64xf32>
    %cst_25 = arith.constant dense<0xFF800000> : vector<64xf32>
    %55 = vector.multi_reduction <maximumf>, %54, %cst_25 [1] : vector<64x64xf32> to vector<64xf32>
    %56 = vector.shape_cast %55 : vector<64xf32> to vector<64x1xf32>
    %57 = vector.broadcast %56 : vector<64x1xf32> to vector<64x64xf32>
    %58 = arith.subf %54, %57 : vector<64x64xf32>
    %59 = math.exp %58 : vector<64x64xf32>
    %cst_26 = arith.constant dense<0.000000e+00> : vector<64xf32>
    %60 = vector.multi_reduction <add>, %59, %cst_26 [1] : vector<64x64xf32> to vector<64xf32>
    %61 = vector.shape_cast %60 : vector<64xf32> to vector<64x1xf32>
    %cst_27 = arith.constant 1.000000e+00 : f32
    %62 = vector.broadcast %cst_27 : f32 to vector<64x1xf32>
    %63 = arith.divf %62, %61 : vector<64x1xf32>
    %64 = vector.broadcast %63 : vector<64x1xf32> to vector<64x64xf32>
    %65 = arith.mulf %59, %64 : vector<64x64xf32>
    %cst_28 = arith.constant dense<0.000000e+00> : vector<64x6xf32>
    %66 = tpu.matmul %65, %53, %cst_28 {dimension_numbers = #tpu.dot_dimension_numbers<[1], [0], [0], [1], [0, 0, 1, 1], [], []>} : vector<64x64xf32>, vector<64x6xf32>, vector<64x6xf32> -> vector<64x6xf32>
    %c0_29 = arith.constant 0 : index
    %c12 = arith.constant 12 : index
    %67 = vector.load %arg18[%c0_29, %c12] : memref<128x24xf32, #tpu.memory_space<vmem>>, vector<64x6xf32>
    tpu.vector_store %arg18[%c0_29, %c12], %66 {strides = array<i32>} : memref<128x24xf32, #tpu.memory_space<vmem>>, vector<64x6xf32>,
    %68 = vector.extract_strided_slice %10 {offsets = [0, 18], sizes = [64, 6], strides = [1, 1]} : vector<128x72xf32> to vector<64x6xf32>
    %cst_30 = arith.constant 0.408248305 : f32
    %69 = vector.broadcast %cst_30 : f32 to vector<64x6xf32>
    %70 = arith.mulf %68, %69 : vector<64x6xf32>
    %71 = vector.extract_strided_slice %10 {offsets = [0, 42], sizes = [64, 6], strides = [1, 1]} : vector<128x72xf32> to vector<64x6xf32>
    %72 = vector.extract_strided_slice %10 {offsets = [0, 66], sizes = [64, 6], strides = [1, 1]} : vector<128x72xf32> to vector<64x6xf32>
    %cst_31 = arith.constant dense<0.000000e+00> : vector<64x64xf32>
    %73 = tpu.matmul %70, %71, %cst_31 {dimension_numbers = #tpu.dot_dimension_numbers<[1], [1], [0], [0], [0, 0, 1, 0], [], []>} : vector<64x6xf32>, vector<64x6xf32>, vector<64x64xf32> -> vector<64x64xf32>
    %cst_32 = arith.constant dense<0xFF800000> : vector<64xf32>
    %74 = vector.multi_reduction <maximumf>, %73, %cst_32 [1] : vector<64x64xf32> to vector<64xf32>
    %75 = vector.shape_cast %74 : vector<64xf32> to vector<64x1xf32>
    %76 = vector.broadcast %75 : vector<64x1xf32> to vector<64x64xf32>
    %77 = arith.subf %73, %76 : vector<64x64xf32>
    %78 = math.exp %77 : vector<64x64xf32>
    %cst_33 = arith.constant dense<0.000000e+00> : vector<64xf32>
    %79 = vector.multi_reduction <add>, %78, %cst_33 [1] : vector<64x64xf32> to vector<64xf32>
    %80 = vector.shape_cast %79 : vector<64xf32> to vector<64x1xf32>
    %cst_34 = arith.constant 1.000000e+00 : f32
    %81 = vector.broadcast %cst_34 : f32 to vector<64x1xf32>
    %82 = arith.divf %81, %80 : vector<64x1xf32>
    %83 = vector.broadcast %82 : vector<64x1xf32> to vector<64x64xf32>
    %84 = arith.mulf %78, %83 : vector<64x64xf32>
    %cst_35 = arith.constant dense<0.000000e+00> : vector<64x6xf32>
    %85 = tpu.matmul %84, %72, %cst_35 {dimension_numbers = #tpu.dot_dimension_numbers<[1], [0], [0], [1], [0, 0, 1, 1], [], []>} : vector<64x64xf32>, vector<64x6xf32>, vector<64x6xf32> -> vector<64x6xf32>
    %c0_36 = arith.constant 0 : index
    %c18 = arith.constant 18 : index
    %86 = vector.load %arg18[%c0_36, %c18] : memref<128x24xf32, #tpu.memory_space<vmem>>, vector<64x6xf32>
    tpu.vector_store %arg18[%c0_36, %c18], %85 {strides = array<i32>} : memref<128x24xf32, #tpu.memory_space<vmem>>, vector<64x6xf32>,
    %87 = vector.extract_strided_slice %10 {offsets = [64, 0], sizes = [64, 6], strides = [1, 1]} : vector<128x72xf32> to vector<64x6xf32>
    %cst_37 = arith.constant 0.408248305 : f32
    %88 = vector.broadcast %cst_37 : f32 to vector<64x6xf32>
    %89 = arith.mulf %87, %88 : vector<64x6xf32>
    %90 = vector.extract_strided_slice %10 {offsets = [64, 24], sizes = [64, 6], strides = [1, 1]} : vector<128x72xf32> to vector<64x6xf32>
    %91 = vector.extract_strided_slice %10 {offsets = [64, 48], sizes = [64, 6], strides = [1, 1]} : vector<128x72xf32> to vector<64x6xf32>
    %cst_38 = arith.constant dense<0.000000e+00> : vector<64x64xf32>
    %92 = tpu.matmul %89, %90, %cst_38 {dimension_numbers = #tpu.dot_dimension_numbers<[1], [1], [0], [0], [0, 0, 1, 0], [], []>} : vector<64x6xf32>, vector<64x6xf32>, vector<64x64xf32> -> vector<64x64xf32>
    %cst_39 = arith.constant dense<0xFF800000> : vector<64xf32>
    %93 = vector.multi_reduction <maximumf>, %92, %cst_39 [1] : vector<64x64xf32> to vector<64xf32>
    %94 = vector.shape_cast %93 : vector<64xf32> to vector<64x1xf32>
    %95 = vector.broadcast %94 : vector<64x1xf32> to vector<64x64xf32>
    %96 = arith.subf %92, %95 : vector<64x64xf32>
    %97 = math.exp %96 : vector<64x64xf32>
    %cst_40 = arith.constant dense<0.000000e+00> : vector<64xf32>
    %98 = vector.multi_reduction <add>, %97, %cst_40 [1] : vector<64x64xf32> to vector<64xf32>
    %99 = vector.shape_cast %98 : vector<64xf32> to vector<64x1xf32>
    %cst_41 = arith.constant 1.000000e+00 : f32
    %100 = vector.broadcast %cst_41 : f32 to vector<64x1xf32>
    %101 = arith.divf %100, %99 : vector<64x1xf32>
    %102 = vector.broadcast %101 : vector<64x1xf32> to vector<64x64xf32>
    %103 = arith.mulf %97, %102 : vector<64x64xf32>
    %cst_42 = arith.constant dense<0.000000e+00> : vector<64x6xf32>
    %104 = tpu.matmul %103, %91, %cst_42 {dimension_numbers = #tpu.dot_dimension_numbers<[1], [0], [0], [1], [0, 0, 1, 1], [], []>} : vector<64x64xf32>, vector<64x6xf32>, vector<64x6xf32> -> vector<64x6xf32>
    %c64 = arith.constant 64 : index
    %c0_43 = arith.constant 0 : index
    %105 = vector.load %arg18[%c64, %c0_43] : memref<128x24xf32, #tpu.memory_space<vmem>>, vector<64x6xf32>
    tpu.vector_store %arg18[%c64, %c0_43], %104 {strides = array<i32>} : memref<128x24xf32, #tpu.memory_space<vmem>>, vector<64x6xf32>,
    %106 = vector.extract_strided_slice %10 {offsets = [64, 6], sizes = [64, 6], strides = [1, 1]} : vector<128x72xf32> to vector<64x6xf32>
    %cst_44 = arith.constant 0.408248305 : f32
    %107 = vector.broadcast %cst_44 : f32 to vector<64x6xf32>
    %108 = arith.mulf %106, %107 : vector<64x6xf32>
    %109 = vector.extract_strided_slice %10 {offsets = [64, 30], sizes = [64, 6], strides = [1, 1]} : vector<128x72xf32> to vector<64x6xf32>
    %110 = vector.extract_strided_slice %10 {offsets = [64, 54], sizes = [64, 6], strides = [1, 1]} : vector<128x72xf32> to vector<64x6xf32>
    %cst_45 = arith.constant dense<0.000000e+00> : vector<64x64xf32>
    %111 = tpu.matmul %108, %109, %cst_45 {dimension_numbers = #tpu.dot_dimension_numbers<[1], [1], [0], [0], [0, 0, 1, 0], [], []>} : vector<64x6xf32>, vector<64x6xf32>, vector<64x64xf32> -> vector<64x64xf32>
    %cst_46 = arith.constant dense<0xFF800000> : vector<64xf32>
    %112 = vector.multi_reduction <maximumf>, %111, %cst_46 [1] : vector<64x64xf32> to vector<64xf32>
    %113 = vector.shape_cast %112 : vector<64xf32> to vector<64x1xf32>
    %114 = vector.broadcast %113 : vector<64x1xf32> to vector<64x64xf32>
    %115 = arith.subf %111, %114 : vector<64x64xf32>
    %116 = math.exp %115 : vector<64x64xf32>
    %cst_47 = arith.constant dense<0.000000e+00> : vector<64xf32>
    %117 = vector.multi_reduction <add>, %116, %cst_47 [1] : vector<64x64xf32> to vector<64xf32>
    %118 = vector.shape_cast %117 : vector<64xf32> to vector<64x1xf32>
    %cst_48 = arith.constant 1.000000e+00 : f32
    %119 = vector.broadcast %cst_48 : f32 to vector<64x1xf32>
    %120 = arith.divf %119, %118 : vector<64x1xf32>
    %121 = vector.broadcast %120 : vector<64x1xf32> to vector<64x64xf32>
    %122 = arith.mulf %116, %121 : vector<64x64xf32>
    %cst_49 = arith.constant dense<0.000000e+00> : vector<64x6xf32>
    %123 = tpu.matmul %122, %110, %cst_49 {dimension_numbers = #tpu.dot_dimension_numbers<[1], [0], [0], [1], [0, 0, 1, 1], [], []>} : vector<64x64xf32>, vector<64x6xf32>, vector<64x6xf32> -> vector<64x6xf32>
    %c64_50 = arith.constant 64 : index
    %c6_51 = arith.constant 6 : index
    %124 = vector.load %arg18[%c64_50, %c6_51] : memref<128x24xf32, #tpu.memory_space<vmem>>, vector<64x6xf32>
    tpu.vector_store %arg18[%c64_50, %c6_51], %123 {strides = array<i32>} : memref<128x24xf32, #tpu.memory_space<vmem>>, vector<64x6xf32>,
    %125 = vector.extract_strided_slice %10 {offsets = [64, 12], sizes = [64, 6], strides = [1, 1]} : vector<128x72xf32> to vector<64x6xf32>
    %cst_52 = arith.constant 0.408248305 : f32
    %126 = vector.broadcast %cst_52 : f32 to vector<64x6xf32>
    %127 = arith.mulf %125, %126 : vector<64x6xf32>
    %128 = vector.extract_strided_slice %10 {offsets = [64, 36], sizes = [64, 6], strides = [1, 1]} : vector<128x72xf32> to vector<64x6xf32>
    %129 = vector.extract_strided_slice %10 {offsets = [64, 60], sizes = [64, 6], strides = [1, 1]} : vector<128x72xf32> to vector<64x6xf32>
    %cst_53 = arith.constant dense<0.000000e+00> : vector<64x64xf32>
    %130 = tpu.matmul %127, %128, %cst_53 {dimension_numbers = #tpu.dot_dimension_numbers<[1], [1], [0], [0], [0, 0, 1, 0], [], []>} : vector<64x6xf32>, vector<64x6xf32>, vector<64x64xf32> -> vector<64x64xf32>
    %cst_54 = arith.constant dense<0xFF800000> : vector<64xf32>
    %131 = vector.multi_reduction <maximumf>, %130, %cst_54 [1] : vector<64x64xf32> to vector<64xf32>
    %132 = vector.shape_cast %131 : vector<64xf32> to vector<64x1xf32>
    %133 = vector.broadcast %132 : vector<64x1xf32> to vector<64x64xf32>
    %134 = arith.subf %130, %133 : vector<64x64xf32>
    %135 = math.exp %134 : vector<64x64xf32>
    %cst_55 = arith.constant dense<0.000000e+00> : vector<64xf32>
    %136 = vector.multi_reduction <add>, %135, %cst_55 [1] : vector<64x64xf32> to vector<64xf32>
    %137 = vector.shape_cast %136 : vector<64xf32> to vector<64x1xf32>
    %cst_56 = arith.constant 1.000000e+00 : f32
    %138 = vector.broadcast %cst_56 : f32 to vector<64x1xf32>
    %139 = arith.divf %138, %137 : vector<64x1xf32>
    %140 = vector.broadcast %139 : vector<64x1xf32> to vector<64x64xf32>
    %141 = arith.mulf %135, %140 : vector<64x64xf32>
    %cst_57 = arith.constant dense<0.000000e+00> : vector<64x6xf32>
    %142 = tpu.matmul %141, %129, %cst_57 {dimension_numbers = #tpu.dot_dimension_numbers<[1], [0], [0], [1], [0, 0, 1, 1], [], []>} : vector<64x64xf32>, vector<64x6xf32>, vector<64x6xf32> -> vector<64x6xf32>
    %c64_58 = arith.constant 64 : index
    %c12_59 = arith.constant 12 : index
    %143 = vector.load %arg18[%c64_58, %c12_59] : memref<128x24xf32, #tpu.memory_space<vmem>>, vector<64x6xf32>
    tpu.vector_store %arg18[%c64_58, %c12_59], %142 {strides = array<i32>} : memref<128x24xf32, #tpu.memory_space<vmem>>, vector<64x6xf32>,
    %144 = vector.extract_strided_slice %10 {offsets = [64, 18], sizes = [64, 6], strides = [1, 1]} : vector<128x72xf32> to vector<64x6xf32>
    %cst_60 = arith.constant 0.408248305 : f32
    %145 = vector.broadcast %cst_60 : f32 to vector<64x6xf32>
    %146 = arith.mulf %144, %145 : vector<64x6xf32>
    %147 = vector.extract_strided_slice %10 {offsets = [64, 42], sizes = [64, 6], strides = [1, 1]} : vector<128x72xf32> to vector<64x6xf32>
    %148 = vector.extract_strided_slice %10 {offsets = [64, 66], sizes = [64, 6], strides = [1, 1]} : vector<128x72xf32> to vector<64x6xf32>
    %cst_61 = arith.constant dense<0.000000e+00> : vector<64x64xf32>
    %149 = tpu.matmul %146, %147, %cst_61 {dimension_numbers = #tpu.dot_dimension_numbers<[1], [1], [0], [0], [0, 0, 1, 0], [], []>} : vector<64x6xf32>, vector<64x6xf32>, vector<64x64xf32> -> vector<64x64xf32>
    %cst_62 = arith.constant dense<0xFF800000> : vector<64xf32>
    %150 = vector.multi_reduction <maximumf>, %149, %cst_62 [1] : vector<64x64xf32> to vector<64xf32>
    %151 = vector.shape_cast %150 : vector<64xf32> to vector<64x1xf32>
    %152 = vector.broadcast %151 : vector<64x1xf32> to vector<64x64xf32>
    %153 = arith.subf %149, %152 : vector<64x64xf32>
    %154 = math.exp %153 : vector<64x64xf32>
    %cst_63 = arith.constant dense<0.000000e+00> : vector<64xf32>
    %155 = vector.multi_reduction <add>, %154, %cst_63 [1] : vector<64x64xf32> to vector<64xf32>
    %156 = vector.shape_cast %155 : vector<64xf32> to vector<64x1xf32>
    %cst_64 = arith.constant 1.000000e+00 : f32
    %157 = vector.broadcast %cst_64 : f32 to vector<64x1xf32>
    %158 = arith.divf %157, %156 : vector<64x1xf32>
    %159 = vector.broadcast %158 : vector<64x1xf32> to vector<64x64xf32>
    %160 = arith.mulf %154, %159 : vector<64x64xf32>
    %cst_65 = arith.constant dense<0.000000e+00> : vector<64x6xf32>
    %161 = tpu.matmul %160, %148, %cst_65 {dimension_numbers = #tpu.dot_dimension_numbers<[1], [0], [0], [1], [0, 0, 1, 1], [], []>} : vector<64x64xf32>, vector<64x6xf32>, vector<64x6xf32> -> vector<64x6xf32>
    %c64_66 = arith.constant 64 : index
    %c18_67 = arith.constant 18 : index
    %162 = vector.load %arg18[%c64_66, %c18_67] : memref<128x24xf32, #tpu.memory_space<vmem>>, vector<64x6xf32>
    tpu.vector_store %arg18[%c64_66, %c18_67], %161 {strides = array<i32>} : memref<128x24xf32, #tpu.memory_space<vmem>>, vector<64x6xf32>,
    %c0_68 = arith.constant 0 : index
    %c0_69 = arith.constant 0 : index
    %163 = vector.load %arg18[%c0_68, %c0_69] : memref<128x24xf32, #tpu.memory_space<vmem>>, vector<128x24xf32>
    %c0_70 = arith.constant 0 : index
    %c0_71 = arith.constant 0 : index
    %c0_72 = arith.constant 0 : index
    %164 = vector.load %arg4[%c0_70, %c0_71, %c0_72] : memref<1x24x24xf32, #tpu.memory_space<vmem>>, vector<1x24x24xf32>
    %165 = vector.shape_cast %164 : vector<1x24x24xf32> to vector<24x24xf32>
    %cst_73 = arith.constant dense<0.000000e+00> : vector<128x24xf32>
    %166 = tpu.matmul %163, %165, %cst_73 {dimension_numbers = #tpu.dot_dimension_numbers<[1], [0], [0], [1], [0, 0, 1, 1], [], []>} : vector<128x24xf32>, vector<24x24xf32>, vector<128x24xf32> -> vector<128x24xf32>
    %c0_74 = arith.constant 0 : index
    %c0_75 = arith.constant 0 : index
    %c0_76 = arith.constant 0 : index
    %167 = vector.load %arg5[%c0_74, %c0_75, %c0_76] : memref<1x1x24xf32, #tpu.memory_space<vmem>>, vector<1x1x24xf32>
    %168 = vector.shape_cast %167 : vector<1x1x24xf32> to vector<1x24xf32>
    %169 = vector.broadcast %168 : vector<1x24xf32> to vector<128x24xf32>
    %170 = arith.addf %166, %169 : vector<128x24xf32>
    %171 = arith.addf %3, %170 : vector<128x24xf32>
    %c0_77 = arith.constant 0 : index
    %c0_78 = arith.constant 0 : index
    %c0_79 = arith.constant 0 : index
    %172 = vector.load %arg6[%c0_77, %c0_78, %c0_79] : memref<1x1x24xf32, #tpu.memory_space<vmem>>, vector<1x1x24xf32>
    %173 = vector.shape_cast %172 : vector<1x1x24xf32> to vector<1x24xf32>
    %c0_80 = arith.constant 0 : index
    %c0_81 = arith.constant 0 : index
    %c0_82 = arith.constant 0 : index
    %174 = vector.load %arg7[%c0_80, %c0_81, %c0_82] : memref<1x1x24xf32, #tpu.memory_space<vmem>>, vector<1x1x24xf32>
    %175 = vector.shape_cast %174 : vector<1x1x24xf32> to vector<1x24xf32>
    %cst_83 = arith.constant dense<0.000000e+00> : vector<128xf32>
    %176 = vector.multi_reduction <add>, %171, %cst_83 [1] : vector<128x24xf32> to vector<128xf32>
    %177 = vector.shape_cast %176 : vector<128xf32> to vector<128x1xf32>
    %cst_84 = arith.constant 2.400000e+01 : f32
    %178 = vector.broadcast %cst_84 : f32 to vector<128x1xf32>
    %179 = arith.divf %177, %178 : vector<128x1xf32>
    %180 = vector.broadcast %179 : vector<128x1xf32> to vector<128x24xf32>
    %181 = arith.subf %171, %180 : vector<128x24xf32>
    %182 = arith.mulf %181, %181 : vector<128x24xf32>
    %cst_85 = arith.constant dense<0.000000e+00> : vector<128xf32>
    %183 = vector.multi_reduction <add>, %182, %cst_85 [1] : vector<128x24xf32> to vector<128xf32>
    %184 = vector.shape_cast %183 : vector<128xf32> to vector<128x1xf32>
    %cst_86 = arith.constant 2.400000e+01 : f32
    %185 = vector.broadcast %cst_86 : f32 to vector<128x1xf32>
    %186 = arith.divf %184, %185 : vector<128x1xf32>
    %187 = vector.broadcast %179 : vector<128x1xf32> to vector<128x24xf32>
    %188 = arith.subf %171, %187 : vector<128x24xf32>
    %cst_87 = arith.constant 9.99999974E-6 : f32
    %189 = vector.broadcast %cst_87 : f32 to vector<128x1xf32>
    %190 = arith.addf %186, %189 : vector<128x1xf32>
    %191 = math.rsqrt %190 : vector<128x1xf32>
    %192 = vector.broadcast %191 : vector<128x1xf32> to vector<128x24xf32>
    %193 = arith.mulf %188, %192 : vector<128x24xf32>
    %194 = vector.broadcast %173 : vector<1x24xf32> to vector<128x24xf32>
    %195 = arith.mulf %193, %194 : vector<128x24xf32>
    %196 = vector.broadcast %175 : vector<1x24xf32> to vector<128x24xf32>
    %197 = arith.addf %195, %196 : vector<128x24xf32>
    %c0_88 = arith.constant 0 : index
    %c0_89 = arith.constant 0 : index
    %c0_90 = arith.constant 0 : index
    %198 = vector.load %arg8[%c0_88, %c0_89, %c0_90] : memref<1x24x2048xf32, #tpu.memory_space<vmem>>, vector<1x24x2048xf32>
    %199 = vector.shape_cast %198 : vector<1x24x2048xf32> to vector<24x2048xf32>
    %cst_91 = arith.constant dense<0.000000e+00> : vector<128x2048xf32>
    %200 = tpu.matmul %197, %199, %cst_91 {dimension_numbers = #tpu.dot_dimension_numbers<[1], [0], [0], [1], [0, 0, 1, 1], [], []>} : vector<128x24xf32>, vector<24x2048xf32>, vector<128x2048xf32> -> vector<128x2048xf32>
    %c0_92 = arith.constant 0 : index
    %c0_93 = arith.constant 0 : index
    %c0_94 = arith.constant 0 : index
    %201 = vector.load %arg9[%c0_92, %c0_93, %c0_94] : memref<1x1x2048xf32, #tpu.memory_space<vmem>>, vector<1x1x2048xf32>
    %202 = vector.shape_cast %201 : vector<1x1x2048xf32> to vector<1x2048xf32>
    %203 = vector.broadcast %202 : vector<1x2048xf32> to vector<128x2048xf32>
    %204 = arith.addf %200, %203 : vector<128x2048xf32>
    %cst_95 = arith.constant 0.000000e+00 : f32
    %205 = vector.broadcast %cst_95 : f32 to vector<128x2048xf32>
    %206 = arith.maximumf %204, %205 : vector<128x2048xf32>
    %c0_96 = arith.constant 0 : index
    %c0_97 = arith.constant 0 : index
    %c0_98 = arith.constant 0 : index
    %207 = vector.load %arg10[%c0_96, %c0_97, %c0_98] : memref<1x2048x24xf32, #tpu.memory_space<vmem>>, vector<1x2048x24xf32>
    %208 = vector.shape_cast %207 : vector<1x2048x24xf32> to vector<2048x24xf32>
    %cst_99 = arith.constant dense<0.000000e+00> : vector<128x24xf32>
    %209 = tpu.matmul %206, %208, %cst_99 {dimension_numbers = #tpu.dot_dimension_numbers<[1], [0], [0], [1], [0, 0, 1, 1], [], []>} : vector<128x2048xf32>, vector<2048x24xf32>, vector<128x24xf32> -> vector<128x24xf32>
    %c0_100 = arith.constant 0 : index
    %c0_101 = arith.constant 0 : index
    %c0_102 = arith.constant 0 : index
    %210 = vector.load %arg11[%c0_100, %c0_101, %c0_102] : memref<1x1x24xf32, #tpu.memory_space<vmem>>, vector<1x1x24xf32>
    %211 = vector.shape_cast %210 : vector<1x1x24xf32> to vector<1x24xf32>
    %212 = vector.broadcast %211 : vector<1x24xf32> to vector<128x24xf32>
    %213 = arith.addf %209, %212 : vector<128x24xf32>
    %214 = arith.addf %197, %213 : vector<128x24xf32>
    %c0_103 = arith.constant 0 : index
    %c0_104 = arith.constant 0 : index
    %c0_105 = arith.constant 0 : index
    %215 = vector.load %arg12[%c0_103, %c0_104, %c0_105] : memref<1x1x24xf32, #tpu.memory_space<vmem>>, vector<1x1x24xf32>
    %216 = vector.shape_cast %215 : vector<1x1x24xf32> to vector<1x24xf32>
    %c0_106 = arith.constant 0 : index
    %c0_107 = arith.constant 0 : index
    %c0_108 = arith.constant 0 : index
    %217 = vector.load %arg13[%c0_106, %c0_107, %c0_108] : memref<1x1x24xf32, #tpu.memory_space<vmem>>, vector<1x1x24xf32>
    %218 = vector.shape_cast %217 : vector<1x1x24xf32> to vector<1x24xf32>
    %cst_109 = arith.constant dense<0.000000e+00> : vector<128xf32>
    %219 = vector.multi_reduction <add>, %214, %cst_109 [1] : vector<128x24xf32> to vector<128xf32>
    %220 = vector.shape_cast %219 : vector<128xf32> to vector<128x1xf32>
    %cst_110 = arith.constant 2.400000e+01 : f32
    %221 = vector.broadcast %cst_110 : f32 to vector<128x1xf32>
    %222 = arith.divf %220, %221 : vector<128x1xf32>
    %223 = vector.broadcast %222 : vector<128x1xf32> to vector<128x24xf32>
    %224 = arith.subf %214, %223 : vector<128x24xf32>
    %225 = arith.mulf %224, %224 : vector<128x24xf32>
    %cst_111 = arith.constant dense<0.000000e+00> : vector<128xf32>
    %226 = vector.multi_reduction <add>, %225, %cst_111 [1] : vector<128x24xf32> to vector<128xf32>
    %227 = vector.shape_cast %226 : vector<128xf32> to vector<128x1xf32>
    %cst_112 = arith.constant 2.400000e+01 : f32
    %228 = vector.broadcast %cst_112 : f32 to vector<128x1xf32>
    %229 = arith.divf %227, %228 : vector<128x1xf32>
    %230 = vector.broadcast %222 : vector<128x1xf32> to vector<128x24xf32>
    %231 = arith.subf %214, %230 : vector<128x24xf32>
    %cst_113 = arith.constant 9.99999974E-6 : f32
    %232 = vector.broadcast %cst_113 : f32 to vector<128x1xf32>
    %233 = arith.addf %229, %232 : vector<128x1xf32>
    %234 = math.rsqrt %233 : vector<128x1xf32>
    %235 = vector.broadcast %234 : vector<128x1xf32> to vector<128x24xf32>
    %236 = arith.mulf %231, %235 : vector<128x24xf32>
    %237 = vector.broadcast %216 : vector<1x24xf32> to vector<128x24xf32>
    %238 = arith.mulf %236, %237 : vector<128x24xf32>
    %239 = vector.broadcast %218 : vector<1x24xf32> to vector<128x24xf32>
    %240 = arith.addf %238, %239 : vector<128x24xf32>
    %c0_114 = arith.constant 0 : index
    %c0_115 = arith.constant 0 : index
    %241 = vector.load %arg17[%c0_114, %c0_115] : memref<128x24xf32, #tpu.memory_space<vmem>>, vector<128x24xf32>
    tpu.vector_store %arg17[%c0_114, %c0_115], %240 {strides = array<i32>} : memref<128x24xf32, #tpu.memory_space<vmem>>, vector<128x24xf32>,
    %c1_i32 = arith.constant 1 : i32
    %242 = arith.cmpi eq, %arg0, %c1_i32 : i32
    %243 = arith.extui %242 : i1 to i32
    %c0_i32_116 = arith.constant 0 : i32
    %244 = arith.cmpi ne, %243, %c0_i32_116 : i32
    scf.if %244 {
      %245 = vector.extract_strided_slice %240 {offsets = [32, 0], sizes = [1, 24], strides = [1, 1]} : vector<128x24xf32> to vector<1x24xf32>
      %246 = vector.extract_strided_slice %240 {offsets = [96, 0], sizes = [1, 24], strides = [1, 1]} : vector<128x24xf32> to vector<1x24xf32>
      %247 = tpu.concatenate %245, %246 in 0 : vector<1x24xf32>, vector<1x24xf32> -> vector<2x24xf32>
      %c0_117 = arith.constant 0 : index
      %c0_118 = arith.constant 0 : index
      %248 = vector.load %arg14[%c0_117, %c0_118] : memref<24x4xf32, #tpu.memory_space<vmem>>, vector<24x4xf32>
      %cst_119 = arith.constant dense<0.000000e+00> : vector<2x4xf32>
      %249 = tpu.matmul %247, %248, %cst_119 {dimension_numbers = #tpu.dot_dimension_numbers<[1], [0], [0], [1], [0, 0, 1, 1], [], []>} : vector<2x24xf32>, vector<24x4xf32>, vector<2x4xf32> -> vector<2x4xf32>
      %c0_120 = arith.constant 0 : index
      %c0_121 = arith.constant 0 : index
      %250 = vector.load %arg15[%c0_120, %c0_121] : memref<1x4xf32, #tpu.memory_space<vmem>>, vector<1x4xf32>
      %251 = vector.broadcast %250 : vector<1x4xf32> to vector<2x4xf32>
      %252 = arith.addf %249, %251 : vector<2x4xf32>
      %c0_122 = arith.constant 0 : index
      %c0_123 = arith.constant 0 : index
      %253 = vector.load %arg16[%c0_122, %c0_123] : memref<2x4xf32, #tpu.memory_space<vmem>>, vector<2x4xf32>
      tpu.vector_store %arg16[%c0_122, %c0_123], %252 {strides = array<i32>} : memref<2x4xf32, #tpu.memory_space<vmem>>, vector<2x4xf32>,
    } else {
    }
    return
  }
  func.func @transform_0(%arg0: i32) -> (i32, i32) {
    %c0_i32 = arith.constant 0 : i32
    %c0_i32_0 = arith.constant 0 : i32
    %c0_i32_1 = arith.constant 0 : i32
    return %c0_i32, %c0_i32_0 : i32, i32
  }
  func.func @transform_1(%arg0: i32) -> (i32, i32, i32) {
    %c0_i32 = arith.constant 0 : i32
    %c0_i32_0 = arith.constant 0 : i32
    %c0_i32_1 = arith.constant 0 : i32
    return %arg0, %c0_i32, %c0_i32_0 : i32, i32, i32
  }
  func.func @transform_2(%arg0: i32) -> (i32, i32, i32) {
    %c0_i32 = arith.constant 0 : i32
    %c0_i32_0 = arith.constant 0 : i32
    %c0_i32_1 = arith.constant 0 : i32
    return %arg0, %c0_i32, %c0_i32_0 : i32, i32, i32
  }
  func.func @transform_3(%arg0: i32) -> (i32, i32, i32) {
    %c0_i32 = arith.constant 0 : i32
    %c0_i32_0 = arith.constant 0 : i32
    %c0_i32_1 = arith.constant 0 : i32
    return %arg0, %c0_i32, %c0_i32_0 : i32, i32, i32
  }
  func.func @transform_4(%arg0: i32) -> (i32, i32, i32) {
    %c0_i32 = arith.constant 0 : i32
    %c0_i32_0 = arith.constant 0 : i32
    %c0_i32_1 = arith.constant 0 : i32
    return %arg0, %c0_i32, %c0_i32_0 : i32, i32, i32
  }
  func.func @transform_5(%arg0: i32) -> (i32, i32, i32) {
    %c0_i32 = arith.constant 0 : i32
    %c0_i32_0 = arith.constant 0 : i32
    %c0_i32_1 = arith.constant 0 : i32
    return %arg0, %c0_i32, %c0_i32_0 : i32, i32, i32
  }
  func.func @transform_6(%arg0: i32) -> (i32, i32, i32) {
    %c0_i32 = arith.constant 0 : i32
    %c0_i32_0 = arith.constant 0 : i32
    %c0_i32_1 = arith.constant 0 : i32
    return %arg0, %c0_i32, %c0_i32_0 : i32, i32, i32
  }
  func.func @transform_7(%arg0: i32) -> (i32, i32, i32) {
    %c0_i32 = arith.constant 0 : i32
    %c0_i32_0 = arith.constant 0 : i32
    %c0_i32_1 = arith.constant 0 : i32
    return %arg0, %c0_i32, %c0_i32_0 : i32, i32, i32
  }
  func.func @transform_8(%arg0: i32) -> (i32, i32, i32) {
    %c0_i32 = arith.constant 0 : i32
    %c0_i32_0 = arith.constant 0 : i32
    %c0_i32_1 = arith.constant 0 : i32
    return %arg0, %c0_i32, %c0_i32_0 : i32, i32, i32
  }
  func.func @transform_9(%arg0: i32) -> (i32, i32, i32) {
    %c0_i32 = arith.constant 0 : i32
    %c0_i32_0 = arith.constant 0 : i32
    %c0_i32_1 = arith.constant 0 : i32
    return %arg0, %c0_i32, %c0_i32_0 : i32, i32, i32
  }
  func.func @transform_10(%arg0: i32) -> (i32, i32, i32) {
    %c0_i32 = arith.constant 0 : i32
    %c0_i32_0 = arith.constant 0 : i32
    %c0_i32_1 = arith.constant 0 : i32
    return %arg0, %c0_i32, %c0_i32_0 : i32, i32, i32
  }
  func.func @transform_11(%arg0: i32) -> (i32, i32, i32) {
    %c0_i32 = arith.constant 0 : i32
    %c0_i32_0 = arith.constant 0 : i32
    %c0_i32_1 = arith.constant 0 : i32
    return %arg0, %c0_i32, %c0_i32_0 : i32, i32, i32
  }
  func.func @transform_12(%arg0: i32) -> (i32, i32, i32) {
    %c0_i32 = arith.constant 0 : i32
    %c0_i32_0 = arith.constant 0 : i32
    %c0_i32_1 = arith.constant 0 : i32
    return %arg0, %c0_i32, %c0_i32_0 : i32, i32, i32
  }
  func.func @transform_13(%arg0: i32) -> (i32, i32) {
    %c0_i32 = arith.constant 0 : i32
    %c0_i32_0 = arith.constant 0 : i32
    %c0_i32_1 = arith.constant 0 : i32
    return %c0_i32, %c0_i32_0 : i32, i32
  }
  func.func @transform_14(%arg0: i32) -> (i32, i32) {
    %c0_i32 = arith.constant 0 : i32
    %c0_i32_0 = arith.constant 0 : i32
    %c0_i32_1 = arith.constant 0 : i32
    return %c0_i32, %c0_i32_0 : i32, i32
  }
  func.func @transform_15(%arg0: i32) -> (i32, i32) {
    %c0_i32 = arith.constant 0 : i32
    %c0_i32_0 = arith.constant 0 : i32
    %c0_i32_1 = arith.constant 0 : i32
    return %c0_i32, %c0_i32_0 : i32, i32
  }
}

</mosaic_0001>

<bundles_post_ra>
// kernel: forward.2
= control target key start
LH: loop header
LB: loop body
LE: loop exit
PB: predicated region body
PF: predicated region fallthrough
CT: control target
= control target key end

     0   :  { %s3199_s0 = inlined_call_operand.vmem [shape: f32[128,36], index: 0, kind: input, shape index: {}]   ;;  %s3200_s1 = inlined_call_operand.vmem [shape: f32[36,32], index: 1, kind: input, shape index: {}]   ;;  %s3201_s2 = inlined_call_operand.hbm [shape: f32[1,32], index: 2, kind: input, shape index: {}]   ;;  %s3202_s3 = inlined_call_operand.vmem [shape: f32[32,8], index: 3, kind: input, shape index: {}]   ;;  %s3203_s4 = inlined_call_operand.hbm [shape: f32[1,8], index: 4, kind: input, shape index: {}]   ;;  %s3204_s5 = inlined_call_operand.vmem [shape: f32[128,100], index: 5, kind: input, shape index: {}]   ;;  %s3205_s6 = inlined_call_operand.vmem [shape: f32[100,32], index: 6, kind: input, shape index: {}]   ;;  %s3206_s7 = inlined_call_operand.hbm [shape: f32[1,32], index: 7, kind: input, shape index: {}]   ;;  %s3207_s8 = inlined_call_operand.vmem [shape: f32[32,8], index: 8, kind: input, shape index: {}]   ;;  %s3208_s9 = inlined_call_operand.hbm [shape: f32[1,8], index: 9, kind: input, shape index: {}]   ;;  %s3209_s10 = inlined_call_operand.vmem [shape: f32[128,196], index: 10, kind: input, shape index: {}]   ;;  %s3210_s11 = inlined_call_operand.vmem [shape: f32[196,32], index: 11, kind: input, shape index: {}]   ;;  %s3211_s12 = inlined_call_operand.hbm [shape: f32[1,32], index: 12, kind: input, shape index: {}]   ;;  %s3212_s13 = inlined_call_operand.vmem [shape: f32[32,8], index: 13, kind: input, shape index: {}]   ;;  %s3213_s14 = inlined_call_operand.hbm [shape: f32[1,8], index: 14, kind: input, shape index: {}]   ;;  %s3214_s15 = inlined_call_operand.vmem [shape: f32[128,24], index: 15, kind: input, shape index: {}]   ;;  %s3215_s16 = inlined_call_operand.vmem [shape: f32[128,24], index: 16, kind: output, shape index: {}]  }
   0x1   :  { %3217 = sst [smem:[#allocation16_spill]] %s3199_s0 }
   0x2   :  { %21 = vsyncpa [#allocation3], 0 }
   0x3   :  { %22 = vsyncpa [#allocation5], 0 }
   0x4   :  { %23 = vsyncpa [#allocation8], 0 }
   0x5   :  { %24 = vsyncpa [#allocation11], 0  ;;  %s2263_s21 = smov [#allocation4]   ;;  %s2264_s23 = smov [#allocation7]  }
   0x6   :  { %s47_s22 = sshll.u32 %s2263_s21, 4  ;;  %s73_s24 = sshll.u32 %s2264_s23, 4  ;;  %s48_s22 = int_to_ptr.vmem [resolvable:$true] %s47_s22  ;;  %s74_s24 = int_to_ptr.vmem [resolvable:$true] %s73_s24 }
   0x7   :  { %s2143_s25 = scalar_lea.vmem %s48_s22, 16  ;;  %s2147_s26 = scalar_lea.vmem %s48_s22, 32 }
   0x8   :  { %p2144_p0 = scmp.ne.s32.totalorder %s48_s22, %s2143_s25  ;;  %p2148_p1 = scmp.lt.s32.totalorder %s48_s22, %s48_s22 }
   0x9   :  { %p2149_p2 = scmp.lt.s32.totalorder %s2147_s26, %s2143_s25 }
   0xb   :  { %p2150_p3 = por %p2149_p2, %p2148_p1 }
   0xd   :  { %p2151_p4 = pnand %p2150_p3, %p2144_p0 }
   0xf   :  { %2154 = shalt.err (!%p2151_p4)
}
  0x10   :  { %50 = dma.hbm_to_vmem [thread:$0]  %s3203_s4, 16, %s48_s22, [#allocation5]  }
  0x11   :  { %s2163_s29 = scalar_lea.vmem %s74_s24, 16  ;;  %s2167_s30 = scalar_lea.vmem %s74_s24, 32 }
  0x12   :  { %p2164_p5 = scmp.ne.s32.totalorder %s74_s24, %s2163_s29  ;;  %p2168_p6 = scmp.lt.s32.totalorder %s74_s24, %s74_s24 }
  0x13   :  { %p2169_p7 = scmp.lt.s32.totalorder %s2167_s30, %s2163_s29 }
  0x15   :  { %p2170_p8 = por %p2169_p7, %p2168_p6 }
  0x17   :  { %p2171_p9 = pnand %p2170_p8, %p2164_p5 }
  0x19   :  { %2174 = shalt.err (!%p2171_p9)
}
  0x1a   :  { %76 = dma.hbm_to_vmem [thread:$0]  %s3208_s9, 16, %s74_s24, [#allocation8]  }
  0x1b   :  { %s2265_s18 = smov [#allocation2]   ;;  %s2266_s20 = smov [#allocation6]  }
  0x1c   :  { %s35_s19 = sshll.u32 %s2265_s18, 4  ;;  %s61_s21 = sshll.u32 %s2266_s20, 4  ;;  %s36_s19 = int_to_ptr.vmem [resolvable:$true] %s35_s19  ;;  %s62_s21 = int_to_ptr.vmem [resolvable:$true] %s61_s21 }
  0x1d   :  { %s2183_s23 = scalar_lea.vmem %s36_s19, 16  ;;  %s2187_s4 = scalar_lea.vmem %s36_s19, 32 }
  0x1e   :  { %p2184_p10 = scmp.ne.s32.totalorder %s36_s19, %s2183_s23  ;;  %p2188_p11 = scmp.lt.s32.totalorder %s36_s19, %s36_s19 }
  0x1f   :  { %p2189_p12 = scmp.lt.s32.totalorder %s2187_s4, %s2183_s23 }
  0x21   :  { %p2190_p13 = por %p2189_p12, %p2188_p11 }
  0x23   :  { %p2191_p0 = pnand %p2190_p13, %p2184_p10 }
  0x25   :  { %2194 = shalt.err (!%p2191_p0)
}
  0x26   :  { %38 = dma.hbm_to_vmem [thread:$0]  %s3201_s2, 16, %s36_s19, [#allocation3]  }
  0x27   :  { %s2203_s26 = scalar_lea.vmem %s62_s21, 16  ;;  %s2207_s9 = scalar_lea.vmem %s62_s21, 32 }
  0x28   :  { %p2204_p1 = scmp.ne.s32.totalorder %s62_s21, %s2203_s26  ;;  %p2208_p2 = scmp.lt.s32.totalorder %s62_s21, %s62_s21 }
  0x29   :  { %p2209_p3 = scmp.lt.s32.totalorder %s2207_s9, %s2203_s26 }
  0x2b   :  { %p2210_p4 = por %p2209_p3, %p2208_p2 }
  0x2d   :  { %p2211_p5 = pnand %p2210_p4, %p2204_p1 }
  0x2f   :  { %2214 = shalt.err (!%p2211_p5)
}
  0x30   :  { %64 = dma.hbm_to_vmem [thread:$0]  %s3206_s7, 16, %s62_s21, [#allocation5]  }
  0x31   :  { %s2267_s28 = smov [#allocation9]   ;;  %s2268_s30 = smov [#allocation10]  }
  0x32   :  { %s87_s29 = sshll.u32 %s2267_s28, 4  ;;  %s99_s0 = sshll.u32 %s2268_s30, 4  ;;  %s88_s29 = int_to_ptr.vmem [resolvable:$true] %s87_s29  ;;  %s100_s0 = int_to_ptr.vmem [resolvable:$true] %s99_s0 }
  0x33   :  { %s2223_s17 = scalar_lea.vmem %s88_s29, 16  ;;  %s2227_s2 = scalar_lea.vmem %s88_s29, 32 }
  0x34   :  { %p2224_p6 = scmp.ne.s32.totalorder %s88_s29, %s2223_s17  ;;  %p2228_p7 = scmp.lt.s32.totalorder %s88_s29, %s88_s29 }
  0x35   :  { %p2229_p8 = scmp.lt.s32.totalorder %s2227_s2, %s2223_s17 }
  0x37   :  { %p2230_p9 = por %p2229_p8, %p2228_p7 }
  0x39   :  { %p2231_p10 = pnand %p2230_p9, %p2224_p6 }
  0x3b   :  { %2234 = shalt.err (!%p2231_p10)
}
  0x3c   :  { %90 = dma.hbm_to_vmem [thread:$0]  %s3211_s12, 16, %s88_s29, [#allocation8]  }
  0x3d   :  { %s2243_s20 = scalar_lea.vmem %s100_s0, 16  ;;  %s2247_s7 = scalar_lea.vmem %s100_s0, 32 }
  0x3e   :  { %p2244_p11 = scmp.ne.s32.totalorder %s100_s0, %s2243_s20  ;;  %p2248_p12 = scmp.lt.s32.totalorder %s100_s0, %s100_s0 }
  0x3f   :  { %p2249_p13 = scmp.lt.s32.totalorder %s2247_s7, %s2243_s20 }
  0x41   :  { %p2250_p0 = por %p2249_p13, %p2248_p12 }
  0x43   :  { %p2251_p1 = pnand %p2250_p0, %p2244_p11 }
  0x45   :  { %2254 = shalt.err (!%p2251_p1)
}
  0x46   :  { %102 = dma.hbm_to_vmem [thread:$0]  %s3213_s14, 16, %s100_s0, [#allocation11]  }
  0x47   :  { %2255 = dma.done.wait [#allocation3], 16  }
  0x48   :  { %2256 = vsyncadd [#allocation3], 4294967280 }
  0x49   :  { %2257 = dma.done.wait [#allocation5], 32  }
  0x4a   :  { %2258 = vsyncadd [#allocation5], 4294967264 }
  0x4b   :  { %2259 = dma.done.wait [#allocation8], 32  }
  0x4c   :  { %2260 = vsyncadd [#allocation8], 4294967264 }
  0x4d   :  { %2261 = dma.done.wait [#allocation11], 16  }
  0x4e   :  { %2262 = vsyncadd [#allocation11], 4294967280  ;;  %vm200_vm0 = vcmask 1043456   ;;  %vm151_vm1 = vcmask 293888   ;;  %v143_v0 = vld [vmem:[%s3200_s1 + $0x20] sm:$0xf] }
  0x4f   :  { %v142_v1 = vld [vmem:[%s3200_s1 + $0x18] sm:$0xff]  ;;  %1938 = vmatprep.subr.msk.mxu0 %vm200_vm0, %v143_v0  ;;  %s3218_s9 = sld [smem:[#allocation16_spill]]  ;;  %v141_v3 = vld [vmem:[%s3200_s1 + $0x10] sm:$0xff]  ;;  %v140_v4 = vld [vmem:[%s3200_s1 + $0x8] sm:$0xff]  ;;  %vm606_vm2 = vcmask 818176   ;;  %v2269_v54 = vmov 0.0  }
  0x50   :  { %1939 = vmatpush3.msk.msra.mxu0 %vm200_vm0, %v143_v0  ;;  %v139_v5 = vld [vmem:[%s3200_s1] sm:$0xff]  ;;  %v597_v9 = vld [vmem:[%s3205_s6 + $0x58] sm:$0xff]  ;;  %v596_v11 = vld [vmem:[%s3205_s6 + $0x50] sm:$0xff]  ;;  %vm376_vm3 = vcmask 261120   ;;  %vm1087_vm4 = vcmask 556032   ;;  %s2271_s20 = smov 16  }
  0x51   :  { %1940 = vmatprep.subr.mxu0 %v142_v1  ;;  %v598_v7 = vld [vmem:[%s3205_s6 + $0x60] sm:$0xf]  ;;  %v595_v13 = vld [vmem:[%s3205_s6 + $0x48] sm:$0xff]  ;;  %v368_v16 = vld [vmem:[%s3202_s3 + $0x18] sm:$0xff]  ;;  %vm1632_vm5 = vcmask 64512   ;;  %vm1649_vm6 = vcmask 130048  }
  0x52   :  { %1941 = vmatpush3.msra.mxu0 %v142_v1  ;;  %v594_v15 = vld [vmem:[%s3205_s6 + $0x40] sm:$0xff]  ;;  %1972 = vmatprep.subr.mxu1 %v368_v16  ;;  %v593_v18 = vld [vmem:[%s3205_s6 + $0x38] sm:$0xff]  ;;  %v592_v20 = vld [vmem:[%s3205_s6 + $0x30] sm:$0xff]  ;;  %vm1698_vm7 = vcmask 195584  }
  0x53   :  { %1942 = vmatprep.subr.mxu0 %v141_v3  ;;  %1973 = vmatpush3.msra.mxu1 %v368_v16  ;;  %v591_v22 = vld [vmem:[%s3205_s6 + $0x28] sm:$0xff]  ;;  %v590_v24 = vld [vmem:[%s3205_s6 + $0x20] sm:$0xff]  ;;  %v589_v26 = vld [vmem:[%s3205_s6 + $0x18] sm:$0xff] }
  0x54   :  { %1943 = vmatpush3.msra.mxu0 %v141_v3  ;;  %v588_v28 = vld [vmem:[%s3205_s6 + $0x10] sm:$0xff]  ;;  %v587_v30 = vld [vmem:[%s3205_s6 + $0x8] sm:$0xff]  ;;  %v586_v32 = vld [vmem:[%s3205_s6] sm:$0xff] }
  0x55   :  { %v123_v2 = vld [vmem:[%s3218_s9] sm:$0xff]  ;;  %1944 = vmatprep.subr.mxu0 %v140_v4  ;;  %v124_v6 = vld [vmem:[%s3218_s9 + $0x8] sm:$0xff]  ;;  %v125_v8 = vld [vmem:[%s3218_s9 + $0x10] sm:$0xff] }
  0x56   :  { %1948 = vmatprep.mubr.msk.f32.mxu0 %vm151_vm1, %v123_v2  ;;  %1945 = vmatpush3.msra.mxu0 %v140_v4  ;;  %v126_v10 = vld [vmem:[%s3218_s9 + $0x18] sm:$0xff]  ;;  %v127_v12 = vld [vmem:[%s3218_s9 + $0x20] sm:$0xff]  ;;  %v128_v14 = vld [vmem:[%s3218_s9 + $0x28] sm:$0xff] }
  0x57   :  { %1946 = vmatprep.subr.mxu0 %v139_v5  ;;  %v129_v17 = vld [vmem:[%s3218_s9 + $0x30] sm:$0xff]  ;;  %v130_v19 = vld [vmem:[%s3218_s9 + $0x38] sm:$0xff]  ;;  %v131_v21 = vld [vmem:[%s3218_s9 + $0x40] sm:$0xff] }
  0x58   :  { %1947 = vmatpush3.msra.mxu0 %v139_v5  ;;  %v132_v23 = vld [vmem:[%s3218_s9 + $0x48] sm:$0xff]  ;;  %v133_v25 = vld [vmem:[%s3218_s9 + $0x50] sm:$0xff]  ;;  %v134_v27 = vld [vmem:[%s3218_s9 + $0x58] sm:$0xff] }
  0x59   :  { %1949 = vmatmul.mubr.msk.f32.vlgmr.msra.gmra.mxu0 %vm151_vm1, %v124_v6  ;;  %2004 = vmatprep.subr.msk.mxu0 %vm200_vm0, %v598_v7  ;;  %v135_v29 = vld [vmem:[%s3218_s9 + $0x60] sm:$0xff]  ;;  %v136_v31 = vld [vmem:[%s3218_s9 + $0x68] sm:$0xff]  ;;  %v137_v33 = vld [vmem:[%s3218_s9 + $0x70] sm:$0xff] }
  0x5a   :  { %1951 = vmatprep.mubr.msk.f32.mxu0 %vm151_vm1, %v125_v8  ;;  %2005 = vmatpush3.msk.msra.mxu0 %vm200_vm0, %v598_v7  ;;  %v138_v34 = vld [vmem:[%s3218_s9 + $0x78] sm:$0xff]  ;;  %v570_v35 = vld [vmem:[%s3204_s5] sm:$0xff]  ;;  %v571_v36 = vld [vmem:[%s3204_s5 + $0x8] sm:$0xff] }
  0x5b   :  { %2006 = vmatprep.subr.mxu0 %v597_v9  ;;  %v572_v37 = vld [vmem:[%s3204_s5 + $0x10] sm:$0xff]  ;;  %v573_v38 = vld [vmem:[%s3204_s5 + $0x18] sm:$0xff]  ;;  %v574_v39 = vld [vmem:[%s3204_s5 + $0x20] sm:$0xff] }
  0x5c   :  { %2007 = vmatpush3.msra.mxu0 %v597_v9  ;;  %v575_v40 = vld [vmem:[%s3204_s5 + $0x28] sm:$0xff]  ;;  %v576_v41 = vld [vmem:[%s3204_s5 + $0x30] sm:$0xff]  ;;  %v577_v42 = vld [vmem:[%s3204_s5 + $0x38] sm:$0xff] }
  0x5d   :  { %1952 = vmatmul.mubr.msk.f32.gmra.mxu0 %vm151_vm1, %v126_v10  ;;  %2008 = vmatprep.subr.mxu0 %v596_v11  ;;  %v578_v43 = vld [vmem:[%s3204_s5 + $0x40] sm:$0xff]  ;;  %v579_v44 = vld [vmem:[%s3204_s5 + $0x48] sm:$0xff]  ;;  %v580_v45 = vld [vmem:[%s3204_s5 + $0x50] sm:$0xff] }
  0x5e   :  { %1954 = vmatprep.mubr.msk.f32.mxu0 %vm151_vm1, %v127_v12  ;;  %2009 = vmatpush3.msra.mxu0 %v596_v11  ;;  %v581_v46 = vld [vmem:[%s3204_s5 + $0x58] sm:$0xff]  ;;  %v582_v47 = vld [vmem:[%s3204_s5 + $0x60] sm:$0xff]  ;;  %v583_v48 = vld [vmem:[%s3204_s5 + $0x68] sm:$0xff] }
  0x5f   :  { %2010 = vmatprep.subr.mxu0 %v595_v13  ;;  %v584_v49 = vld [vmem:[%s3204_s5 + $0x70] sm:$0xff]  ;;  %v585_v50 = vld [vmem:[%s3204_s5 + $0x78] sm:$0xff]  ;;  %v366_v52 = vld [vmem:[%s3202_s3 + $0x8] sm:$0xff] }
  0x60   :  { %2011 = vmatpush3.msra.mxu0 %v595_v13  ;;  %v367_v51 = vld [vmem:[%s3202_s3 + $0x10] sm:$0xff]  ;;  %v365_v53 = vld [vmem:[%s3202_s3] sm:$0xff]  ;;  %v822_v55 = vld [vmem:[%s3207_s8 + $0x18] sm:$0xff] }
  0x61   :  { %1955 = vmatmul.mubr.msk.f32.gmra.mxu0 %vm151_vm1, %v128_v14  ;;  %2012 = vmatprep.subr.mxu0 %v594_v15  ;;  %v821_v56 = vld [vmem:[%s3207_s8 + $0x10] sm:$0xff]  ;;  %v820_v57 = vld [vmem:[%s3207_s8 + $0x8] sm:$0xff]  ;;  %v819_v58 = vld [vmem:[%s3207_s8] sm:$0xff] }
  0x62   :  { %1957 = vmatprep.mubr.msk.f32.mxu0 %vm151_vm1, %v129_v17  ;;  %2013 = vmatpush3.msra.mxu0 %v594_v15  ;;  %v2586_v59 = vld [vmem:[#allocation2] ss:$0 sm:$0xff]  ;;  %v1070_v5 = vld [vmem:[%s3210_s11 + $0x78] sm:$0xff]  ;;  %v1069_v9 = vld [vmem:[%s3210_s11 + $0x70] sm:$0xff] }
  0x63   :  { %2014 = vmatprep.subr.mxu0 %v593_v18  ;;  %1974 = vmatprep.subr.mxu1 %v367_v51  ;;  %v1068_v13 = vld [vmem:[%s3210_s11 + $0x68] sm:$0xff]  ;;  %v1067_v17 = vld [vmem:[%s3210_s11 + $0x60] sm:$0xff] }
  0x64   :  { %2015 = vmatpush3.msra.mxu0 %v593_v18  ;;  %1975 = vmatpush3.msra.mxu1 %v367_v51 }
  0x65   :  { %1958 = vmatmul.mubr.msk.f32.gmra.mxu0 %vm151_vm1, %v130_v19  ;;  %2016 = vmatprep.subr.mxu0 %v592_v20 }
  0x66   :  { %1960 = vmatprep.mubr.msk.f32.mxu0 %vm151_vm1, %v131_v21  ;;  %2017 = vmatpush3.msra.mxu0 %v592_v20  ;;  %v1066_v21 = vld [vmem:[%s3210_s11 + $0x58] sm:$0xff] }
  0x67   :  { %2018 = vmatprep.subr.mxu0 %v591_v22  ;;  %1976 = vmatprep.subr.mxu1 %v366_v52 }
  0x68   :  { %2019 = vmatpush3.msra.mxu0 %v591_v22  ;;  %1977 = vmatpush3.msra.mxu1 %v366_v52 }
  0x69   :  { %1961 = vmatmul.mubr.msk.f32.gmra.mxu0 %vm151_vm1, %v132_v23  ;;  %2020 = vmatprep.subr.mxu0 %v590_v24 }
  0x6a   :  { %1963 = vmatprep.mubr.msk.f32.mxu0 %vm151_vm1, %v133_v25  ;;  %2021 = vmatpush3.msra.mxu0 %v590_v24  ;;  %v1065_v25 = vld [vmem:[%s3210_s11 + $0x50] sm:$0xff] }
  0x6b   :  { %2022 = vmatprep.subr.mxu0 %v589_v26  ;;  %1978 = vmatprep.subr.mxu1 %v365_v53 }
  0x6c   :  { %2023 = vmatpush3.msra.mxu0 %v589_v26  ;;  %1979 = vmatpush3.msra.mxu1 %v365_v53  ;;  %v2662_v53 = vld [vmem:[#allocation6] ss:$0 sm:$0xff] }
  0x6d   :  { %1964 = vmatmul.mubr.msk.f32.gmra.mxu0 %vm151_vm1, %v134_v27  ;;  %2024 = vmatprep.subr.mxu0 %v588_v28 }
  0x6e   :  { %1966 = vmatprep.mubr.msk.f32.mxu0 %vm151_vm1, %v135_v29  ;;  %2025 = vmatpush3.msra.mxu0 %v588_v28  ;;  %v1064_v29 = vld [vmem:[%s3210_s11 + $0x48] sm:$0xff] }
  0x6f   :  { %2026 = vmatprep.subr.mxu0 %v587_v30  ;;  %1139 = vmatprep.subr.mxu1 %v2269_v54 }
  0x70   :  { %2027 = vmatpush3.msra.mxu0 %v587_v30 }
  0x71   :  { %1967 = vmatmul.mubr.msk.f32.gmra.mxu0 %vm151_vm1, %v136_v31  ;;  %2028 = vmatprep.subr.mxu0 %v586_v32 }
  0x72   :  { %1969 = vmatprep.mubr.msk.f32.mxu0 %vm151_vm1, %v137_v33  ;;  %2029 = vmatpush3.msra.mxu0 %v586_v32  ;;  %v1063_v33 = vld [vmem:[%s3210_s11 + $0x40] sm:$0xff] }
  0x73   :  { %2054 = vmatprep.subr.mxu0 %v822_v55 }
  0x75   :  { %1970 = vmatmul.mubr.msk.f32.gmra.mxu0 %vm151_vm1, %v138_v34 }
  0x76   :  { %2030 = vmatprep.mubr.msk.f32.mxu0 %vm606_vm2, %v570_v35 }
  0x79   :  { %2031 = vmatmul.mubr.msk.f32.vlgmr.msra.gmra.mxu0 %vm606_vm2, %v571_v36 }
  0x7a   :  { %2033 = vmatprep.mubr.msk.f32.mxu0 %vm606_vm2, %v572_v37  ;;  %2055 = vmatpush3.msra.mxu0 %v822_v55  ;;  %v1062_v37 = vld [vmem:[%s3210_s11 + $0x38] sm:$0xff] }
  0x7b   :  { %2056 = vmatprep.subr.mxu0 %v821_v56  ;;  %v1058_v55 = vld [vmem:[%s3210_s11 + $0x18] sm:$0xff] }
  0x7c   :  { %2057 = vmatpush3.msra.mxu0 %v821_v56 }
  0x7d   :  { %2034 = vmatmul.mubr.msk.f32.gmra.mxu0 %vm606_vm2, %v573_v38  ;;  %2058 = vmatprep.subr.mxu0 %v820_v57 }
  0x7e   :  { %2036 = vmatprep.mubr.msk.f32.mxu0 %vm606_vm2, %v574_v39  ;;  %2059 = vmatpush3.msra.mxu0 %v820_v57 }
  0x7f   :  { %2060 = vmatprep.subr.mxu0 %v819_v58 }
  0x80   :  { %2061 = vmatpush3.msra.mxu0 %v819_v58 }
  0x81   :  { %2037 = vmatmul.mubr.msk.f32.gmra.mxu0 %vm606_vm2, %v575_v40 }
  0x82   :  { %2039 = vmatprep.mubr.msk.f32.mxu0 %vm606_vm2, %v576_v41  ;;  %v1061_v41 = vld [vmem:[%s3210_s11 + $0x30] sm:$0xff] }
  0x85   :  { %2040 = vmatmul.mubr.msk.f32.gmra.mxu0 %vm606_vm2, %v577_v42 }
  0x86   :  { %2042 = vmatprep.mubr.msk.f32.mxu0 %vm606_vm2, %v578_v43 }
  0x89   :  { %2043 = vmatmul.mubr.msk.f32.gmra.mxu0 %vm606_vm2, %v579_v44 }
  0x8a   :  { %2045 = vmatprep.mubr.msk.f32.mxu0 %vm606_vm2, %v580_v45  ;;  %v1060_v45 = vld [vmem:[%s3210_s11 + $0x28] sm:$0xff] }
  0x8d   :  { %2046 = vmatmul.mubr.msk.f32.gmra.mxu0 %vm606_vm2, %v581_v46 }
  0x8e   :  { %2048 = vmatprep.mubr.msk.f32.mxu0 %vm606_vm2, %v582_v47 }
  0x91   :  { %2049 = vmatmul.mubr.msk.f32.gmra.mxu0 %vm606_vm2, %v583_v48 }
  0x92   :  { %2051 = vmatprep.mubr.msk.f32.mxu0 %vm606_vm2, %v584_v49  ;;  %v1059_v49 = vld [vmem:[%s3210_s11 + $0x20] sm:$0xff] }
  0x95   :  { %2052 = vmatmul.mubr.msk.f32.gmra.mxu0 %vm606_vm2, %v585_v50 }
 0x119   :  { %v1950_v60 = vpop.f32.mrf.mxu0 }
 0x11a   :  { %v276_v61 = vadd.f32 %v1950_v60, %v2586_v59  ;;  %v1057_v60 = vld [vmem:[%s3210_s11 + $0x10] sm:$0xff] }
 0x11b   :  { %v270_v62 = vpop.f32.mrf.mxu0 }
 0x11c   :  { %v271_v63 = vadd.f32 %v2586_v59, %v270_v62  ;;  %v350_v3 = vmax.f32 %v276_v61, 0.0 }
 0x11d   :  { %v1953_v0 = vpop.f32.mrf.mxu0 }
 0x11e   :  { %v349_v1 = vmax.f32 %v271_v63, 0.0  ;;  %v286_v2 = vadd.f32 %v1953_v0, %v2586_v59  ;;  %v1056_v63 = vld [vmem:[%s3210_s11 + $0x8] sm:$0xff] }
 0x11f   :  { %v280_v4 = vpop.f32.mrf.mxu0  ;;  %v1024_v0 = vld [vmem:[%s3209_s10 + $0x8] sm:$0xff] }
 0x120   :  { %v281_v6 = vadd.f32 %v2586_v59, %v280_v4  ;;  %1980 = vmatprep.mubr.msk.f32.mxu1 %vm376_vm3, %v349_v1  ;;  %v352_v7 = vmax.f32 %v286_v2, 0.0  ;;  %v1055_v4 = vld [vmem:[%s3210_s11] sm:$0xff] }
 0x121   :  { %v1956_v8 = vpop.f32.mrf.mxu0  ;;  %1981 = vmatmul.mubr.msk.f32.vlgmr.msra.gmra.mxu1 %vm376_vm3, %v350_v3 }
 0x122   :  { %v351_v10 = vmax.f32 %v281_v6, 0.0  ;;  %v296_v11 = vadd.f32 %v1956_v8, %v2586_v59  ;;  %1140 = vmatpush1.msra.mxu1 %v1070_v5  ;;  %v1079_v8 = vld [vmem:[%s3210_s11 + $0xc0] sm:$0xf] }
 0x123   :  { %1141 = vmatprep.subr.mxu1 %v2269_v54  ;;  %v290_v12 = vpop.f32.mrf.mxu0 }
 0x124   :  { %v291_v14 = vadd.f32 %v2586_v59, %v290_v12  ;;  %1142 = vmatpush1.msra.mxu1 %v1069_v9  ;;  %1983 = vmatprep.mubr.msk.f32.mxu1 %vm376_vm3, %v351_v10  ;;  %v354_v15 = vmax.f32 %v296_v11, 0.0  ;;  %v1078_v12 = vld [vmem:[%s3210_s11 + $0xb8] sm:$0xff] }
 0x125   :  { %1143 = vmatprep.subr.mxu1 %v2269_v54  ;;  %v1959_v16 = vpop.f32.mrf.mxu0  ;;  %1984 = vmatmul.mubr.msk.f32.gmra.mxu1 %vm376_vm3, %v352_v7 }
 0x126   :  { %v353_v18 = vmax.f32 %v291_v14, 0.0  ;;  %v306_v19 = vadd.f32 %v1959_v16, %v2586_v59  ;;  %1144 = vmatpush1.msra.mxu1 %v1068_v13  ;;  %v1077_v16 = vld [vmem:[%s3210_s11 + $0xb0] sm:$0xff] }
 0x127   :  { %1145 = vmatprep.subr.mxu1 %v2269_v54  ;;  %v300_v20 = vpop.f32.mrf.mxu0 }
 0x128   :  { %v301_v22 = vadd.f32 %v2586_v59, %v300_v20  ;;  %1146 = vmatpush1.msra.mxu1 %v1067_v17  ;;  %1986 = vmatprep.mubr.msk.f32.mxu1 %vm376_vm3, %v353_v18  ;;  %v356_v23 = vmax.f32 %v306_v19, 0.0  ;;  %v1076_v20 = vld [vmem:[%s3210_s11 + $0xa8] sm:$0xff] }
 0x129   :  { %1147 = vmatprep.subr.mxu1 %v2269_v54  ;;  %v1962_v24 = vpop.f32.mrf.mxu0  ;;  %1987 = vmatmul.mubr.msk.f32.gmra.mxu1 %vm376_vm3, %v354_v15 }
 0x12a   :  { %v355_v26 = vmax.f32 %v301_v22, 0.0  ;;  %v316_v27 = vadd.f32 %v1962_v24, %v2586_v59  ;;  %1148 = vmatpush1.msra.mxu1 %v1066_v21  ;;  %v1075_v24 = vld [vmem:[%s3210_s11 + $0xa0] sm:$0xff] }
 0x12b   :  { %1149 = vmatprep.subr.mxu1 %v2269_v54  ;;  %v310_v28 = vpop.f32.mrf.mxu0 }
 0x12c   :  { %v311_v30 = vadd.f32 %v2586_v59, %v310_v28  ;;  %1150 = vmatpush1.msra.mxu1 %v1065_v25  ;;  %1989 = vmatprep.mubr.msk.f32.mxu1 %vm376_vm3, %v355_v26  ;;  %v358_v31 = vmax.f32 %v316_v27, 0.0  ;;  %v1074_v28 = vld [vmem:[%s3210_s11 + $0x98] sm:$0xff] }
 0x12d   :  { %1151 = vmatprep.subr.mxu1 %v2269_v54  ;;  %v1965_v32 = vpop.f32.mrf.mxu0  ;;  %1990 = vmatmul.mubr.msk.f32.gmra.mxu1 %vm376_vm3, %v356_v23 }
 0x12e   :  { %v357_v34 = vmax.f32 %v311_v30, 0.0  ;;  %v326_v35 = vadd.f32 %v1965_v32, %v2586_v59  ;;  %1152 = vmatpush1.msra.mxu1 %v1064_v29  ;;  %v1073_v32 = vld [vmem:[%s3210_s11 + $0x90] sm:$0xff] }
 0x12f   :  { %1153 = vmatprep.subr.mxu1 %v2269_v54  ;;  %v320_v36 = vpop.f32.mrf.mxu0 }
 0x130   :  { %v321_v38 = vadd.f32 %v2586_v59, %v320_v36  ;;  %1154 = vmatpush1.msra.mxu1 %v1063_v33  ;;  %1992 = vmatprep.mubr.msk.f32.mxu1 %vm376_vm3, %v357_v34  ;;  %v360_v39 = vmax.f32 %v326_v35, 0.0  ;;  %v1072_v36 = vld [vmem:[%s3210_s11 + $0x88] sm:$0xff] }
 0x131   :  { %1155 = vmatprep.subr.mxu1 %v2269_v54  ;;  %v1968_v40 = vpop.f32.mrf.mxu0  ;;  %1993 = vmatmul.mubr.msk.f32.gmra.mxu1 %vm376_vm3, %v358_v31 }
 0x132   :  { %v359_v42 = vmax.f32 %v321_v38, 0.0  ;;  %v336_v43 = vadd.f32 %v1968_v40, %v2586_v59  ;;  %1156 = vmatpush1.msra.mxu1 %v1062_v37  ;;  %v1071_v40 = vld [vmem:[%s3210_s11 + $0x80] sm:$0xff] }
 0x133   :  { %1157 = vmatprep.subr.mxu1 %v2269_v54  ;;  %v330_v44 = vpop.f32.mrf.mxu0 }
 0x134   :  { %v331_v46 = vadd.f32 %v2586_v59, %v330_v44  ;;  %1158 = vmatpush1.msra.mxu1 %v1061_v41  ;;  %1995 = vmatprep.mubr.msk.f32.mxu1 %vm376_vm3, %v359_v42  ;;  %v362_v47 = vmax.f32 %v336_v43, 0.0  ;;  %v1023_v42 = vld [vmem:[%s3209_s10] sm:$0xff] }
 0x135   :  { %1159 = vmatprep.subr.mxu1 %v2269_v54  ;;  %v1971_v48 = vpop.f32.mrf.mxu0  ;;  %1996 = vmatmul.mubr.msk.f32.gmra.mxu1 %vm376_vm3, %v360_v39 }
 0x136   :  { %v361_v50 = vmax.f32 %v331_v46, 0.0  ;;  %v346_v51 = vadd.f32 %v1971_v48, %v2586_v59  ;;  %1160 = vmatpush1.msra.mxu1 %v1060_v45  ;;  %v1026_v45 = vld [vmem:[%s3209_s10 + $0x18] sm:$0xff] }
 0x137   :  { %1161 = vmatprep.subr.mxu1 %v2269_v54  ;;  %v340_v52 = vpop.f32.mrf.mxu0 }
 0x138   :  { %v341_v56 = vadd.f32 %v2586_v59, %v340_v52  ;;  %1162 = vmatpush1.msra.mxu1 %v1059_v49  ;;  %1998 = vmatprep.mubr.msk.f32.mxu1 %vm376_vm3, %v361_v50  ;;  %v364_v57 = vmax.f32 %v346_v51, 0.0  ;;  %v1028_v52 = vld [vmem:[%s3209_s10 + $0x28] sm:$0xff] }
 0x139   :  { %1163 = vmatprep.subr.mxu1 %v2269_v54  ;;  %v2032_v58 = vpop.f32.mrf.mxu0  ;;  %1999 = vmatmul.mubr.msk.f32.gmra.mxu1 %vm376_vm3, %v362_v47 }
 0x13a   :  { %v363_v61 = vmax.f32 %v341_v56, 0.0  ;;  %v730_v62 = vadd.f32 %v2032_v58, %v2662_v53  ;;  %1164 = vmatpush1.msra.mxu1 %v1058_v55 }
 0x13b   :  { %1165 = vmatprep.subr.mxu1 %v2269_v54  ;;  %v724_v59 = vpop.f32.mrf.mxu0 }
 0x13c   :  { %v725_v1 = vadd.f32 %v2662_v53, %v724_v59  ;;  %1166 = vmatpush1.msra.mxu1 %v1057_v60  ;;  %2001 = vmatprep.mubr.msk.f32.mxu1 %vm376_vm3, %v363_v61  ;;  %v804_v2 = vmax.f32 %v730_v62, 0.0  ;;  %v1027_v60 = vld [vmem:[%s3209_s10 + $0x20] sm:$0xff]  ;;  %v1030_v62 = vld [vmem:[%s3209_s10 + $0x38] sm:$0xff] }
 0x13d   :  { %1167 = vmatprep.subr.mxu1 %v2269_v54  ;;  %v2035_v3 = vpop.f32.mrf.mxu0  ;;  %2002 = vmatmul.mubr.msk.f32.gmra.mxu1 %vm376_vm3, %v364_v57 }
 0x13e   :  { %v803_v5 = vmax.f32 %v725_v1, 0.0  ;;  %v740_v6 = vadd.f32 %v2035_v3, %v2662_v53  ;;  %1168 = vmatpush1.msra.mxu1 %v1056_v63  ;;  %1795 = vmatprep.mubr.msk.f32.mxu1 %vm1087_vm4, %v1024_v0  ;;  %v1032_v63 = vld [vmem:[%s3209_s10 + $0x48] sm:$0xff]  ;;  %v1031_v0 = vld [vmem:[%s3209_s10 + $0x40] sm:$0xff]  ;;  %v1034_v1 = vld [vmem:[%s3209_s10 + $0x58] sm:$0xff] }
 0x13f   :  { %1169 = vmatprep.subr.mxu1 %v2269_v54  ;;  %v734_v7 = vpop.f32.mrf.mxu0  ;;  %v1036_v3 = vld [vmem:[%s3209_s10 + $0x68] sm:$0xff] }
 0x140   :  { %v735_v9 = vadd.f32 %v2662_v53, %v734_v7  ;;  %1170 = vmatpush1.msra.mxu1 %v1055_v4  ;;  %2062 = vmatprep.mubr.msk.f32.mxu0 %vm376_vm3, %v803_v5  ;;  %v806_v10 = vmax.f32 %v740_v6, 0.0  ;;  %v1035_v4 = vld [vmem:[%s3209_s10 + $0x60] sm:$0xff]  ;;  %v1038_v5 = vld [vmem:[%s3209_s10 + $0x78] sm:$0xff]  ;;  %v1037_v6 = vld [vmem:[%s3209_s10 + $0x70] sm:$0xff] }
 0x141   :  { %1185 = vmatprep.subr.mxu1 %v2269_v54  ;;  %v2038_v11 = vpop.f32.mrf.mxu0  ;;  %2063 = vmatmul.mubr.msk.f32.vlgmr.msra.gmra.mxu0 %vm376_vm3, %v804_v2  ;;  %v1033_v2 = vld [vmem:[%s3209_s10 + $0x50] sm:$0xff]  ;;  %v1040_v7 = vld [vmem:[%s3209_s10 + $0x88] sm:$0xff] }
 0x142   :  { %v805_v13 = vmax.f32 %v735_v9, 0.0  ;;  %v750_v14 = vadd.f32 %v2038_v11, %v2662_v53  ;;  %1794 = vmatpush2.msk.msra.mxu1 %vm200_vm0, %v1079_v8  ;;  %v1039_v8 = vld [vmem:[%s3209_s10 + $0x80] sm:$0xff]  ;;  %v1042_v9 = vld [vmem:[%s3209_s10 + $0x98] sm:$0xff]  ;;  %v1044_v11 = vld [vmem:[%s3209_s10 + $0xa8] sm:$0xff] }
 0x143   :  { %1187 = vmatprep.subr.mxu1 %v2269_v54  ;;  %v744_v15 = vpop.f32.mrf.mxu0 }
 0x144   :  { %v745_v17 = vadd.f32 %v2662_v53, %v744_v15  ;;  %1188 = vmatpush2.msra.mxu1 %v1078_v12  ;;  %2065 = vmatprep.mubr.msk.f32.mxu0 %vm376_vm3, %v805_v13  ;;  %v808_v18 = vmax.f32 %v750_v14, 0.0  ;;  %v1043_v12 = vld [vmem:[%s3209_s10 + $0xa0] sm:$0xff]  ;;  %v1046_v13 = vld [vmem:[%s3209_s10 + $0xb8] sm:$0xff]  ;;  %v1045_v14 = vld [vmem:[%s3209_s10 + $0xb0] sm:$0xff] }
 0x145   :  { %1189 = vmatprep.subr.mxu1 %v2269_v54  ;;  %v2041_v19 = vpop.f32.mrf.mxu0  ;;  %2066 = vmatmul.mubr.msk.f32.gmra.mxu0 %vm376_vm3, %v806_v10  ;;  %v1041_v10 = vld [vmem:[%s3209_s10 + $0x90] sm:$0xff]  ;;  %v1048_v15 = vld [vmem:[%s3209_s10 + $0xc8] sm:$0xff] }
 0x146   :  { %v807_v21 = vmax.f32 %v745_v17, 0.0  ;;  %v760_v22 = vadd.f32 %v2041_v19, %v2662_v53  ;;  %1190 = vmatpush2.msra.mxu1 %v1077_v16  ;;  %v1047_v16 = vld [vmem:[%s3209_s10 + $0xc0] sm:$0xff]  ;;  %v1050_v17 = vld [vmem:[%s3209_s10 + $0xd8] sm:$0xff]  ;;  %v1052_v19 = vld [vmem:[%s3209_s10 + $0xe8] sm:$0xff] }
 0x147   :  { %1191 = vmatprep.subr.mxu1 %v2269_v54  ;;  %v754_v23 = vpop.f32.mrf.mxu0 }
 0x148   :  { %v755_v25 = vadd.f32 %v2662_v53, %v754_v23  ;;  %1192 = vmatpush2.msra.mxu1 %v1076_v20  ;;  %2068 = vmatprep.mubr.msk.f32.mxu0 %vm376_vm3, %v807_v21  ;;  %v810_v26 = vmax.f32 %v760_v22, 0.0  ;;  %v1051_v20 = vld [vmem:[%s3209_s10 + $0xe0] sm:$0xff]  ;;  %v1054_v21 = vld [vmem:[%s3209_s10 + $0xf8] sm:$0xff]  ;;  %v1053_v22 = vld [vmem:[%s3209_s10 + $0xf0] sm:$0xff] }
 0x149   :  { %1193 = vmatprep.subr.mxu1 %v2269_v54  ;;  %v2044_v27 = vpop.f32.mrf.mxu0  ;;  %2069 = vmatmul.mubr.msk.f32.gmra.mxu0 %vm376_vm3, %v808_v18  ;;  %v1049_v18 = vld [vmem:[%s3209_s10 + $0xd0] sm:$0xff]  ;;  %v1303_v23 = vld [vmem:[%s3212_s13 + $0x18] sm:$0xff] }
 0x14a   :  { %v809_v29 = vmax.f32 %v755_v25, 0.0  ;;  %v770_v30 = vadd.f32 %v2044_v27, %v2662_v53  ;;  %1194 = vmatpush2.msra.mxu1 %v1075_v24  ;;  %2086 = vmatprep.subr.mxu0 %v1303_v23  ;;  %v1302_v24 = vld [vmem:[%s3212_s13 + $0x10] sm:$0xff]  ;;  %v1301_v25 = vld [vmem:[%s3212_s13 + $0x8] sm:$0xff] }
 0x14b   :  { %1195 = vmatprep.subr.mxu1 %v2269_v54  ;;  %v764_v31 = vpop.f32.mrf.mxu0  ;;  %2087 = vmatpush3.msra.mxu0 %v1303_v23 }
 0x14c   :  { %v765_v33 = vadd.f32 %v2662_v53, %v764_v31  ;;  %1196 = vmatpush2.msra.mxu1 %v1074_v28  ;;  %2071 = vmatprep.mubr.msk.f32.mxu0 %vm376_vm3, %v809_v29  ;;  %v812_v34 = vmax.f32 %v770_v30, 0.0 }
 0x14d   :  { %1197 = vmatprep.subr.mxu1 %v2269_v54  ;;  %v2047_v35 = vpop.f32.mrf.mxu0  ;;  %2072 = vmatmul.mubr.msk.f32.gmra.mxu0 %vm376_vm3, %v810_v26  ;;  %v1300_v26 = vld [vmem:[%s3212_s13] sm:$0xff]  ;;  %s2270_s13 = smov 8  }
 0x14e   :  { %v811_v37 = vmax.f32 %v765_v33, 0.0  ;;  %v780_v38 = vadd.f32 %v2047_v35, %v2662_v53  ;;  %1198 = vmatpush2.msra.mxu1 %v1073_v32  ;;  %2088 = vmatprep.subr.mxu0 %v1302_v24 }
 0x14f   :  { %1199 = vmatprep.subr.mxu1 %v2269_v54  ;;  %v774_v39 = vpop.f32.mrf.mxu0  ;;  %2089 = vmatpush3.msra.mxu0 %v1302_v24 }
 0x150   :  { %v775_v41 = vadd.f32 %v2662_v53, %v774_v39  ;;  %1200 = vmatpush2.msra.mxu1 %v1072_v36  ;;  %2074 = vmatprep.mubr.msk.f32.mxu0 %vm376_vm3, %v811_v37  ;;  %v814_v43 = vmax.f32 %v780_v38, 0.0  ;;  %v2900_v38 = vld [vmem:[#allocation7] ss:$0 sm:$0xff] }
 0x151   :  { %1201 = vmatprep.subr.mxu1 %v2269_v54  ;;  %v2050_v44 = vpop.f32.mrf.mxu0  ;;  %2075 = vmatmul.mubr.msk.f32.gmra.mxu0 %vm376_vm3, %v812_v34  ;;  %v1025_v54 = vld [vmem:[%s3209_s10 + $0x10] sm:$0xff] }
 0x152   :  { %v813_v46 = vmax.f32 %v775_v41, 0.0  ;;  %v790_v47 = vadd.f32 %v2050_v44, %v2662_v53  ;;  %1202 = vmatpush2.msra.mxu1 %v1071_v40  ;;  %2090 = vmatprep.subr.mxu0 %v1301_v25 }
 0x153   :  { %1204 = vmatmul.mubr.f32.vlgmr.msra.gmra.mxu1 %v1023_v42  ;;  %v784_v48 = vpop.f32.mrf.mxu0  ;;  %2118 = vmatprep.subr.mxu1 %v1303_v23 }
 0x154   :  { %v785_v49 = vadd.f32 %v2662_v53, %v784_v48  ;;  %2077 = vmatprep.mubr.msk.f32.mxu0 %vm376_vm3, %v813_v46  ;;  %1796 = vmatprep.mubr.msk.f32.mxu1 %vm1087_vm4, %v1026_v45  ;;  %v816_v50 = vmax.f32 %v790_v47, 0.0 }
 0x155   :  { %v2053_v51 = vpop.f32.mrf.mxu0  ;;  %2078 = vmatmul.mubr.msk.f32.gmra.mxu0 %vm376_vm3, %v814_v43  ;;  %2122 = vmatpush3.msra.mxu1 %v1303_v23 }
 0x156   :  { %v815_v55 = vmax.f32 %v785_v49, 0.0  ;;  %v800_v56 = vadd.f32 %v2053_v51, %v2662_v53  ;;  %2119 = vmatprep.subr.mxu1 %v1302_v24  ;;  %2091 = vmatpush3.msra.mxu0 %v1301_v25 }
 0x157   :  { %1209 = vmatmul.mubr.f32.gmra.mxu1 %v1025_v54  ;;  %v794_v57 = vpop.f32.mrf.mxu0  ;;  %2092 = vmatprep.subr.mxu0 %v1300_v26 }
 0x158   :  { %v795_v58 = vadd.f32 %v2662_v53, %v794_v57  ;;  %2080 = vmatprep.mubr.msk.f32.mxu0 %vm376_vm3, %v815_v55  ;;  %1797 = vmatprep.mubr.msk.f32.mxu1 %vm1087_vm4, %v1028_v52  ;;  %v818_v61 = vmax.f32 %v800_v56, 0.0  ;;  %v1029_v53 = vld [vmem:[%s3209_s10 + $0x30] sm:$0xff] }
 0x159   :  { %2081 = vmatmul.mubr.msk.f32.gmra.mxu0 %vm376_vm3, %v816_v50  ;;  %2123 = vmatpush3.msra.mxu1 %v1302_v24 }
 0x15a   :  { %v817_v59 = vmax.f32 %v795_v58, 0.0  ;;  %2120 = vmatprep.subr.mxu1 %v1301_v25  ;;  %2093 = vmatpush3.msra.mxu0 %v1300_v26 }
 0x15b   :  { %1214 = vmatmul.mubr.f32.gmra.mxu1 %v1027_v60 }
 0x15c   :  { %2083 = vmatprep.mubr.msk.f32.mxu0 %vm376_vm3, %v817_v59  ;;  %1798 = vmatprep.mubr.msk.f32.mxu1 %vm1087_vm4, %v1030_v62  ;;  %v2926_v59 = vld [vmem:[#allocation9] ss:$0 sm:$0xff] }
 0x15d   :  { %2084 = vmatmul.mubr.msk.f32.gmra.mxu0 %vm376_vm3, %v818_v61  ;;  %2124 = vmatpush3.msra.mxu1 %v1301_v25 }
 0x15e   :  { %2121 = vmatprep.subr.mxu1 %v1300_v26 }
 0x15f   :  { %1219 = vmatmul.mubr.f32.gmra.mxu1 %v1029_v53 }
 0x160   :  { %1799 = vmatprep.mubr.msk.f32.mxu1 %vm1087_vm4, %v1032_v63  ;;  %2125 = vmatpush3.msra.mxu1 %v1300_v26 }
 0x163   :  { %1224 = vmatmul.mubr.f32.gmra.mxu1 %v1031_v0 }
 0x164   :  { %1800 = vmatprep.mubr.msk.f32.mxu1 %vm1087_vm4, %v1034_v1 }
 0x167   :  { %1229 = vmatmul.mubr.f32.gmra.mxu1 %v1033_v2 }
 0x168   :  { %1801 = vmatprep.mubr.msk.f32.mxu1 %vm1087_vm4, %v1036_v3 }
 0x16b   :  { %1234 = vmatmul.mubr.f32.gmra.mxu1 %v1035_v4 }
 0x16c   :  { %1802 = vmatprep.mubr.msk.f32.mxu1 %vm1087_vm4, %v1038_v5 }
 0x16f   :  { %1239 = vmatmul.mubr.f32.gmra.mxu1 %v1037_v6 }
 0x170   :  { %1803 = vmatprep.mubr.msk.f32.mxu1 %vm1087_vm4, %v1040_v7 }
 0x173   :  { %1244 = vmatmul.mubr.f32.gmra.mxu1 %v1039_v8 }
 0x174   :  { %1804 = vmatprep.mubr.msk.f32.mxu1 %vm1087_vm4, %v1042_v9 }
 0x177   :  { %1249 = vmatmul.mubr.f32.gmra.mxu1 %v1041_v10 }
 0x178   :  { %1805 = vmatprep.mubr.msk.f32.mxu1 %vm1087_vm4, %v1044_v11 }
 0x17b   :  { %1254 = vmatmul.mubr.f32.gmra.mxu1 %v1043_v12 }
 0x17c   :  { %1806 = vmatprep.mubr.msk.f32.mxu1 %vm1087_vm4, %v1046_v13 }
 0x17f   :  { %1259 = vmatmul.mubr.f32.gmra.mxu1 %v1045_v14 }
 0x180   :  { %1807 = vmatprep.mubr.msk.f32.mxu1 %vm1087_vm4, %v1048_v15 }
 0x183   :  { %1264 = vmatmul.mubr.f32.gmra.mxu1 %v1047_v16 }
 0x184   :  { %1808 = vmatprep.mubr.msk.f32.mxu1 %vm1087_vm4, %v1050_v17 }
 0x187   :  { %1269 = vmatmul.mubr.f32.gmra.mxu1 %v1049_v18 }
 0x188   :  { %1809 = vmatprep.mubr.msk.f32.mxu1 %vm1087_vm4, %v1052_v19 }
 0x18b   :  { %1274 = vmatmul.mubr.f32.gmra.mxu1 %v1051_v20 }
 0x18c   :  { %1810 = vmatprep.mubr.msk.f32.mxu1 %vm1087_vm4, %v1054_v21 }
 0x18f   :  { %1279 = vmatmul.mubr.f32.gmra.mxu1 %v1053_v22 }
 0x1e1   :  { %v2878_v27 = vpop.f32.mrf.mxu1 }
 0x1e3   :  { %v2880_v28 = vpop.f32.mrf.mxu1 }
 0x1e5   :  { %v2882_v29 = vpop.f32.mrf.mxu1 }
 0x1e7   :  { %v2884_v30 = vpop.f32.mrf.mxu1 }
 0x1e9   :  { %v2886_v31 = vpop.f32.mrf.mxu1 }
 0x1eb   :  { %v2888_v32 = vpop.f32.mrf.mxu1 }
 0x1ed   :  { %v2890_v33 = vpop.f32.mrf.mxu1 }
 0x1ef   :  { %v2892_v34 = vpop.f32.mrf.mxu1 }
 0x1f1   :  { %v2894_v35 = vpop.f32.mrf.mxu1 }
 0x1f3   :  { %v2896_v36 = vpop.f32.mrf.mxu1 }
 0x1f5   :  { %v2898_v37 = vpop.f32.mrf.mxu1 }
 0x1f7   :  { %v2902_v40 = vpop.f32.mrf.mxu1 }
 0x1f9   :  { %v2907_v44 = vpop.f32.mrf.mxu1 }
 0x1fb   :  { %v2913_v49 = vpop.f32.mrf.mxu1 }
 0x1fd   :  { %v2918_v55 = vpop.f32.mrf.mxu1 }
 0x1ff   :  { %v2924_v61 = vpop.f32.mrf.mxu1 }
 0x201   :  { %v2064_v39 = vpop.f32.mrf.mxu0 }
 0x202   :  { %v950_v41 = vadd.f32 %v2064_v39, %v2900_v38 }
 0x203   :  { %v944_v42 = vpop.f32.mrf.mxu0 }
 0x204   :  { %v945_v43 = vadd.f32 %v2900_v38, %v944_v42  ;;  %1522 = vrot.lane.b32.xlu0 %v950_v41, %s2270_s13 }
 0x205   :  { %v2067_v45 = vpop.f32.mrf.mxu0 }
 0x206   :  { %v960_v46 = vadd.f32 %v2067_v45, %v2900_v38 }
 0x207   :  { %v954_v47 = vpop.f32.mrf.mxu0 }
 0x208   :  { %v955_v48 = vadd.f32 %v2900_v38, %v954_v47  ;;  %1526 = vrot.lane.b32.xlu1 %v960_v46, %s2270_s13  ;;  %1520 = vrot.lane.b32.xlu0 %v945_v43, %s2270_s13 }
 0x209   :  { %v2070_v54 = vpop.f32.mrf.mxu0 }
 0x20a   :  { %v970_v51 = vadd.f32 %v2070_v54, %v2900_v38 }
 0x20b   :  { %v964_v50 = vpop.f32.mrf.mxu0 }
 0x20c   :  { %v965_v52 = vadd.f32 %v2900_v38, %v964_v50  ;;  %1524 = vrot.lane.b32.xlu1 %v955_v48, %s2270_s13 }
 0x20d   :  { %v2073_v56 = vpop.f32.mrf.mxu0 }
 0x20e   :  { %1528 = vrot.lane.b32.xlu0 %v965_v52, %s2270_s13  ;;  %v980_v58 = vadd.f32 %v2073_v56, %v2900_v38 }
 0x20f   :  { %v974_v57 = vpop.f32.mrf.mxu0 }
 0x210   :  { %v975_v60 = vadd.f32 %v2900_v38, %v974_v57  ;;  %1530 = vrot.lane.b32.xlu1 %v970_v51, %s2270_s13 }
 0x211   :  { %v2076_v62 = vpop.f32.mrf.mxu0 }
 0x212   :  { %1532 = vrot.lane.b32.xlu0 %v975_v60, %s2270_s13  ;;  %v990_v0 = vadd.f32 %v2076_v62, %v2900_v38 }
 0x213   :  { %v1205_v53 = vpop.f32.mrf.mxu1  ;;  %v984_v63 = vpop.f32.mrf.mxu0 }
 0x214   :  { %v1206_v1 = vadd.f32 %v2926_v59, %v1205_v53  ;;  %v985_v2 = vadd.f32 %v2900_v38, %v984_v63  ;;  %1534 = vrot.lane.b32.xlu1 %v980_v58, %s2270_s13 }
 0x215   :  { %v1207_v3 = vpop.f32.mrf.mxu1  ;;  %v2079_v4 = vpop.f32.mrf.mxu0 }
 0x216   :  { %v1284_v5 = vmax.f32 %v1206_v1, 0.0  ;;  %1536 = vrot.lane.b32.xlu0 %v985_v2, %s2270_s13  ;;  %v1000_v8 = vadd.f32 %v2079_v4, %v2900_v38 }
 0x217   :  { %v1210_v6 = vpop.f32.mrf.mxu1  ;;  %v994_v7 = vpop.f32.mrf.mxu0 }
 0x218   :  { %v1211_v9 = vadd.f32 %v2926_v59, %v1210_v6  ;;  %v995_v10 = vadd.f32 %v2900_v38, %v994_v7  ;;  %2094 = vmatprep.mubr.msk.f32.mxu0 %vm376_vm3, %v1284_v5  ;;  %1538 = vrot.lane.b32.xlu1 %v990_v0, %s2270_s13 }
 0x219   :  { %v1212_v11 = vpop.f32.mrf.mxu1  ;;  %v2082_v12 = vpop.f32.mrf.mxu0 }
 0x21a   :  { %v1285_v13 = vmax.f32 %v1211_v9, 0.0  ;;  %1540 = vrot.lane.b32.xlu0 %v995_v10, %s2270_s13  ;;  %v1010_v16 = vadd.f32 %v2082_v12, %v2900_v38 }
 0x21b   :  { %v1215_v14 = vpop.f32.mrf.mxu1  ;;  %v1004_v15 = vpop.f32.mrf.mxu0 }
 0x21c   :  { %v1216_v17 = vadd.f32 %v2926_v59, %v1215_v14  ;;  %v1005_v18 = vadd.f32 %v2900_v38, %v1004_v15  ;;  %2095 = vmatmul.mubr.msk.f32.vlgmr.msra.gmra.mxu0 %vm376_vm3, %v1285_v13  ;;  %1542 = vrot.lane.b32.xlu1 %v1000_v8, %s2270_s13 }
 0x21d   :  { %v1217_v19 = vpop.f32.mrf.mxu1  ;;  %v2085_v20 = vpop.f32.mrf.mxu0 }
 0x21e   :  { %v1286_v21 = vmax.f32 %v1216_v17, 0.0  ;;  %1544 = vrot.lane.b32.xlu0 %v1005_v18, %s2270_s13  ;;  %v1020_v24 = vadd.f32 %v2085_v20, %v2900_v38 }
 0x21f   :  { %v1220_v22 = vpop.f32.mrf.mxu1  ;;  %v1014_v23 = vpop.f32.mrf.mxu0 }
 0x220   :  { %v1221_v25 = vadd.f32 %v2926_v59, %v1220_v22  ;;  %v1015_v26 = vadd.f32 %v2900_v38, %v1014_v23  ;;  %2097 = vmatprep.mubr.msk.f32.mxu0 %vm376_vm3, %v1286_v21  ;;  %1546 = vrot.lane.b32.xlu1 %v1010_v16, %s2270_s13 }
 0x221   :  { %v1222_v39 = vpop.f32.mrf.mxu1 }
 0x222   :  { %v1287_v41 = vmax.f32 %v1221_v25, 0.0  ;;  %1548 = vrot.lane.b32.xlu0 %v1015_v26, %s2270_s13 }
 0x223   :  { %v1225_v42 = vpop.f32.mrf.mxu1 }
 0x224   :  { %v1226_v43 = vadd.f32 %v2926_v59, %v1225_v42  ;;  %2098 = vmatmul.mubr.msk.f32.gmra.mxu0 %vm376_vm3, %v1287_v41  ;;  %1550 = vrot.lane.b32.xlu1 %v1020_v24, %s2270_s13 }
 0x225   :  { %v1227_v45 = vpop.f32.mrf.mxu1 }
 0x226   :  { %v1288_v46 = vmax.f32 %v1226_v43, 0.0  ;;  %v1811_v43 = vld [vmem:[#allocation10] ss:$0 sm:$0xff] }
 0x227   :  { %v1230_v47 = vpop.f32.mrf.mxu1 }
 0x228   :  { %v1231_v38 = vadd.f32 %v2926_v59, %v1230_v47  ;;  %2100 = vmatprep.mubr.msk.f32.mxu0 %vm376_vm3, %v1288_v46 }
 0x229   :  { %v1232_v48 = vpop.f32.mrf.mxu1 }
 0x22a   :  { %v1289_v54 = vmax.f32 %v1231_v38, 0.0 }
 0x22b   :  { %v1235_v50 = vpop.f32.mrf.mxu1 }
 0x22c   :  { %v1236_v51 = vadd.f32 %v2926_v59, %v1235_v50  ;;  %2101 = vmatmul.mubr.msk.f32.gmra.mxu0 %vm376_vm3, %v1289_v54 }
 0x22d   :  { %v1237_v52 = vpop.f32.mrf.mxu1 }
 0x22e   :  { %v1290_v56 = vmax.f32 %v1236_v51, 0.0 }
 0x22f   :  { %v1240_v57 = vpop.f32.mrf.mxu1 }
 0x230   :  { %v1241_v58 = vadd.f32 %v2926_v59, %v1240_v57  ;;  %2103 = vmatprep.mubr.msk.f32.mxu0 %vm376_vm3, %v1290_v56 }
 0x231   :  { %v1242_v60 = vpop.f32.mrf.mxu1 }
 0x232   :  { %v1291_v62 = vmax.f32 %v1241_v58, 0.0 }
 0x233   :  { %v1245_v53 = vpop.f32.mrf.mxu1 }
 0x234   :  { %v1246_v63 = vadd.f32 %v2926_v59, %v1245_v53  ;;  %2104 = vmatmul.mubr.msk.f32.gmra.mxu0 %vm376_vm3, %v1291_v62 }
 0x235   :  { %v1247_v0 = vpop.f32.mrf.mxu1 }
 0x236   :  { %v1292_v1 = vmax.f32 %v1246_v63, 0.0 }
 0x237   :  { %v1250_v2 = vpop.f32.mrf.mxu1 }
 0x238   :  { %v1251_v3 = vadd.f32 %v2926_v59, %v1250_v2  ;;  %2106 = vmatprep.mubr.msk.f32.mxu0 %vm376_vm3, %v1292_v1 }
 0x239   :  { %v1252_v4 = vpop.f32.mrf.mxu1 }
 0x23a   :  { %v1293_v5 = vmax.f32 %v1251_v3, 0.0 }
 0x23b   :  { %v1255_v6 = vpop.f32.mrf.mxu1 }
 0x23c   :  { %v1256_v7 = vadd.f32 %v2926_v59, %v1255_v6  ;;  %2107 = vmatmul.mubr.msk.f32.gmra.mxu0 %vm376_vm3, %v1293_v5 }
 0x23d   :  { %v1257_v8 = vpop.f32.mrf.mxu1 }
 0x23e   :  { %v1294_v9 = vmax.f32 %v1256_v7, 0.0 }
 0x23f   :  { %v1260_v10 = vpop.f32.mrf.mxu1 }
 0x240   :  { %v1261_v11 = vadd.f32 %v2926_v59, %v1260_v10  ;;  %2109 = vmatprep.mubr.msk.f32.mxu0 %vm376_vm3, %v1294_v9 }
 0x241   :  { %v1262_v12 = vpop.f32.mrf.mxu1 }
 0x242   :  { %v1295_v13 = vmax.f32 %v1261_v11, 0.0 }
 0x243   :  { %v1265_v14 = vpop.f32.mrf.mxu1 }
 0x244   :  { %v1266_v15 = vadd.f32 %v2926_v59, %v1265_v14  ;;  %2110 = vmatmul.mubr.msk.f32.gmra.mxu0 %vm376_vm3, %v1295_v13 }
 0x245   :  { %v1267_v16 = vpop.f32.mrf.mxu1 }
 0x246   :  { %v1296_v17 = vmax.f32 %v1266_v15, 0.0 }
 0x247   :  { %v1270_v18 = vpop.f32.mrf.mxu1 }
 0x248   :  { %v1271_v19 = vadd.f32 %v2926_v59, %v1270_v18  ;;  %2112 = vmatprep.mubr.msk.f32.mxu1 %vm376_vm3, %v1296_v17 }
 0x249   :  { %v1272_v20 = vpop.f32.mrf.mxu1 }
 0x24a   :  { %v1297_v21 = vmax.f32 %v1271_v19, 0.0 }
 0x24b   :  { %v1275_v22 = vpop.f32.mrf.mxu1 }
 0x24c   :  { %v1276_v23 = vadd.f32 %v2926_v59, %v1275_v22  ;;  %2113 = vmatmul.mubr.msk.f32.vlgmr.msra.gmra.mxu1 %vm376_vm3, %v1297_v21 }
 0x24d   :  { %v1277_v24 = vpop.f32.mrf.mxu1 }
 0x24e   :  { %v1298_v25 = vmax.f32 %v1276_v23, 0.0 }
 0x24f   :  { %v1280_v26 = vpop.f32.mrf.mxu1 }
 0x250   :  { %v1281_v39 = vadd.f32 %v2926_v59, %v1280_v26  ;;  %2115 = vmatprep.mubr.msk.f32.mxu1 %vm376_vm3, %v1298_v25 }
 0x251   :  { %v1282_v41 = vpop.f32.mrf.mxu1 }
 0x252   :  { %v1299_v42 = vmax.f32 %v1281_v39, 0.0 }
 0x254   :  { %2116 = vmatmul.mubr.msk.f32.gmra.mxu1 %vm376_vm3, %v1299_v42  ;;  %v3008_v42 = vld [vmem:[#allocation4] ss:$0 sm:$0xff] }
 0x276   :  { %v1523_v16 = vpop.permute.xlu0 %1522 }
 0x27a   :  { %v1527_v15 = vpop.permute.xlu1 %1526  ;;  %v1521_v18 = vpop.permute.xlu0 %1520 }
 0x27e   :  { %v1525_v17 = vpop.permute.xlu1 %1524 }
 0x280   :  { %v1529_v20 = vpop.permute.xlu0 %1528 }
 0x282   :  { %v1531_v19 = vpop.permute.xlu1 %1530 }
 0x284   :  { %v2994_v22 = vpop.permute.xlu0 %1532 }
 0x286   :  { %v1535_v21 = vpop.permute.xlu1 %1534 }
 0x288   :  { %v2998_v24 = vpop.permute.xlu0 %1536 }
 0x28a   :  { %v2996_v23 = vpop.permute.xlu1 %1538 }
 0x28c   :  { %v3002_v26 = vpop.permute.xlu0 %1540 }
 0x28e   :  { %v3000_v25 = vpop.permute.xlu1 %1542 }
 0x290   :  { %v3006_v41 = vpop.permute.xlu0 %1544 }
 0x292   :  { %v3004_v39 = vpop.permute.xlu1 %1546 }
 0x2dc   :  { %v2096_v45 = vpop.f32.mrf.mxu0 }
 0x2dd   :  { %v1431_v46 = vadd.f32 %v2096_v45, %v1811_v43  ;;  %v497_v45 = vadd.f32 %v2878_v27, %v3008_v42  ;;  %v1666_v27 = vld [vmem:[%s3214_s15] sm:$0xff] }
 0x2de   :  { %v1425_v47 = vpop.f32.mrf.mxu0 }
 0x2df   :  { %v1426_v38 = vadd.f32 %v1811_v43, %v1425_v47  ;;  %1586 = vrot.lane.b32.xlu1 %v1431_v46, %s2271_s20  ;;  %v3014_v46 = vpop.permute.xlu0 %1548  ;;  %v1667_v47 = vld [vmem:[%s3214_s15 + $0x8] sm:$0xff] }
 0x2e1   :  { %1584 = vrot.lane.b32.xlu0 %v1426_v38, %s2271_s20  ;;  %v492_v38 = vadd.f32 %v3008_v42, %v2880_v28 }
 0x2e4   :  { %v2099_v48 = vpop.f32.mrf.mxu0 }
 0x2e5   :  { %v1441_v54 = vadd.f32 %v2099_v48, %v1811_v43  ;;  %v1634_v48 = vsel %vm1632_vm5, %v497_v45, %v1523_v16  ;;  %v522_v16 = vadd.f32 %v3008_v42, %v2892_v34 }
 0x2e6   :  { %v1435_v50 = vpop.f32.mrf.mxu0 }
 0x2e7   :  { %v1436_v59 = vadd.f32 %v1811_v43, %v1435_v50  ;;  %1590 = vrot.lane.b32.xlu1 %v1441_v54, %s2271_s20 }
 0x2e9   :  { %1588 = vrot.lane.b32.xlu0 %v1436_v59, %s2271_s20  ;;  %v1633_v59 = vsel %vm1632_vm5, %v492_v38, %v1521_v18 }
 0x2ec   :  { %v2102_v51 = vpop.f32.mrf.mxu0 }
 0x2ed   :  { %v1451_v52 = vadd.f32 %v2102_v51, %v1811_v43 }
 0x2ee   :  { %v1445_v56 = vpop.f32.mrf.mxu0 }
 0x2ef   :  { %v1446_v57 = vadd.f32 %v1811_v43, %v1445_v56  ;;  %1594 = vrot.lane.b32.xlu1 %v1451_v52, %s2271_s20 }
 0x2f1   :  { %1592 = vrot.lane.b32.xlu0 %v1446_v57, %s2271_s20  ;;  %v507_v57 = vadd.f32 %v2882_v29, %v3008_v42  ;;  %v1668_v29 = vld [vmem:[%s3214_s15 + $0x10] sm:$0xff] }
 0x2f4   :  { %v2105_v58 = vpop.f32.mrf.mxu0 }
 0x2f5   :  { %v1461_v60 = vadd.f32 %v2105_v58, %v1811_v43  ;;  %v1669_v58 = vld [vmem:[%s3214_s15 + $0x18] sm:$0xff] }
 0x2f6   :  { %v1455_v62 = vpop.f32.mrf.mxu0 }
 0x2f7   :  { %v1456_v53 = vadd.f32 %v1811_v43, %v1455_v62  ;;  %1598 = vrot.lane.b32.xlu1 %v1461_v60, %s2271_s20  ;;  %v502_v60 = vadd.f32 %v3008_v42, %v2884_v30  ;;  %v1636_v62 = vsel %vm1632_vm5, %v507_v57, %v1527_v15  ;;  %v1673_v15 = vld [vmem:[%s3214_s15 + $0x38] sm:$0xff] }
 0x2f9   :  { %1596 = vrot.lane.b32.xlu0 %v1456_v53, %s2271_s20 }
 0x2fc   :  { %v2108_v63 = vpop.f32.mrf.mxu0 }
 0x2fd   :  { %v1471_v0 = vadd.f32 %v2108_v63, %v1811_v43 }
 0x2fe   :  { %v1465_v1 = vpop.f32.mrf.mxu0 }
 0x2ff   :  { %v1466_v2 = vadd.f32 %v1811_v43, %v1465_v1  ;;  %1602 = vrot.lane.b32.xlu1 %v1471_v0, %s2271_s20  ;;  %v1635_v0 = vsel %vm1632_vm5, %v502_v60, %v1525_v17 }
 0x301   :  { %1600 = vrot.lane.b32.xlu0 %v1466_v2, %s2271_s20 }
 0x304   :  { %v2111_v3 = vpop.f32.mrf.mxu0 }
 0x305   :  { %v1481_v4 = vadd.f32 %v2111_v3, %v1811_v43 }
 0x306   :  { %v1475_v5 = vpop.f32.mrf.mxu0 }
 0x307   :  { %v1476_v6 = vadd.f32 %v1811_v43, %v1475_v5  ;;  %1606 = vrot.lane.b32.xlu1 %v1481_v4, %s2271_s20  ;;  %v517_v4 = vadd.f32 %v2886_v31, %v3008_v42  ;;  %v1671_v5 = vld [vmem:[%s3214_s15 + $0x28] sm:$0xff]  ;;  %v1670_v31 = vld [vmem:[%s3214_s15 + $0x20] sm:$0xff] }
 0x309   :  { %1604 = vrot.lane.b32.xlu0 %v1476_v6, %s2271_s20  ;;  %v512_v6 = vadd.f32 %v3008_v42, %v2888_v32 }
 0x30c   :  { %v2114_v7 = vpop.f32.mrf.mxu1 }
 0x30d   :  { %v1491_v8 = vadd.f32 %v2114_v7, %v1811_v43  ;;  %v1638_v7 = vsel %vm1632_vm5, %v517_v4, %v1531_v19 }
 0x30e   :  { %v1485_v9 = vpop.f32.mrf.mxu1 }
 0x30f   :  { %v1486_v10 = vadd.f32 %v1811_v43, %v1485_v9  ;;  %1610 = vrot.lane.b32.xlu1 %v1491_v8, %s2271_s20 }
 0x311   :  { %1608 = vrot.lane.b32.xlu0 %v1486_v10, %s2271_s20  ;;  %v1637_v10 = vsel %vm1632_vm5, %v512_v6, %v1529_v20  ;;  %v1639_v20 = vsel %vm1632_vm5, %v522_v16, %v2994_v22  ;;  %v1675_v22 = vld [vmem:[%s3214_s15 + $0x48] sm:$0xff] }
 0x314   :  { %v2117_v11 = vpop.f32.mrf.mxu1 }
 0x315   :  { %v1501_v12 = vadd.f32 %v2117_v11, %v1811_v43 }
 0x316   :  { %v1495_v13 = vpop.f32.mrf.mxu1 }
 0x317   :  { %v1496_v14 = vadd.f32 %v1811_v43, %v1495_v13  ;;  %1614 = vrot.lane.b32.xlu1 %v1501_v12, %s2271_s20  ;;  %v3010_v43 = vpop.permute.xlu1 %1550 }
 0x319   :  { %1612 = vrot.lane.b32.xlu0 %v1496_v14, %s2271_s20  ;;  %v527_v14 = vadd.f32 %v2890_v33, %v3008_v42  ;;  %v1672_v33 = vld [vmem:[%s3214_s15 + $0x30] sm:$0xff] }
 0x31b   :  { %v1640_v17 = vsel %vm1632_vm5, %v527_v14, %v1535_v21  ;;  %v537_v21 = vadd.f32 %v2894_v35, %v3008_v42  ;;  %v1674_v35 = vld [vmem:[%s3214_s15 + $0x40] sm:$0xff] }
 0x351   :  { %v1587_v54 = vpop.permute.xlu1 %1586 }
 0x352   :  { %v1651_v50 = vsel %vm1649_vm6, %v1634_v48, %v1587_v54  ;;  %v532_v48 = vadd.f32 %v3008_v42, %v2896_v36  ;;  %v1642_v54 = vsel %vm1632_vm5, %v537_v21, %v2996_v23  ;;  %v547_v23 = vadd.f32 %v2898_v37, %v3008_v42  ;;  %v1676_v37 = vld [vmem:[%s3214_s15 + $0x50] sm:$0xff] }
 0x353   :  { %v1683_v51 = vadd.f32 %v1667_v47, %v1651_v50  ;;  %v1585_v52 = vpop.permute.xlu0 %1584 }
 0x354   :  { %v1650_v56 = vsel %vm1649_vm6, %v1633_v59, %v1585_v52  ;;  %v1641_v59 = vsel %vm1632_vm5, %v532_v48, %v2998_v24  ;;  %v1677_v24 = vld [vmem:[%s3214_s15 + $0x58] sm:$0xff]  ;;  %v1644_v57 = vsel %vm1632_vm5, %v547_v23, %v3000_v25  ;;  %v557_v25 = vadd.f32 %v2907_v44, %v3008_v42  ;;  %v1678_v44 = vld [vmem:[%s3214_s15 + $0x60] sm:$0xff] }
 0x355   :  { %1700 = vst.msk [vmem:[%s3215_s16 + $0x8] sm:$0xff] %vm1698_vm7, %v1683_v51  ;;  %v1682_v28 = vadd.f32 %v1666_v27, %v1650_v56 }
 0x357   :  { %1699 = vst.msk [vmem:[%s3215_s16] sm:$0xff] %vm1698_vm7, %v1682_v28  ;;  %v542_v28 = vadd.f32 %v3008_v42, %v2902_v40 }
 0x359   :  { %v1591_v53 = vpop.permute.xlu1 %1590 }
 0x35a   :  { %v1653_v63 = vsel %vm1649_vm6, %v1636_v62, %v1591_v53  ;;  %v1643_v62 = vsel %vm1632_vm5, %v542_v28, %v3002_v26  ;;  %v1679_v26 = vld [vmem:[%s3214_s15 + $0x68] sm:$0xff] }
 0x35b   :  { %v1685_v1 = vadd.f32 %v1669_v58, %v1653_v63  ;;  %v1589_v2 = vpop.permute.xlu0 %1588 }
 0x35c   :  { %v1652_v3 = vsel %vm1649_vm6, %v1635_v0, %v1589_v2  ;;  %v552_v0 = vadd.f32 %v3008_v42, %v2913_v49 }
 0x35d   :  { %1702 = vst.msk [vmem:[%s3215_s16 + $0x18] sm:$0xff] %vm1698_vm7, %v1685_v1  ;;  %v1684_v30 = vadd.f32 %v1668_v29, %v1652_v3  ;;  %v1646_v1 = vsel %vm1632_vm5, %v557_v25, %v3004_v39  ;;  %v567_v39 = vadd.f32 %v2918_v55, %v3008_v42  ;;  %v1680_v55 = vld [vmem:[%s3214_s15 + $0x70] sm:$0xff] }
 0x35f   :  { %1701 = vst.msk [vmem:[%s3215_s16 + $0x10] sm:$0xff] %vm1698_vm7, %v1684_v30  ;;  %v1645_v30 = vsel %vm1632_vm5, %v552_v0, %v3006_v41  ;;  %v1681_v41 = vld [vmem:[%s3214_s15 + $0x78] sm:$0xff] }
 0x361   :  { %v1595_v8 = vpop.permute.xlu1 %1594 }
 0x362   :  { %v1655_v9 = vsel %vm1649_vm6, %v1638_v7, %v1595_v8  ;;  %v562_v7 = vadd.f32 %v3008_v42, %v2924_v61  ;;  %v1648_v8 = vsel %vm1632_vm5, %v567_v39, %v3010_v43 }
 0x363   :  { %v1687_v11 = vadd.f32 %v1671_v5, %v1655_v9  ;;  %v1593_v12 = vpop.permute.xlu0 %1592 }
 0x364   :  { %v1654_v13 = vsel %vm1649_vm6, %v1637_v10, %v1593_v12  ;;  %v1647_v10 = vsel %vm1632_vm5, %v562_v7, %v3014_v46 }
 0x365   :  { %1704 = vst.msk [vmem:[%s3215_s16 + $0x28] sm:$0xff] %vm1698_vm7, %v1687_v11  ;;  %v1686_v32 = vadd.f32 %v1670_v31, %v1654_v13 }
 0x367   :  { %1703 = vst.msk [vmem:[%s3215_s16 + $0x20] sm:$0xff] %vm1698_vm7, %v1686_v32 }
 0x369   :  { %v1599_v18 = vpop.permute.xlu1 %1598 }
 0x36a   :  { %v1657_v19 = vsel %vm1649_vm6, %v1640_v17, %v1599_v18 }
 0x36b   :  { %v1689_v45 = vadd.f32 %v1673_v15, %v1657_v19  ;;  %v1597_v47 = vpop.permute.xlu0 %1596 }
 0x36c   :  { %v1656_v38 = vsel %vm1649_vm6, %v1639_v20, %v1597_v47 }
 0x36d   :  { %1706 = vst.msk [vmem:[%s3215_s16 + $0x38] sm:$0xff] %vm1698_vm7, %v1689_v45  ;;  %v1688_v34 = vadd.f32 %v1672_v33, %v1656_v38 }
 0x36f   :  { %1705 = vst.msk [vmem:[%s3215_s16 + $0x30] sm:$0xff] %vm1698_vm7, %v1688_v34 }
 0x371   :  { %v1603_v50 = vpop.permute.xlu1 %1602 }
 0x372   :  { %v1659_v27 = vsel %vm1649_vm6, %v1642_v54, %v1603_v50 }
 0x373   :  { %v1691_v51 = vadd.f32 %v1675_v22, %v1659_v27  ;;  %v1601_v52 = vpop.permute.xlu0 %1600 }
 0x374   :  { %v1658_v56 = vsel %vm1649_vm6, %v1641_v59, %v1601_v52 }
 0x375   :  { %1708 = vst.msk [vmem:[%s3215_s16 + $0x48] sm:$0xff] %vm1698_vm7, %v1691_v51  ;;  %v1690_v36 = vadd.f32 %v1674_v35, %v1658_v56 }
 0x377   :  { %1707 = vst.msk [vmem:[%s3215_s16 + $0x40] sm:$0xff] %vm1698_vm7, %v1690_v36 }
 0x379   :  { %v1607_v58 = vpop.permute.xlu1 %1606 }
 0x37a   :  { %v1661_v60 = vsel %vm1649_vm6, %v1644_v57, %v1607_v58 }
 0x37b   :  { %v1693_v53 = vadd.f32 %v1677_v24, %v1661_v60  ;;  %v1605_v63 = vpop.permute.xlu0 %1604 }
 0x37c   :  { %v1660_v29 = vsel %vm1649_vm6, %v1643_v62, %v1605_v63 }
 0x37d   :  { %1710 = vst.msk [vmem:[%s3215_s16 + $0x58] sm:$0xff] %vm1698_vm7, %v1693_v53  ;;  %v1692_v40 = vadd.f32 %v1676_v37, %v1660_v29 }
 0x37f   :  { %1709 = vst.msk [vmem:[%s3215_s16 + $0x50] sm:$0xff] %vm1698_vm7, %v1692_v40 }
 0x381   :  { %v1611_v2 = vpop.permute.xlu1 %1610 }
 0x382   :  { %v1663_v3 = vsel %vm1649_vm6, %v1646_v1, %v1611_v2 }
 0x383   :  { %v1695_v4 = vadd.f32 %v1679_v26, %v1663_v3  ;;  %v1609_v5 = vpop.permute.xlu0 %1608 }
 0x384   :  { %v1662_v6 = vsel %vm1649_vm6, %v1645_v30, %v1609_v5 }
 0x385   :  { %1712 = vst.msk [vmem:[%s3215_s16 + $0x68] sm:$0xff] %vm1698_vm7, %v1695_v4  ;;  %v1694_v49 = vadd.f32 %v1678_v44, %v1662_v6 }
 0x387   :  { %1711 = vst.msk [vmem:[%s3215_s16 + $0x60] sm:$0xff] %vm1698_vm7, %v1694_v49 }
 0x389   :  { %v1615_v9 = vpop.permute.xlu1 %1614 }
 0x38a   :  { %v1665_v31 = vsel %vm1649_vm6, %v1648_v8, %v1615_v9 }
 0x38b   :  { %v1697_v11 = vadd.f32 %v1681_v41, %v1665_v31  ;;  %v1613_v12 = vpop.permute.xlu0 %1612 }
 0x38c   :  { %v1664_v13 = vsel %vm1649_vm6, %v1647_v10, %v1613_v12 }
 0x38d   :  { %1714 = vst.msk [vmem:[%s3215_s16 + $0x78] sm:$0xff] %vm1698_vm7, %v1697_v11  ;;  %v1696_v61 = vadd.f32 %v1680_v55, %v1664_v13 }
 0x38f   :  { %1713 = vst.msk [vmem:[%s3215_s16 + $0x70] sm:$0xff] %vm1698_vm7, %v1696_v61 }
 0x390   :  { %1719 = vsyncpa [#allocation3], 1 }
 0x391   :  { %1720 = vsyncpa [#allocation5], 1 }
 0x392   :  { %1721 = vsyncpa [#allocation8], 1 }
 0x393   :  { %1722 = vsyncpa [#allocation11], 1 }

// kernel: forward.3
= control target key start
LH: loop header
LB: loop body
LE: loop exit
PB: predicated region body
PF: predicated region fallthrough
CT: control target
= control target key end

     0   :  { %s15391_s0 = inlined_call_operand.vmem [shape: f32[128,24], index: 0, kind: input, shape index: {}]   ;;  %s15392_s1 = inlined_call_operand.vmem [shape: f32[2,24,72], index: 1, kind: input, shape index: {}]   ;;  %s15393_s2 = inlined_call_operand.vmem [shape: f32[2,1,72], index: 2, kind: input, shape index: {}]   ;;  %s15394_s3 = inlined_call_operand.vmem [shape: f32[2,24,24], index: 3, kind: input, shape index: {}]   ;;  %s15395_s4 = inlined_call_operand.vmem [shape: f32[2,1,24], index: 4, kind: input, shape index: {}]   ;;  %s15396_s5 = inlined_call_operand.vmem [shape: f32[2,1,24], index: 5, kind: input, shape index: {}]   ;;  %s15397_s6 = inlined_call_operand.vmem [shape: f32[2,1,24], index: 6, kind: input, shape index: {}]   ;;  %s15398_s7 = inlined_call_operand.vmem [shape: f32[2,24,2048], index: 7, kind: input, shape index: {}]   ;;  %s15399_s8 = inlined_call_operand.vmem [shape: f32[2,1,2048], index: 8, kind: input, shape index: {}]   ;;  %s15400_s9 = inlined_call_operand.vmem [shape: f32[2,2048,24], index: 9, kind: input, shape index: {}]   ;;  %s15401_s10 = inlined_call_operand.vmem [shape: f32[2,1,24], index: 10, kind: input, shape index: {}]   ;;  %s15402_s11 = inlined_call_operand.vmem [shape: f32[2,1,24], index: 11, kind: input, shape index: {}]   ;;  %s15403_s12 = inlined_call_operand.vmem [shape: f32[2,1,24], index: 12, kind: input, shape index: {}]   ;;  %s15404_s13 = inlined_call_operand.vmem [shape: f32[24,4], index: 13, kind: input, shape index: {}]   ;;  %s15405_s14 = inlined_call_operand.vmem [shape: f32[1,4], index: 14, kind: input, shape index: {}]   ;;  %s15406_s15 = inlined_call_operand.hbm [shape: f32[2,4], index: 15, kind: output, shape index: {}]  }
   0x1   :  { %15432 = sst [smem:[#allocation55_spill]] %s15392_s1 }
   0x2   :  { %15433 = sst [smem:[#allocation56_spill]] %s15393_s2 }
   0x3   :  { %15434 = sst [smem:[#allocation57_spill]] %s15394_s3 }
   0x4   :  { %15435 = sst [smem:[#allocation58_spill]] %s15395_s4 }
   0x5   :  { %15436 = sst [smem:[#allocation59_spill]] %s15398_s7 }
   0x6   :  { %15437 = sst [smem:[#allocation60_spill]] %s15404_s13 }
   0x7   :  { %15438 = sst [smem:[#allocation61_spill]] %s15405_s14 }
   0x8   :  { %15439 = sst [smem:[#allocation62_spill]] %s15406_s15 }
   0x9   :  { %20 = vsyncpa [#allocation5], 0  ;;  %s11046_s18 = smov 0  }
   0xa LB: > { %15440 = sst [smem:[#allocation7_spill]] %s10946_s18  ;;  %s11052_s19 = sadd.s32 4294967295, %s10946_s18   ;;  %s10946_s18 = sphi %s11046_s18, %s26_s18  }
   0xb   : > { %p8711_p0 = scmp.ge.s32.totalorder %s10946_s18, 1  ;;  %p528_p1 = scmp.lt.s32.totalorder %s10946_s18, 3 }
   0xd   : > { %p529_p2 = pnand %p8711_p0, %p528_p1 }
   0xf   : > { %532 = sbr.rel (%p529_p2) target bundleno = 6511 (0x196f), region = 80 }
  0x14   : > { %p611_p3 = scmp.lt.s32.totalorder %s11052_s19, 1  ;;  %s15441_s2 = sld [smem:[#allocation56_spill]] }
  0x15   : > { %s15443_s1 = sld [smem:[#allocation55_spill]]  ;;  %p8718_p4 = scmp.ne.s32.totalorder %s11052_s19, 0 }
  0x16   : > { %s11058_s20 = scalar_select %p611_p3, %s11052_s19, 1 }
  0x17   : > { %s15444_s3 = sld [smem:[#allocation57_spill]] }
  0x18   : > { %s10541_s21 = smul.u32 24, %s11058_s20  ;;  %s8715_s26 = sshll.u32 %s11058_s20, 4 }
  0x19   : > { %s10542_s25 = smul.u32 384, %s11058_s20  ;;  %s9085_s27 = sshll.u32 %s11058_s20, 11 }
  0x1a   : > { %s11065_s24 = scalar_lea.vmem %s15441_s2, %s11058_s20  ;;  %s15445_s7 = sld [smem:[#allocation59_spill]] }
  0x1b   : > { %s11078_s18 = scalar_lea.vmem %s15443_s1, %s10541_s21  ;;  %s11100_s30 = scalar_lea.vmem %s15399_s8, %s8715_s26 }
  0x1c   : > { %s649_s2 = scalar_lea.vmem %s15401_s10, %s11058_s20  ;;  %s652_s4 = scalar_lea.vmem %s15402_s11, %s11058_s20 }
  0x1d   : > { %s11083_s13 = scalar_lea.vmem %s15444_s3, %s10541_s21  ;;  %s11105_s21 = scalar_lea.vmem %s15400_s9, %s9085_s27 }
  0x1e   : > { %659 = sbr.rel (%p8718_p4) target bundleno = 44 (0x2c), region = 84 }
  0x20   : > { %s11095_s29 = scalar_lea.vmem %s15445_s7, %s10542_s25  ;;  %s655_s7 = scalar_lea.vmem %s15403_s12, %s11058_s20 }
  0x23   : > { %v660_v0 = vld [vmem:[%s15391_s0] sm:$0xff]  ;;  %vm676_vm0 = vcmask 195584   ;;  %v661_v1 = vld [vmem:[%s15391_s0 + $0x8] sm:$0xff]  ;;  %v662_v2 = vld [vmem:[%s15391_s0 + $0x10] sm:$0xff] }
  0x24   : > { %677 = vst.msk [vmem:[#allocation2] sm:$0xff] %vm676_vm0, %v660_v0  ;;  %678 = vst.msk [vmem:[#allocation2 + $0x8] sm:$0xff] %vm676_vm0, %v661_v1  ;;  %v663_v3 = vld [vmem:[%s15391_s0 + $0x18] sm:$0xff]  ;;  %v664_v4 = vld [vmem:[%s15391_s0 + $0x20] sm:$0xff] }
  0x25   : > { %679 = vst.msk [vmem:[#allocation2 + $0x10] sm:$0xff] %vm676_vm0, %v662_v2  ;;  %v665_v5 = vld [vmem:[%s15391_s0 + $0x28] sm:$0xff]  ;;  %680 = vst.msk [vmem:[#allocation2 + $0x18] sm:$0xff] %vm676_vm0, %v663_v3  ;;  %v666_v6 = vld [vmem:[%s15391_s0 + $0x30] sm:$0xff] }
  0x26   : > { %681 = vst.msk [vmem:[#allocation2 + $0x20] sm:$0xff] %vm676_vm0, %v664_v4  ;;  %682 = vst.msk [vmem:[#allocation2 + $0x28] sm:$0xff] %vm676_vm0, %v665_v5  ;;  %v667_v7 = vld [vmem:[%s15391_s0 + $0x38] sm:$0xff]  ;;  %v668_v8 = vld [vmem:[%s15391_s0 + $0x40] sm:$0xff] }
  0x27   : > { %683 = vst.msk [vmem:[#allocation2 + $0x30] sm:$0xff] %vm676_vm0, %v666_v6  ;;  %684 = vst.msk [vmem:[#allocation2 + $0x38] sm:$0xff] %vm676_vm0, %v667_v7  ;;  %v669_v9 = vld [vmem:[%s15391_s0 + $0x48] sm:$0xff]  ;;  %v670_v10 = vld [vmem:[%s15391_s0 + $0x50] sm:$0xff] }
  0x28   : > { %685 = vst.msk [vmem:[#allocation2 + $0x40] sm:$0xff] %vm676_vm0, %v668_v8  ;;  %v671_v11 = vld [vmem:[%s15391_s0 + $0x58] sm:$0xff]  ;;  %686 = vst.msk [vmem:[#allocation2 + $0x48] sm:$0xff] %vm676_vm0, %v669_v9  ;;  %v672_v12 = vld [vmem:[%s15391_s0 + $0x60] sm:$0xff] }
  0x29   : > { %687 = vst.msk [vmem:[#allocation2 + $0x50] sm:$0xff] %vm676_vm0, %v670_v10  ;;  %688 = vst.msk [vmem:[#allocation2 + $0x58] sm:$0xff] %vm676_vm0, %v671_v11  ;;  %v673_v13 = vld [vmem:[%s15391_s0 + $0x68] sm:$0xff]  ;;  %v674_v14 = vld [vmem:[%s15391_s0 + $0x70] sm:$0xff] }
  0x2a   : > { %689 = vst.msk [vmem:[#allocation2 + $0x60] sm:$0xff] %vm676_vm0, %v672_v12  ;;  %690 = vst.msk [vmem:[#allocation2 + $0x68] sm:$0xff] %vm676_vm0, %v673_v13  ;;  %v675_v15 = vld [vmem:[%s15391_s0 + $0x78] sm:$0xff] }
  0x2b   : > { %691 = vst.msk [vmem:[#allocation2 + $0x70] sm:$0xff] %vm676_vm0, %v674_v14  ;;  %692 = vst.msk [vmem:[#allocation2 + $0x78] sm:$0xff] %vm676_vm0, %v675_v15 }
  0x2c PF: > { %v711_v16 = vld [vmem:[%s11078_s18 + $0x10] sm:$0xff]  ;;  %v710_v17 = vld [vmem:[%s11078_s18 + $0x8] sm:$0xff]  ;;  %vm719_vm1 = vcmask 195584   ;;  %v693_v18 = vld [vmem:[#allocation2] sm:$0xff]  ;;  %vm945_vm2 = vcmask 48128   ;;  %s10949_s22 = smov 98  }
  0x2d   : > { %10024 = vmatprep.subr.mxu1 %v711_v16  ;;  %v709_v19 = vld [vmem:[%s11078_s18] sm:$0xff]  ;;  %10030 = vmatprep.mubr.msk.f32.mxu1 %vm719_vm1, %v693_v18  ;;  %v694_v20 = vld [vmem:[#allocation2 + $0x8] sm:$0xff]  ;;  %v695_v21 = vld [vmem:[#allocation2 + $0x10] sm:$0xff]  ;;  %s10948_s18 = smov 104   ;;  %s10950_s23 = smov 122   ;;  %vm1091_vm3 = vcmask 523264  }
  0x2e   : > { %10025 = vmatpush3.msra.mxu1 %v711_v16  ;;  %v696_v22 = vld [vmem:[#allocation2 + $0x18] sm:$0xff]  ;;  %v697_v23 = vld [vmem:[#allocation2 + $0x20] sm:$0xff]  ;;  %v698_v24 = vld [vmem:[#allocation2 + $0x28] sm:$0xff]  ;;  %s10951_s25 = smov 80   ;;  %s10952_s28 = smov 74   ;;  %vm1799_vm4 = vcmask 97328  }
  0x2f   : > { %10026 = vmatprep.subr.mxu1 %v710_v17  ;;  %v699_v25 = vld [vmem:[#allocation2 + $0x30] sm:$0xff]  ;;  %v700_v26 = vld [vmem:[#allocation2 + $0x38] sm:$0xff]  ;;  %v701_v27 = vld [vmem:[#allocation2 + $0x40] sm:$0xff]  ;;  %s10953_s26 = smov 92   ;;  %s10954_s16 = smov 116   ;;  %vm2258_vm5 = vcmask 146528  }
  0x30   : > { %10027 = vmatpush3.msra.mxu1 %v710_v17  ;;  %v702_v28 = vld [vmem:[#allocation2 + $0x48] sm:$0xff]  ;;  %v703_v29 = vld [vmem:[#allocation2 + $0x50] sm:$0xff]  ;;  %v704_v30 = vld [vmem:[#allocation2 + $0x58] sm:$0xff]  ;;  %s10955_s27 = smov 68   ;;  %s10956_s17 = smov 86   ;;  %vm2717_vm6 = vcmask 195728  }
  0x31   : > { %10028 = vmatprep.subr.mxu1 %v709_v19  ;;  %v705_v31 = vld [vmem:[#allocation2 + $0x60] sm:$0xff]  ;;  %v706_v32 = vld [vmem:[#allocation2 + $0x68] sm:$0xff]  ;;  %s10957_s14 = smov 110   ;;  %s10958_s15 = smov 62  }
  0x32   : > { %10029 = vmatpush3.msra.mxu1 %v709_v19  ;;  %v707_v33 = vld [vmem:[#allocation2 + $0x70] sm:$0xff]  ;;  %v708_v34 = vld [vmem:[#allocation2 + $0x78] sm:$0xff]  ;;  %v8719_v36 = vld [vmem:[%s11065_s24] ss:$0 sm:$0xff]  ;;  %s10960_s1 = smov 12   ;;  %s10961_s3 = smov 18  }
  0x33   : > { %10031 = vmatmul.mubr.msk.f32.vlgmr.msra.gmra.mxu1 %vm719_vm1, %v694_v20  ;;  %p9078_p5 = scmp.ne.s32.totalorder %s11052_s19, 1 }
  0x34   : > { %10033 = vmatprep.mubr.msk.f32.mxu1 %vm719_vm1, %v695_v21 }
  0x37   : > { %10034 = vmatmul.mubr.msk.f32.gmra.mxu1 %vm719_vm1, %v696_v22 }
  0x38   : > { %10036 = vmatprep.mubr.msk.f32.mxu1 %vm719_vm1, %v697_v23 }
  0x3b   : > { %10037 = vmatmul.mubr.msk.f32.gmra.mxu1 %vm719_vm1, %v698_v24 }
  0x3c   : > { %10039 = vmatprep.mubr.msk.f32.mxu1 %vm719_vm1, %v699_v25 }
  0x3f   : > { %10040 = vmatmul.mubr.msk.f32.gmra.mxu1 %vm719_vm1, %v700_v26 }
  0x40   : > { %10042 = vmatprep.mubr.msk.f32.mxu1 %vm719_vm1, %v701_v27 }
  0x43   : > { %10043 = vmatmul.mubr.msk.f32.gmra.mxu1 %vm719_vm1, %v702_v28 }
  0x44   : > { %10045 = vmatprep.mubr.msk.f32.mxu1 %vm719_vm1, %v703_v29 }
  0x47   : > { %10046 = vmatmul.mubr.msk.f32.gmra.mxu1 %vm719_vm1, %v704_v30 }
  0x48   : > { %10048 = vmatprep.mubr.msk.f32.mxu1 %vm719_vm1, %v705_v31 }
  0x4b   : > { %10049 = vmatmul.mubr.msk.f32.gmra.mxu1 %vm719_vm1, %v706_v32 }
  0x4c   : > { %10051 = vmatprep.mubr.msk.f32.mxu1 %vm719_vm1, %v707_v33 }
  0x4f   : > { %10052 = vmatmul.mubr.msk.f32.gmra.mxu1 %vm719_vm1, %v708_v34 }
  0xf3   : > { %v10032_v35 = vpop.f32.mrf.mxu1 }
  0xf4   : > { %v11237_v52 = vadd.f32 %v10032_v35, %v8719_v36 }
  0xf5   : > { %v834_v37 = vpop.f32.mrf.mxu1 }
  0xf6   : > { %v11204_v38 = vadd.f32 %v8719_v36, %v834_v37  ;;  %v11256_v53 = vmul.f32 0.4082483, %v11237_v52 }
  0xf7   : > { %v10035_v39 = vpop.f32.mrf.mxu1 }
  0xf8   : > { %v11207_v40 = vmul.f32 0.4082483, %v11204_v38  ;;  %v11231_v51 = vadd.f32 %v10035_v39, %v8719_v36 }
  0xf9   : > { %v844_v41 = vpop.f32.mrf.mxu1 }
  0xfa   : > { %10070 = vmatprep.mubr.msk.f32.mxu1 %vm945_vm2, %v11207_v40  ;;  %v11223_v49 = vadd.f32 %v8719_v36, %v844_v41  ;;  %v11263_v54 = vmul.f32 0.4082483, %v11231_v51 }
  0xfb   : > { %v10038_v42 = vpop.f32.mrf.mxu1 }
  0xfc   : > { %v11211_v43 = vadd.f32 %v10038_v42, %v8719_v36  ;;  %v11273_v56 = vmul.f32 0.4082483, %v11223_v49 }
  0xfd   : > { %v854_v44 = vpop.f32.mrf.mxu1 }
  0xfe   : > { %939 = vrot.lane.b32.xlu1 %v11211_v43, %s10948_s18  ;;  %v11215_v46 = vadd.f32 %v8719_v36, %v854_v44  ;;  %v11270_v55 = vmul.f32 0.4082483, %v11211_v43 }
  0xff   : > { %v10041_v45 = vpop.f32.mrf.mxu1 }
 0x100   : > { %v11217_v47 = vadd.f32 %v10041_v45, %v8719_v36  ;;  %v11283_v58 = vmul.f32 0.4082483, %v11215_v46 }
 0x101   : > { %v864_v48 = vpop.f32.mrf.mxu1 }
 0x102   : > { %943 = vrot.lane.b32.xlu0 %v11217_v47, %s10948_s18  ;;  %937 = vrot.lane.b32.xlu1 %v11215_v46, %s10948_s18  ;;  %v11225_v50 = vadd.f32 %v8719_v36, %v864_v48  ;;  %v11280_v57 = vmul.f32 0.4082483, %v11217_v47 }
 0x103   : > { %v11387_v29 = vpop.f32.mrf.mxu1 }
 0x104   : > { %v11290_v59 = vmul.f32 0.4082483, %v11225_v50  ;;  %15446 = vst [vmem:[#allocation8_spill] sm:$0xff] %v11387_v29 }
 0x105   : > { %v11389_v30 = vpop.f32.mrf.mxu1 }
 0x106   : > { %941 = vrot.lane.b32.xlu0 %v11225_v50, %s10948_s18  ;;  %933 = vrot.lane.b32.xlu1 %v11223_v49, %s10948_s18 }
 0x107   : > { %v11391_v31 = vpop.f32.mrf.mxu1 }
 0x109   : > { %v11393_v32 = vpop.f32.mrf.mxu1 }
 0x10a   : > { %935 = vrot.lane.b32.xlu0 %v11231_v51, %s10948_s18  ;;  %929 = vrot.lane.b32.xlu1 %v11204_v38, %s10948_s18 }
 0x10b   : > { %v11395_v33 = vpop.f32.mrf.mxu1 }
 0x10d   : > { %v11397_v34 = vpop.f32.mrf.mxu1 }
 0x10e   : > { %931 = vrot.lane.b32.xlu0 %v11237_v52, %s10948_s18  ;;  %1377 = vrot.lane.b32.xlu1 %v11225_v50, %s10949_s22 }
 0x10f   : > { %v11399_v35 = vpop.f32.mrf.mxu1 }
 0x111   : > { %v11401_v36 = vpop.f32.mrf.mxu1 }
 0x112   : > { %1379 = vrot.lane.b32.xlu0 %v11217_v47, %s10949_s22  ;;  %1373 = vrot.lane.b32.xlu1 %v11215_v46, %s10949_s22 }
 0x116   : > { %1375 = vrot.lane.b32.xlu0 %v11211_v43, %s10949_s22  ;;  %1369 = vrot.lane.b32.xlu1 %v11223_v49, %s10949_s22 }
 0x11a   : > { %1371 = vrot.lane.b32.xlu0 %v11231_v51, %s10949_s22  ;;  %1365 = vrot.lane.b32.xlu1 %v11204_v38, %s10949_s22 }
 0x11e   : > { %1367 = vrot.lane.b32.xlu0 %v11237_v52, %s10949_s22  ;;  %1351 = vrot.lane.b32.xlu1 %v11256_v53, %s10950_s23 }
 0x122   : > { %1355 = vrot.lane.b32.xlu1 %v11263_v54, %s10950_s23  ;;  %1349 = vrot.lane.b32.xlu0 %v11207_v40, %s10950_s23 }
 0x126   : > { %1359 = vrot.lane.b32.xlu1 %v11270_v55, %s10950_s23  ;;  %1353 = vrot.lane.b32.xlu0 %v11273_v56, %s10950_s23 }
 0x12a   : > { %1363 = vrot.lane.b32.xlu1 %v11280_v57, %s10950_s23  ;;  %1357 = vrot.lane.b32.xlu0 %v11283_v58, %s10950_s23 }
 0x12e   : > { %1200 = vrot.lane.b32.xlu1 %v11225_v50, %s10951_s25  ;;  %1361 = vrot.lane.b32.xlu0 %v11290_v59, %s10950_s23 }
 0x132   : > { %1194 = vrot.lane.b32.xlu1 %v11231_v51, %s10951_s25  ;;  %1202 = vrot.lane.b32.xlu0 %v11217_v47, %s10951_s25 }
 0x136   : > { %1192 = vrot.lane.b32.xlu1 %v11223_v49, %s10951_s25  ;;  %1198 = vrot.lane.b32.xlu0 %v11211_v43, %s10951_s25 }
 0x13a   : > { %1188 = vrot.lane.b32.xlu1 %v11204_v38, %s10951_s25  ;;  %1196 = vrot.lane.b32.xlu0 %v11215_v46, %s10951_s25 }
 0x13e   : > { %1626 = vrot.lane.b32.xlu1 %v11225_v50, %s10952_s28  ;;  %1190 = vrot.lane.b32.xlu0 %v11237_v52, %s10951_s25 }
 0x142   : > { %1622 = vrot.lane.b32.xlu1 %v11215_v46, %s10952_s28  ;;  %1628 = vrot.lane.b32.xlu0 %v11217_v47, %s10952_s28 }
 0x146   : > { %1618 = vrot.lane.b32.xlu1 %v11223_v49, %s10952_s28  ;;  %1624 = vrot.lane.b32.xlu0 %v11211_v43, %s10952_s28 }
 0x14a   : > { %1614 = vrot.lane.b32.xlu1 %v11204_v38, %s10952_s28  ;;  %1620 = vrot.lane.b32.xlu0 %v11231_v51, %s10952_s28 }
 0x14e   : > { %1836 = vrot.lane.b32.xlu1 %v11225_v50, %s10953_s26  ;;  %1616 = vrot.lane.b32.xlu0 %v11237_v52, %s10952_s28 }
 0x152   : > { %1838 = vrot.lane.b32.xlu0 %v11217_v47, %s10953_s26 }
 0x170   : > { %v940_v60 = vpop.permute.xlu1 %939 }
 0x174   : > { %v944_v61 = vpop.permute.xlu0 %943  ;;  %v938_v62 = vpop.permute.xlu1 %937 }
 0x175   : > { %10054 = vmatprep.subr.msk.mxu1 %vm945_vm2, %v944_v61 }
 0x176   : > { %10055 = vmatpush3.xpose.msk.msra.mxu1 %vm945_vm2, %v944_v61 }
 0x178   : > { %v942_v63 = vpop.permute.xlu0 %941  ;;  %v934_v0 = vpop.permute.xlu1 %933 }
 0x179   : > { %10056 = vmatprep.subr.msk.mxu1 %vm945_vm2, %v942_v63 }
 0x17a   : > { %10057 = vmatpush3.xpose.msk.msra.mxu1 %vm945_vm2, %v942_v63 }
 0x17b   : > { %10058 = vmatprep.subr.msk.mxu1 %vm945_vm2, %v940_v60 }
 0x17c   : > { %v936_v1 = vpop.permute.xlu0 %935  ;;  %v930_v2 = vpop.permute.xlu1 %929 }
 0x17e   : > { %10059 = vmatpush3.xpose.msk.msra.mxu1 %vm945_vm2, %v940_v60 }
 0x17f   : > { %10060 = vmatprep.subr.msk.mxu1 %vm945_vm2, %v938_v62 }
 0x180   : > { %v932_v3 = vpop.permute.xlu0 %931  ;;  %v1378_v4 = vpop.permute.xlu1 %1377 }
 0x182   : > { %10061 = vmatpush3.xpose.msk.msra.mxu1 %vm945_vm2, %v938_v62 }
 0x183   : > { %10062 = vmatprep.subr.msk.mxu1 %vm945_vm2, %v936_v1 }
 0x184   : > { %v1380_v5 = vpop.permute.xlu0 %1379  ;;  %v1374_v6 = vpop.permute.xlu1 %1373 }
 0x186   : > { %10063 = vmatpush3.xpose.msk.msra.mxu1 %vm945_vm2, %v936_v1 }
 0x187   : > { %10064 = vmatprep.subr.msk.mxu1 %vm945_vm2, %v934_v0 }
 0x188   : > { %v1376_v7 = vpop.permute.xlu0 %1375  ;;  %v1370_v8 = vpop.permute.xlu1 %1369 }
 0x18a   : > { %10065 = vmatpush3.xpose.msk.msra.mxu1 %vm945_vm2, %v934_v0 }
 0x18b   : > { %10066 = vmatprep.subr.msk.mxu1 %vm945_vm2, %v932_v3 }
 0x18c   : > { %v1372_v9 = vpop.permute.xlu0 %1371  ;;  %v1366_v10 = vpop.permute.xlu1 %1365 }
 0x18e   : > { %10067 = vmatpush3.xpose.msk.msra.mxu1 %vm945_vm2, %v932_v3 }
 0x18f   : > { %10068 = vmatprep.subr.msk.mxu1 %vm945_vm2, %v930_v2 }
 0x190   : > { %v1368_v11 = vpop.permute.xlu0 %1367  ;;  %v1352_v12 = vpop.permute.xlu1 %1351 }
 0x192   : > { %10069 = vmatpush3.xpose.msk.msra.mxu1 %vm945_vm2, %v930_v2 }
 0x193   : > { %10110 = vmatprep.subr.msk.mxu1 %vm945_vm2, %v1380_v5 }
 0x194   : > { %v1356_v13 = vpop.permute.xlu1 %1355  ;;  %v1350_v14 = vpop.permute.xlu0 %1349 }
 0x195   : > { %10071 = vmatmul.mubr.msk.f32.vlgmr.msra.gmra.mxu1 %vm945_vm2, %v11256_v53 }
 0x196   : > { %10073 = vmatprep.mubr.msk.f32.mxu1 %vm945_vm2, %v11273_v56  ;;  %10111 = vmatpush3.xpose.msk.msra.mxu1 %vm945_vm2, %v1380_v5 }
 0x197   : > { %10112 = vmatprep.subr.msk.mxu1 %vm945_vm2, %v1378_v4 }
 0x198   : > { %v1360_v15 = vpop.permute.xlu1 %1359  ;;  %v1354_v16 = vpop.permute.xlu0 %1353 }
 0x199   : > { %10074 = vmatmul.mubr.msk.f32.gmra.mxu1 %vm945_vm2, %v11263_v54 }
 0x19a   : > { %10076 = vmatprep.mubr.msk.f32.mxu1 %vm945_vm2, %v11283_v58  ;;  %10113 = vmatpush3.xpose.msk.msra.mxu1 %vm945_vm2, %v1378_v4 }
 0x19b   : > { %10114 = vmatprep.subr.msk.mxu1 %vm945_vm2, %v1376_v7 }
 0x19c   : > { %v1364_v17 = vpop.permute.xlu1 %1363  ;;  %v1358_v18 = vpop.permute.xlu0 %1357 }
 0x19d   : > { %10077 = vmatmul.mubr.msk.f32.gmra.mxu1 %vm945_vm2, %v11270_v55 }
 0x19e   : > { %10079 = vmatprep.mubr.msk.f32.mxu1 %vm945_vm2, %v11290_v59  ;;  %10115 = vmatpush3.xpose.msk.msra.mxu1 %vm945_vm2, %v1376_v7 }
 0x19f   : > { %10116 = vmatprep.subr.msk.mxu1 %vm945_vm2, %v1374_v6 }
 0x1a0   : > { %v1362_v19 = vpop.permute.xlu0 %1361  ;;  %v1201_v20 = vpop.permute.xlu1 %1200 }
 0x1a1   : > { %10080 = vmatmul.mubr.msk.f32.gmra.mxu1 %vm945_vm2, %v11280_v57 }
 0x1a2   : > { %10117 = vmatpush3.xpose.msk.msra.mxu1 %vm945_vm2, %v1374_v6  ;;  %10126 = vmatprep.mubr.msk.f32.mxu1 %vm945_vm2, %v1350_v14 }
 0x1a3   : > { %10118 = vmatprep.subr.msk.mxu1 %vm945_vm2, %v1372_v9 }
 0x1a4   : > { %v1203_v21 = vpop.permute.xlu0 %1202  ;;  %v1195_v22 = vpop.permute.xlu1 %1194 }
 0x1a5   : > { %10082 = vmatprep.subr.mxu0 %v1203_v21 }
 0x1a6   : > { %10083 = vmatpush3.msra.mxu0 %v1203_v21  ;;  %10119 = vmatpush3.xpose.msk.msra.mxu1 %vm945_vm2, %v1372_v9 }
 0x1a7   : > { %10084 = vmatprep.subr.mxu0 %v1201_v20  ;;  %10120 = vmatprep.subr.msk.mxu1 %vm945_vm2, %v1370_v8 }
 0x1a8   : > { %10085 = vmatpush3.msra.mxu0 %v1201_v20  ;;  %v1199_v23 = vpop.permute.xlu0 %1198  ;;  %v1193_v25 = vpop.permute.xlu1 %1192 }
 0x1a9   : > { %10086 = vmatprep.subr.mxu0 %v1199_v23 }
 0x1aa   : > { %10087 = vmatpush3.msra.mxu0 %v1199_v23  ;;  %10121 = vmatpush3.xpose.msk.msra.mxu1 %vm945_vm2, %v1370_v8 }
 0x1ab   : > { %10122 = vmatprep.subr.msk.mxu1 %vm945_vm2, %v1368_v11 }
 0x1ac   : > { %v1197_v24 = vpop.permute.xlu0 %1196  ;;  %v1189_v27 = vpop.permute.xlu1 %1188 }
 0x1ad   : > { %10088 = vmatprep.subr.mxu0 %v1197_v24 }
 0x1ae   : > { %10089 = vmatpush3.msra.mxu0 %v1197_v24  ;;  %10123 = vmatpush3.xpose.msk.msra.mxu1 %vm945_vm2, %v1368_v11 }
 0x1af   : > { %10090 = vmatprep.subr.mxu0 %v1195_v22  ;;  %10124 = vmatprep.subr.msk.mxu1 %vm945_vm2, %v1366_v10 }
 0x1b0   : > { %10091 = vmatpush3.msra.mxu0 %v1195_v22  ;;  %v1191_v26 = vpop.permute.xlu0 %1190  ;;  %v11465_v21 = vpop.permute.xlu1 %1626 }
 0x1b1   : > { %10092 = vmatprep.subr.mxu0 %v1193_v25 }
 0x1b2   : > { %10093 = vmatpush3.msra.mxu0 %v1193_v25  ;;  %10125 = vmatpush3.xpose.msk.msra.mxu1 %vm945_vm2, %v1366_v10 }
 0x1b3   : > { %10094 = vmatprep.subr.mxu0 %v1191_v26 }
 0x1b4   : > { %10095 = vmatpush3.msra.mxu0 %v1191_v26  ;;  %v11378_v28 = vpop.permute.xlu0 %1628  ;;  %v11467_v22 = vpop.permute.xlu1 %1622 }
 0x1b5   : > { %10096 = vmatprep.subr.mxu0 %v1189_v27  ;;  %10127 = vmatmul.mubr.msk.f32.vlgmr.msra.gmra.mxu1 %vm945_vm2, %v1352_v12 }
 0x1b6   : > { %10097 = vmatpush3.msra.mxu0 %v1189_v27  ;;  %10129 = vmatprep.mubr.msk.f32.mxu1 %vm945_vm2, %v1354_v16 }
 0x1b7   : > { %10138 = vmatprep.subr.mxu0 %v11378_v28 }
 0x1b8   : > { %v11469_v23 = vpop.permute.xlu0 %1624  ;;  %v11471_v24 = vpop.permute.xlu1 %1618 }
 0x1b9   : > { %10130 = vmatmul.mubr.msk.f32.gmra.mxu1 %vm945_vm2, %v1356_v13 }
 0x1ba   : > { %10132 = vmatprep.mubr.msk.f32.mxu1 %vm945_vm2, %v1358_v18 }
 0x1bc   : > { %v11473_v25 = vpop.permute.xlu0 %1620  ;;  %v11475_v26 = vpop.permute.xlu1 %1614 }
 0x1bd   : > { %10133 = vmatmul.mubr.msk.f32.gmra.mxu1 %vm945_vm2, %v1360_v15 }
 0x1be   : > { %10135 = vmatprep.mubr.msk.f32.mxu1 %vm945_vm2, %v1362_v19 }
 0x1c0   : > { %v11477_v27 = vpop.permute.xlu0 %1616 }
 0x1c1   : > { %10136 = vmatmul.mubr.msk.f32.gmra.mxu1 %vm945_vm2, %v1364_v17 }
 0x255   : > { %v10072_v37 = vpop.f32.mrf.mxu1 }
 0x256   : > { %v1095_v39 = vsel %vm1091_vm3, %v10072_v37, -inf }
 0x257   : > { %1096 = vmax.xlane.f32.xlu1 %v1095_v39  ;;  %v1052_v41 = vpop.f32.mrf.mxu1  ;;  %v11479_v39 = vpop.permute.xlu1 %1836 }
 0x258   : > { %v1092_v42 = vsel %vm1091_vm3, %v1052_v41, -inf }
 0x259   : > { %1093 = vmax.xlane.f32.xlu0 %v1092_v42  ;;  %v11405_v44 = vpop.f32.mrf.mxu1  ;;  %v11481_v42 = vpop.permute.xlu0 %1838 }
 0x25a   : > { %v1101_v48 = vsel %vm1091_vm3, %v11405_v44, -inf }
 0x25b   : > { %v11407_v45 = vpop.f32.mrf.mxu1 }
 0x25c   : > { %v1098_v62 = vsel %vm1091_vm3, %v11407_v45, -inf }
 0x25d   : > { %1102 = vmax.xlane.f32.xlu0 %v1101_v48  ;;  %v11411_v60 = vpop.f32.mrf.mxu1 }
 0x25e   : > { %v1107_v2 = vsel %vm1091_vm3, %v11411_v60, -inf }
 0x25f   : > { %v11413_v61 = vpop.f32.mrf.mxu1 }
 0x260   : > { %v1104_v63 = vsel %vm1091_vm3, %v11413_v61, -inf }
 0x261   : > { %1099 = vmax.xlane.f32.xlu0 %v1098_v62  ;;  %1105 = vmax.xlane.f32.xlu1 %v1104_v63  ;;  %v11419_v0 = vpop.f32.mrf.mxu1 }
 0x262   : > { %v1113_v4 = vsel %vm1091_vm3, %v11419_v0, -inf }
 0x263   : > { %v11421_v1 = vpop.f32.mrf.mxu1 }
 0x264   : > { %v1110_v3 = vsel %vm1091_vm3, %v11421_v1, -inf }
 0x265   : > { %1108 = vmax.xlane.f32.xlu0 %v1107_v2  ;;  %1111 = vmax.xlane.f32.xlu1 %v1110_v3 }
 0x269   : > { %1114 = vmax.xlane.f32.xlu0 %v1113_v4 }
 0x275   : > { %v11429_v5 = vpop.f32.mrf.mxu1 }
 0x276   : > { %v1521_v6 = vsel %vm1091_vm3, %v11429_v5, -inf }
 0x277   : > { %1522 = vmax.xlane.f32.xlu0 %v1521_v6  ;;  %v11433_v7 = vpop.f32.mrf.mxu1 }
 0x278   : > { %v1518_v8 = vsel %vm1091_vm3, %v11433_v7, -inf }
 0x279   : > { %v11437_v9 = vpop.f32.mrf.mxu1  ;;  %1519 = vmax.xlane.f32.xlu1 %v1518_v8 }
 0x27a   : > { %v1527_v10 = vsel %vm1091_vm3, %v11437_v9, -inf }
 0x27b   : > { %1528 = vmax.xlane.f32.xlu0 %v1527_v10  ;;  %v11441_v11 = vpop.f32.mrf.mxu1 }
 0x27c   : > { %v1524_v12 = vsel %vm1091_vm3, %v11441_v11, -inf }
 0x27d   : > { %v11445_v13 = vpop.f32.mrf.mxu1  ;;  %1525 = vmax.xlane.f32.xlu1 %v1524_v12 }
 0x27e   : > { %v1533_v14 = vsel %vm1091_vm3, %v11445_v13, -inf }
 0x27f   : > { %1534 = vmax.xlane.f32.xlu0 %v1533_v14  ;;  %v11449_v15 = vpop.f32.mrf.mxu1 }
 0x280   : > { %v1530_v16 = vsel %vm1091_vm3, %v11449_v15, -inf }
 0x281   : > { %v11453_v17 = vpop.f32.mrf.mxu1  ;;  %1531 = vmax.xlane.f32.xlu1 %v1530_v16 }
 0x282   : > { %v1539_v18 = vsel %vm1091_vm3, %v11453_v17, -inf }
 0x283   : > { %1540 = vmax.xlane.f32.xlu0 %v1539_v18  ;;  %v11461_v19 = vpop.f32.mrf.mxu1 }
 0x284   : > { %v1536_v20 = vsel %vm1091_vm3, %v11461_v19, -inf }
 0x292   : > { %1832 = vrot.lane.b32.xlu1 %v11215_v46, %s10953_s26 }
 0x299   : > { %1834 = vrot.lane.b32.xlu0 %v11211_v43, %s10953_s26 }
 0x2b6   : > { %1537 = vmax.xlane.f32.xlu1 %v1536_v20 }
 0x2e0   : > { %v1097_v48 = vpop.xlane.xlu1 %1096 }
 0x2e1   : > { %v1117_v62 = vsub.f32 %v10072_v37, %v1097_v48 }
 0x2e2   : > { %v1094_v63 = vpop.xlane.xlu0 %1093 }
 0x2e3   : > { %v1126_v2 = vmul.f32 1.442695, %v1117_v62  ;;  %v1116_v3 = vsub.f32 %v1052_v41, %v1094_v63 }
 0x2e5   : > { %10575 = vpow2.f32 %v1126_v2  ;;  %v1124_v4 = vmul.f32 1.442695, %v1116_v3 }
 0x2e6   : > { %v1103_v6 = vpop.xlane.xlu0 %1102 }
 0x2e7   : > { %10577 = vpow2.f32 %v1124_v4  ;;  %v1119_v8 = vsub.f32 %v11405_v44, %v1103_v6 }
 0x2e9   : > { %v1130_v10 = vmul.f32 1.442695, %v1119_v8 }
 0x2ea   : > { %v1100_v12 = vpop.xlane.xlu0 %1099  ;;  %v1106_v14 = vpop.xlane.xlu1 %1105 }
 0x2eb   : > { %10579 = vpow2.f32 %v1130_v10  ;;  %v1118_v16 = vsub.f32 %v11407_v45, %v1100_v12  ;;  %v1120_v18 = vsub.f32 %v11413_v61, %v1106_v14 }
 0x2ed   : > { %v1128_v20 = vmul.f32 1.442695, %v1118_v16  ;;  %v1132_v29 = vmul.f32 1.442695, %v1120_v18 }
 0x2ee   : > { %v1109_v37 = vpop.xlane.xlu0 %1108  ;;  %v1112_v48 = vpop.xlane.xlu1 %1111 }
 0x2ef   : > { %10581 = vpow2.f32 %v1128_v20  ;;  %v1121_v41 = vsub.f32 %v11411_v60, %v1109_v37  ;;  %v1122_v63 = vsub.f32 %v11421_v1, %v1112_v48 }
 0x2f0   : > { %10583 = vpow2.f32 %v1132_v29 }
 0x2f1   : > { %v1134_v62 = vmul.f32 1.442695, %v1121_v41  ;;  %v1136_v4 = vmul.f32 1.442695, %v1122_v63 }
 0x2f2   : > { %v11488_v44 = vpop.eup %10575  ;;  %v1115_v2 = vpop.xlane.xlu0 %1114 }
 0x2f3   : > { %10585 = vpow2.f32 %v1134_v62  ;;  %v1123_v3 = vsub.f32 %v11419_v0, %v1115_v2  ;;  %v1143_v45 = vsel %vm1091_vm3, %v11488_v44, 0.0 }
 0x2f4   : > { %v11493_v61 = vpop.eup %10577  ;;  %1144 = vadd.xlane.f32.xlu0 %v1143_v45 }
 0x2f5   : > { %v1138_v6 = vmul.f32 1.442695, %v1123_v3  ;;  %v1140_v29 = vsel %vm1091_vm3, %v11493_v61, 0.0 }
 0x2f6   : > { %1141 = vadd.xlane.f32.xlu1 %v1140_v29 }
 0x2f7   : > { %10587 = vpow2.f32 %v1138_v6 }
 0x2f8   : > { %v11497_v60 = vpop.eup %10579  ;;  %10589 = vpow2.f32 %v1136_v4 }
 0x2f9   : > { %v1149_v1 = vsel %vm1091_vm3, %v11497_v60, 0.0 }
 0x2fa   : > { %1150 = vadd.xlane.f32.xlu0 %v1149_v1 }
 0x2fc   : > { %v11501_v0 = vpop.eup %10581 }
 0x2fd   : > { %v1146_v8 = vsel %vm1091_vm3, %v11501_v0, 0.0  ;;  %v11505_v10 = vpop.eup %10583 }
 0x2fe   : > { %1147 = vadd.xlane.f32.xlu1 %v1146_v8  ;;  %v1152_v20 = vsel %vm1091_vm3, %v11505_v10, 0.0 }
 0x300   : > { %v11507_v12 = vpop.eup %10585  ;;  %v1523_v14 = vpop.xlane.xlu0 %1522 }
 0x301   : > { %v1543_v16 = vsub.f32 %v11429_v5, %v1523_v14  ;;  %v1155_v18 = vsel %vm1091_vm3, %v11507_v12, 0.0 }
 0x302   : > { %1156 = vadd.xlane.f32.xlu0 %v1155_v18  ;;  %1153 = vadd.xlane.f32.xlu1 %v1152_v20  ;;  %v1520_v37 = vpop.xlane.xlu1 %1519 }
 0x303   : > { %v1552_v48 = vmul.f32 1.442695, %v1543_v16  ;;  %v1542_v41 = vsub.f32 %v11433_v7, %v1520_v37 }
 0x304   : > { %v11515_v62 = vpop.eup %10587  ;;  %v1529_v29 = vpop.xlane.xlu0 %1528 }
 0x305   : > { %10591 = vpow2.f32 %v1552_v48  ;;  %v1550_v63 = vmul.f32 1.442695, %v1542_v41  ;;  %v1161_v2 = vsel %vm1091_vm3, %v11515_v62, 0.0  ;;  %v11519_v5 = vpop.eup %10589  ;;  %v1545_v18 = vsub.f32 %v11437_v9, %v1529_v29 }
 0x306   : > { %1162 = vadd.xlane.f32.xlu1 %v1161_v2  ;;  %v1158_v3 = vsel %vm1091_vm3, %v11519_v5, 0.0  ;;  %v1526_v1 = vpop.xlane.xlu1 %1525 }
 0x307   : > { %10593 = vpow2.f32 %v1550_v63  ;;  %v1544_v8 = vsub.f32 %v11441_v11, %v1526_v1  ;;  %v1556_v48 = vmul.f32 1.442695, %v1545_v18 }
 0x308   : > { %v1535_v14 = vpop.xlane.xlu0 %1534 }
 0x309   : > { %v1554_v20 = vmul.f32 1.442695, %v1544_v8  ;;  %v1547_v41 = vsub.f32 %v11445_v13, %v1535_v14 }
 0x30a   : > { %1159 = vadd.xlane.f32.xlu1 %v1158_v3  ;;  %v1532_v16 = vpop.xlane.xlu1 %1531 }
 0x30b   : > { %v1546_v37 = vsub.f32 %v11449_v15, %v1532_v16  ;;  %10595 = vpow2.f32 %v1554_v20  ;;  %v1560_v3 = vmul.f32 1.442695, %v1547_v41 }
 0x30c   : > { %v1541_v63 = vpop.xlane.xlu0 %1540  ;;  %10597 = vpow2.f32 %v1556_v48 }
 0x30d   : > { %v1558_v2 = vmul.f32 1.442695, %v1546_v37 }
 0x30f   : > { %10599 = vpow2.f32 %v1558_v2 }
 0x310   : > { %10601 = vpow2.f32 %v1560_v3 }
 0x312   : > { %v11523_v45 = vpop.eup %10591 }
 0x313   : > { %v1569_v7 = vsel %vm1091_vm3, %v11523_v45, 0.0 }
 0x314   : > { %v11527_v4 = vpop.eup %10593  ;;  %1570 = vadd.xlane.f32.xlu0 %v1569_v7  ;;  %v1549_v7 = vsub.f32 %v11453_v17, %v1541_v63  ;;  %v11587_v63 = vpop.permute.xlu0 %1834 }
 0x315   : > { %v1566_v6 = vsel %vm1091_vm3, %v11527_v4, 0.0 }
 0x316   : > { %1567 = vadd.xlane.f32.xlu1 %v1566_v6  ;;  %v11540_v6 = vpop.permute.xlu1 %1832  ;;  %v1564_v11 = vmul.f32 1.442695, %v1549_v7 }
 0x318   : > { %10603 = vpow2.f32 %v1564_v11  ;;  %v11543_v29 = vpop.eup %10595 }
 0x319   : > { %v11545_v13 = vpop.eup %10597  ;;  %v1572_v8 = vsel %vm1091_vm3, %v11543_v29, 0.0 }
 0x31a   : > { %v1575_v17 = vsel %vm1091_vm3, %v11545_v13, 0.0 }
 0x31c   : > { %v11549_v14 = vpop.eup %10599 }
 0x31d   : > { %v11553_v16 = vpop.eup %10601 }
 0x31e   : > { %v1581_v18 = vsel %vm1091_vm3, %v11553_v16, 0.0 }
 0x325   : > { %v11559_v20 = vpop.eup %10603 }
 0x326   : > { %v1587_v48 = vsel %vm1091_vm3, %v11559_v20, 0.0 }
 0x327   : > { %1828 = vrot.lane.b32.xlu1 %v11223_v49, %s10953_s26 }
 0x32a   : > { %1830 = vrot.lane.b32.xlu0 %v11231_v51, %s10953_s26 }
 0x33f   : > { %v1538_v1 = vpop.xlane.xlu1 %1537 }
 0x340   : > { %v1548_v9 = vsub.f32 %v11461_v19, %v1538_v1  ;;  %v1578_v19 = vsel %vm1091_vm3, %v11549_v14, 0.0 }
 0x342   : > { %v1562_v15 = vmul.f32 1.442695, %v1548_v9 }
 0x344   : > { %10605 = vpow2.f32 %v1562_v15 }
 0x349   : > { %1573 = vadd.xlane.f32.xlu0 %v1572_v8 }
 0x34b   : > { %1576 = vadd.xlane.f32.xlu1 %v1575_v17 }
 0x34d   : > { %1579 = vadd.xlane.f32.xlu0 %v1578_v19 }
 0x34f   : > { %1582 = vadd.xlane.f32.xlu1 %v1581_v18 }
 0x351   : > { %v11561_v37 = vpop.eup %10605 }
 0x352   : > { %v1584_v41 = vsel %vm1091_vm3, %v11561_v37, 0.0 }
 0x353   : > { %1588 = vadd.xlane.f32.xlu1 %v1587_v48  ;;  %1585 = vadd.xlane.f32.xlu0 %v1584_v41 }
 0x364   : > { %1824 = vrot.lane.b32.xlu1 %v11204_v38, %s10953_s26 }
 0x368   : > { %1810 = vrot.lane.b32.xlu1 %v11256_v53, %s10954_s16 }
 0x369   : > { %1826 = vrot.lane.b32.xlu0 %v11237_v52, %s10953_s26 }
 0x36c   : > { %1814 = vrot.lane.b32.xlu1 %v11263_v54, %s10954_s16 }
 0x36d   : > { %1808 = vrot.lane.b32.xlu0 %v11207_v40, %s10954_s16 }
 0x370   : > { %1818 = vrot.lane.b32.xlu1 %v11270_v55, %s10954_s16 }
 0x371   : > { %1812 = vrot.lane.b32.xlu0 %v11273_v56, %s10954_s16 }
 0x374   : > { %1822 = vrot.lane.b32.xlu1 %v11280_v57, %s10954_s16 }
 0x375   : > { %1816 = vrot.lane.b32.xlu0 %v11283_v58, %s10954_s16 }
 0x378   : > { %2087 = vrot.lane.b32.xlu1 %v11217_v47, %s10955_s27 }
 0x379   : > { %1820 = vrot.lane.b32.xlu0 %v11290_v59, %s10954_s16 }
 0x37c   : > { %2083 = vrot.lane.b32.xlu1 %v11211_v43, %s10955_s27 }
 0x37d   : > { %v1145_v2 = vpop.xlane.xlu0 %1144  ;;  %2085 = vrot.lane.b32.xlu0 %v11225_v50, %s10955_s27 }
 0x37e   : > { %10607 = vrcp.f32 %v1145_v2 }
 0x37f   : > { %v1142_v3 = vpop.xlane.xlu1 %1141 }
 0x380   : > { %10609 = vrcp.f32 %v1142_v3  ;;  %2081 = vrot.lane.b32.xlu1 %v11215_v46, %s10955_s27 }
 0x381   : > { %2079 = vrot.lane.b32.xlu0 %v11231_v51, %s10955_s27 }
 0x383   : > { %v1151_v7 = vpop.xlane.xlu0 %1150 }
 0x384   : > { %2077 = vrot.lane.b32.xlu1 %v11223_v49, %s10955_s27  ;;  %10611 = vrcp.f32 %v1151_v7 }
 0x385   : > { %2075 = vrot.lane.b32.xlu0 %v11237_v52, %s10955_s27 }
 0x387   : > { %v1148_v11 = vpop.xlane.xlu1 %1147 }
 0x388   : > { %10613 = vrcp.f32 %v1148_v11  ;;  %2073 = vrot.lane.b32.xlu1 %v11204_v38, %s10955_s27 }
 0x389   : > { %2297 = vrot.lane.b32.xlu0 %v11217_v47, %s10956_s17 }
 0x38b   : > { %v1157_v1 = vpop.xlane.xlu0 %1156  ;;  %v1154_v9 = vpop.xlane.xlu1 %1153 }
 0x38c   : > { %v10608_v15 = vpop.eup %10607  ;;  %10615 = vrcp.f32 %v1157_v1  ;;  %2295 = vrot.lane.b32.xlu1 %v11225_v50, %s10956_s17 }
 0x38d   : > { %v10610_v8 = vpop.eup %10609  ;;  %10617 = vrcp.f32 %v1154_v9  ;;  %v1181_v18 = vmul.f32 %v10608_v15, %v11488_v44 }
 0x38e   : > { %v1180_v17 = vmul.f32 %v10610_v8, %v11493_v61 }
 0x38f   : > { %v1163_v19 = vpop.xlane.xlu1 %1162 }
 0x390   : > { %10098 = vmatprep.mubr.msk.f32.mxu0 %vm1091_vm3, %v1180_v17  ;;  %10619 = vrcp.f32 %v1163_v19 }
 0x391   : > { %10099 = vmatmul.mubr.msk.f32.vlgmr.msra.gmra.mxu0 %vm1091_vm3, %v1181_v18  ;;  %v10612_v41 = vpop.eup %10611 }
 0x392   : > { %10139 = vmatpush3.msra.mxu0 %v11378_v28  ;;  %v1183_v61 = vmul.f32 %v10612_v41, %v11497_v60 }
 0x393   : > { %10140 = vmatprep.subr.mxu0 %v11465_v21  ;;  %v1160_v48 = vpop.xlane.xlu1 %1159 }
 0x394   : > { %10141 = vmatpush3.msra.mxu0 %v11465_v21  ;;  %10621 = vrcp.f32 %v1160_v48 }
 0x395   : > { %v10614_v2 = vpop.eup %10613  ;;  %10142 = vmatprep.subr.mxu0 %v11469_v23 }
 0x396   : > { %10143 = vmatpush3.msra.mxu0 %v11469_v23  ;;  %v1182_v44 = vmul.f32 %v10614_v2, %v11501_v0 }
 0x397   : > { %10144 = vmatprep.subr.mxu0 %v11467_v22 }
 0x398   : > { %10145 = vmatpush3.msra.mxu0 %v11467_v22  ;;  %10101 = vmatprep.mubr.msk.f32.mxu0 %vm1091_vm3, %v1182_v44 }
 0x399   : > { %v10616_v28 = vpop.eup %10615  ;;  %10146 = vmatprep.subr.mxu0 %v11473_v25  ;;  %10102 = vmatmul.mubr.msk.f32.gmra.mxu0 %vm1091_vm3, %v1183_v61 }
 0x39a   : > { %v10618_v21 = vpop.eup %10617  ;;  %10147 = vmatpush3.msra.mxu0 %v11473_v25  ;;  %v1185_v23 = vmul.f32 %v10616_v28, %v11507_v12 }
 0x39b   : > { %10148 = vmatprep.subr.mxu0 %v11471_v24  ;;  %v1184_v0 = vmul.f32 %v10618_v21, %v11505_v10 }
 0x39c   : > { %10149 = vmatpush3.msra.mxu0 %v11471_v24 }
 0x39d   : > { %10104 = vmatprep.mubr.msk.f32.mxu0 %vm1091_vm3, %v1184_v0  ;;  %10150 = vmatprep.subr.mxu0 %v11477_v27  ;;  %v1571_v22 = vpop.xlane.xlu0 %1570  ;;  %v10620_v25 = vpop.eup %10619 }
 0x39e   : > { %10105 = vmatmul.mubr.msk.f32.gmra.mxu0 %vm1091_vm3, %v1185_v23  ;;  %10623 = vrcp.f32 %v1571_v22  ;;  %v1187_v10 = vmul.f32 %v10620_v25, %v11515_v62 }
 0x39f   : > { %10151 = vmatpush3.msra.mxu0 %v11477_v27  ;;  %v1568_v60 = vpop.xlane.xlu1 %1567 }
 0x3a0   : > { %10152 = vmatprep.subr.mxu0 %v11475_v26  ;;  %10625 = vrcp.f32 %v1568_v60 }
 0x3a1   : > { %v10622_v12 = vpop.eup %10621  ;;  %10153 = vmatpush3.msra.mxu0 %v11475_v26  ;;  %v1831_v26 = vpop.permute.xlu0 %1830 }
 0x3a2   : > { %10166 = vmatprep.subr.msk.mxu0 %vm945_vm2, %v11481_v42  ;;  %v1186_v24 = vmul.f32 %v10622_v12, %v11519_v5 }
 0x3a4   : > { %10107 = vmatprep.mubr.msk.f32.mxu0 %vm1091_vm3, %v1186_v24 }
 0x3a5   : > { %10108 = vmatmul.mubr.msk.f32.gmra.mxu0 %vm1091_vm3, %v1187_v10 }
 0x3ab   : > { %v10624_v27 = vpop.eup %10623 }
 0x3ac   : > { %v1607_v11 = vmul.f32 %v10624_v27, %v11523_v45 }
 0x3ad   : > { %v10626_v3 = vpop.eup %10625 }
 0x3ae   : > { %v1606_v7 = vmul.f32 %v10626_v3, %v11527_v4 }
 0x3b0   : > { %10154 = vmatprep.mubr.msk.f32.mxu0 %vm1091_vm3, %v1606_v7 }
 0x3b1   : > { %10155 = vmatmul.mubr.msk.f32.vlgmr.msra.gmra.mxu0 %vm1091_vm3, %v1607_v11 }
 0x3b2   : > { %10167 = vmatpush3.xpose.msk.msra.mxu0 %vm945_vm2, %v11481_v42  ;;  %v1829_v42 = vpop.permute.xlu1 %1828 }
 0x3b3   : > { %10168 = vmatprep.subr.msk.mxu0 %vm945_vm2, %v11479_v39 }
 0x3b6   : > { %10169 = vmatpush3.xpose.msk.msra.mxu0 %vm945_vm2, %v11479_v39 }
 0x3b7   : > { %10170 = vmatprep.subr.msk.mxu0 %vm945_vm2, %v11587_v63 }
 0x3ba   : > { %10171 = vmatpush3.xpose.msk.msra.mxu0 %vm945_vm2, %v11587_v63 }
 0x3bb   : > { %10172 = vmatprep.subr.msk.mxu0 %vm945_vm2, %v11540_v6 }
 0x3be   : > { %10173 = vmatpush3.xpose.msk.msra.mxu0 %vm945_vm2, %v11540_v6 }
 0x3bf   : > { %10174 = vmatprep.subr.msk.mxu0 %vm945_vm2, %v1831_v26 }
 0x3c2   : > { %10175 = vmatpush3.xpose.msk.msra.mxu0 %vm945_vm2, %v1831_v26 }
 0x3c3   : > { %10176 = vmatprep.subr.msk.mxu0 %vm945_vm2, %v1829_v42 }
 0x3c6   : > { %10177 = vmatpush3.xpose.msk.msra.mxu0 %vm945_vm2, %v1829_v42 }
 0x3d2   : > { %v1574_v39 = vpop.xlane.xlu0 %1573 }
 0x3d3   : > { %10627 = vrcp.f32 %v1574_v39 }
 0x3d4   : > { %v1577_v62 = vpop.xlane.xlu1 %1576 }
 0x3d5   : > { %10629 = vrcp.f32 %v1577_v62 }
 0x3d6   : > { %v1580_v5 = vpop.xlane.xlu0 %1579 }
 0x3d7   : > { %10631 = vrcp.f32 %v1580_v5 }
 0x3d8   : > { %v1583_v45 = vpop.xlane.xlu1 %1582 }
 0x3d9   : > { %10633 = vrcp.f32 %v1583_v45 }
 0x3dc   : > { %v1586_v4 = vpop.xlane.xlu0 %1585  ;;  %v1589_v63 = vpop.xlane.xlu1 %1588 }
 0x3dd   : > { %10635 = vrcp.f32 %v1586_v4 }
 0x3de   : > { %10637 = vrcp.f32 %v1589_v63 }
 0x3e0   : > { %v10628_v6 = vpop.eup %10627  ;;  %v1827_v1 = vpop.permute.xlu0 %1826 }
 0x3e1   : > { %v1825_v9 = vpop.permute.xlu1 %1824  ;;  %10178 = vmatprep.subr.msk.mxu0 %vm945_vm2, %v1827_v1  ;;  %v1608_v15 = vmul.f32 %v10628_v6, %v11543_v29 }
 0x3e2   : > { %v10630_v8 = vpop.eup %10629  ;;  %10179 = vmatpush3.xpose.msk.msra.mxu0 %vm945_vm2, %v1827_v1 }
 0x3e3   : > { %10157 = vmatprep.mubr.msk.f32.mxu0 %vm1091_vm3, %v1608_v15  ;;  %10180 = vmatprep.subr.msk.mxu0 %vm945_vm2, %v1825_v9  ;;  %v1609_v17 = vmul.f32 %v10630_v8, %v11545_v13 }
 0x3e4   : > { %v10632_v19 = vpop.eup %10631  ;;  %v1809_v18 = vpop.permute.xlu0 %1808 }
 0x3e5   : > { %v1811_v48 = vpop.permute.xlu1 %1810  ;;  %10158 = vmatmul.mubr.msk.f32.gmra.mxu0 %vm1091_vm3, %v1609_v17  ;;  %v1610_v41 = vmul.f32 %v10632_v19, %v11549_v14 }
 0x3e6   : > { %v10634_v2 = vpop.eup %10633  ;;  %10181 = vmatpush3.xpose.msk.msra.mxu0 %vm945_vm2, %v1825_v9 }
 0x3e7   : > { %10160 = vmatprep.mubr.msk.f32.mxu0 %vm1091_vm3, %v1610_v41  ;;  %v1611_v29 = vmul.f32 %v10634_v2, %v11553_v16 }
 0x3e8   : > { %v1813_v44 = vpop.permute.xlu0 %1812 }
 0x3e9   : > { %v1815_v61 = vpop.permute.xlu1 %1814  ;;  %10161 = vmatmul.mubr.msk.f32.gmra.mxu0 %vm1091_vm3, %v1611_v29 }
 0x3ea   : > { %v10636_v28 = vpop.eup %10635 }
 0x3eb   : > { %v10638_v13 = vpop.eup %10637  ;;  %v1612_v21 = vmul.f32 %v10636_v28, %v11561_v37 }
 0x3ec   : > { %v1817_v23 = vpop.permute.xlu0 %1816  ;;  %v1613_v22 = vmul.f32 %v10638_v13, %v11559_v20 }
 0x3ed   : > { %v1819_v0 = vpop.permute.xlu1 %1818  ;;  %10163 = vmatprep.mubr.msk.f32.mxu0 %vm1091_vm3, %v1612_v21 }
 0x3ee   : > { %10164 = vmatmul.mubr.msk.f32.gmra.mxu0 %vm1091_vm3, %v1613_v22 }
 0x3ef   : > { %10182 = vmatprep.mubr.msk.f32.mxu0 %vm945_vm2, %v1809_v18 }
 0x3f0   : > { %v1821_v14 = vpop.permute.xlu0 %1820 }
 0x3f1   : > { %v1823_v16 = vpop.permute.xlu1 %1822 }
 0x3f2   : > { %10183 = vmatmul.mubr.msk.f32.vlgmr.msra.gmra.mxu0 %vm945_vm2, %v1811_v48 }
 0x3f3   : > { %10185 = vmatprep.mubr.msk.f32.mxu0 %vm945_vm2, %v1813_v44 }
 0x3f4   : > { %v2086_v60 = vpop.permute.xlu0 %2085 }
 0x3f5   : > { %v2088_v25 = vpop.permute.xlu1 %2087 }
 0x3f6   : > { %10194 = vmatprep.subr.mxu1 %v2088_v25  ;;  %10186 = vmatmul.mubr.msk.f32.gmra.mxu0 %vm945_vm2, %v1815_v61 }
 0x3f7   : > { %10195 = vmatpush3.msra.mxu1 %v2088_v25  ;;  %10188 = vmatprep.mubr.msk.f32.mxu0 %vm945_vm2, %v1817_v23 }
 0x3f8   : > { %10196 = vmatprep.subr.mxu1 %v2086_v60  ;;  %v2080_v37 = vpop.permute.xlu0 %2079 }
 0x3f9   : > { %10197 = vmatpush3.msra.mxu1 %v2086_v60  ;;  %v2084_v20 = vpop.permute.xlu1 %2083 }
 0x3fa   : > { %10198 = vmatprep.subr.mxu1 %v2084_v20  ;;  %10189 = vmatmul.mubr.msk.f32.gmra.mxu0 %vm945_vm2, %v1819_v0 }
 0x3fb   : > { %10199 = vmatpush3.msra.mxu1 %v2084_v20  ;;  %10191 = vmatprep.mubr.msk.f32.mxu0 %vm945_vm2, %v1821_v14 }
 0x3fc   : > { %v2076_v24 = vpop.permute.xlu0 %2075 }
 0x3fd   : > { %v2082_v12 = vpop.permute.xlu1 %2081 }
 0x3fe   : > { %10200 = vmatprep.subr.mxu1 %v2082_v12  ;;  %10192 = vmatmul.mubr.msk.f32.gmra.mxu0 %vm945_vm2, %v1823_v16 }
 0x3ff   : > { %10201 = vmatpush3.msra.mxu1 %v2082_v12 }
 0x400   : > { %10202 = vmatprep.subr.mxu1 %v2080_v37  ;;  %v11688_v3 = vpop.permute.xlu0 %2297 }
 0x401   : > { %10203 = vmatpush3.msra.mxu1 %v2080_v37  ;;  %v2078_v10 = vpop.permute.xlu1 %2077 }
 0x402   : > { %10204 = vmatprep.subr.mxu1 %v2078_v10 }
 0x403   : > { %10205 = vmatpush3.msra.mxu1 %v2078_v10 }
 0x404   : > { %10206 = vmatprep.subr.mxu1 %v2076_v24 }
 0x405   : > { %10207 = vmatpush3.msra.mxu1 %v2076_v24  ;;  %v2074_v27 = vpop.permute.xlu1 %2073 }
 0x406   : > { %10208 = vmatprep.subr.mxu1 %v2074_v27 }
 0x407   : > { %10209 = vmatpush3.msra.mxu1 %v2074_v27 }
 0x408   : > { %10222 = vmatprep.subr.msk.mxu1 %vm945_vm2, %v11688_v3 }
 0x409   : > { %v11728_v60 = vpop.permute.xlu1 %2295 }
 0x451   : > { %v10100_v7 = vpop.f32.mrf.mxu0 }
 0x452   : > { %1342 = vst.msk [vmem:[#allocation3 + $0x8] sm:$0xff] %vm945_vm2, %v10100_v7 }
 0x453   : > { %v1302_v11 = vpop.f32.mrf.mxu0 }
 0x454   : > { %1341 = vst.msk [vmem:[#allocation3] sm:$0xff] %vm945_vm2, %v1302_v11 }
 0x459   : > { %v10103_v26 = vpop.f32.mrf.mxu0 }
 0x45a   : > { %1344 = vst.msk [vmem:[#allocation3 + $0x18] sm:$0xff] %vm945_vm2, %v10103_v26 }
 0x45b   : > { %v1312_v42 = vpop.f32.mrf.mxu0 }
 0x45c   : > { %1343 = vst.msk [vmem:[#allocation3 + $0x10] sm:$0xff] %vm945_vm2, %v1312_v42 }
 0x45e   : > { %v10106_v39 = vpop.f32.mrf.mxu0 }
 0x45f   : > { %1346 = vst.msk [vmem:[#allocation3 + $0x28] sm:$0xff] %vm945_vm2, %v10106_v39 }
 0x460   : > { %v1322_v62 = vpop.f32.mrf.mxu0 }
 0x461   : > { %1345 = vst.msk [vmem:[#allocation3 + $0x20] sm:$0xff] %vm945_vm2, %v1322_v62 }
 0x465   : > { %v10109_v5 = vpop.f32.mrf.mxu0 }
 0x466   : > { %1348 = vst.msk [vmem:[#allocation3 + $0x38] sm:$0xff] %vm945_vm2, %v10109_v5 }
 0x467   : > { %v1332_v45 = vpop.f32.mrf.mxu0 }
 0x468   : > { %1347 = vst.msk [vmem:[#allocation3 + $0x30] sm:$0xff] %vm945_vm2, %v1332_v45 }
 0x471   : > { %v11700_v4 = vpop.f32.mrf.mxu0 }
 0x473   : > { %v11702_v63 = vpop.f32.mrf.mxu0 }
 0x4a5   : > { %v11704_v6 = vpop.f32.mrf.mxu0 }
 0x4a7   : > { %v11706_v1 = vpop.f32.mrf.mxu0 }
 0x4a9   : > { %v11708_v9 = vpop.f32.mrf.mxu0 }
 0x4ab   : > { %v11710_v15 = vpop.f32.mrf.mxu0 }
 0x4ac   : > { %15447 = vst [vmem:[#allocation9_spill] sm:$0xff] %v11710_v15 }
 0x4ae   : > { %v11712_v8 = vpop.f32.mrf.mxu0 }
 0x4b0   : > { %v11714_v17 = vpop.f32.mrf.mxu0 }
 0x4b1   : > { %15448 = vst [vmem:[#allocation10_spill] sm:$0xff] %v11714_v17 }
 0x4b2   : > { %v10184_v19 = vpop.f32.mrf.mxu0 }
 0x4b3   : > { %v1980_v18 = vsel %vm1091_vm3, %v10184_v19, -inf }
 0x4b4   : > { %1981 = vmax.xlane.f32.xlu1 %v1980_v18  ;;  %v1938_v48 = vpop.f32.mrf.mxu0 }
 0x4b5   : > { %v1977_v41 = vsel %vm1091_vm3, %v1938_v48, -inf }
 0x4b6   : > { %1978 = vmax.xlane.f32.xlu0 %v1977_v41  ;;  %v10187_v2 = vpop.f32.mrf.mxu0 }
 0x4b7   : > { %v1986_v44 = vsel %vm1091_vm3, %v10187_v2, -inf }
 0x4b8   : > { %v1948_v29 = vpop.f32.mrf.mxu0 }
 0x4b9   : > { %v1983_v13 = vsel %vm1091_vm3, %v1948_v29, -inf }
 0x4ba   : > { %1987 = vmax.xlane.f32.xlu0 %v1986_v44  ;;  %v10190_v61 = vpop.f32.mrf.mxu0 }
 0x4bb   : > { %v1992_v22 = vsel %vm1091_vm3, %v10190_v61, -inf }
 0x4bc   : > { %v1958_v28 = vpop.f32.mrf.mxu0 }
 0x4bd   : > { %v1989_v21 = vsel %vm1091_vm3, %v1958_v28, -inf }
 0x4be   : > { %1984 = vmax.xlane.f32.xlu0 %v1983_v13  ;;  %1990 = vmax.xlane.f32.xlu1 %v1989_v21  ;;  %v10193_v23 = vpop.f32.mrf.mxu0 }
 0x4bf   : > { %v1998_v16 = vsel %vm1091_vm3, %v10193_v23, -inf }
 0x4c0   : > { %v1968_v0 = vpop.f32.mrf.mxu0 }
 0x4c1   : > { %v1995_v14 = vsel %vm1091_vm3, %v1968_v0, -inf }
 0x4c2   : > { %1993 = vmax.xlane.f32.xlu0 %v1992_v22  ;;  %1996 = vmax.xlane.f32.xlu1 %v1995_v14 }
 0x4c6   : > { %1999 = vmax.xlane.f32.xlu0 %v1998_v16 }
 0x4d3   : > { %2291 = vrot.lane.b32.xlu1 %v11215_v46, %s10956_s17 }
 0x4dc   : > { %2293 = vrot.lane.b32.xlu0 %v11211_v43, %s10956_s17 }
 0x53d   : > { %v1982_v25 = vpop.xlane.xlu1 %1981 }
 0x53e   : > { %v2002_v20 = vsub.f32 %v10184_v19, %v1982_v25 }
 0x53f   : > { %v1979_v37 = vpop.xlane.xlu0 %1978 }
 0x540   : > { %v2011_v12 = vmul.f32 1.442695, %v2002_v20  ;;  %v2001_v24 = vsub.f32 %v1938_v48, %v1979_v37 }
 0x542   : > { %10639 = vpow2.f32 %v2011_v12  ;;  %v2009_v10 = vmul.f32 1.442695, %v2001_v24 }
 0x543   : > { %v1988_v42 = vpop.xlane.xlu0 %1987 }
 0x544   : > { %10641 = vpow2.f32 %v2009_v10  ;;  %v2004_v19 = vsub.f32 %v10187_v2, %v1988_v42 }
 0x546   : > { %v2015_v44 = vmul.f32 1.442695, %v2004_v19 }
 0x547   : > { %v1985_v39 = vpop.xlane.xlu0 %1984  ;;  %v1991_v62 = vpop.xlane.xlu1 %1990 }
 0x548   : > { %v2003_v5 = vsub.f32 %v1948_v29, %v1985_v39  ;;  %v2005_v48 = vsub.f32 %v1958_v28, %v1991_v62 }
 0x54a   : > { %v2013_v18 = vmul.f32 1.442695, %v2003_v5  ;;  %v2017_v22 = vmul.f32 1.442695, %v2005_v48 }
 0x54b   : > { %v1994_v45 = vpop.xlane.xlu0 %1993  ;;  %v1997_v41 = vpop.xlane.xlu1 %1996 }
 0x54c   : > { %v2006_v13 = vsub.f32 %v10190_v61, %v1994_v45  ;;  %10643 = vpow2.f32 %v2013_v18  ;;  %v2007_v14 = vsub.f32 %v1968_v0, %v1997_v41 }
 0x54d   : > { %10645 = vpow2.f32 %v2015_v44 }
 0x54e   : > { %v2019_v16 = vmul.f32 1.442695, %v2006_v13  ;;  %10647 = vpow2.f32 %v2017_v22  ;;  %v2021_v20 = vmul.f32 1.442695, %v2007_v14 }
 0x54f   : > { %v11730_v27 = vpop.eup %10639  ;;  %v2000_v21 = vpop.xlane.xlu0 %1999 }
 0x550   : > { %v2028_v7 = vsel %vm1091_vm3, %v11730_v27, 0.0  ;;  %v2008_v25 = vsub.f32 %v10193_v23, %v2000_v21  ;;  %10649 = vpow2.f32 %v2019_v16 }
 0x551   : > { %v11734_v11 = vpop.eup %10641  ;;  %2029 = vadd.xlane.f32.xlu0 %v2028_v7  ;;  %10651 = vpow2.f32 %v2021_v20 }
 0x552   : > { %v2025_v26 = vsel %vm1091_vm3, %v11734_v11, 0.0  ;;  %v2023_v37 = vmul.f32 1.442695, %v2008_v25 }
 0x553   : > { %2026 = vadd.xlane.f32.xlu1 %v2025_v26 }
 0x554   : > { %10653 = vpow2.f32 %v2023_v37 }
 0x559   : > { %v11742_v29 = vpop.eup %10643 }
 0x55a   : > { %v11744_v2 = vpop.eup %10645  ;;  %v2031_v61 = vsel %vm1091_vm3, %v11742_v29, 0.0 }
 0x55b   : > { %v11748_v28 = vpop.eup %10647  ;;  %v2034_v0 = vsel %vm1091_vm3, %v11744_v2, 0.0 }
 0x55c   : > { %v2037_v12 = vsel %vm1091_vm3, %v11748_v28, 0.0 }
 0x55d   : > { %v11752_v23 = vpop.eup %10649 }
 0x55e   : > { %v11756_v24 = vpop.eup %10651  ;;  %v2040_v10 = vsel %vm1091_vm3, %v11752_v23, 0.0 }
 0x55f   : > { %v2043_v26 = vsel %vm1091_vm3, %v11756_v24, 0.0 }
 0x561   : > { %v11760_v7 = vpop.eup %10653 }
 0x562   : > { %v2046_v42 = vsel %vm1091_vm3, %v11760_v7, 0.0 }
 0x564   : > { %2287 = vrot.lane.b32.xlu1 %v11223_v49, %s10956_s17 }
 0x567   : > { %2289 = vrot.lane.b32.xlu0 %v11231_v51, %s10956_s17 }
 0x586   : > { %2032 = vadd.xlane.f32.xlu0 %v2031_v61 }
 0x588   : > { %2035 = vadd.xlane.f32.xlu1 %v2034_v0 }
 0x58a   : > { %2038 = vadd.xlane.f32.xlu0 %v2037_v12 }
 0x58c   : > { %2041 = vadd.xlane.f32.xlu1 %v2040_v10 }
 0x58e   : > { %2044 = vadd.xlane.f32.xlu0 %v2043_v26 }
 0x590   : > { %2047 = vadd.xlane.f32.xlu1 %v2046_v42 }
 0x5a1   : > { %2283 = vrot.lane.b32.xlu1 %v11204_v38, %s10956_s17 }
 0x5a4   : > { %2285 = vrot.lane.b32.xlu0 %v11237_v52, %s10956_s17 }
 0x5a5   : > { %2269 = vrot.lane.b32.xlu1 %v11256_v53, %s10957_s14 }
 0x5a8   : > { %2267 = vrot.lane.b32.xlu0 %v11207_v40, %s10957_s14  ;;  %v11801_v40 = vld [vmem:[%s11065_s24] ss:$0 sm:$0xff]  ;;  %s10959_s24 = smov 6  }
 0x5a9   : > { %2273 = vrot.lane.b32.xlu1 %v11263_v54, %s10957_s14 }
 0x5ac   : > { %2271 = vrot.lane.b32.xlu0 %v11273_v56, %s10957_s14 }
 0x5ad   : > { %2277 = vrot.lane.b32.xlu1 %v11270_v55, %s10957_s14 }
 0x5b0   : > { %2275 = vrot.lane.b32.xlu0 %v11283_v58, %s10957_s14 }
 0x5b1   : > { %2281 = vrot.lane.b32.xlu1 %v11280_v57, %s10957_s14 }
 0x5b4   : > { %2279 = vrot.lane.b32.xlu0 %v11290_v59, %s10957_s14 }
 0x5b5   : > { %2546 = vrot.lane.b32.xlu1 %v11217_v47, %s10958_s15  ;;  %v11805_v47 = vadd.f32 %v11801_v40, %v11399_v35 }
 0x5b8   : > { %2544 = vrot.lane.b32.xlu0 %v11225_v50, %s10958_s15 }
 0x5b9   : > { %2542 = vrot.lane.b32.xlu1 %v11211_v43, %s10958_s15  ;;  %v11813_v43 = vadd.f32 %v11801_v40, %v11401_v36 }
 0x5bc   : > { %2538 = vrot.lane.b32.xlu0 %v11231_v51, %s10958_s15 }
 0x5bd   : > { %2540 = vrot.lane.b32.xlu1 %v11215_v46, %s10958_s15  ;;  %v2294_v46 = vpop.permute.xlu0 %2293 }
 0x5c0   : > { %2534 = vrot.lane.b32.xlu0 %v11237_v52, %s10958_s15 }
 0x5c1   : > { %2536 = vrot.lane.b32.xlu1 %v11223_v49, %s10958_s15  ;;  %v2292_v49 = vpop.permute.xlu1 %2291 }
 0x5c4   : > { %2756 = vrot.lane.b32.xlu0 %v11805_v47, %s10948_s18 }
 0x5c5   : > { %2532 = vrot.lane.b32.xlu1 %v11204_v38, %s10958_s15 }
 0x5c9   : > { %2754 = vrot.lane.b32.xlu1 %v11813_v43, %s10948_s18 }
 0x5da   : > { %v2030_v50 = vpop.xlane.xlu0 %2029 }
 0x5db   : > { %10655 = vrcp.f32 %v2030_v50 }
 0x5dc   : > { %v2027_v51 = vpop.xlane.xlu1 %2026 }
 0x5dd   : > { %10657 = vrcp.f32 %v2027_v51 }
 0x5de   : > { %v2290_v38 = vpop.permute.xlu0 %2289 }
 0x5e0   : > { %v2288_v56 = vpop.permute.xlu1 %2287 }
 0x5e8   : > { %v10656_v52 = vpop.eup %10655 }
 0x5e9   : > { %v2066_v55 = vmul.f32 %v10656_v52, %v11730_v27 }
 0x5ea   : > { %v10658_v53 = vpop.eup %10657 }
 0x5eb   : > { %v2065_v54 = vmul.f32 %v10658_v53, %v11734_v11 }
 0x5ed   : > { %10210 = vmatprep.mubr.msk.f32.mxu1 %vm1091_vm3, %v2065_v54 }
 0x5ee   : > { %10211 = vmatmul.mubr.msk.f32.vlgmr.msra.gmra.mxu1 %vm1091_vm3, %v2066_v55 }
 0x5ef   : > { %10223 = vmatpush3.xpose.msk.msra.mxu1 %vm945_vm2, %v11688_v3 }
 0x5f0   : > { %10224 = vmatprep.subr.msk.mxu1 %vm945_vm2, %v11728_v60 }
 0x5f3   : > { %10225 = vmatpush3.xpose.msk.msra.mxu1 %vm945_vm2, %v11728_v60 }
 0x5f4   : > { %10226 = vmatprep.subr.msk.mxu1 %vm945_vm2, %v2294_v46 }
 0x5f7   : > { %10227 = vmatpush3.xpose.msk.msra.mxu1 %vm945_vm2, %v2294_v46 }
 0x5f8   : > { %10228 = vmatprep.subr.msk.mxu1 %vm945_vm2, %v2292_v49 }
 0x5fb   : > { %10229 = vmatpush3.xpose.msk.msra.mxu1 %vm945_vm2, %v2292_v49 }
 0x5fc   : > { %10230 = vmatprep.subr.msk.mxu1 %vm945_vm2, %v2290_v38 }
 0x5ff   : > { %10231 = vmatpush3.xpose.msk.msra.mxu1 %vm945_vm2, %v2290_v38 }
 0x600   : > { %10232 = vmatprep.subr.msk.mxu1 %vm945_vm2, %v2288_v56 }
 0x603   : > { %10233 = vmatpush3.xpose.msk.msra.mxu1 %vm945_vm2, %v2288_v56 }
 0x60f   : > { %v2033_v57 = vpop.xlane.xlu0 %2032 }
 0x610   : > { %10659 = vrcp.f32 %v2033_v57 }
 0x611   : > { %v2036_v58 = vpop.xlane.xlu1 %2035 }
 0x612   : > { %10661 = vrcp.f32 %v2036_v58 }
 0x613   : > { %v2039_v59 = vpop.xlane.xlu0 %2038 }
 0x614   : > { %10663 = vrcp.f32 %v2039_v59 }
 0x615   : > { %v2042_v35 = vpop.xlane.xlu1 %2041 }
 0x616   : > { %10665 = vrcp.f32 %v2042_v35 }
 0x617   : > { %v2045_v36 = vpop.xlane.xlu0 %2044 }
 0x618   : > { %10667 = vrcp.f32 %v2045_v36 }
 0x619   : > { %v2048_v3 = vpop.xlane.xlu1 %2047 }
 0x61a   : > { %10669 = vrcp.f32 %v2048_v3 }
 0x61b   : > { %v2286_v60 = vpop.permute.xlu0 %2285 }
 0x61c   : > { %10234 = vmatprep.subr.msk.mxu1 %vm945_vm2, %v2286_v60 }
 0x61d   : > { %v10660_v27 = vpop.eup %10659  ;;  %10235 = vmatpush3.xpose.msk.msra.mxu1 %vm945_vm2, %v2286_v60  ;;  %v2284_v11 = vpop.permute.xlu1 %2283 }
 0x61e   : > { %10236 = vmatprep.subr.msk.mxu1 %vm945_vm2, %v2284_v11  ;;  %v2067_v39 = vmul.f32 %v10660_v27, %v11742_v29 }
 0x61f   : > { %v10662_v62 = vpop.eup %10661  ;;  %v2268_v5 = vpop.permute.xlu0 %2267 }
 0x620   : > { %10213 = vmatprep.mubr.msk.f32.mxu1 %vm1091_vm3, %v2067_v39  ;;  %v2068_v45 = vmul.f32 %v10662_v62, %v11744_v2 }
 0x621   : > { %v10664_v19 = vpop.eup %10663  ;;  %10237 = vmatpush3.xpose.msk.msra.mxu1 %vm945_vm2, %v2284_v11  ;;  %v2270_v18 = vpop.permute.xlu1 %2269 }
 0x622   : > { %10214 = vmatmul.mubr.msk.f32.gmra.mxu1 %vm1091_vm3, %v2068_v45  ;;  %v2069_v48 = vmul.f32 %v10664_v19, %v11748_v28  ;;  %v11889_v19 = vadd.f32 %v11801_v40, %v11397_v34 }
 0x623   : > { %v10666_v41 = vpop.eup %10665  ;;  %v2272_v44 = vpop.permute.xlu0 %2271 }
 0x624   : > { %10216 = vmatprep.mubr.msk.f32.mxu1 %vm1091_vm3, %v2069_v48  ;;  %v2070_v13 = vmul.f32 %v10666_v41, %v11752_v23 }
 0x625   : > { %v10668_v21 = vpop.eup %10667  ;;  %v2274_v22 = vpop.permute.xlu1 %2273 }
 0x626   : > { %10217 = vmatmul.mubr.msk.f32.gmra.mxu1 %vm1091_vm3, %v2070_v13  ;;  %v2071_v14 = vmul.f32 %v10668_v21, %v11756_v24 }
 0x627   : > { %v10670_v16 = vpop.eup %10669  ;;  %v2276_v25 = vpop.permute.xlu0 %2275 }
 0x628   : > { %10219 = vmatprep.mubr.msk.f32.mxu1 %vm1091_vm3, %v2071_v14  ;;  %v2072_v20 = vmul.f32 %v10670_v16, %v11760_v7 }
 0x629   : > { %v2278_v37 = vpop.permute.xlu1 %2277 }
 0x62a   : > { %10220 = vmatmul.mubr.msk.f32.gmra.mxu1 %vm1091_vm3, %v2072_v20  ;;  %v11911_v20 = vadd.f32 %v11801_v40, %v11393_v32 }
 0x62b   : > { %v2280_v29 = vpop.permute.xlu0 %2279  ;;  %10238 = vmatprep.mubr.msk.f32.mxu1 %vm945_vm2, %v2268_v5 }
 0x62d   : > { %v2282_v2 = vpop.permute.xlu1 %2281 }
 0x62e   : > { %10239 = vmatmul.mubr.msk.f32.vlgmr.msra.gmra.mxu1 %vm945_vm2, %v2270_v18  ;;  %v11895_v18 = vadd.f32 %v11801_v40, %v11395_v33 }
 0x62f   : > { %10241 = vmatprep.mubr.msk.f32.mxu1 %vm945_vm2, %v2272_v44  ;;  %v2545_v61 = vpop.permute.xlu0 %2544 }
 0x631   : > { %v2547_v28 = vpop.permute.xlu1 %2546 }
 0x632   : > { %10242 = vmatmul.mubr.msk.f32.gmra.mxu1 %vm945_vm2, %v2274_v22  ;;  %10250 = vmatprep.subr.mxu0 %v2547_v28 }
 0x633   : > { %10244 = vmatprep.mubr.msk.f32.mxu1 %vm945_vm2, %v2276_v25  ;;  %10251 = vmatpush3.msra.mxu0 %v2547_v28  ;;  %v2539_v23 = vpop.permute.xlu0 %2538 }
 0x634   : > { %10252 = vmatprep.subr.mxu0 %v2545_v61 }
 0x635   : > { %10253 = vmatpush3.msra.mxu0 %v2545_v61  ;;  %v2543_v0 = vpop.permute.xlu1 %2542 }
 0x636   : > { %10245 = vmatmul.mubr.msk.f32.gmra.mxu1 %vm945_vm2, %v2278_v37  ;;  %10254 = vmatprep.subr.mxu0 %v2543_v0 }
 0x637   : > { %10247 = vmatprep.mubr.msk.f32.mxu1 %vm945_vm2, %v2280_v29  ;;  %10255 = vmatpush3.msra.mxu0 %v2543_v0  ;;  %v2535_v24 = vpop.permute.xlu0 %2534  ;;  %v11917_v29 = vadd.f32 %v11801_v40, %v11391_v31 }
 0x639   : > { %v2541_v12 = vpop.permute.xlu1 %2540 }
 0x63a   : > { %10248 = vmatmul.mubr.msk.f32.gmra.mxu1 %vm945_vm2, %v2282_v2  ;;  %10256 = vmatprep.subr.mxu0 %v2541_v12 }
 0x63b   : > { %10257 = vmatpush3.msra.mxu0 %v2541_v12  ;;  %v11859_v26 = vpop.permute.xlu0 %2756 }
 0x63c   : > { %10258 = vmatprep.subr.mxu0 %v2539_v23 }
 0x63d   : > { %10259 = vmatpush3.msra.mxu0 %v2539_v23  ;;  %v2537_v10 = vpop.permute.xlu1 %2536 }
 0x63e   : > { %10260 = vmatprep.subr.mxu0 %v2537_v10 }
 0x63f   : > { %10261 = vmatpush3.msra.mxu0 %v2537_v10 }
 0x640   : > { %10262 = vmatprep.subr.mxu0 %v2535_v24 }
 0x641   : > { %10263 = vmatpush3.msra.mxu0 %v2535_v24  ;;  %v2533_v7 = vpop.permute.xlu1 %2532 }
 0x642   : > { %10264 = vmatprep.subr.mxu0 %v2533_v7 }
 0x643   : > { %10265 = vmatpush3.msra.mxu0 %v2533_v7 }
 0x644   : > { %10278 = vmatprep.subr.msk.mxu0 %vm945_vm2, %v11859_v26 }
 0x645   : > { %v11899_v48 = vpop.permute.xlu1 %2754 }
 0x6ae   : > { %v11863_v42 = vpop.f32.mrf.mxu1 }
 0x6b0   : > { %v11865_v46 = vpop.f32.mrf.mxu1 }
 0x6e2   : > { %v11867_v49 = vpop.f32.mrf.mxu1 }
 0x6e4   : > { %v11869_v50 = vpop.f32.mrf.mxu1 }
 0x6e6   : > { %v11871_v51 = vpop.f32.mrf.mxu1 }
 0x6e8   : > { %v11873_v52 = vpop.f32.mrf.mxu1 }
 0x6e9   : > { %15449 = vst [vmem:[#allocation11_spill] sm:$0xff] %v11873_v52 }
 0x6ea   : > { %v11875_v53 = vpop.f32.mrf.mxu1 }
 0x6ec   : > { %v11877_v54 = vpop.f32.mrf.mxu1 }
 0x6ed   : > { %15450 = vst [vmem:[#allocation12_spill] sm:$0xff] %v11877_v54 }
 0x6ee   : > { %v10240_v55 = vpop.f32.mrf.mxu1 }
 0x6ef   : > { %v2439_v38 = vsel %vm1091_vm3, %v10240_v55, -inf }
 0x6f0   : > { %2440 = vmax.xlane.f32.xlu1 %v2439_v38  ;;  %v2397_v56 = vpop.f32.mrf.mxu1 }
 0x6f1   : > { %v2436_v57 = vsel %vm1091_vm3, %v2397_v56, -inf }
 0x6f2   : > { %2437 = vmax.xlane.f32.xlu0 %v2436_v57  ;;  %v10243_v58 = vpop.f32.mrf.mxu1 }
 0x6f3   : > { %v2445_v35 = vsel %vm1091_vm3, %v10243_v58, -inf }
 0x6f4   : > { %v2407_v59 = vpop.f32.mrf.mxu1 }
 0x6f5   : > { %v2442_v60 = vsel %vm1091_vm3, %v2407_v59, -inf }
 0x6f6   : > { %2446 = vmax.xlane.f32.xlu0 %v2445_v35  ;;  %v10246_v36 = vpop.f32.mrf.mxu1 }
 0x6f7   : > { %v2451_v62 = vsel %vm1091_vm3, %v10246_v36, -inf }
 0x6f8   : > { %v2417_v3 = vpop.f32.mrf.mxu1 }
 0x6f9   : > { %v2448_v27 = vsel %vm1091_vm3, %v2417_v3, -inf }
 0x6fa   : > { %2443 = vmax.xlane.f32.xlu0 %v2442_v60  ;;  %2449 = vmax.xlane.f32.xlu1 %v2448_v27  ;;  %v10249_v11 = vpop.f32.mrf.mxu1 }
 0x6fb   : > { %v2457_v45 = vsel %vm1091_vm3, %v10249_v11, -inf }
 0x6fc   : > { %v2427_v39 = vpop.f32.mrf.mxu1 }
 0x6fd   : > { %v2454_v5 = vsel %vm1091_vm3, %v2427_v39, -inf }
 0x6fe   : > { %2452 = vmax.xlane.f32.xlu0 %v2451_v62  ;;  %2455 = vmax.xlane.f32.xlu1 %v2454_v5 }
 0x702   : > { %2458 = vmax.xlane.f32.xlu0 %v2457_v45 }
 0x70f   : > { %2750 = vrot.lane.b32.xlu1 %v11889_v19, %s10948_s18 }
 0x718   : > { %2752 = vrot.lane.b32.xlu0 %v11895_v18, %s10948_s18 }
 0x779   : > { %v2441_v41 = vpop.xlane.xlu1 %2440 }
 0x77a   : > { %v2461_v44 = vsub.f32 %v10240_v55, %v2441_v41 }
 0x77b   : > { %v2438_v13 = vpop.xlane.xlu0 %2437 }
 0x77c   : > { %v2470_v21 = vmul.f32 1.442695, %v2461_v44  ;;  %v2460_v22 = vsub.f32 %v2397_v56, %v2438_v13  ;;  %v11947_v13 = vadd.f32 %v11801_v40, %v11389_v30 }
 0x77e   : > { %10671 = vpow2.f32 %v2470_v21  ;;  %v2468_v34 = vmul.f32 1.442695, %v2460_v22  ;;  %v15451_v21 = vld [vmem:[#allocation8_spill] sm:$0xff] }
 0x77f   : > { %v2447_v37 = vpop.xlane.xlu0 %2446  ;;  %v11953_v22 = vadd.f32 %v11801_v40, %v15451_v21 }
 0x780   : > { %10673 = vpow2.f32 %v2468_v34  ;;  %v2463_v23 = vsub.f32 %v10243_v58, %v2447_v37 }
 0x782   : > { %v2474_v10 = vmul.f32 1.442695, %v2463_v23 }
 0x783   : > { %v2444_v2 = vpop.xlane.xlu0 %2443  ;;  %v2450_v61 = vpop.xlane.xlu1 %2449 }
 0x784   : > { %v2462_v28 = vsub.f32 %v2407_v59, %v2444_v2  ;;  %v2464_v24 = vsub.f32 %v2417_v3, %v2450_v61 }
 0x786   : > { %v2472_v12 = vmul.f32 1.442695, %v2462_v28  ;;  %v2476_v38 = vmul.f32 1.442695, %v2464_v24 }
 0x787   : > { %v2453_v0 = vpop.xlane.xlu0 %2452  ;;  %v2456_v32 = vpop.xlane.xlu1 %2455 }
 0x788   : > { %v2465_v7 = vsub.f32 %v10246_v36, %v2453_v0  ;;  %10675 = vpow2.f32 %v2472_v12  ;;  %v2466_v56 = vsub.f32 %v2427_v39, %v2456_v32 }
 0x789   : > { %10677 = vpow2.f32 %v2474_v10 }
 0x78a   : > { %v2478_v31 = vmul.f32 1.442695, %v2465_v7  ;;  %10679 = vpow2.f32 %v2476_v38  ;;  %v2480_v35 = vmul.f32 1.442695, %v2466_v56 }
 0x78b   : > { %v11901_v14 = vpop.eup %10671  ;;  %v2459_v55 = vpop.xlane.xlu0 %2458 }
 0x78c   : > { %v2487_v16 = vsel %vm1091_vm3, %v11901_v14, 0.0  ;;  %v2467_v57 = vsub.f32 %v10249_v11, %v2459_v55  ;;  %10681 = vpow2.f32 %v2478_v31  ;;  %v2751_v40 = vpop.permute.xlu1 %2750 }
 0x78d   : > { %v11905_v33 = vpop.eup %10673  ;;  %2488 = vadd.xlane.f32.xlu0 %v2487_v16  ;;  %10683 = vpow2.f32 %v2480_v35 }
 0x78e   : > { %v2484_v25 = vsel %vm1091_vm3, %v11905_v33, 0.0  ;;  %v2482_v60 = vmul.f32 1.442695, %v2467_v57 }
 0x78f   : > { %2485 = vadd.xlane.f32.xlu1 %v2484_v25  ;;  %v2753_v30 = vpop.permute.xlu0 %2752 }
 0x790   : > { %10685 = vpow2.f32 %v2482_v60 }
 0x795   : > { %v11921_v59 = vpop.eup %10675 }
 0x796   : > { %v11923_v58 = vpop.eup %10677  ;;  %v2490_v36 = vsel %vm1091_vm3, %v11921_v59, 0.0 }
 0x797   : > { %v11927_v3 = vpop.eup %10679  ;;  %v2493_v27 = vsel %vm1091_vm3, %v11923_v58, 0.0 }
 0x798   : > { %v2496_v39 = vsel %vm1091_vm3, %v11927_v3, 0.0 }
 0x799   : > { %v11931_v11 = vpop.eup %10681 }
 0x79a   : > { %v11935_v62 = vpop.eup %10683  ;;  %v2499_v5 = vsel %vm1091_vm3, %v11931_v11, 0.0 }
 0x79b   : > { %v2502_v41 = vsel %vm1091_vm3, %v11935_v62, 0.0 }
 0x79d   : > { %v11939_v45 = vpop.eup %10685 }
 0x79e   : > { %v2505_v44 = vsel %vm1091_vm3, %v11939_v45, 0.0 }
 0x7a0   : > { %2746 = vrot.lane.b32.xlu1 %v11911_v20, %s10948_s18 }
 0x7a3   : > { %2748 = vrot.lane.b32.xlu0 %v11917_v29, %s10948_s18 }
 0x7c2   : > { %2491 = vadd.xlane.f32.xlu0 %v2490_v36 }
 0x7c4   : > { %2494 = vadd.xlane.f32.xlu1 %v2493_v27 }
 0x7c6   : > { %2497 = vadd.xlane.f32.xlu0 %v2496_v39 }
 0x7c8   : > { %2500 = vadd.xlane.f32.xlu1 %v2499_v5 }
 0x7ca   : > { %2503 = vadd.xlane.f32.xlu0 %v2502_v41 }
 0x7cc   : > { %2506 = vadd.xlane.f32.xlu1 %v2505_v44  ;;  %v12011_v44 = vmul.f32 0.4082483, %v11947_v13 }
 0x7dd   : > { %2742 = vrot.lane.b32.xlu1 %v11947_v13, %s10948_s18 }
 0x7e0   : > { %2744 = vrot.lane.b32.xlu0 %v11953_v22, %s10948_s18 }
 0x7e1   : > { %3013 = vrot.lane.b32.xlu1 %v11805_v47, %s10951_s25 }
 0x7e4   : > { %3011 = vrot.lane.b32.xlu0 %v11813_v43, %s10951_s25 }
 0x7e5   : > { %3009 = vrot.lane.b32.xlu1 %v11895_v18, %s10951_s25 }
 0x7e8   : > { %3005 = vrot.lane.b32.xlu0 %v11917_v29, %s10951_s25 }
 0x7e9   : > { %3007 = vrot.lane.b32.xlu1 %v11889_v19, %s10951_s25 }
 0x7ec   : > { %3001 = vrot.lane.b32.xlu0 %v11953_v22, %s10951_s25 }
 0x7ed   : > { %3003 = vrot.lane.b32.xlu1 %v11911_v20, %s10951_s25 }
 0x7f0   : > { %3190 = vrot.lane.b32.xlu0 %v11805_v47, %s10949_s22 }
 0x7f1   : > { %2999 = vrot.lane.b32.xlu1 %v11947_v13, %s10951_s25 }
 0x7f5   : > { %3188 = vrot.lane.b32.xlu1 %v11813_v43, %s10949_s22 }
 0x816   : > { %v2489_v34 = vpop.xlane.xlu0 %2488 }
 0x817   : > { %10687 = vrcp.f32 %v2489_v34  ;;  %v12030_v34 = vmul.f32 0.4082483, %v11889_v19 }
 0x818   : > { %v2486_v16 = vpop.xlane.xlu1 %2485 }
 0x819   : > { %10689 = vrcp.f32 %v2486_v16 }
 0x824   : > { %v10688_v25 = vpop.eup %10687 }
 0x825   : > { %v2525_v61 = vmul.f32 %v10688_v25, %v11901_v14  ;;  %v2749_v14 = vpop.permute.xlu0 %2748  ;;  %v12041_v25 = vmul.f32 0.4082483, %v11895_v18 }
 0x826   : > { %v10690_v37 = vpop.eup %10689 }
 0x827   : > { %v2524_v2 = vmul.f32 %v10690_v37, %v11905_v33  ;;  %v2747_v33 = vpop.permute.xlu1 %2746  ;;  %v12044_v37 = vmul.f32 0.4082483, %v11813_v43 }
 0x829   : > { %10266 = vmatprep.mubr.msk.f32.mxu0 %vm1091_vm3, %v2524_v2  ;;  %v12051_v2 = vmul.f32 0.4082483, %v11805_v47 }
 0x82a   : > { %10267 = vmatmul.mubr.msk.f32.vlgmr.msra.gmra.mxu0 %vm1091_vm3, %v2525_v61 }
 0x82b   : > { %10279 = vmatpush3.xpose.msk.msra.mxu0 %vm945_vm2, %v11859_v26 }
 0x82c   : > { %10280 = vmatprep.subr.msk.mxu0 %vm945_vm2, %v11899_v48 }
 0x82f   : > { %10281 = vmatpush3.xpose.msk.msra.mxu0 %vm945_vm2, %v11899_v48 }
 0x830   : > { %10282 = vmatprep.subr.msk.mxu0 %vm945_vm2, %v2753_v30 }
 0x833   : > { %10283 = vmatpush3.xpose.msk.msra.mxu0 %vm945_vm2, %v2753_v30  ;;  %v12027_v30 = vmul.f32 0.4082483, %v11917_v29 }
 0x834   : > { %10284 = vmatprep.subr.msk.mxu0 %vm945_vm2, %v2751_v40 }
 0x837   : > { %10285 = vmatpush3.xpose.msk.msra.mxu0 %vm945_vm2, %v2751_v40 }
 0x838   : > { %10286 = vmatprep.subr.msk.mxu0 %vm945_vm2, %v2749_v14 }
 0x83b   : > { %10287 = vmatpush3.xpose.msk.msra.mxu0 %vm945_vm2, %v2749_v14 }
 0x83c   : > { %10288 = vmatprep.subr.msk.mxu0 %vm945_vm2, %v2747_v33 }
 0x83f   : > { %10289 = vmatpush3.xpose.msk.msra.mxu0 %vm945_vm2, %v2747_v33 }
 0x84b   : > { %v2492_v26 = vpop.xlane.xlu0 %2491 }
 0x84c   : > { %10691 = vrcp.f32 %v2492_v26 }
 0x84d   : > { %v2495_v48 = vpop.xlane.xlu1 %2494 }
 0x84e   : > { %10693 = vrcp.f32 %v2495_v48 }
 0x84f   : > { %v2498_v28 = vpop.xlane.xlu0 %2497 }
 0x850   : > { %10695 = vrcp.f32 %v2498_v28 }
 0x851   : > { %v2501_v0 = vpop.xlane.xlu1 %2500 }
 0x852   : > { %10697 = vrcp.f32 %v2501_v0 }
 0x853   : > { %v2504_v23 = vpop.xlane.xlu0 %2503 }
 0x854   : > { %10699 = vrcp.f32 %v2504_v23 }
 0x855   : > { %v2507_v12 = vpop.xlane.xlu1 %2506 }
 0x856   : > { %10701 = vrcp.f32 %v2507_v12 }
 0x857   : > { %v2745_v24 = vpop.permute.xlu0 %2744 }
 0x858   : > { %10290 = vmatprep.subr.msk.mxu0 %vm945_vm2, %v2745_v24 }
 0x859   : > { %v10692_v32 = vpop.eup %10691  ;;  %10291 = vmatpush3.xpose.msk.msra.mxu0 %vm945_vm2, %v2745_v24  ;;  %v2743_v10 = vpop.permute.xlu1 %2742 }
 0x85a   : > { %10292 = vmatprep.subr.msk.mxu0 %vm945_vm2, %v2743_v10  ;;  %v2526_v7 = vmul.f32 %v10692_v32, %v11921_v59 }
 0x85b   : > { %v10694_v55 = vpop.eup %10693  ;;  %v3012_v31 = vpop.permute.xlu0 %3011 }
 0x85c   : > { %10269 = vmatprep.mubr.msk.f32.mxu0 %vm1091_vm3, %v2526_v7  ;;  %v2527_v38 = vmul.f32 %v10694_v55, %v11923_v58 }
 0x85d   : > { %v10696_v56 = vpop.eup %10695  ;;  %10293 = vmatpush3.xpose.msk.msra.mxu0 %vm945_vm2, %v2743_v10  ;;  %v3014_v57 = vpop.permute.xlu1 %3013 }
 0x85e   : > { %10270 = vmatmul.mubr.msk.f32.gmra.mxu0 %vm1091_vm3, %v2527_v38  ;;  %10306 = vmatprep.subr.mxu1 %v3014_v57  ;;  %v2528_v35 = vmul.f32 %v10696_v56, %v11927_v3 }
 0x85f   : > { %v10698_v60 = vpop.eup %10697  ;;  %10307 = vmatpush3.msra.mxu1 %v3014_v57  ;;  %v3006_v5 = vpop.permute.xlu0 %3005 }
 0x860   : > { %10272 = vmatprep.mubr.msk.f32.mxu0 %vm1091_vm3, %v2528_v35  ;;  %10308 = vmatprep.subr.mxu1 %v3012_v31  ;;  %v2529_v59 = vmul.f32 %v10698_v60, %v11931_v11  ;;  %v12017_v11 = vmul.f32 0.4082483, %v11953_v22 }
 0x861   : > { %v10700_v36 = vpop.eup %10699  ;;  %10309 = vmatpush3.msra.mxu1 %v3012_v31  ;;  %v3010_v58 = vpop.permute.xlu1 %3009 }
 0x862   : > { %10273 = vmatmul.mubr.msk.f32.gmra.mxu0 %vm1091_vm3, %v2529_v59  ;;  %10310 = vmatprep.subr.mxu1 %v3010_v58  ;;  %v2530_v27 = vmul.f32 %v10700_v36, %v11935_v62 }
 0x863   : > { %v10702_v39 = vpop.eup %10701  ;;  %10311 = vmatpush3.msra.mxu1 %v3010_v58  ;;  %v3002_v62 = vpop.permute.xlu0 %3001 }
 0x864   : > { %10275 = vmatprep.mubr.msk.f32.mxu0 %vm1091_vm3, %v2530_v27  ;;  %v2531_v3 = vmul.f32 %v10702_v39, %v11939_v45  ;;  %v12020_v45 = vmul.f32 0.4082483, %v11911_v20 }
 0x865   : > { %v3008_v41 = vpop.permute.xlu1 %3007 }
 0x866   : > { %10276 = vmatmul.mubr.msk.f32.gmra.mxu0 %vm1091_vm3, %v2531_v3  ;;  %10312 = vmatprep.subr.mxu1 %v3008_v41 }
 0x867   : > { %10294 = vmatprep.mubr.msk.f32.mxu0 %vm945_vm2, %v12011_v44  ;;  %10313 = vmatpush3.msra.mxu1 %v3008_v41  ;;  %v12034_v16 = vpop.permute.xlu0 %3190 }
 0x868   : > { %10314 = vmatprep.subr.mxu1 %v3006_v5 }
 0x869   : > { %10315 = vmatpush3.msra.mxu1 %v3006_v5  ;;  %v3004_v21 = vpop.permute.xlu1 %3003 }
 0x86a   : > { %10295 = vmatmul.mubr.msk.f32.vlgmr.msra.gmra.mxu0 %vm945_vm2, %v12017_v11  ;;  %10316 = vmatprep.subr.mxu1 %v3004_v21 }
 0x86b   : > { %10297 = vmatprep.mubr.msk.f32.mxu0 %vm945_vm2, %v12020_v45  ;;  %10317 = vmatpush3.msra.mxu1 %v3004_v21 }
 0x86c   : > { %10318 = vmatprep.subr.mxu1 %v3002_v62 }
 0x86d   : > { %10319 = vmatpush3.msra.mxu1 %v3002_v62  ;;  %v3000_v40 = vpop.permute.xlu1 %2999 }
 0x86e   : > { %10298 = vmatmul.mubr.msk.f32.gmra.mxu0 %vm945_vm2, %v12027_v30  ;;  %10320 = vmatprep.subr.mxu1 %v3000_v40 }
 0x86f   : > { %10300 = vmatprep.mubr.msk.f32.mxu0 %vm945_vm2, %v12030_v34  ;;  %10321 = vmatpush3.msra.mxu1 %v3000_v40 }
 0x870   : > { %10334 = vmatprep.subr.msk.mxu1 %vm945_vm2, %v12034_v16 }
 0x871   : > { %v12083_v39 = vpop.permute.xlu1 %3188 }
 0x872   : > { %10301 = vmatmul.mubr.msk.f32.gmra.mxu0 %vm945_vm2, %v12041_v25 }
 0x873   : > { %10303 = vmatprep.mubr.msk.f32.mxu0 %vm945_vm2, %v12044_v37 }
 0x876   : > { %10304 = vmatmul.mubr.msk.f32.gmra.mxu0 %vm945_vm2, %v12051_v2 }
 0x8ea   : > { %v12055_v61 = vpop.f32.mrf.mxu0 }
 0x8ec   : > { %v12057_v14 = vpop.f32.mrf.mxu0 }
 0x91e   : > { %v12059_v33 = vpop.f32.mrf.mxu0 }
 0x920   : > { %v12061_v26 = vpop.f32.mrf.mxu0 }
 0x921   : > { %15452 = vst [vmem:[#allocation8_spill] sm:$0xff] %v12061_v26 }
 0x922   : > { %v12063_v48 = vpop.f32.mrf.mxu0 }
 0x924   : > { %v12065_v28 = vpop.f32.mrf.mxu0 }
 0x925   : > { %15453 = vst [vmem:[#allocation13_spill] sm:$0xff] %v12065_v28 }
 0x926   : > { %v12067_v0 = vpop.f32.mrf.mxu0 }
 0x928   : > { %v12069_v23 = vpop.f32.mrf.mxu0 }
 0x929   : > { %15454 = vst [vmem:[#allocation14_spill] sm:$0xff] %v12069_v23 }
 0x92a   : > { %v10296_v12 = vpop.f32.mrf.mxu0 }
 0x92b   : > { %v2906_v24 = vsel %vm1091_vm3, %v10296_v12, -inf }
 0x92c   : > { %2907 = vmax.xlane.f32.xlu1 %v2906_v24  ;;  %v2864_v32 = vpop.f32.mrf.mxu0 }
 0x92d   : > { %v2903_v10 = vsel %vm1091_vm3, %v2864_v32, -inf }
 0x92e   : > { %2904 = vmax.xlane.f32.xlu0 %v2903_v10  ;;  %v10299_v7 = vpop.f32.mrf.mxu0 }
 0x92f   : > { %v2912_v38 = vsel %vm1091_vm3, %v10299_v7, -inf }
 0x930   : > { %v2874_v55 = vpop.f32.mrf.mxu0 }
 0x931   : > { %v2909_v57 = vsel %vm1091_vm3, %v2874_v55, -inf }
 0x932   : > { %2913 = vmax.xlane.f32.xlu0 %v2912_v38  ;;  %v10302_v56 = vpop.f32.mrf.mxu0 }
 0x933   : > { %v2918_v36 = vsel %vm1091_vm3, %v10302_v56, -inf }
 0x934   : > { %v2884_v31 = vpop.f32.mrf.mxu0 }
 0x935   : > { %v2915_v35 = vsel %vm1091_vm3, %v2884_v31, -inf }
 0x936   : > { %2910 = vmax.xlane.f32.xlu0 %v2909_v57  ;;  %2916 = vmax.xlane.f32.xlu1 %v2915_v35  ;;  %v10305_v60 = vpop.f32.mrf.mxu0 }
 0x937   : > { %v2924_v27 = vsel %vm1091_vm3, %v10305_v60, -inf }
 0x938   : > { %v2894_v59 = vpop.f32.mrf.mxu0 }
 0x939   : > { %v2921_v58 = vsel %vm1091_vm3, %v2894_v59, -inf }
 0x93a   : > { %2919 = vmax.xlane.f32.xlu0 %v2918_v36  ;;  %2922 = vmax.xlane.f32.xlu1 %v2921_v58 }
 0x93e   : > { %2925 = vmax.xlane.f32.xlu0 %v2924_v27 }
 0x94b   : > { %3184 = vrot.lane.b32.xlu1 %v11889_v19, %s10949_s22 }
 0x954   : > { %3186 = vrot.lane.b32.xlu0 %v11895_v18, %s10949_s22 }
 0x9b5   : > { %v2908_v5 = vpop.xlane.xlu1 %2907 }
 0x9b6   : > { %v2928_v3 = vsub.f32 %v10296_v12, %v2908_v5 }
 0x9b7   : > { %v2905_v41 = vpop.xlane.xlu0 %2904 }
 0x9b8   : > { %v2937_v62 = vmul.f32 1.442695, %v2928_v3  ;;  %v2927_v21 = vsub.f32 %v2864_v32, %v2905_v41 }
 0x9ba   : > { %10703 = vpow2.f32 %v2937_v62  ;;  %v2935_v40 = vmul.f32 1.442695, %v2927_v21 }
 0x9bb   : > { %v2914_v35 = vpop.xlane.xlu0 %2913 }
 0x9bc   : > { %10705 = vpow2.f32 %v2935_v40  ;;  %v2930_v27 = vsub.f32 %v10299_v7, %v2914_v35 }
 0x9be   : > { %v2941_v62 = vmul.f32 1.442695, %v2930_v27 }
 0x9bf   : > { %v2911_v12 = vpop.xlane.xlu0 %2910  ;;  %v2917_v32 = vpop.xlane.xlu1 %2916 }
 0x9c0   : > { %v2929_v36 = vsub.f32 %v2874_v55, %v2911_v12  ;;  %v2931_v3 = vsub.f32 %v2884_v31, %v2917_v32 }
 0x9c2   : > { %v2939_v5 = vmul.f32 1.442695, %v2929_v36 }
 0x9c3   : > { %v2920_v58 = vpop.xlane.xlu0 %2919  ;;  %v2923_v41 = vpop.xlane.xlu1 %2922 }
 0x9c4   : > { %v2932_v21 = vsub.f32 %v10302_v56, %v2920_v58  ;;  %10707 = vpow2.f32 %v2939_v5 }
 0x9c5   : > { %10709 = vpow2.f32 %v2941_v62 }
 0x9c6   : > { %v2945_v23 = vmul.f32 1.442695, %v2932_v21 }
 0x9c7   : > { %v12085_v24 = vpop.eup %10703  ;;  %v2926_v40 = vpop.xlane.xlu0 %2925 }
 0x9c8   : > { %v2954_v10 = vsel %vm1091_vm3, %v12085_v24, 0.0  ;;  %v2934_v54 = vsub.f32 %v10305_v60, %v2926_v40  ;;  %v3185_v36 = vpop.permute.xlu1 %3184 }
 0x9c9   : > { %v12089_v38 = vpop.eup %10705  ;;  %2955 = vadd.xlane.f32.xlu0 %v2954_v10  ;;  %v2943_v10 = vmul.f32 1.442695, %v2931_v3 }
 0x9ca   : > { %v2951_v57 = vsel %vm1091_vm3, %v12089_v38, 0.0  ;;  %v2949_v28 = vmul.f32 1.442695, %v2934_v54 }
 0x9cb   : > { %2952 = vadd.xlane.f32.xlu1 %v2951_v57  ;;  %v2933_v57 = vsub.f32 %v2894_v59, %v2923_v41  ;;  %10711 = vpow2.f32 %v2943_v10  ;;  %v3187_v32 = vpop.permute.xlu0 %3186 }
 0x9cc   : > { %10713 = vpow2.f32 %v2945_v23 }
 0x9cd   : > { %v2947_v17 = vmul.f32 1.442695, %v2933_v57 }
 0x9cf   : > { %10715 = vpow2.f32 %v2947_v17 }
 0x9d0   : > { %10717 = vpow2.f32 %v2949_v28 }
 0x9d1   : > { %v12097_v55 = vpop.eup %10707 }
 0x9d2   : > { %v12099_v7 = vpop.eup %10709  ;;  %v2957_v56 = vsel %vm1091_vm3, %v12097_v55, 0.0 }
 0x9d3   : > { %v2960_v59 = vsel %vm1091_vm3, %v12099_v7, 0.0 }
 0x9d8   : > { %v12103_v31 = vpop.eup %10711 }
 0x9d9   : > { %v12107_v60 = vpop.eup %10713  ;;  %v2963_v17 = vsel %vm1091_vm3, %v12103_v31, 0.0 }
 0x9da   : > { %v2966_v28 = vsel %vm1091_vm3, %v12107_v60, 0.0 }
 0x9dc   : > { %3180 = vrot.lane.b32.xlu1 %v11911_v20, %s10949_s22  ;;  %v12111_v54 = vpop.eup %10715 }
 0x9dd   : > { %v12115_v23 = vpop.eup %10717  ;;  %v2969_v35 = vsel %vm1091_vm3, %v12111_v54, 0.0 }
 0x9de   : > { %v2972_v12 = vsel %vm1091_vm3, %v12115_v23, 0.0 }
 0x9df   : > { %3182 = vrot.lane.b32.xlu0 %v11917_v29, %s10949_s22 }
 0x9fe   : > { %2958 = vadd.xlane.f32.xlu0 %v2957_v56 }
 0xa00   : > { %2961 = vadd.xlane.f32.xlu1 %v2960_v59 }
 0xa02   : > { %2964 = vadd.xlane.f32.xlu0 %v2963_v17 }
 0xa04   : > { %2967 = vadd.xlane.f32.xlu1 %v2966_v28 }
 0xa06   : > { %2970 = vadd.xlane.f32.xlu0 %v2969_v35 }
 0xa08   : > { %2973 = vadd.xlane.f32.xlu1 %v2972_v12 }
 0xa19   : > { %3176 = vrot.lane.b32.xlu1 %v11947_v13, %s10949_s22 }
 0xa1c   : > { %3178 = vrot.lane.b32.xlu0 %v11953_v22, %s10949_s22  ;;  %s15472_s22 = sld [smem:[#allocation58_spill]] }
 0xa1d   : > { %3162 = vrot.lane.b32.xlu1 %v12017_v11, %s10950_s23 }
 0xa20   : > { %3160 = vrot.lane.b32.xlu0 %v12011_v44, %s10950_s23 }
 0xa21   : > { %3166 = vrot.lane.b32.xlu1 %v12027_v30, %s10950_s23 }
 0xa24   : > { %3164 = vrot.lane.b32.xlu0 %v12020_v45, %s10950_s23 }
 0xa25   : > { %3170 = vrot.lane.b32.xlu1 %v12041_v25, %s10950_s23 }
 0xa28   : > { %3168 = vrot.lane.b32.xlu0 %v12030_v34, %s10950_s23 }
 0xa29   : > { %3174 = vrot.lane.b32.xlu1 %v12051_v2, %s10950_s23 }
 0xa2c   : > { %3172 = vrot.lane.b32.xlu0 %v12044_v37, %s10950_s23  ;;  %s15473_s23 = scalar_lea.vmem %s15472_s22, %s11058_s20 }
 0xa2d   : > { %3439 = vrot.lane.b32.xlu1 %v11805_v47, %s10952_s28 }
 0xa30   : > { %3437 = vrot.lane.b32.xlu0 %v11813_v43, %s10952_s28 }
 0xa31   : > { %3435 = vrot.lane.b32.xlu1 %v11895_v18, %s10952_s28 }
 0xa34   : > { %3431 = vrot.lane.b32.xlu0 %v11917_v29, %s10952_s28 }
 0xa35   : > { %3433 = vrot.lane.b32.xlu1 %v11889_v19, %s10952_s28 }
 0xa38   : > { %3427 = vrot.lane.b32.xlu0 %v11953_v22, %s10952_s28 }
 0xa39   : > { %3429 = vrot.lane.b32.xlu1 %v11911_v20, %s10952_s28 }
 0xa3c   : > { %3648 = vrot.lane.b32.xlu0 %v11805_v47, %s10953_s26 }
 0xa3d   : > { %3425 = vrot.lane.b32.xlu1 %v11947_v13, %s10952_s28 }
 0xa41   : > { %3646 = vrot.lane.b32.xlu1 %v11813_v43, %s10953_s26 }
 0xa52   : > { %v2956_v58 = vpop.xlane.xlu0 %2955 }
 0xa53   : > { %10719 = vrcp.f32 %v2956_v58 }
 0xa54   : > { %v2953_v27 = vpop.xlane.xlu1 %2952 }
 0xa55   : > { %10721 = vrcp.f32 %v2953_v27 }
 0xa60   : > { %v10720_v5 = vpop.eup %10719 }
 0xa61   : > { %v2992_v62 = vmul.f32 %v10720_v5, %v12085_v24  ;;  %v3183_v24 = vpop.permute.xlu0 %3182 }
 0xa62   : > { %v10722_v3 = vpop.eup %10721 }
 0xa63   : > { %v2991_v41 = vmul.f32 %v10722_v3, %v12089_v38  ;;  %v3181_v38 = vpop.permute.xlu1 %3180 }
 0xa65   : > { %10322 = vmatprep.mubr.msk.f32.mxu1 %vm1091_vm3, %v2991_v41 }
 0xa66   : > { %10323 = vmatmul.mubr.msk.f32.vlgmr.msra.gmra.mxu1 %vm1091_vm3, %v2992_v62 }
 0xa67   : > { %10335 = vmatpush3.xpose.msk.msra.mxu1 %vm945_vm2, %v12034_v16 }
 0xa68   : > { %10336 = vmatprep.subr.msk.mxu1 %vm945_vm2, %v12083_v39 }
 0xa6b   : > { %10337 = vmatpush3.xpose.msk.msra.mxu1 %vm945_vm2, %v12083_v39 }
 0xa6c   : > { %10338 = vmatprep.subr.msk.mxu1 %vm945_vm2, %v3187_v32 }
 0xa6f   : > { %10339 = vmatpush3.xpose.msk.msra.mxu1 %vm945_vm2, %v3187_v32 }
 0xa70   : > { %10340 = vmatprep.subr.msk.mxu1 %vm945_vm2, %v3185_v36 }
 0xa73   : > { %10341 = vmatpush3.xpose.msk.msra.mxu1 %vm945_vm2, %v3185_v36 }
 0xa74   : > { %10342 = vmatprep.subr.msk.mxu1 %vm945_vm2, %v3183_v24 }
 0xa77   : > { %10343 = vmatpush3.xpose.msk.msra.mxu1 %vm945_vm2, %v3183_v24 }
 0xa78   : > { %10344 = vmatprep.subr.msk.mxu1 %vm945_vm2, %v3181_v38 }
 0xa7b   : > { %10345 = vmatpush3.xpose.msk.msra.mxu1 %vm945_vm2, %v3181_v38 }
 0xa87   : > { %v2959_v16 = vpop.xlane.xlu0 %2958 }
 0xa88   : > { %10723 = vrcp.f32 %v2959_v16 }
 0xa89   : > { %v2962_v39 = vpop.xlane.xlu1 %2961 }
 0xa8a   : > { %10725 = vrcp.f32 %v2962_v39 }
 0xa8b   : > { %v2965_v21 = vpop.xlane.xlu0 %2964 }
 0xa8c   : > { %10727 = vrcp.f32 %v2965_v21 }
 0xa8d   : > { %v2968_v40 = vpop.xlane.xlu1 %2967 }
 0xa8e   : > { %10729 = vrcp.f32 %v2968_v40 }
 0xa8f   : > { %v2971_v10 = vpop.xlane.xlu0 %2970 }
 0xa90   : > { %10731 = vrcp.f32 %v2971_v10 }
 0xa91   : > { %v2974_v57 = vpop.xlane.xlu1 %2973 }
 0xa92   : > { %10733 = vrcp.f32 %v2974_v57 }
 0xa93   : > { %v3179_v56 = vpop.permute.xlu0 %3178 }
 0xa94   : > { %10346 = vmatprep.subr.msk.mxu1 %vm945_vm2, %v3179_v56 }
 0xa95   : > { %v10724_v59 = vpop.eup %10723  ;;  %10347 = vmatpush3.xpose.msk.msra.mxu1 %vm945_vm2, %v3179_v56  ;;  %v3177_v17 = vpop.permute.xlu1 %3176 }
 0xa96   : > { %10348 = vmatprep.subr.msk.mxu1 %vm945_vm2, %v3177_v17  ;;  %v2993_v28 = vmul.f32 %v10724_v59, %v12097_v55 }
 0xa97   : > { %v10726_v35 = vpop.eup %10725  ;;  %v3161_v12 = vpop.permute.xlu0 %3160 }
 0xa98   : > { %10325 = vmatprep.mubr.msk.f32.mxu1 %vm1091_vm3, %v2993_v28  ;;  %v2994_v32 = vmul.f32 %v10726_v35, %v12099_v7 }
 0xa99   : > { %v10728_v36 = vpop.eup %10727  ;;  %10349 = vmatpush3.xpose.msk.msra.mxu1 %vm945_vm2, %v3177_v17  ;;  %v3163_v58 = vpop.permute.xlu1 %3162 }
 0xa9a   : > { %10326 = vmatmul.mubr.msk.f32.gmra.mxu1 %vm1091_vm3, %v2994_v32  ;;  %v2995_v27 = vmul.f32 %v10728_v36, %v12103_v31 }
 0xa9b   : > { %v10730_v5 = vpop.eup %10729  ;;  %v3165_v3 = vpop.permute.xlu0 %3164 }
 0xa9c   : > { %10328 = vmatprep.mubr.msk.f32.mxu1 %vm1091_vm3, %v2995_v27  ;;  %v2996_v55 = vmul.f32 %v10730_v5, %v12107_v60 }
 0xa9d   : > { %v10732_v41 = vpop.eup %10731  ;;  %v3167_v62 = vpop.permute.xlu1 %3166 }
 0xa9e   : > { %10329 = vmatmul.mubr.msk.f32.gmra.mxu1 %vm1091_vm3, %v2996_v55  ;;  %v2997_v7 = vmul.f32 %v10732_v41, %v12111_v54 }
 0xa9f   : > { %v10734_v24 = vpop.eup %10733  ;;  %v3169_v38 = vpop.permute.xlu0 %3168 }
 0xaa0   : > { %10331 = vmatprep.mubr.msk.f32.mxu1 %vm1091_vm3, %v2997_v7  ;;  %v2998_v16 = vmul.f32 %v10734_v24, %v12115_v23 }
 0xaa1   : > { %v3171_v39 = vpop.permute.xlu1 %3170 }
 0xaa2   : > { %10332 = vmatmul.mubr.msk.f32.gmra.mxu1 %vm1091_vm3, %v2998_v16 }
 0xaa3   : > { %v3173_v31 = vpop.permute.xlu0 %3172  ;;  %10350 = vmatprep.mubr.msk.f32.mxu1 %vm945_vm2, %v3161_v12 }
 0xaa5   : > { %v3175_v21 = vpop.permute.xlu1 %3174 }
 0xaa6   : > { %10351 = vmatmul.mubr.msk.f32.vlgmr.msra.gmra.mxu1 %vm945_vm2, %v3163_v58 }
 0xaa7   : > { %10353 = vmatprep.mubr.msk.f32.mxu1 %vm945_vm2, %v3165_v3  ;;  %v3438_v60 = vpop.permute.xlu0 %3437 }
 0xaa9   : > { %v3440_v40 = vpop.permute.xlu1 %3439 }
 0xaaa   : > { %10354 = vmatmul.mubr.msk.f32.gmra.mxu1 %vm945_vm2, %v3167_v62  ;;  %10362 = vmatprep.subr.mxu0 %v3440_v40 }
 0xaab   : > { %10356 = vmatprep.mubr.msk.f32.mxu1 %vm945_vm2, %v3169_v38  ;;  %10363 = vmatpush3.msra.mxu0 %v3440_v40  ;;  %v3432_v23 = vpop.permute.xlu0 %3431 }
 0xaac   : > { %10364 = vmatprep.subr.mxu0 %v3438_v60 }
 0xaad   : > { %10365 = vmatpush3.msra.mxu0 %v3438_v60  ;;  %v3436_v54 = vpop.permute.xlu1 %3435 }
 0xaae   : > { %10357 = vmatmul.mubr.msk.f32.gmra.mxu1 %vm945_vm2, %v3171_v39  ;;  %10366 = vmatprep.subr.mxu0 %v3436_v54 }
 0xaaf   : > { %10359 = vmatprep.mubr.msk.f32.mxu1 %vm945_vm2, %v3173_v31  ;;  %10367 = vmatpush3.msra.mxu0 %v3436_v54  ;;  %v3428_v57 = vpop.permute.xlu0 %3427 }
 0xab1   : > { %v3434_v10 = vpop.permute.xlu1 %3433 }
 0xab2   : > { %10360 = vmatmul.mubr.msk.f32.gmra.mxu1 %vm945_vm2, %v3175_v21  ;;  %10368 = vmatprep.subr.mxu0 %v3434_v10 }
 0xab3   : > { %10369 = vmatpush3.msra.mxu0 %v3434_v10  ;;  %v12203_v17 = vpop.permute.xlu0 %3648 }
 0xab4   : > { %10370 = vmatprep.subr.mxu0 %v3432_v23 }
 0xab5   : > { %10371 = vmatpush3.msra.mxu0 %v3432_v23  ;;  %v3430_v56 = vpop.permute.xlu1 %3429 }
 0xab6   : > { %10372 = vmatprep.subr.mxu0 %v3430_v56 }
 0xab7   : > { %10373 = vmatpush3.msra.mxu0 %v3430_v56 }
 0xab8   : > { %10374 = vmatprep.subr.mxu0 %v3428_v57 }
 0xab9   : > { %10375 = vmatpush3.msra.mxu0 %v3428_v57  ;;  %v3426_v59 = vpop.permute.xlu1 %3425 }
 0xaba   : > { %10376 = vmatprep.subr.mxu0 %v3426_v59 }
 0xabb   : > { %10377 = vmatpush3.msra.mxu0 %v3426_v59 }
 0xabc   : > { %10390 = vmatprep.subr.msk.mxu0 %vm945_vm2, %v12203_v17 }
 0xabd   : > { %v12227_v57 = vpop.permute.xlu1 %3646 }
 0xb26   : > { %v10324_v28 = vpop.f32.mrf.mxu1 }
 0xb27   : > { %3153 = vst.msk [vmem:[#allocation3 + $0x48] sm:$0xff] %vm945_vm2, %v10324_v28 }
 0xb28   : > { %v3113_v35 = vpop.f32.mrf.mxu1 }
 0xb29   : > { %3152 = vst.msk [vmem:[#allocation3 + $0x40] sm:$0xff] %vm945_vm2, %v3113_v35 }
 0xb5a   : > { %v10327_v12 = vpop.f32.mrf.mxu1 }
 0xb5b   : > { %3155 = vst.msk [vmem:[#allocation3 + $0x58] sm:$0xff] %vm945_vm2, %v10327_v12 }
 0xb5c   : > { %v3123_v32 = vpop.f32.mrf.mxu1 }
 0xb5d   : > { %3154 = vst.msk [vmem:[#allocation3 + $0x50] sm:$0xff] %vm945_vm2, %v3123_v32 }
 0xb5e   : > { %v10330_v36 = vpop.f32.mrf.mxu1 }
 0xb5f   : > { %3157 = vst.msk [vmem:[#allocation3 + $0x68] sm:$0xff] %vm945_vm2, %v10330_v36 }
 0xb60   : > { %v3133_v58 = vpop.f32.mrf.mxu1 }
 0xb61   : > { %3156 = vst.msk [vmem:[#allocation3 + $0x60] sm:$0xff] %vm945_vm2, %v3133_v58 }
 0xb62   : > { %v10333_v27 = vpop.f32.mrf.mxu1 }
 0xb63   : > { %3159 = vst.msk [vmem:[#allocation3 + $0x78] sm:$0xff] %vm945_vm2, %v10333_v27 }
 0xb64   : > { %v3143_v5 = vpop.f32.mrf.mxu1 }
 0xb65   : > { %3158 = vst.msk [vmem:[#allocation3 + $0x70] sm:$0xff] %vm945_vm2, %v3143_v5 }
 0xb66   : > { %v10352_v3 = vpop.f32.mrf.mxu1 }
 0xb67   : > { %v3332_v55 = vsel %vm1091_vm3, %v10352_v3, -inf }
 0xb68   : > { %3333 = vmax.xlane.f32.xlu1 %v3332_v55  ;;  %v3290_v41 = vpop.f32.mrf.mxu1 }
 0xb69   : > { %v3329_v62 = vsel %vm1091_vm3, %v3290_v41, -inf }
 0xb6a   : > { %3330 = vmax.xlane.f32.xlu0 %v3329_v62  ;;  %v10355_v7 = vpop.f32.mrf.mxu1 }
 0xb6b   : > { %v3338_v38 = vsel %vm1091_vm3, %v10355_v7, -inf }
 0xb6c   : > { %v3300_v24 = vpop.f32.mrf.mxu1 }
 0xb6d   : > { %v3335_v31 = vsel %vm1091_vm3, %v3300_v24, -inf }
 0xb6e   : > { %3339 = vmax.xlane.f32.xlu0 %v3338_v38  ;;  %v10358_v16 = vpop.f32.mrf.mxu1 }
 0xb6f   : > { %v3344_v54 = vsel %vm1091_vm3, %v10358_v16, -inf }
 0xb70   : > { %v3310_v39 = vpop.f32.mrf.mxu1 }
 0xb71   : > { %v3341_v21 = vsel %vm1091_vm3, %v3310_v39, -inf }
 0xb72   : > { %3336 = vmax.xlane.f32.xlu0 %v3335_v31  ;;  %3342 = vmax.xlane.f32.xlu1 %v3341_v21  ;;  %v10361_v60 = vpop.f32.mrf.mxu1 }
 0xb73   : > { %v3350_v10 = vsel %vm1091_vm3, %v10361_v60, -inf }
 0xb74   : > { %v3320_v40 = vpop.f32.mrf.mxu1 }
 0xb75   : > { %v3347_v23 = vsel %vm1091_vm3, %v3320_v40, -inf }
 0xb76   : > { %3345 = vmax.xlane.f32.xlu0 %v3344_v54  ;;  %3348 = vmax.xlane.f32.xlu1 %v3347_v23 }
 0xb7a   : > { %3351 = vmax.xlane.f32.xlu0 %v3350_v10 }
 0xb87   : > { %3642 = vrot.lane.b32.xlu1 %v11889_v19, %s10953_s26 }
 0xb90   : > { %3644 = vrot.lane.b32.xlu0 %v11895_v18, %s10953_s26 }
 0xbf1   : > { %v3334_v56 = vpop.xlane.xlu1 %3333 }
 0xbf2   : > { %v3354_v59 = vsub.f32 %v10352_v3, %v3334_v56 }
 0xbf3   : > { %v3331_v28 = vpop.xlane.xlu0 %3330 }
 0xbf4   : > { %v3363_v35 = vmul.f32 1.442695, %v3354_v59  ;;  %v3353_v12 = vsub.f32 %v3290_v41, %v3331_v28 }
 0xbf6   : > { %10735 = vpow2.f32 %v3363_v35  ;;  %v3361_v32 = vmul.f32 1.442695, %v3353_v12 }
 0xbf7   : > { %v3340_v55 = vpop.xlane.xlu0 %3339 }
 0xbf8   : > { %10737 = vpow2.f32 %v3361_v32  ;;  %v3356_v31 = vsub.f32 %v10355_v7, %v3340_v55 }
 0xbfa   : > { %v3367_v10 = vmul.f32 1.442695, %v3356_v31 }
 0xbfb   : > { %v3337_v3 = vpop.xlane.xlu0 %3336  ;;  %v3343_v41 = vpop.xlane.xlu1 %3342 }
 0xbfc   : > { %v3355_v62 = vsub.f32 %v3300_v24, %v3337_v3  ;;  %v3357_v54 = vsub.f32 %v3310_v39, %v3343_v41 }
 0xbfe   : > { %v3365_v21 = vmul.f32 1.442695, %v3355_v62  ;;  %v3369_v28 = vmul.f32 1.442695, %v3357_v54 }
 0xbff   : > { %v3346_v38 = vpop.xlane.xlu0 %3345  ;;  %v3349_v23 = vpop.xlane.xlu1 %3348 }
 0xc00   : > { %v3358_v56 = vsub.f32 %v10358_v16, %v3346_v38  ;;  %10739 = vpow2.f32 %v3365_v21  ;;  %v3359_v35 = vsub.f32 %v3320_v40, %v3349_v23 }
 0xc01   : > { %10741 = vpow2.f32 %v3367_v10 }
 0xc02   : > { %v3371_v12 = vmul.f32 1.442695, %v3358_v56  ;;  %10743 = vpow2.f32 %v3369_v28 }
 0xc03   : > { %v12229_v36 = vpop.eup %10735  ;;  %v3352_v59 = vpop.xlane.xlu0 %3351 }
 0xc04   : > { %v3380_v58 = vsel %vm1091_vm3, %v12229_v36, 0.0  ;;  %v3360_v32 = vsub.f32 %v10361_v60, %v3352_v59  ;;  %10745 = vpow2.f32 %v3371_v12  ;;  %v3643_v54 = vpop.permute.xlu1 %3642 }
 0xc05   : > { %v12233_v27 = vpop.eup %10737  ;;  %3381 = vadd.xlane.f32.xlu0 %v3380_v58  ;;  %v3373_v58 = vmul.f32 1.442695, %v3359_v35 }
 0xc06   : > { %v3377_v5 = vsel %vm1091_vm3, %v12233_v27, 0.0 }
 0xc07   : > { %3378 = vadd.xlane.f32.xlu1 %v3377_v5  ;;  %v3375_v5 = vmul.f32 1.442695, %v3360_v32  ;;  %10747 = vpow2.f32 %v3373_v58  ;;  %v3645_v21 = vpop.permute.xlu0 %3644 }
 0xc09   : > { %10749 = vpow2.f32 %v3375_v5 }
 0xc0d   : > { %v12241_v24 = vpop.eup %10739 }
 0xc0e   : > { %v12243_v7 = vpop.eup %10741  ;;  %v3383_v16 = vsel %vm1091_vm3, %v12241_v24, 0.0 }
 0xc0f   : > { %v12247_v39 = vpop.eup %10743  ;;  %v3386_v40 = vsel %vm1091_vm3, %v12243_v7, 0.0 }
 0xc10   : > { %v3389_v55 = vsel %vm1091_vm3, %v12247_v39, 0.0 }
 0xc11   : > { %v12251_v60 = vpop.eup %10745 }
 0xc12   : > { %v3392_v41 = vsel %vm1091_vm3, %v12251_v60, 0.0 }
 0xc14   : > { %v12255_v3 = vpop.eup %10747 }
 0xc15   : > { %v3395_v38 = vsel %vm1091_vm3, %v12255_v3, 0.0 }
 0xc16   : > { %v12259_v62 = vpop.eup %10749 }
 0xc17   : > { %v3398_v31 = vsel %vm1091_vm3, %v12259_v62, 0.0 }
 0xc18   : > { %3638 = vrot.lane.b32.xlu1 %v11911_v20, %s10953_s26 }
 0xc1b   : > { %3640 = vrot.lane.b32.xlu0 %v11917_v29, %s10953_s26 }
 0xc3a   : > { %3384 = vadd.xlane.f32.xlu0 %v3383_v16 }
 0xc3c   : > { %3387 = vadd.xlane.f32.xlu1 %v3386_v40 }
 0xc3e   : > { %3390 = vadd.xlane.f32.xlu0 %v3389_v55 }
 0xc40   : > { %3393 = vadd.xlane.f32.xlu1 %v3392_v41 }
 0xc42   : > { %3396 = vadd.xlane.f32.xlu0 %v3395_v38 }
 0xc44   : > { %3399 = vadd.xlane.f32.xlu1 %v3398_v31 }
 0xc55   : > { %3634 = vrot.lane.b32.xlu1 %v11947_v13, %s10953_s26 }
 0xc58   : > { %3636 = vrot.lane.b32.xlu0 %v11953_v22, %s10953_s26  ;;  %s15474_s26 = scalar_lea.vmem %s15396_s5, %s11058_s20 }
 0xc59   : > { %3620 = vrot.lane.b32.xlu1 %v12017_v11, %s10954_s16 }
 0xc5c   : > { %3618 = vrot.lane.b32.xlu0 %v12011_v44, %s10954_s16 }
 0xc5d   : > { %3624 = vrot.lane.b32.xlu1 %v12027_v30, %s10954_s16 }
 0xc60   : > { %3622 = vrot.lane.b32.xlu0 %v12020_v45, %s10954_s16 }
 0xc61   : > { %3628 = vrot.lane.b32.xlu1 %v12041_v25, %s10954_s16 }
 0xc64   : > { %3626 = vrot.lane.b32.xlu0 %v12030_v34, %s10954_s16 }
 0xc65   : > { %3632 = vrot.lane.b32.xlu1 %v12051_v2, %s10954_s16 }
 0xc68   : > { %3630 = vrot.lane.b32.xlu0 %v12044_v37, %s10954_s16 }
 0xc69   : > { %3897 = vrot.lane.b32.xlu1 %v11805_v47, %s10955_s27 }
 0xc6c   : > { %3895 = vrot.lane.b32.xlu0 %v11813_v43, %s10955_s27 }
 0xc6d   : > { %3893 = vrot.lane.b32.xlu1 %v11895_v18, %s10955_s27 }
 0xc70   : > { %3889 = vrot.lane.b32.xlu0 %v11917_v29, %s10955_s27 }
 0xc71   : > { %3891 = vrot.lane.b32.xlu1 %v11889_v19, %s10955_s27 }
 0xc74   : > { %3885 = vrot.lane.b32.xlu0 %v11953_v22, %s10955_s27 }
 0xc75   : > { %3887 = vrot.lane.b32.xlu1 %v11911_v20, %s10955_s27 }
 0xc78   : > { %4106 = vrot.lane.b32.xlu0 %v11805_v47, %s10956_s17 }
 0xc79   : > { %3883 = vrot.lane.b32.xlu1 %v11947_v13, %s10955_s27 }
 0xc7d   : > { %4104 = vrot.lane.b32.xlu1 %v11813_v43, %s10956_s17 }
 0xc8e   : > { %v3382_v23 = vpop.xlane.xlu0 %3381 }
 0xc8f   : > { %10751 = vrcp.f32 %v3382_v23 }
 0xc90   : > { %v3379_v10 = vpop.xlane.xlu1 %3378 }
 0xc91   : > { %10753 = vrcp.f32 %v3379_v10 }
 0xc9c   : > { %v10752_v56 = vpop.eup %10751 }
 0xc9d   : > { %v3418_v35 = vmul.f32 %v10752_v56, %v12229_v36  ;;  %v3641_v36 = vpop.permute.xlu0 %3640 }
 0xc9e   : > { %v10754_v59 = vpop.eup %10753 }
 0xc9f   : > { %v3417_v28 = vmul.f32 %v10754_v59, %v12233_v27  ;;  %v3639_v27 = vpop.permute.xlu1 %3638 }
 0xca1   : > { %10378 = vmatprep.mubr.msk.f32.mxu0 %vm1091_vm3, %v3417_v28 }
 0xca2   : > { %10379 = vmatmul.mubr.msk.f32.vlgmr.msra.gmra.mxu0 %vm1091_vm3, %v3418_v35 }
 0xca3   : > { %10391 = vmatpush3.xpose.msk.msra.mxu0 %vm945_vm2, %v12203_v17 }
 0xca4   : > { %10392 = vmatprep.subr.msk.mxu0 %vm945_vm2, %v12227_v57 }
 0xca7   : > { %10393 = vmatpush3.xpose.msk.msra.mxu0 %vm945_vm2, %v12227_v57 }
 0xca8   : > { %10394 = vmatprep.subr.msk.mxu0 %vm945_vm2, %v3645_v21 }
 0xcab   : > { %10395 = vmatpush3.xpose.msk.msra.mxu0 %vm945_vm2, %v3645_v21 }
 0xcac   : > { %10396 = vmatprep.subr.msk.mxu0 %vm945_vm2, %v3643_v54 }
 0xcaf   : > { %10397 = vmatpush3.xpose.msk.msra.mxu0 %vm945_vm2, %v3643_v54 }
 0xcb0   : > { %10398 = vmatprep.subr.msk.mxu0 %vm945_vm2, %v3641_v36 }
 0xcb3   : > { %10399 = vmatpush3.xpose.msk.msra.mxu0 %vm945_vm2, %v3641_v36 }
 0xcb4   : > { %10400 = vmatprep.subr.msk.mxu0 %vm945_vm2, %v3639_v27 }
 0xcb7   : > { %10401 = vmatpush3.xpose.msk.msra.mxu0 %vm945_vm2, %v3639_v27 }
 0xcc3   : > { %v3385_v17 = vpop.xlane.xlu0 %3384 }
 0xcc4   : > { %10755 = vrcp.f32 %v3385_v17 }
 0xcc5   : > { %v3388_v57 = vpop.xlane.xlu1 %3387 }
 0xcc6   : > { %10757 = vrcp.f32 %v3388_v57 }
 0xcc7   : > { %v3391_v12 = vpop.xlane.xlu0 %3390 }
 0xcc8   : > { %10759 = vrcp.f32 %v3391_v12 }
 0xcc9   : > { %v3394_v32 = vpop.xlane.xlu1 %3393 }
 0xcca   : > { %10761 = vrcp.f32 %v3394_v32 }
 0xccb   : > { %v3397_v58 = vpop.xlane.xlu0 %3396 }
 0xccc   : > { %10763 = vrcp.f32 %v3397_v58 }
 0xccd   : > { %v3400_v5 = vpop.xlane.xlu1 %3399 }
 0xcce   : > { %10765 = vrcp.f32 %v3400_v5 }
 0xccf   : > { %v3637_v16 = vpop.permute.xlu0 %3636 }
 0xcd0   : > { %10402 = vmatprep.subr.msk.mxu0 %vm945_vm2, %v3637_v16 }
 0xcd1   : > { %v10756_v40 = vpop.eup %10755  ;;  %10403 = vmatpush3.xpose.msk.msra.mxu0 %vm945_vm2, %v3637_v16  ;;  %v3635_v55 = vpop.permute.xlu1 %3634 }
 0xcd2   : > { %10404 = vmatprep.subr.msk.mxu0 %vm945_vm2, %v3635_v55  ;;  %v3419_v41 = vmul.f32 %v10756_v40, %v12241_v24 }
 0xcd3   : > { %v10758_v38 = vpop.eup %10757  ;;  %v3619_v31 = vpop.permute.xlu0 %3618 }
 0xcd4   : > { %10381 = vmatprep.mubr.msk.f32.mxu0 %vm1091_vm3, %v3419_v41  ;;  %v3420_v21 = vmul.f32 %v10758_v38, %v12243_v7 }
 0xcd5   : > { %v10760_v54 = vpop.eup %10759  ;;  %10405 = vmatpush3.xpose.msk.msra.mxu0 %vm945_vm2, %v3635_v55  ;;  %v3621_v23 = vpop.permute.xlu1 %3620 }
 0xcd6   : > { %10382 = vmatmul.mubr.msk.f32.gmra.mxu0 %vm1091_vm3, %v3420_v21  ;;  %v3421_v10 = vmul.f32 %v10760_v54, %v12247_v39 }
 0xcd7   : > { %v10762_v56 = vpop.eup %10761  ;;  %v3623_v59 = vpop.permute.xlu0 %3622 }
 0xcd8   : > { %10384 = vmatprep.mubr.msk.f32.mxu0 %vm1091_vm3, %v3421_v10  ;;  %v3422_v24 = vmul.f32 %v10762_v56, %v12251_v60 }
 0xcd9   : > { %v10764_v28 = vpop.eup %10763  ;;  %v3625_v35 = vpop.permute.xlu1 %3624 }
 0xcda   : > { %10385 = vmatmul.mubr.msk.f32.gmra.mxu0 %vm1091_vm3, %v3422_v24  ;;  %v3423_v7 = vmul.f32 %v10764_v28, %v12255_v3 }
 0xcdb   : > { %v10766_v36 = vpop.eup %10765  ;;  %v3627_v27 = vpop.permute.xlu0 %3626 }
 0xcdc   : > { %10387 = vmatprep.mubr.msk.f32.mxu0 %vm1091_vm3, %v3423_v7  ;;  %v3424_v17 = vmul.f32 %v10766_v36, %v12259_v62 }
 0xcdd   : > { %v3629_v57 = vpop.permute.xlu1 %3628 }
 0xcde   : > { %10388 = vmatmul.mubr.msk.f32.gmra.mxu0 %vm1091_vm3, %v3424_v17 }
 0xcdf   : > { %v3631_v39 = vpop.permute.xlu0 %3630  ;;  %10406 = vmatprep.mubr.msk.f32.mxu0 %vm945_vm2, %v3619_v31 }
 0xce1   : > { %v3633_v12 = vpop.permute.xlu1 %3632 }
 0xce2   : > { %10407 = vmatmul.mubr.msk.f32.vlgmr.msra.gmra.mxu0 %vm945_vm2, %v3621_v23 }
 0xce3   : > { %10409 = vmatprep.mubr.msk.f32.mxu0 %vm945_vm2, %v3623_v59  ;;  %v3896_v60 = vpop.permute.xlu0 %3895 }
 0xce5   : > { %v3898_v32 = vpop.permute.xlu1 %3897 }
 0xce6   : > { %10410 = vmatmul.mubr.msk.f32.gmra.mxu0 %vm945_vm2, %v3625_v35  ;;  %10418 = vmatprep.subr.mxu1 %v3898_v32 }
 0xce7   : > { %10412 = vmatprep.mubr.msk.f32.mxu0 %vm945_vm2, %v3627_v27  ;;  %10419 = vmatpush3.msra.mxu1 %v3898_v32  ;;  %v3890_v62 = vpop.permute.xlu0 %3889 }
 0xce8   : > { %10420 = vmatprep.subr.mxu1 %v3896_v60 }
 0xce9   : > { %10421 = vmatpush3.msra.mxu1 %v3896_v60  ;;  %v3894_v3 = vpop.permute.xlu1 %3893 }
 0xcea   : > { %10413 = vmatmul.mubr.msk.f32.gmra.mxu0 %vm945_vm2, %v3629_v57  ;;  %10422 = vmatprep.subr.mxu1 %v3894_v3 }
 0xceb   : > { %10415 = vmatprep.mubr.msk.f32.mxu0 %vm945_vm2, %v3631_v39  ;;  %10423 = vmatpush3.msra.mxu1 %v3894_v3  ;;  %v3886_v5 = vpop.permute.xlu0 %3885 }
 0xced   : > { %v3892_v58 = vpop.permute.xlu1 %3891 }
 0xcee   : > { %10416 = vmatmul.mubr.msk.f32.gmra.mxu0 %vm945_vm2, %v3633_v12  ;;  %10424 = vmatprep.subr.mxu1 %v3892_v58 }
 0xcef   : > { %10425 = vmatpush3.msra.mxu1 %v3892_v58  ;;  %v12347_v55 = vpop.permute.xlu0 %4106 }
 0xcf0   : > { %10426 = vmatprep.subr.mxu1 %v3890_v62 }
 0xcf1   : > { %10427 = vmatpush3.msra.mxu1 %v3890_v62  ;;  %v3888_v16 = vpop.permute.xlu1 %3887 }
 0xcf2   : > { %10428 = vmatprep.subr.mxu1 %v3888_v16 }
 0xcf3   : > { %10429 = vmatpush3.msra.mxu1 %v3888_v16 }
 0xcf4   : > { %10430 = vmatprep.subr.mxu1 %v3886_v5 }
 0xcf5   : > { %10431 = vmatpush3.msra.mxu1 %v3886_v5  ;;  %v3884_v40 = vpop.permute.xlu1 %3883 }
 0xcf6   : > { %10432 = vmatprep.subr.mxu1 %v3884_v40 }
 0xcf7   : > { %10433 = vmatpush3.msra.mxu1 %v3884_v40 }
 0xcf8   : > { %10446 = vmatprep.subr.msk.mxu1 %vm945_vm2, %v12347_v55 }
 0xcf9   : > { %v12379_v5 = vpop.permute.xlu1 %4104 }
 0xd62   : > { %v12351_v41 = vpop.f32.mrf.mxu0 }
 0xd64   : > { %v12353_v38 = vpop.f32.mrf.mxu0 }
 0xd65   : > { %15455 = vst [vmem:[#allocation15_spill] sm:$0xff] %v12353_v38 }
 0xd96   : > { %v12355_v31 = vpop.f32.mrf.mxu0 }
 0xd98   : > { %v12357_v21 = vpop.f32.mrf.mxu0 }
 0xd99   : > { %15456 = vst [vmem:[#allocation16_spill] sm:$0xff] %v12357_v21 }
 0xd9a   : > { %v12359_v54 = vpop.f32.mrf.mxu0 }
 0xd9c   : > { %v12361_v23 = vpop.f32.mrf.mxu0 }
 0xd9d   : > { %15457 = vst [vmem:[#allocation17_spill] sm:$0xff] %v12361_v23 }
 0xd9e   : > { %v12363_v10 = vpop.f32.mrf.mxu0 }
 0xd9f   : > { %15458 = vst [vmem:[#allocation18_spill] sm:$0xff] %v12363_v10 }
 0xda0   : > { %v12365_v56 = vpop.f32.mrf.mxu0 }
 0xda1   : > { %15459 = vst [vmem:[#allocation19_spill] sm:$0xff] %v12365_v56 }
 0xda2   : > { %v10408_v59 = vpop.f32.mrf.mxu0 }
 0xda3   : > { %v3790_v24 = vsel %vm1091_vm3, %v10408_v59, -inf }
 0xda4   : > { %3791 = vmax.xlane.f32.xlu1 %v3790_v24  ;;  %v3748_v28 = vpop.f32.mrf.mxu0 }
 0xda5   : > { %v3787_v35 = vsel %vm1091_vm3, %v3748_v28, -inf }
 0xda6   : > { %3788 = vmax.xlane.f32.xlu0 %v3787_v35  ;;  %v10411_v7 = vpop.f32.mrf.mxu0 }
 0xda7   : > { %v3796_v27 = vsel %vm1091_vm3, %v10411_v7, -inf }
 0xda8   : > { %v3758_v36 = vpop.f32.mrf.mxu0 }
 0xda9   : > { %v3793_v39 = vsel %vm1091_vm3, %v3758_v36, -inf }
 0xdaa   : > { %3797 = vmax.xlane.f32.xlu0 %v3796_v27  ;;  %v10414_v17 = vpop.f32.mrf.mxu0 }
 0xdab   : > { %v3802_v3 = vsel %vm1091_vm3, %v10414_v17, -inf }
 0xdac   : > { %v3768_v57 = vpop.f32.mrf.mxu0 }
 0xdad   : > { %v3799_v12 = vsel %vm1091_vm3, %v3768_v57, -inf }
 0xdae   : > { %3794 = vmax.xlane.f32.xlu0 %v3793_v39  ;;  %3800 = vmax.xlane.f32.xlu1 %v3799_v12  ;;  %v10417_v60 = vpop.f32.mrf.mxu0 }
 0xdaf   : > { %v3808_v58 = vsel %vm1091_vm3, %v10417_v60, -inf }
 0xdb0   : > { %v3778_v32 = vpop.f32.mrf.mxu0 }
 0xdb1   : > { %v3805_v62 = vsel %vm1091_vm3, %v3778_v32, -inf }
 0xdb2   : > { %3803 = vmax.xlane.f32.xlu0 %v3802_v3  ;;  %3806 = vmax.xlane.f32.xlu1 %v3805_v62 }
 0xdb6   : > { %3809 = vmax.xlane.f32.xlu0 %v3808_v58 }
 0xdc3   : > { %4100 = vrot.lane.b32.xlu1 %v11889_v19, %s10956_s17 }
 0xdcc   : > { %4102 = vrot.lane.b32.xlu0 %v11895_v18, %s10956_s17 }
 0xe2d   : > { %v3792_v16 = vpop.xlane.xlu1 %3791 }
 0xe2e   : > { %v3812_v40 = vsub.f32 %v10408_v59, %v3792_v16 }
 0xe2f   : > { %v3789_v24 = vpop.xlane.xlu0 %3788 }
 0xe30   : > { %v3821_v35 = vmul.f32 1.442695, %v3812_v40  ;;  %v3811_v27 = vsub.f32 %v3748_v28, %v3789_v24 }
 0xe32   : > { %10767 = vpow2.f32 %v3821_v35  ;;  %v3819_v39 = vmul.f32 1.442695, %v3811_v27 }
 0xe33   : > { %v3798_v56 = vpop.xlane.xlu0 %3797 }
 0xe34   : > { %10769 = vpow2.f32 %v3819_v39  ;;  %v3814_v24 = vsub.f32 %v10411_v7, %v3798_v56 }
 0xe37   : > { %v3795_v59 = vpop.xlane.xlu0 %3794  ;;  %v3801_v28 = vpop.xlane.xlu1 %3800 }
 0xe38   : > { %v3813_v16 = vsub.f32 %v3758_v36, %v3795_v59  ;;  %v3815_v27 = vsub.f32 %v3768_v57, %v3801_v28 }
 0xe3a   : > { %v3823_v35 = vmul.f32 1.442695, %v3813_v16 }
 0xe3b   : > { %v3804_v40 = vpop.xlane.xlu0 %3803  ;;  %v3807_v39 = vpop.xlane.xlu1 %3806 }
 0xe3c   : > { %v3816_v10 = vsub.f32 %v10414_v17, %v3804_v40  ;;  %10771 = vpow2.f32 %v3823_v35  ;;  %v3817_v21 = vsub.f32 %v3778_v32, %v3807_v39 }
 0xe3e   : > { %v3829_v38 = vmul.f32 1.442695, %v3816_v10  ;;  %v3831_v15 = vmul.f32 1.442695, %v3817_v21 }
 0xe3f   : > { %v12381_v12 = vpop.eup %10767  ;;  %v3810_v23 = vpop.xlane.xlu0 %3809 }
 0xe40   : > { %v3838_v3 = vsel %vm1091_vm3, %v12381_v12, 0.0  ;;  %v3818_v52 = vsub.f32 %v10417_v60, %v3810_v23 }
 0xe41   : > { %v12385_v62 = vpop.eup %10769  ;;  %3839 = vadd.xlane.f32.xlu0 %v3838_v3  ;;  %v3825_v3 = vmul.f32 1.442695, %v3814_v24 }
 0xe42   : > { %v3835_v58 = vsel %vm1091_vm3, %v12385_v62, 0.0  ;;  %v3833_v26 = vmul.f32 1.442695, %v3818_v52 }
 0xe43   : > { %3836 = vadd.xlane.f32.xlu1 %v3835_v58  ;;  %v3827_v58 = vmul.f32 1.442695, %v3815_v27  ;;  %10773 = vpow2.f32 %v3825_v3 }
 0xe45   : > { %10775 = vpow2.f32 %v3827_v58 }
 0xe46   : > { %10777 = vpow2.f32 %v3829_v38 }
 0xe47   : > { %10779 = vpow2.f32 %v3831_v15 }
 0xe48   : > { %10781 = vpow2.f32 %v3833_v26 }
 0xe49   : > { %v12393_v36 = vpop.eup %10771 }
 0xe4a   : > { %v3841_v7 = vsel %vm1091_vm3, %v12393_v36, 0.0 }
 0xe50   : > { %v12395_v56 = vpop.eup %10773 }
 0xe51   : > { %v3844_v10 = vsel %vm1091_vm3, %v12395_v56, 0.0 }
 0xe52   : > { %v12399_v17 = vpop.eup %10775 }
 0xe53   : > { %v12403_v23 = vpop.eup %10777  ;;  %v3847_v15 = vsel %vm1091_vm3, %v12399_v17, 0.0 }
 0xe54   : > { %4096 = vrot.lane.b32.xlu1 %v11911_v20, %s10956_s17  ;;  %v12407_v52 = vpop.eup %10779  ;;  %v3850_v26 = vsel %vm1091_vm3, %v12403_v23, 0.0 }
 0xe55   : > { %v12411_v38 = vpop.eup %10781  ;;  %v3853_v21 = vsel %vm1091_vm3, %v12407_v52, 0.0 }
 0xe56   : > { %v3856_v57 = vsel %vm1091_vm3, %v12411_v38, 0.0 }
 0xe57   : > { %4098 = vrot.lane.b32.xlu0 %v11917_v29, %s10956_s17 }
 0xe76   : > { %3842 = vadd.xlane.f32.xlu0 %v3841_v7 }
 0xe78   : > { %3845 = vadd.xlane.f32.xlu1 %v3844_v10 }
 0xe7a   : > { %3848 = vadd.xlane.f32.xlu0 %v3847_v15 }
 0xe7c   : > { %3851 = vadd.xlane.f32.xlu1 %v3850_v26 }
 0xe7e   : > { %3854 = vadd.xlane.f32.xlu0 %v3853_v21 }
 0xe80   : > { %3857 = vadd.xlane.f32.xlu1 %v3856_v57 }
 0xe91   : > { %4092 = vrot.lane.b32.xlu1 %v11947_v13, %s10956_s17 }
 0xe94   : > { %4094 = vrot.lane.b32.xlu0 %v11953_v22, %s10956_s17  ;;  %s15475_s17 = scalar_lea.vmem %s15397_s6, %s11058_s20 }
 0xe95   : > { %4078 = vrot.lane.b32.xlu1 %v12017_v11, %s10957_s14  ;;  %v4101_v11 = vpop.permute.xlu1 %4100 }
 0xe98   : > { %4076 = vrot.lane.b32.xlu0 %v12011_v44, %s10957_s14  ;;  %v4103_v44 = vpop.permute.xlu0 %4102 }
 0xe99   : > { %4082 = vrot.lane.b32.xlu1 %v12027_v30, %s10957_s14 }
 0xe9c   : > { %4080 = vrot.lane.b32.xlu0 %v12020_v45, %s10957_s14 }
 0xe9d   : > { %4086 = vrot.lane.b32.xlu1 %v12041_v25, %s10957_s14 }
 0xea0   : > { %4084 = vrot.lane.b32.xlu0 %v12030_v34, %s10957_s14 }
 0xea1   : > { %4090 = vrot.lane.b32.xlu1 %v12051_v2, %s10957_s14 }
 0xea4   : > { %4088 = vrot.lane.b32.xlu0 %v12044_v37, %s10957_s14 }
 0xea5   : > { %4355 = vrot.lane.b32.xlu1 %v11805_v47, %s10958_s15 }
 0xeca   : > { %v3840_v30 = vpop.xlane.xlu0 %3839 }
 0xecb   : > { %10783 = vrcp.f32 %v3840_v30 }
 0xecc   : > { %v3837_v45 = vpop.xlane.xlu1 %3836 }
 0xecd   : > { %10785 = vrcp.f32 %v3837_v45 }
 0xece   : > { %v4099_v47 = vpop.permute.xlu0 %4098 }
 0xed0   : > { %v4097_v37 = vpop.permute.xlu1 %4096 }
 0xed8   : > { %v10784_v60 = vpop.eup %10783 }
 0xed9   : > { %v3876_v34 = vmul.f32 %v10784_v60, %v12381_v12 }
 0xeda   : > { %v10786_v25 = vpop.eup %10785 }
 0xedb   : > { %v3875_v32 = vmul.f32 %v10786_v25, %v12385_v62 }
 0xedd   : > { %10434 = vmatprep.mubr.msk.f32.mxu1 %vm1091_vm3, %v3875_v32 }
 0xede   : > { %10435 = vmatmul.mubr.msk.f32.vlgmr.msra.gmra.mxu1 %vm1091_vm3, %v3876_v34 }
 0xedf   : > { %10447 = vmatpush3.xpose.msk.msra.mxu1 %vm945_vm2, %v12347_v55 }
 0xee0   : > { %10448 = vmatprep.subr.msk.mxu1 %vm945_vm2, %v12379_v5 }
 0xee3   : > { %10449 = vmatpush3.xpose.msk.msra.mxu1 %vm945_vm2, %v12379_v5 }
 0xee4   : > { %10450 = vmatprep.subr.msk.mxu1 %vm945_vm2, %v4103_v44 }
 0xee7   : > { %10451 = vmatpush3.xpose.msk.msra.mxu1 %vm945_vm2, %v4103_v44 }
 0xee8   : > { %10452 = vmatprep.subr.msk.mxu1 %vm945_vm2, %v4101_v11 }
 0xeeb   : > { %10453 = vmatpush3.xpose.msk.msra.mxu1 %vm945_vm2, %v4101_v11 }
 0xeec   : > { %10454 = vmatprep.subr.msk.mxu1 %vm945_vm2, %v4099_v47 }
 0xeef   : > { %10455 = vmatpush3.xpose.msk.msra.mxu1 %vm945_vm2, %v4099_v47 }
 0xef0   : > { %10456 = vmatprep.subr.msk.mxu1 %vm945_vm2, %v4097_v37 }
 0xef3   : > { %10457 = vmatpush3.xpose.msk.msra.mxu1 %vm945_vm2, %v4097_v37 }
 0xeff   : > { %v3843_v2 = vpop.xlane.xlu0 %3842 }
 0xf00   : > { %10787 = vrcp.f32 %v3843_v2 }
 0xf01   : > { %v3846_v55 = vpop.xlane.xlu1 %3845 }
 0xf02   : > { %10789 = vrcp.f32 %v3846_v55 }
 0xf03   : > { %v3849_v5 = vpop.xlane.xlu0 %3848 }
 0xf04   : > { %10791 = vrcp.f32 %v3849_v5 }
 0xf05   : > { %v3852_v12 = vpop.xlane.xlu1 %3851 }
 0xf06   : > { %10793 = vrcp.f32 %v3852_v12 }
 0xf07   : > { %v3855_v62 = vpop.xlane.xlu0 %3854 }
 0xf08   : > { %10795 = vrcp.f32 %v3855_v62 }
 0xf09   : > { %v3858_v59 = vpop.xlane.xlu1 %3857 }
 0xf0a   : > { %10797 = vrcp.f32 %v3858_v59 }
 0xf0b   : > { %v4095_v28 = vpop.permute.xlu0 %4094 }
 0xf0c   : > { %10458 = vmatprep.subr.msk.mxu1 %vm945_vm2, %v4095_v28 }
 0xf0d   : > { %v10788_v16 = vpop.eup %10787  ;;  %10459 = vmatpush3.xpose.msk.msra.mxu1 %vm945_vm2, %v4095_v28  ;;  %v4093_v40 = vpop.permute.xlu1 %4092 }
 0xf0e   : > { %10460 = vmatprep.subr.msk.mxu1 %vm945_vm2, %v4093_v40  ;;  %v3877_v24 = vmul.f32 %v10788_v16, %v12393_v36 }
 0xf0f   : > { %v10790_v35 = vpop.eup %10789  ;;  %v4077_v10 = vpop.permute.xlu0 %4076 }
 0xf10   : > { %10437 = vmatprep.mubr.msk.f32.mxu1 %vm1091_vm3, %v3877_v24  ;;  %v3878_v27 = vmul.f32 %v10790_v35, %v12395_v56 }
 0xf11   : > { %v10792_v39 = vpop.eup %10791  ;;  %10461 = vmatpush3.xpose.msk.msra.mxu1 %vm945_vm2, %v4093_v40  ;;  %v4079_v3 = vpop.permute.xlu1 %4078 }
 0xf12   : > { %10438 = vmatmul.mubr.msk.f32.gmra.mxu1 %vm1091_vm3, %v3878_v27  ;;  %v3879_v58 = vmul.f32 %v10792_v39, %v12399_v17 }
 0xf13   : > { %v10794_v7 = vpop.eup %10793  ;;  %v4081_v11 = vpop.permute.xlu0 %4080 }
 0xf14   : > { %10440 = vmatprep.mubr.msk.f32.mxu1 %vm1091_vm3, %v3879_v58  ;;  %v3880_v15 = vmul.f32 %v10794_v7, %v12403_v23 }
 0xf15   : > { %v10796_v36 = vpop.eup %10795  ;;  %v4083_v26 = vpop.permute.xlu1 %4082 }
 0xf16   : > { %10441 = vmatmul.mubr.msk.f32.gmra.mxu1 %vm1091_vm3, %v3880_v15  ;;  %v3881_v56 = vmul.f32 %v10796_v36, %v12407_v52 }
 0xf17   : > { %v10798_v21 = vpop.eup %10797  ;;  %v4085_v23 = vpop.permute.xlu0 %4084 }
 0xf18   : > { %10443 = vmatprep.mubr.msk.f32.mxu1 %vm1091_vm3, %v3881_v56  ;;  %v3882_v57 = vmul.f32 %v10798_v21, %v12411_v38 }
 0xf19   : > { %v4087_v44 = vpop.permute.xlu1 %4086 }
 0xf1a   : > { %10444 = vmatmul.mubr.msk.f32.gmra.mxu1 %vm1091_vm3, %v3882_v57 }
 0xf1b   : > { %10462 = vmatprep.mubr.msk.f32.mxu1 %vm945_vm2, %v4077_v10  ;;  %v4089_v52 = vpop.permute.xlu0 %4088 }
 0xf1d   : > { %v4091_v17 = vpop.permute.xlu1 %4090 }
 0xf1e   : > { %10463 = vmatmul.mubr.msk.f32.vlgmr.msra.gmra.mxu1 %vm945_vm2, %v4079_v3 }
 0xf1f   : > { %10465 = vmatprep.mubr.msk.f32.mxu1 %vm945_vm2, %v4081_v11 }
 0xf21   : > { %v4356_v30 = vpop.permute.xlu1 %4355 }
 0xf22   : > { %10466 = vmatmul.mubr.msk.f32.gmra.mxu1 %vm945_vm2, %v4083_v26  ;;  %10474 = vmatprep.subr.mxu0 %v4356_v30 }
 0xf23   : > { %10468 = vmatprep.mubr.msk.f32.mxu1 %vm945_vm2, %v4085_v23  ;;  %10475 = vmatpush3.msra.mxu0 %v4356_v30 }
 0xf26   : > { %10469 = vmatmul.mubr.msk.f32.gmra.mxu1 %vm945_vm2, %v4087_v44 }
 0xf27   : > { %10471 = vmatprep.mubr.msk.f32.mxu1 %vm945_vm2, %v4089_v52 }
 0xf2a   : > { %10472 = vmatmul.mubr.msk.f32.gmra.mxu1 %vm945_vm2, %v4091_v17 }
 0xf9e   : > { %v12481_v38 = vpop.f32.mrf.mxu1 }
 0xfa0   : > { %v12483_v45 = vpop.f32.mrf.mxu1 }
 0xfd2   : > { %v12485_v60 = vpop.f32.mrf.mxu1 }
 0xfd4   : > { %v12487_v25 = vpop.f32.mrf.mxu1 }
 0xfd6   : > { %v12489_v32 = vpop.f32.mrf.mxu1 }
 0xfd8   : > { %v12491_v34 = vpop.f32.mrf.mxu1 }
 0xfda   : > { %v12493_v47 = vpop.f32.mrf.mxu1 }
 0xfdc   : > { %v12495_v37 = vpop.f32.mrf.mxu1 }
 0xfde   : > { %v10464_v2 = vpop.f32.mrf.mxu1 }
 0xfdf   : > { %v4248_v55 = vsel %vm1091_vm3, %v10464_v2, -inf }
 0xfe0   : > { %4249 = vmax.xlane.f32.xlu1 %v4248_v55  ;;  %v4206_v5 = vpop.f32.mrf.mxu1 }
 0xfe1   : > { %v4245_v12 = vsel %vm1091_vm3, %v4206_v5, -inf }
 0xfe2   : > { %4246 = vmax.xlane.f32.xlu0 %v4245_v12  ;;  %v10467_v62 = vpop.f32.mrf.mxu1 }
 0xfe3   : > { %v4254_v59 = vsel %vm1091_vm3, %v10467_v62, -inf }
 0xfe4   : > { %v4216_v28 = vpop.f32.mrf.mxu1 }
 0xfe5   : > { %v4251_v16 = vsel %vm1091_vm3, %v4216_v28, -inf }
 0xfe6   : > { %4255 = vmax.xlane.f32.xlu0 %v4254_v59  ;;  %v10470_v40 = vpop.f32.mrf.mxu1 }
 0xfe7   : > { %v4260_v27 = vsel %vm1091_vm3, %v10470_v40, -inf }
 0xfe8   : > { %v4226_v24 = vpop.f32.mrf.mxu1 }
 0xfe9   : > { %v4257_v35 = vsel %vm1091_vm3, %v4226_v24, -inf }
 0xfea   : > { %4252 = vmax.xlane.f32.xlu0 %v4251_v16  ;;  %v10473_v39 = vpop.f32.mrf.mxu1 }
 0xfeb   : > { %v4266_v3 = vsel %vm1091_vm3, %v10473_v39, -inf }
 0xff1   : > { %4351 = vrot.lane.b32.xlu1 %v11895_v18, %s10958_s15  ;;  %v12512_v18 = vpop.f32.mrf.mxu1 }
0x1000   : > { %4353 = vrot.lane.b32.xlu0 %v11813_v43, %s10958_s15  ;;  %v4263_v43 = vsel %vm1091_vm3, %v12512_v18, -inf }
0x1015   : > { %4258 = vmax.xlane.f32.xlu1 %v4257_v35 }
0x101f   : > { %4261 = vmax.xlane.f32.xlu0 %v4260_v27 }
0x1023   : > { %4267 = vmax.xlane.f32.xlu0 %v4266_v3 }
0x1026   : > { %4347 = vrot.lane.b32.xlu1 %v11917_v29, %s10958_s15 }
0x1039   : > { %4349 = vrot.lane.b32.xlu0 %v11889_v19, %s10958_s15 }
0x104a   : > { %4264 = vmax.xlane.f32.xlu1 %v4263_v43 }
0x105b   : > { %4345 = vrot.lane.b32.xlu1 %v11911_v20, %s10958_s15 }
0x1069   : > { %v4250_v58 = vpop.xlane.xlu1 %4249 }
0x106a   : > { %v4270_v7 = vsub.f32 %v10464_v2, %v4250_v58 }
0x106b   : > { %v4247_v10 = vpop.xlane.xlu0 %4246 }
0x106c   : > { %v4279_v15 = vmul.f32 1.442695, %v4270_v7  ;;  %v4269_v36 = vsub.f32 %v4206_v5, %v4247_v10 }
0x106d   : > { %v4352_v17 = vpop.permute.xlu1 %4351 }
0x106e   : > { %10799 = vpow2.f32 %v4279_v15  ;;  %v4277_v26 = vmul.f32 1.442695, %v4269_v36 }
0x106f   : > { %v4256_v29 = vpop.xlane.xlu0 %4255 }
0x1070   : > { %10801 = vpow2.f32 %v4277_v26  ;;  %v4272_v56 = vsub.f32 %v10467_v62, %v4256_v29 }
0x1072   : > { %v4283_v19 = vmul.f32 1.442695, %v4272_v56 }
0x1073   : > { %v4253_v21 = vpop.xlane.xlu0 %4252 }
0x1074   : > { %10803 = vpow2.f32 %v4283_v19  ;;  %v4271_v57 = vsub.f32 %v4216_v28, %v4253_v21 }
0x1076   : > { %v4281_v44 = vmul.f32 1.442695, %v4271_v57 }
0x1077   : > { %v4354_v11 = vpop.permute.xlu0 %4353 }
0x1078   : > { %10805 = vpow2.f32 %v4281_v44  ;;  %10476 = vmatprep.subr.mxu0 %v4354_v11 }
0x1079   : > { %10477 = vmatpush3.msra.mxu0 %v4354_v11 }
0x107a   : > { %10478 = vmatprep.subr.mxu0 %v4352_v17 }
0x107b   : > { %v12518_v20 = vpop.eup %10799  ;;  %10479 = vmatpush3.msra.mxu0 %v4352_v17 }
0x107c   : > { %v4296_v23 = vsel %vm1091_vm3, %v12518_v20, 0.0 }
0x107d   : > { %v12522_v30 = vpop.eup %10801  ;;  %4297 = vadd.xlane.f32.xlu0 %v4296_v23 }
0x107e   : > { %v4293_v52 = vsel %vm1091_vm3, %v12522_v30, 0.0 }
0x107f   : > { %4294 = vadd.xlane.f32.xlu1 %v4293_v52 }
0x1081   : > { %v12526_v2 = vpop.eup %10803 }
0x1082   : > { %v4302_v55 = vsel %vm1091_vm3, %v12526_v2, 0.0 }
0x1083   : > { %4303 = vadd.xlane.f32.xlu0 %v4302_v55 }
0x1085   : > { %v12530_v5 = vpop.eup %10805 }
0x1086   : > { %v4299_v12 = vsel %vm1091_vm3, %v12530_v5, 0.0 }
0x1087   : > { %4300 = vadd.xlane.f32.xlu1 %v4299_v12 }
0x109e   : > { %v4259_v62 = vpop.xlane.xlu1 %4258 }
0x109f   : > { %v4273_v59 = vsub.f32 %v4226_v24, %v4259_v62  ;;  %v4552_v62 = vld [vmem:[%s11083_s13 + $0x10] sm:$0xff] }
0x10a1   : > { %v4285_v28 = vmul.f32 1.442695, %v4273_v59 }
0x10a2   : > { %v4348_v36 = vpop.permute.xlu1 %4347 }
0x10a3   : > { %10807 = vpow2.f32 %v4285_v28 }
0x10a8   : > { %v4262_v16 = vpop.xlane.xlu0 %4261 }
0x10a9   : > { %v4274_v35 = vsub.f32 %v10470_v40, %v4262_v16 }
0x10ab   : > { %v4287_v27 = vmul.f32 1.442695, %v4274_v35 }
0x10ac   : > { %v4268_v3 = vpop.xlane.xlu0 %4267 }
0x10ad   : > { %10809 = vpow2.f32 %v4287_v27  ;;  %v4276_v43 = vsub.f32 %v10473_v39, %v4268_v3  ;;  %v4551_v27 = vld [vmem:[%s11083_s13 + $0x8] sm:$0xff] }
0x10af   : > { %v4291_v58 = vmul.f32 1.442695, %v4276_v43 }
0x10b0   : > { %v12534_v7 = vpop.eup %10807  ;;  %v4350_v10 = vpop.permute.xlu0 %4349 }
0x10b1   : > { %10811 = vpow2.f32 %v4291_v58  ;;  %10480 = vmatprep.subr.mxu0 %v4350_v10  ;;  %v4305_v15 = vsel %vm1091_vm3, %v12534_v7, 0.0 }
0x10b2   : > { %10481 = vmatpush3.msra.mxu0 %v4350_v10  ;;  %4306 = vadd.xlane.f32.xlu1 %v4305_v15 }
0x10b3   : > { %10482 = vmatprep.subr.mxu0 %v4348_v36 }
0x10b4   : > { %10483 = vmatpush3.msra.mxu0 %v4348_v36 }
0x10ba   : > { %v12538_v24 = vpop.eup %10809 }
0x10bb   : > { %v4308_v40 = vsel %vm1091_vm3, %v12538_v24, 0.0 }
0x10bc   : > { %4309 = vadd.xlane.f32.xlu0 %v4308_v40 }
0x10be   : > { %v12542_v39 = vpop.eup %10811 }
0x10bf   : > { %v4314_v26 = vsel %vm1091_vm3, %v12542_v39, 0.0 }
0x10c0   : > { %4315 = vadd.xlane.f32.xlu1 %v4314_v26 }
0x10d1   : > { %4341 = vrot.lane.b32.xlu1 %v11947_v13, %s10958_s15 }
0x10d3   : > { %v4265_v29 = vpop.xlane.xlu1 %4264 }
0x10d4   : > { %v4275_v56 = vsub.f32 %v12512_v18, %v4265_v29 }
0x10d5   : > { %1777 = vrot.lane.b32.xlu1 %v11700_v4, %s10959_s24 }
0x10d6   : > { %v4289_v19 = vmul.f32 1.442695, %v4275_v56 }
0x10d7   : > { %v4346_v21 = vpop.permute.xlu1 %4345 }
0x10d8   : > { %10813 = vpow2.f32 %v4289_v19  ;;  %10484 = vmatprep.subr.mxu0 %v4346_v21 }
0x10d9   : > { %2236 = vrot.lane.b32.xlu1 %v11863_v42, %s10960_s1  ;;  %10485 = vmatpush3.msra.mxu0 %v4346_v21  ;;  %v15461_v42 = vld [vmem:[#allocation9_spill] sm:$0xff] }
0x10dd   : > { %2695 = vrot.lane.b32.xlu1 %v12055_v61, %s10961_s3 }
0x10e1   : > { %1781 = vrot.lane.b32.xlu1 %v11704_v6, %s10959_s24 }
0x10e5   : > { %v12557_v13 = vpop.eup %10813  ;;  %2240 = vrot.lane.b32.xlu1 %v11867_v49, %s10960_s1  ;;  %v15464_v49 = vld [vmem:[#allocation10_spill] sm:$0xff] }
0x10e6   : > { %v4311_v4 = vsel %vm1091_vm3, %v12557_v13, 0.0 }
0x10e7   : > { %4312 = vadd.xlane.f32.xlu0 %v4311_v4 }
0x10e9   : > { %2699 = vrot.lane.b32.xlu1 %v12059_v33, %s10961_s3 }
0x10ed   : > { %1785 = vrot.lane.b32.xlu1 %v11708_v9, %s10959_s24 }
0x10f1   : > { %2244 = vrot.lane.b32.xlu1 %v11871_v51, %s10960_s1  ;;  %v15466_v51 = vld [vmem:[#allocation14_spill] sm:$0xff] }
0x10f5   : > { %2703 = vrot.lane.b32.xlu1 %v12063_v48, %s10961_s3 }
0x10f9   : > { %1789 = vrot.lane.b32.xlu1 %v11712_v8, %s10959_s24 }
0x10fd   : > { %2248 = vrot.lane.b32.xlu1 %v11875_v53, %s10960_s1  ;;  %4343 = vrot.lane.b32.xlu0 %v11953_v22, %s10958_s15  ;;  %v15467_v53 = vld [vmem:[#allocation15_spill] sm:$0xff]  ;;  %v15468_v22 = vld [vmem:[#allocation16_spill] sm:$0xff] }
0x1101   : > { %2707 = vrot.lane.b32.xlu1 %v12067_v0, %s10961_s3  ;;  %1775 = vrot.lane.b32.xlu0 %v11702_v63, %s10959_s24  ;;  %v15460_v63 = vld [vmem:[#allocation8_spill] sm:$0xff] }
0x1105   : > { %3588 = vrot.lane.b32.xlu1 %v12351_v41, %s10959_s24  ;;  %2234 = vrot.lane.b32.xlu0 %v11865_v46, %s10960_s1  ;;  %v15463_v46 = vld [vmem:[#allocation13_spill] sm:$0xff] }
0x1108   : > { %v4295_v6 = vpop.xlane.xlu1 %4294 }
0x1109   : > { %10815 = vrcp.f32 %v4295_v6  ;;  %4046 = vrot.lane.b32.xlu1 %v12481_v38, %s10960_s1  ;;  %2693 = vrot.lane.b32.xlu0 %v12057_v14, %s10961_s3  ;;  %v15469_v14 = vld [vmem:[#allocation17_spill] sm:$0xff] }
0x110d   : > { %3592 = vrot.lane.b32.xlu1 %v12355_v31, %s10959_s24  ;;  %1779 = vrot.lane.b32.xlu0 %v11706_v1, %s10959_s24  ;;  %v15462_v1 = vld [vmem:[#allocation11_spill] sm:$0xff] }
0x1110   : > { %v4301_v61 = vpop.xlane.xlu1 %4300 }
0x1111   : > { %4050 = vrot.lane.b32.xlu1 %v12485_v60, %s10960_s1  ;;  %2238 = vrot.lane.b32.xlu0 %v11869_v50, %s10960_s1  ;;  %v15465_v50 = vld [vmem:[#allocation12_spill] sm:$0xff]  ;;  %v4298_v60 = vpop.xlane.xlu0 %4297 }
0x1112   : > { %10817 = vrcp.f32 %v4298_v60 }
0x1113   : > { %10819 = vrcp.f32 %v4301_v61 }
0x1115   : > { %3596 = vrot.lane.b32.xlu1 %v12359_v54, %s10959_s24  ;;  %2697 = vrot.lane.b32.xlu0 %v15460_v63, %s10961_s3  ;;  %v4304_v18 = vpop.xlane.xlu0 %4303 }
0x1116   : > { %v10816_v9 = vpop.eup %10815  ;;  %10821 = vrcp.f32 %v4304_v18 }
0x1117   : > { %v4333_v8 = vmul.f32 %v10816_v9, %v12522_v30 }
0x1119   : > { %1783 = vrot.lane.b32.xlu0 %v15461_v42, %s10959_s24  ;;  %10490 = vmatprep.mubr.msk.f32.mxu0 %vm1091_vm3, %v4333_v8 }
0x111d   : > { %2242 = vrot.lane.b32.xlu0 %v15462_v1, %s10960_s1 }
0x111f   : > { %v10818_v30 = vpop.eup %10817 }
0x1120   : > { %v10820_v55 = vpop.eup %10819  ;;  %v4334_v59 = vmul.f32 %v10818_v30, %v12518_v20  ;;  %v4550_v20 = vld [vmem:[%s11083_s13] sm:$0xff] }
0x1121   : > { %2701 = vrot.lane.b32.xlu0 %v15463_v46, %s10961_s3  ;;  %v4335_v35 = vmul.f32 %v10820_v55, %v12530_v5 }
0x1123   : > { %v10822_v28 = vpop.eup %10821 }
0x1124   : > { %v4336_v58 = vmul.f32 %v10822_v28, %v12526_v2 }
0x1125   : > { %1787 = vrot.lane.b32.xlu0 %v15464_v49, %s10959_s24 }
0x1129   : > { %2246 = vrot.lane.b32.xlu0 %v15465_v50, %s10960_s1 }
0x112d   : > { %2705 = vrot.lane.b32.xlu0 %v15466_v51, %s10961_s3 }
0x1131   : > { %3586 = vrot.lane.b32.xlu0 %v15467_v53, %s10959_s24 }
0x1135   : > { %4044 = vrot.lane.b32.xlu0 %v12483_v45, %s10960_s1 }
0x1139   : > { %3590 = vrot.lane.b32.xlu0 %v15468_v22, %s10959_s24 }
0x113b   : > { %v4307_v33 = vpop.xlane.xlu1 %4306 }
0x113c   : > { %10823 = vrcp.f32 %v4307_v33 }
0x113d   : > { %4048 = vrot.lane.b32.xlu0 %v12487_v25, %s10960_s1 }
0x1141   : > { %3594 = vrot.lane.b32.xlu0 %v15469_v14, %s10959_s24 }
0x1145   : > { %v4310_v44 = vpop.xlane.xlu0 %4309 }
0x1146   : > { %10825 = vrcp.f32 %v4310_v44 }
0x1149   : > { %v4316_v48 = vpop.xlane.xlu1 %4315  ;;  %v10824_v3 = vpop.eup %10823 }
0x114a   : > { %v4337_v5 = vmul.f32 %v10824_v3, %v12534_v7  ;;  %v10897_v3 = vld [vmem:[#allocation2 + $0x8] sm:$0xff] }
0x114d   : > { %v4342_v0 = vpop.permute.xlu1 %4341 }
0x1151   : > { %v1778_v41 = vpop.permute.xlu1 %1777 }
0x1152   : > { %1801 = vst.msk [vmem:[#allocation3 + $0x8] sm:$0xff] %vm1799_vm4, %v1778_v41 }
0x1153   : > { %v10826_v10 = vpop.eup %10825 }
0x1154   : > { %v4338_v2 = vmul.f32 %v10826_v10, %v12538_v24 }
0x1155   : > { %v2237_v31 = vpop.permute.xlu1 %2236 }
0x1156   : > { %2260 = vst.msk [vmem:[#allocation3 + $0x8] sm:$0xff] %vm2258_vm5, %v2237_v31 }
0x1159   : > { %v2696_v54 = vpop.permute.xlu1 %2695 }
0x115a   : > { %2719 = vst.msk [vmem:[#allocation3 + $0x8] sm:$0xff] %vm2717_vm6, %v2696_v54 }
0x115d   : > { %v1782_v38 = vpop.permute.xlu1 %1781 }
0x115e   : > { %1803 = vst.msk [vmem:[#allocation3 + $0x18] sm:$0xff] %vm1799_vm4, %v1782_v38 }
0x1161   : > { %v2241_v45 = vpop.permute.xlu1 %2240  ;;  %v4535_v63 = vld [vmem:[#allocation3 + $0x8] sm:$0xff] }
0x1162   : > { %2262 = vst.msk [vmem:[#allocation3 + $0x18] sm:$0xff] %vm2258_vm5, %v2241_v45 }
0x1165   : > { %v2700_v25 = vpop.permute.xlu1 %2699 }
0x1166   : > { %2721 = vst.msk [vmem:[#allocation3 + $0x18] sm:$0xff] %vm2717_vm6, %v2700_v25 }
0x1169   : > { %v1786_v57 = vpop.permute.xlu1 %1785 }
0x116a   : > { %1805 = vst.msk [vmem:[#allocation3 + $0x28] sm:$0xff] %vm1799_vm4, %v1786_v57  ;;  %v15470_v57 = vld [vmem:[#allocation18_spill] sm:$0xff] }
0x116d   : > { %v2245_v11 = vpop.permute.xlu1 %2244  ;;  %v4537_v49 = vld [vmem:[#allocation3 + $0x18] sm:$0xff] }
0x116e   : > { %2264 = vst.msk [vmem:[#allocation3 + $0x28] sm:$0xff] %vm2258_vm5, %v2245_v11  ;;  %v15471_v11 = vld [vmem:[#allocation19_spill] sm:$0xff] }
0x1170   : > { %v4313_v17 = vpop.xlane.xlu0 %4312 }
0x1171   : > { %10827 = vrcp.f32 %v4313_v17  ;;  %v2704_v23 = vpop.permute.xlu1 %2703 }
0x1172   : > { %2723 = vst.msk [vmem:[#allocation3 + $0x28] sm:$0xff] %vm2717_vm6, %v2704_v23  ;;  %10829 = vrcp.f32 %v4316_v48 }
0x1174   : > { %v4344_v52 = vpop.permute.xlu0 %4343 }
0x1175   : > { %10486 = vmatprep.subr.mxu0 %v4344_v52  ;;  %v1790_v12 = vpop.permute.xlu1 %1789 }
0x1176   : > { %1807 = vst.msk [vmem:[#allocation3 + $0x38] sm:$0xff] %vm1799_vm4, %v1790_v12  ;;  %10487 = vmatpush3.msra.mxu0 %v4344_v52 }
0x1177   : > { %10488 = vmatprep.subr.mxu0 %v4342_v0 }
0x1178   : > { %v1776_v16 = vpop.permute.xlu0 %1775  ;;  %10489 = vmatpush3.msra.mxu0 %v4342_v0 }
0x1179   : > { %1800 = vst.msk [vmem:[#allocation3] sm:$0xff] %vm1799_vm4, %v1776_v16  ;;  %10491 = vmatmul.mubr.msk.f32.vlgmr.msra.gmra.mxu0 %vm1091_vm3, %v4334_v59  ;;  %v2249_v43 = vpop.permute.xlu1 %2248  ;;  %10502 = vmatprep.subr.mxu0 %v4552_v62  ;;  %v4539_v61 = vld [vmem:[#allocation3 + $0x28] sm:$0xff] }
0x117a   : > { %2266 = vst.msk [vmem:[#allocation3 + $0x38] sm:$0xff] %vm2258_vm5, %v2249_v43  ;;  %10493 = vmatprep.mubr.msk.f32.mxu0 %vm1091_vm3, %v4335_v35  ;;  %10503 = vmatpush3.msra.mxu0 %v4552_v62  ;;  %v12709_v62 = vld [vmem:[%s15473_s23] ss:$0 sm:$0xff]  ;;  %s15721_s23 = sld [smem:[#allocation61_spill]] (!%p9078_p5) }
0x117b   : > { %10504 = vmatprep.subr.mxu0 %v4551_v27  ;;  %v10896_v35 = vld [vmem:[#allocation2] sm:$0xff] }
0x117c   : > { %v2235_v15 = vpop.permute.xlu0 %2234  ;;  %10505 = vmatpush3.msra.mxu0 %v4551_v27 }
0x117d   : > { %2259 = vst.msk [vmem:[#allocation3] sm:$0xff] %vm2258_vm5, %v2235_v15  ;;  %10494 = vmatmul.mubr.msk.f32.gmra.mxu0 %vm1091_vm3, %v4336_v58  ;;  %v2708_v36 = vpop.permute.xlu1 %2707  ;;  %10506 = vmatprep.subr.mxu0 %v4550_v20 }
0x117e   : > { %v10828_v40 = vpop.eup %10827  ;;  %2725 = vst.msk [vmem:[#allocation3 + $0x38] sm:$0xff] %vm2717_vm6, %v2708_v36  ;;  %10496 = vmatprep.mubr.msk.f32.mxu0 %vm1091_vm3, %v4337_v5  ;;  %10507 = vmatpush3.msra.mxu0 %v4550_v20  ;;  %v10898_v5 = vld [vmem:[#allocation2 + $0x10] sm:$0xff] }
0x117f   : > { %v4339_v26 = vmul.f32 %v10828_v40, %v12557_v13  ;;  %v10830_v29 = vpop.eup %10829 }
0x1180   : > { %v2694_v56 = vpop.permute.xlu0 %2693  ;;  %v4340_v19 = vmul.f32 %v10830_v29, %v12542_v39 }
0x1181   : > { %2718 = vst.msk [vmem:[#allocation3] sm:$0xff] %vm2717_vm6, %v2694_v56  ;;  %10497 = vmatmul.mubr.msk.f32.gmra.mxu0 %vm1091_vm3, %v4338_v2  ;;  %v3589_v7 = vpop.permute.xlu1 %3588  ;;  %v10900_v56 = vld [vmem:[#allocation2 + $0x18] sm:$0xff] }
0x1182   : > { %3611 = vst.msk [vmem:[#allocation3 + $0x48] sm:$0xff] %vm1799_vm4, %v3589_v7  ;;  %10499 = vmatprep.mubr.msk.f32.mxu0 %vm1091_vm3, %v4339_v26  ;;  %v10899_v26 = vld [vmem:[#allocation2 + $0x20] sm:$0xff] }
0x1184   : > { %v1780_v21 = vpop.permute.xlu0 %1779 }
0x1185   : > { %1802 = vst.msk [vmem:[#allocation3 + $0x10] sm:$0xff] %vm1799_vm4, %v1780_v21  ;;  %10500 = vmatmul.mubr.msk.f32.gmra.mxu0 %vm1091_vm3, %v4340_v19  ;;  %v4047_v24 = vpop.permute.xlu1 %4046  ;;  %v4541_v41 = vld [vmem:[#allocation3 + $0x38] sm:$0xff] }
0x1186   : > { %4069 = vst.msk [vmem:[#allocation3 + $0x48] sm:$0xff] %vm2258_vm5, %v4047_v24 }
0x1188   : > { %v2239_v13 = vpop.permute.xlu0 %2238  ;;  %v4534_v4 = vld [vmem:[#allocation3] sm:$0xff] }
0x1189   : > { %2261 = vst.msk [vmem:[#allocation3 + $0x10] sm:$0xff] %vm2258_vm5, %v2239_v13  ;;  %10508 = vmatprep.mubr.msk.f32.mxu0 %vm719_vm1, %v4534_v4  ;;  %v3593_v6 = vpop.permute.xlu1 %3592  ;;  %v10901_v13 = vld [vmem:[#allocation2 + $0x30] sm:$0xff] }
0x118a   : > { %3613 = vst.msk [vmem:[#allocation3 + $0x58] sm:$0xff] %vm1799_vm4, %v3593_v6  ;;  %10509 = vmatmul.mubr.msk.f32.vlgmr.msra.gmra.mxu0 %vm719_vm1, %v4535_v63  ;;  %v10902_v6 = vld [vmem:[#allocation2 + $0x28] sm:$0xff] }
0x118c   : > { %v2698_v39 = vpop.permute.xlu0 %2697 }
0x118d   : > { %2720 = vst.msk [vmem:[#allocation3 + $0x10] sm:$0xff] %vm2717_vm6, %v2698_v39  ;;  %v4051_v9 = vpop.permute.xlu1 %4050 }
0x118e   : > { %4071 = vst.msk [vmem:[#allocation3 + $0x58] sm:$0xff] %vm2258_vm5, %v4051_v9 }
0x1190   : > { %v1784_v8 = vpop.permute.xlu0 %1783 }
0x1191   : > { %1804 = vst.msk [vmem:[#allocation3 + $0x20] sm:$0xff] %vm1799_vm4, %v1784_v8  ;;  %v3597_v42 = vpop.permute.xlu1 %3596 }
0x1192   : > { %3615 = vst.msk [vmem:[#allocation3 + $0x68] sm:$0xff] %vm1799_vm4, %v3597_v42  ;;  %v10903_v42 = vld [vmem:[#allocation2 + $0x38] sm:$0xff] }
0x1194   : > { %v2243_v1 = vpop.permute.xlu0 %2242  ;;  %v4536_v46 = vld [vmem:[#allocation3 + $0x10] sm:$0xff] }
0x1195   : > { %2263 = vst.msk [vmem:[#allocation3 + $0x20] sm:$0xff] %vm2258_vm5, %v2243_v1  ;;  %10511 = vmatprep.mubr.msk.f32.mxu0 %vm719_vm1, %v4536_v46 }
0x1196   : > { %10512 = vmatmul.mubr.msk.f32.gmra.mxu0 %vm719_vm1, %v4537_v49 }
0x1198   : > { %v2702_v50 = vpop.permute.xlu0 %2701 }
0x1199   : > { %2722 = vst.msk [vmem:[#allocation3 + $0x20] sm:$0xff] %vm2717_vm6, %v2702_v50 }
0x119c   : > { %v1788_v51 = vpop.permute.xlu0 %1787 }
0x119d   : > { %1806 = vst.msk [vmem:[#allocation3 + $0x30] sm:$0xff] %vm1799_vm4, %v1788_v51 }
0x11a0   : > { %v2247_v53 = vpop.permute.xlu0 %2246  ;;  %v4538_v22 = vld [vmem:[#allocation3 + $0x20] sm:$0xff] }
0x11a1   : > { %2265 = vst.msk [vmem:[#allocation3 + $0x30] sm:$0xff] %vm2258_vm5, %v2247_v53  ;;  %10514 = vmatprep.mubr.msk.f32.mxu0 %vm719_vm1, %v4538_v22 }
0x11a2   : > { %10515 = vmatmul.mubr.msk.f32.gmra.mxu0 %vm719_vm1, %v4539_v61 }
0x11a4   : > { %v2706_v14 = vpop.permute.xlu0 %2705 }
0x11a5   : > { %2724 = vst.msk [vmem:[#allocation3 + $0x30] sm:$0xff] %vm2717_vm6, %v2706_v14 }
0x11a8   : > { %v3587_v33 = vpop.permute.xlu0 %3586 }
0x11a9   : > { %3610 = vst.msk [vmem:[#allocation3 + $0x40] sm:$0xff] %vm1799_vm4, %v3587_v33 }
0x11ac   : > { %v4045_v48 = vpop.permute.xlu0 %4044  ;;  %v4540_v0 = vld [vmem:[#allocation3 + $0x30] sm:$0xff] }
0x11ad   : > { %4068 = vst.msk [vmem:[#allocation3 + $0x40] sm:$0xff] %vm2258_vm5, %v4045_v48  ;;  %10517 = vmatprep.mubr.msk.f32.mxu0 %vm719_vm1, %v4540_v0 }
0x11ae   : > { %10518 = vmatmul.mubr.msk.f32.gmra.mxu0 %vm719_vm1, %v4541_v41 }
0x11b0   : > { %v3591_v31 = vpop.permute.xlu0 %3590 }
0x11b1   : > { %3612 = vst.msk [vmem:[#allocation3 + $0x50] sm:$0xff] %vm1799_vm4, %v3591_v31 }
0x11b4   : > { %v4049_v54 = vpop.permute.xlu0 %4048 }
0x11b5   : > { %4070 = vst.msk [vmem:[#allocation3 + $0x50] sm:$0xff] %vm2258_vm5, %v4049_v54 }
0x11b8   : > { %v3595_v38 = vpop.permute.xlu0 %3594 }
0x11b9   : > { %3614 = vst.msk [vmem:[#allocation3 + $0x60] sm:$0xff] %vm1799_vm4, %v3595_v38 }
0x1239   : > { %v10492_v45 = vpop.f32.mrf.mxu0 }
0x123a   : > { %4504 = vrot.lane.b32.xlu1 %v10492_v45, %s10961_s3 }
0x123b   : > { %v4455_v60 = vpop.f32.mrf.mxu0 }
0x123c   : > { %4502 = vrot.lane.b32.xlu0 %v4455_v60, %s10961_s3 }
0x123d   : > { %v10495_v25 = vpop.f32.mrf.mxu0 }
0x123e   : > { %4054 = vrot.lane.b32.xlu1 %v12489_v32, %s10960_s1 }
0x123f   : > { %v4465_v18 = vpop.f32.mrf.mxu0 }
0x1240   : > { %4052 = vrot.lane.b32.xlu0 %v12491_v34, %s10960_s1 }
0x1241   : > { %v10498_v44 = vpop.f32.mrf.mxu0 }
0x1242   : > { %4508 = vrot.lane.b32.xlu1 %v10495_v25, %s10961_s3 }
0x1243   : > { %v4475_v32 = vpop.f32.mrf.mxu0 }
0x1244   : > { %4506 = vrot.lane.b32.xlu0 %v4465_v18, %s10961_s3 }
0x1245   : > { %v10501_v34 = vpop.f32.mrf.mxu0 }
0x1246   : > { %3600 = vrot.lane.b32.xlu1 %v15470_v57, %s10959_s24 }
0x1247   : > { %v4485_v17 = vpop.f32.mrf.mxu0 }
0x1248   : > { %3598 = vrot.lane.b32.xlu0 %v15471_v11, %s10959_s24 }
0x124a   : > { %4512 = vrot.lane.b32.xlu1 %v10498_v44, %s10961_s3  ;;  %v10510_v23 = vpop.f32.mrf.mxu0 }
0x124c   : > { %4510 = vrot.lane.b32.xlu0 %v4475_v32, %s10961_s3  ;;  %v4674_v30 = vpop.f32.mrf.mxu0 }
0x124e   : > { %4058 = vrot.lane.b32.xlu1 %v12493_v47, %s10960_s1  ;;  %v4675_v47 = vadd.f32 %v12709_v62, %v4674_v30 }
0x1250   : > { %4056 = vrot.lane.b32.xlu0 %v12495_v37, %s10960_s1  ;;  %v4680_v37 = vadd.f32 %v10510_v23, %v12709_v62  ;;  %v12714_v27 = vadd.f32 %v10896_v35, %v4675_v47 }
0x1252   : > { %4516 = vrot.lane.b32.xlu1 %v10501_v34, %s10961_s3  ;;  %v12716_v43 = vadd.f32 %v10897_v3, %v4680_v37  ;;  %v4771_v15 = vsel %vm719_vm1, %v12714_v27, 0.0 }
0x1254   : > { %4514 = vrot.lane.b32.xlu0 %v4485_v17, %s10961_s3  ;;  %v4774_v2 = vsel %vm719_vm1, %v12716_v43, 0.0 }
0x1256   : > { %v10513_v52 = vpop.f32.mrf.mxu0 }
0x1257   : > { %v4690_v58 = vadd.f32 %v10513_v52, %v12709_v62  ;;  %v10904_v52 = vld [vmem:[#allocation2 + $0x48] sm:$0xff] }
0x1258   : > { %v4684_v55 = vpop.f32.mrf.mxu0 }
0x1259   : > { %v4685_v28 = vadd.f32 %v12709_v62, %v4684_v55  ;;  %v12729_v7 = vadd.f32 %v10900_v56, %v4690_v58  ;;  %v10906_v58 = vld [vmem:[#allocation2 + $0x58] sm:$0xff] }
0x125b   : > { %v12722_v36 = vadd.f32 %v10898_v5, %v4685_v28  ;;  %v4780_v9 = vsel %vm719_vm1, %v12729_v7, 0.0 }
0x125d   : > { %v4777_v21 = vsel %vm719_vm1, %v12722_v36, 0.0 }
0x1262   : > { %v10516_v12 = vpop.f32.mrf.mxu0 }
0x1263   : > { %v4700_v19 = vadd.f32 %v10516_v12, %v12709_v62 }
0x1264   : > { %v4694_v59 = vpop.f32.mrf.mxu0 }
0x1265   : > { %v4695_v20 = vadd.f32 %v12709_v62, %v4694_v59  ;;  %v12738_v63 = vadd.f32 %v10902_v6, %v4700_v19  ;;  %v10905_v59 = vld [vmem:[#allocation2 + $0x40] sm:$0xff] }
0x1267   : > { %v12727_v29 = vadd.f32 %v10899_v26, %v4695_v20  ;;  %v4786_v46 = vsel %vm719_vm1, %v12738_v63, 0.0 }
0x1269   : > { %v4783_v24 = vsel %vm719_vm1, %v12727_v29, 0.0 }
0x126e   : > { %v10519_v16 = vpop.f32.mrf.mxu0 }
0x126f   : > { %v4710_v39 = vadd.f32 %v10519_v16, %v12709_v62 }
0x1270   : > { %v4704_v10 = vpop.f32.mrf.mxu0 }
0x1271   : > { %v4705_v40 = vadd.f32 %v12709_v62, %v4704_v10  ;;  %v12745_v1 = vadd.f32 %v10903_v42, %v4710_v39  ;;  %v10908_v39 = vld [vmem:[#allocation2 + $0x68] sm:$0xff] }
0x1273   : > { %4772 = vadd.xlane.f32.xlu0 %v4771_v15  ;;  %v12736_v4 = vadd.f32 %v10901_v13, %v4705_v40  ;;  %v4792_v49 = vsel %vm719_vm1, %v12745_v1, 0.0 }
0x1275   : > { %v4789_v8 = vsel %vm719_vm1, %v12736_v4, 0.0 }
0x1276   : > { %4775 = vadd.xlane.f32.xlu1 %v4774_v2  ;;  %v10907_v2 = vld [vmem:[#allocation2 + $0x50] sm:$0xff] }
0x1277   : > { %4778 = vadd.xlane.f32.xlu0 %v4777_v21 }
0x127a   : > { %4784 = vadd.xlane.f32.xlu1 %v4783_v24 }
0x127b   : > { %4781 = vadd.xlane.f32.xlu0 %v4780_v9 }
0x127e   : > { %4790 = vadd.xlane.f32.xlu1 %v4789_v8 }
0x127f   : > { %4787 = vadd.xlane.f32.xlu0 %v4786_v46 }
0x1283   : > { %4793 = vadd.xlane.f32.xlu0 %v4792_v49  ;;  %v10909_v49 = vld [vmem:[#allocation2 + $0x60] sm:$0xff] }
0x12ac   : > { %v4505_v50 = vpop.permute.xlu1 %4504 }
0x12ad   : > { %4527 = vst.msk [vmem:[#allocation3 + $0x48] sm:$0xff] %vm2717_vm6, %v4505_v50 }
0x12ae   : > { %v4503_v51 = vpop.permute.xlu0 %4502 }
0x12af   : > { %4526 = vst.msk [vmem:[#allocation3 + $0x40] sm:$0xff] %vm2717_vm6, %v4503_v51 }
0x12b0   : > { %v4055_v53 = vpop.permute.xlu1 %4054 }
0x12b1   : > { %4073 = vst.msk [vmem:[#allocation3 + $0x68] sm:$0xff] %vm2258_vm5, %v4055_v53 }
0x12b2   : > { %v4053_v22 = vpop.permute.xlu0 %4052 }
0x12b3   : > { %4072 = vst.msk [vmem:[#allocation3 + $0x60] sm:$0xff] %vm2258_vm5, %v4053_v22 }
0x12b4   : > { %v4509_v61 = vpop.permute.xlu1 %4508  ;;  %v4543_v48 = vld [vmem:[#allocation3 + $0x48] sm:$0xff] }
0x12b5   : > { %4529 = vst.msk [vmem:[#allocation3 + $0x58] sm:$0xff] %vm2717_vm6, %v4509_v61 }
0x12b6   : > { %v4507_v14 = vpop.permute.xlu0 %4506  ;;  %v4542_v33 = vld [vmem:[#allocation3 + $0x40] sm:$0xff] }
0x12b7   : > { %4528 = vst.msk [vmem:[#allocation3 + $0x50] sm:$0xff] %vm2717_vm6, %v4507_v14  ;;  %10520 = vmatprep.mubr.msk.f32.mxu0 %vm719_vm1, %v4542_v33 }
0x12b8   : > { %10521 = vmatmul.mubr.msk.f32.gmra.mxu0 %vm719_vm1, %v4543_v48  ;;  %v3601_v0 = vpop.permute.xlu1 %3600 }
0x12b9   : > { %3617 = vst.msk [vmem:[#allocation3 + $0x78] sm:$0xff] %vm1799_vm4, %v3601_v0 }
0x12ba   : > { %v3599_v41 = vpop.permute.xlu0 %3598 }
0x12bb   : > { %3616 = vst.msk [vmem:[#allocation3 + $0x70] sm:$0xff] %vm1799_vm4, %v3599_v41 }
0x12bc   : > { %v4513_v31 = vpop.permute.xlu1 %4512  ;;  %v4545_v45 = vld [vmem:[#allocation3 + $0x58] sm:$0xff] }
0x12bd   : > { %4531 = vst.msk [vmem:[#allocation3 + $0x68] sm:$0xff] %vm2717_vm6, %v4513_v31 }
0x12be   : > { %v4511_v54 = vpop.permute.xlu0 %4510  ;;  %v4544_v38 = vld [vmem:[#allocation3 + $0x50] sm:$0xff] }
0x12bf   : > { %4530 = vst.msk [vmem:[#allocation3 + $0x60] sm:$0xff] %vm2717_vm6, %v4511_v54  ;;  %10523 = vmatprep.mubr.msk.f32.mxu0 %vm719_vm1, %v4544_v38  ;;  %v10910_v38 = vld [vmem:[#allocation2 + $0x78] sm:$0xff] }
0x12c0   : > { %10524 = vmatmul.mubr.msk.f32.gmra.mxu0 %vm719_vm1, %v4545_v45  ;;  %v4059_v60 = vpop.permute.xlu1 %4058 }
0x12c1   : > { %4075 = vst.msk [vmem:[#allocation3 + $0x78] sm:$0xff] %vm2258_vm5, %v4059_v60 }
0x12c2   : > { %v4057_v25 = vpop.permute.xlu0 %4056 }
0x12c3   : > { %4074 = vst.msk [vmem:[#allocation3 + $0x70] sm:$0xff] %vm2258_vm5, %v4057_v25 }
0x12c4   : > { %v4517_v18 = vpop.permute.xlu1 %4516  ;;  %v4547_v11 = vld [vmem:[#allocation3 + $0x68] sm:$0xff] }
0x12c5   : > { %4533 = vst.msk [vmem:[#allocation3 + $0x78] sm:$0xff] %vm2717_vm6, %v4517_v18 }
0x12c6   : > { %v4515_v57 = vpop.permute.xlu0 %4514  ;;  %v4546_v44 = vld [vmem:[#allocation3 + $0x60] sm:$0xff] }
0x12c7   : > { %4532 = vst.msk [vmem:[#allocation3 + $0x70] sm:$0xff] %vm2717_vm6, %v4515_v57  ;;  %10526 = vmatprep.mubr.msk.f32.mxu0 %vm719_vm1, %v4546_v44  ;;  %v10911_v44 = vld [vmem:[#allocation2 + $0x70] sm:$0xff] }
0x12c8   : > { %10527 = vmatmul.mubr.msk.f32.gmra.mxu0 %vm719_vm1, %v4547_v11 }
0x12cc   : > { %v4549_v34 = vld [vmem:[#allocation3 + $0x78] sm:$0xff] }
0x12ce   : > { %v4548_v32 = vld [vmem:[#allocation3 + $0x70] sm:$0xff] }
0x12cf   : > { %10529 = vmatprep.mubr.msk.f32.mxu0 %vm719_vm1, %v4548_v32 }
0x12d0   : > { %10530 = vmatmul.mubr.msk.f32.gmra.mxu0 %vm719_vm1, %v4549_v34 }
0x12fc   : > { %v4773_v28 = vpop.xlane.xlu0 %4772 }
0x12fd   : > { %v4820_v51 = vmul.f32 0.041666668, %v4773_v28 }
0x12ff   : > { %v4776_v21 = vpop.xlane.xlu1 %4775  ;;  %v12808_v31 = vsub.f32 %v12714_v27, %v4820_v51  ;;  %v15416_v51 = vmov 0.0  }
0x1300   : > { %v4779_v5 = vpop.xlane.xlu0 %4778  ;;  %v4821_v42 = vmul.f32 0.041666668, %v4776_v21  ;;  %v5058_v21 = vld [vmem:[%s11095_s29 + $0x110] sm:$0xff]  ;;  %5268 = vmatprep.mubr.f32.mxu1 %v15416_v51  ;;  %5429 = vmatprep.mubr.f32.mxu0 %v15416_v51 }
0x1301   : > { %v4822_v54 = vmul.f32 0.041666668, %v4779_v5 }
0x1302   : > { %v12804_v22 = vsub.f32 %v12716_v43, %v4821_v42  ;;  %v5027_v42 = vld [vmem:[%s11095_s29 + $0x18] sm:$0xff] }
0x1303   : > { %v4785_v0 = vpop.xlane.xlu1 %4784  ;;  %v12823_v32 = vsub.f32 %v12722_v36, %v4822_v54 }
0x1304   : > { %v4782_v13 = vpop.xlane.xlu0 %4781  ;;  %v4853_v43 = vmul.f32 %v12804_v22, %v12804_v22  ;;  %v4824_v34 = vmul.f32 0.041666668, %v4785_v0 }
0x1305   : > { %v4823_v33 = vmul.f32 0.041666668, %v4782_v13  ;;  %v4854_v28 = vmul.f32 %v12823_v32, %v12823_v32  ;;  %v5043_v13 = vld [vmem:[%s11095_s29 + $0x98] sm:$0xff] }
0x1306   : > { %v12836_v36 = vsub.f32 %v12727_v29, %v4824_v34 }
0x1307   : > { %v12816_v25 = vsub.f32 %v12729_v7, %v4823_v33  ;;  %v4852_v7 = vmul.f32 %v12808_v31, %v12808_v31 }
0x1308   : > { %v4788_v61 = vpop.xlane.xlu0 %4787 }
0x1309   : > { %v4825_v18 = vmul.f32 0.041666668, %v4788_v61  ;;  %v5063_v61 = vld [vmem:[%s11095_s29 + $0x138] sm:$0xff] }
0x130c   : > { %v4794_v27 = vpop.xlane.xlu0 %4793 }
0x1378   : > { %v10522_v17 = vpop.f32.mrf.mxu0 }
0x1379   : > { %v4720_v23 = vadd.f32 %v10522_v17, %v12709_v62  ;;  %v4791_v17 = vpop.xlane.xlu1 %4790 }
0x137a   : > { %v4714_v30 = vpop.f32.mrf.mxu0 }
0x137b   : > { %v12774_v55 = vadd.f32 %v10904_v52, %v4720_v23  ;;  %v4715_v12 = vadd.f32 %v12709_v62, %v4714_v30  ;;  %v12830_v23 = vsub.f32 %v12738_v63, %v4825_v18  ;;  %v4827_v30 = vmul.f32 0.041666668, %v4794_v27 }
0x137c   : > { %v4871_v52 = vsel %vm719_vm1, %v4853_v43, 0.0 }
0x137d   : > { %v4798_v47 = vsel %vm719_vm1, %v12774_v55, 0.0  ;;  %v12779_v37 = vadd.f32 %v10905_v59, %v4715_v12  ;;  %v4855_v12 = vmul.f32 %v12816_v25, %v12816_v25  ;;  %v4868_v59 = vsel %vm719_vm1, %v4852_v7, 0.0 }
0x137e   : > { %4799 = vadd.xlane.f32.xlu0 %v4798_v47  ;;  %v4826_v47 = vmul.f32 0.041666668, %v4791_v17  ;;  %v12842_v63 = vsub.f32 %v12745_v1, %v4827_v30 }
0x137f   : > { %v4795_v16 = vsel %vm719_vm1, %v12779_v37, 0.0 }
0x1380   : > { %4796 = vadd.xlane.f32.xlu1 %v4795_v16  ;;  %v10525_v35 = vpop.f32.mrf.mxu0  ;;  %v4877_v16 = vsel %vm719_vm1, %v4855_v12, 0.0  ;;  %v12848_v29 = vsub.f32 %v12736_v4, %v4826_v47 }
0x1381   : > { %v4730_v3 = vadd.f32 %v10525_v35, %v12709_v62  ;;  %v4857_v35 = vmul.f32 %v12830_v23, %v12830_v23 }
0x1382   : > { %v4724_v20 = vpop.f32.mrf.mxu0  ;;  %v4858_v4 = vmul.f32 %v12848_v29, %v12848_v29 }
0x1383   : > { %v12784_v10 = vadd.f32 %v10906_v58, %v4730_v3  ;;  %v4725_v15 = vadd.f32 %v12709_v62, %v4724_v20  ;;  %v4874_v3 = vsel %vm719_vm1, %v4854_v28, 0.0  ;;  %v4856_v20 = vmul.f32 %v12836_v36, %v12836_v36 }
0x1384   : > { %v4883_v1 = vsel %vm719_vm1, %v4857_v35, 0.0  ;;  %v4859_v58 = vmul.f32 %v12842_v63, %v12842_v63 }
0x1385   : > { %v4804_v40 = vsel %vm719_vm1, %v12784_v10, 0.0  ;;  %v12789_v26 = vadd.f32 %v10907_v2, %v4725_v15  ;;  %v4880_v15 = vsel %vm719_vm1, %v4856_v20, 0.0  ;;  %v5057_v2 = vld [vmem:[%s11095_s29 + $0x108] sm:$0xff] }
0x1386   : > { %4805 = vadd.xlane.f32.xlu0 %v4804_v40  ;;  %v4889_v5 = vsel %vm719_vm1, %v4859_v58, 0.0  ;;  %v4886_v40 = vsel %vm719_vm1, %v4858_v4, 0.0  ;;  %5230 = vmatprep.subr.mxu1 %v5057_v2 }
0x1387   : > { %v4801_v56 = vsel %vm719_vm1, %v12789_v26, 0.0 }
0x1388   : > { %4802 = vadd.xlane.f32.xlu1 %v4801_v56  ;;  %v10528_v19 = vpop.f32.mrf.mxu0  ;;  %v5059_v56 = vld [vmem:[%s11095_s29 + $0x118] sm:$0xff] }
0x1389   : > { %v4740_v24 = vadd.f32 %v10528_v19, %v12709_v62  ;;  %5391 = vmatprep.subr.mxu0 %v5059_v56  ;;  %v5056_v19 = vld [vmem:[%s11095_s29 + $0x100] sm:$0xff] }
0x138a   : > { %v4734_v6 = vpop.f32.mrf.mxu0  ;;  %5231 = vmatpush1.msra.mxu1 %v5056_v19  ;;  %5392 = vmatpush1.msra.mxu0 %v5058_v21 }
0x138b   : > { %v12794_v9 = vadd.f32 %v10908_v39, %v4740_v24  ;;  %v4735_v8 = vadd.f32 %v12709_v62, %v4734_v6  ;;  %v5041_v24 = vld [vmem:[%s11095_s29 + $0x88] sm:$0xff]  ;;  %5393 = vmatprep.subr.mxu0 %v5043_v13  ;;  %v5040_v6 = vld [vmem:[%s11095_s29 + $0x80] sm:$0xff]  ;;  %v5042_v39 = vld [vmem:[%s11095_s29 + $0x90] sm:$0xff] }
0x138c   : > { %5232 = vmatprep.subr.mxu1 %v5041_v24  ;;  %5394 = vmatpush1.msra.mxu0 %v5042_v39 }
0x138d   : > { %v4810_v46 = vsel %vm719_vm1, %v12794_v9, 0.0  ;;  %v12799_v50 = vadd.f32 %v10909_v49, %v4735_v8  ;;  %5233 = vmatpush1.msra.mxu1 %v5040_v6  ;;  %v5025_v8 = vld [vmem:[%s11095_s29 + $0x8] sm:$0xff]  ;;  %5395 = vmatprep.subr.mxu0 %v5027_v42  ;;  %v5026_v49 = vld [vmem:[%s11095_s29 + $0x10] sm:$0xff] }
0x138e   : > { %4811 = vadd.xlane.f32.xlu0 %v4810_v46  ;;  %5234 = vmatprep.subr.mxu1 %v5025_v8  ;;  %v5024_v46 = vld [vmem:[%s11095_s29] sm:$0xff] }
0x138f   : > { %v4807_v53 = vsel %vm719_vm1, %v12799_v50, 0.0  ;;  %5235 = vmatpush1.msra.mxu1 %v5024_v46  ;;  %5396 = vmatpush1.msra.mxu0 %v5026_v49 }
0x1390   : > { %4808 = vadd.xlane.f32.xlu1 %v4807_v53  ;;  %v10531_v14 = vpop.f32.mrf.mxu0  ;;  %v5061_v53 = vld [vmem:[%s11095_s29 + $0x128] sm:$0xff]  ;;  %5713 = vmatprep.subr.mxu0 %v5063_v61 }
0x1391   : > { %v4750_v48 = vadd.f32 %v10531_v14, %v12709_v62  ;;  %5552 = vmatprep.subr.mxu1 %v5061_v53 }
0x1392   : > { %v4744_v41 = vpop.f32.mrf.mxu0 }
0x1393   : > { %v12810_v45 = vadd.f32 %v10910_v38, %v4750_v48  ;;  %v4745_v60 = vadd.f32 %v12709_v62, %v4744_v41 }
0x1395   : > { %v4816_v57 = vsel %vm719_vm1, %v12810_v45, 0.0  ;;  %v12820_v11 = vadd.f32 %v10911_v44, %v4745_v60 }
0x1396   : > { %4817 = vadd.xlane.f32.xlu0 %v4816_v57 }
0x1397   : > { %v4813_v62 = vsel %vm719_vm1, %v12820_v11, 0.0 }
0x1398   : > { %4814 = vadd.xlane.f32.xlu1 %v4813_v62 }
0x139a   : > { %4872 = vadd.xlane.f32.xlu0 %v4871_v52 }
0x139c   : > { %4869 = vadd.xlane.f32.xlu1 %v4868_v59 }
0x139e   : > { %4878 = vadd.xlane.f32.xlu0 %v4877_v16 }
0x13a0   : > { %4875 = vadd.xlane.f32.xlu1 %v4874_v3 }
0x13a2   : > { %4884 = vadd.xlane.f32.xlu0 %v4883_v1 }
0x13a4   : > { %4881 = vadd.xlane.f32.xlu1 %v4880_v15 }
0x13a6   : > { %4890 = vadd.xlane.f32.xlu0 %v4889_v5 }
0x13a8   : > { %4887 = vadd.xlane.f32.xlu1 %v4886_v40 }
0x1407   : > { %v4800_v14 = vpop.xlane.xlu0 %4799 }
0x1408   : > { %v4829_v33 = vmul.f32 0.041666668, %v4800_v14 }
0x1409   : > { %v4797_v48 = vpop.xlane.xlu1 %4796 }
0x140a   : > { %v12878_v0 = vsub.f32 %v12774_v55, %v4829_v33  ;;  %v4828_v41 = vmul.f32 0.041666668, %v4797_v48 }
0x140c   : > { %v12881_v54 = vsub.f32 %v12779_v37, %v4828_v41  ;;  %v4861_v38 = vmul.f32 %v12878_v0, %v12878_v0 }
0x140e   : > { %v4895_v60 = vsel %vm719_vm1, %v4861_v38, 0.0  ;;  %v4860_v43 = vmul.f32 %v12881_v54, %v12881_v54 }
0x140f   : > { %v4806_v18 = vpop.xlane.xlu0 %4805  ;;  %4896 = vadd.xlane.f32.xlu0 %v4895_v60 }
0x1410   : > { %v4831_v57 = vmul.f32 0.041666668, %v4806_v18  ;;  %v4892_v44 = vsel %vm719_vm1, %v4860_v43, 0.0 }
0x1411   : > { %4893 = vadd.xlane.f32.xlu1 %v4892_v44  ;;  %v4803_v55 = vpop.xlane.xlu1 %4802 }
0x1412   : > { %v12890_v27 = vsub.f32 %v12784_v10, %v4831_v57  ;;  %v4830_v37 = vmul.f32 0.041666668, %v4803_v55 }
0x1414   : > { %v12893_v34 = vsub.f32 %v12789_v26, %v4830_v37  ;;  %v4863_v62 = vmul.f32 %v12890_v27, %v12890_v27 }
0x1416   : > { %v4901_v7 = vsel %vm719_vm1, %v4863_v62, 0.0  ;;  %v4862_v17 = vmul.f32 %v12893_v34, %v12893_v34  ;;  %v12932_v62 = vld [vmem:[%s15474_s26] ss:$0 sm:$0xff] }
0x1417   : > { %v4812_v30 = vpop.xlane.xlu0 %4811  ;;  %4902 = vadd.xlane.f32.xlu0 %v4901_v7 }
0x1418   : > { %v4833_v52 = vmul.f32 0.041666668, %v4812_v30  ;;  %v4898_v12 = vsel %vm719_vm1, %v4862_v17, 0.0  ;;  %v12940_v30 = vld [vmem:[%s15475_s17] ss:$0 sm:$0xff] }
0x1419   : > { %4899 = vadd.xlane.f32.xlu1 %v4898_v12  ;;  %v4809_v10 = vpop.xlane.xlu1 %4808 }
0x141a   : > { %v12902_v47 = vsub.f32 %v12794_v9, %v4833_v52  ;;  %v4832_v26 = vmul.f32 0.041666668, %v4809_v10 }
0x141c   : > { %v12905_v59 = vsub.f32 %v12799_v50, %v4832_v26  ;;  %v4865_v28 = vmul.f32 %v12902_v47, %v12902_v47  ;;  %v5060_v26 = vld [vmem:[%s11095_s29 + $0x120] sm:$0xff] }
0x141e   : > { %v4907_v16 = vsel %vm719_vm1, %v4865_v28, 0.0  ;;  %v4864_v35 = vmul.f32 %v12905_v59, %v12905_v59  ;;  %v5062_v28 = vld [vmem:[%s11095_s29 + $0x130] sm:$0xff] }
0x141f   : > { %v4818_v3 = vpop.xlane.xlu0 %4817  ;;  %4908 = vadd.xlane.f32.xlu0 %v4907_v16  ;;  %v5045_v16 = vld [vmem:[%s11095_s29 + $0xa8] sm:$0xff] }
0x1420   : > { %v4835_v20 = vmul.f32 0.041666668, %v4818_v3  ;;  %v4904_v1 = vsel %vm719_vm1, %v4864_v35, 0.0 }
0x1421   : > { %4905 = vadd.xlane.f32.xlu1 %v4904_v1  ;;  %v4815_v9 = vpop.xlane.xlu1 %4814  ;;  %v5044_v1 = vld [vmem:[%s11095_s29 + $0xa0] sm:$0xff] }
0x1422   : > { %v12914_v58 = vsub.f32 %v12810_v45, %v4835_v20  ;;  %v4834_v50 = vmul.f32 0.041666668, %v4815_v9  ;;  %v5047_v9 = vld [vmem:[%s11095_s29 + $0xb8] sm:$0xff] }
0x1423   : > { %v4873_v15 = vpop.xlane.xlu0 %4872 }
0x1424   : > { %v12917_v4 = vsub.f32 %v12820_v11, %v4834_v50  ;;  %v4917_v5 = vmul.f32 0.041666668, %v4873_v15  ;;  %v4867_v40 = vmul.f32 %v12914_v58, %v12914_v58  ;;  %v5046_v50 = vld [vmem:[%s11095_s29 + $0xb0] sm:$0xff] }
0x1425   : > { %v4870_v2 = vpop.xlane.xlu1 %4869 }
0x1426   : > { %v4933_v56 = vadd.f32 1e-05, %v4917_v5  ;;  %v4916_v19 = vmul.f32 0.041666668, %v4870_v2  ;;  %v4913_v21 = vsel %vm719_vm1, %v4867_v40, 0.0  ;;  %v4866_v24 = vmul.f32 %v12917_v4, %v12917_v4 }
0x1427   : > { %4914 = vadd.xlane.f32.xlu0 %v4913_v21  ;;  %v4879_v45 = vpop.xlane.xlu0 %4878  ;;  %v5029_v21 = vld [vmem:[%s11095_s29 + $0x28] sm:$0xff] }
0x1428   : > { %10831 = vrsqrt.f32 %v4933_v56  ;;  %v4932_v13 = vadd.f32 1e-05, %v4916_v19  ;;  %v4919_v6 = vmul.f32 0.041666668, %v4879_v45  ;;  %v4910_v11 = vsel %vm719_vm1, %v4866_v24, 0.0  ;;  %v5031_v24 = vld [vmem:[%s11095_s29 + $0x38] sm:$0xff] }
0x1429   : > { %4911 = vadd.xlane.f32.xlu1 %v4910_v11  ;;  %v4876_v39 = vpop.xlane.xlu1 %4875  ;;  %v5028_v45 = vld [vmem:[%s11095_s29 + $0x20] sm:$0xff] }
0x142a   : > { %10833 = vrsqrt.f32 %v4932_v13  ;;  %v4918_v8 = vmul.f32 0.041666668, %v4876_v39  ;;  %v4935_v42 = vadd.f32 1e-05, %v4919_v6  ;;  %v5030_v13 = vld [vmem:[%s11095_s29 + $0x30] sm:$0xff] }
0x142b   : > { %v4885_v49 = vpop.xlane.xlu0 %4884 }
0x142c   : > { %v4934_v46 = vadd.f32 1e-05, %v4918_v8  ;;  %v4921_v14 = vmul.f32 0.041666668, %v4885_v49 }
0x142d   : > { %v4882_v53 = vpop.xlane.xlu1 %4881 }
0x142e   : > { %10835 = vrsqrt.f32 %v4934_v46  ;;  %v4920_v61 = vmul.f32 0.041666668, %v4882_v53  ;;  %v4937_v41 = vadd.f32 1e-05, %v4921_v14  ;;  %v5065_v46 = vld [vmem:[%s11095_s29 + $0x148] sm:$0xff] }
0x142f   : > { %10837 = vrsqrt.f32 %v4935_v42  ;;  %v4891_v38 = vpop.xlane.xlu0 %4890 }
0x1430   : > { %v4936_v33 = vadd.f32 1e-05, %v4920_v61  ;;  %v4923_v57 = vmul.f32 0.041666668, %v4891_v38 }
0x1431   : > { %v4888_v48 = vpop.xlane.xlu1 %4887 }
0x1432   : > { %10839 = vrsqrt.f32 %v4936_v33  ;;  %v4922_v60 = vmul.f32 0.041666668, %v4888_v48 }
0x1433   : > { %10841 = vrsqrt.f32 %v4937_v41 }
0x1434   : > { %v4938_v37 = vadd.f32 1e-05, %v4922_v60 }
0x1435   : > { %v10832_v43 = vpop.eup %10831 }
0x1436   : > { %v4965_v44 = vmul.f32 %v10832_v43, %v12804_v22  ;;  %v4939_v22 = vadd.f32 1e-05, %v4923_v57  ;;  %10843 = vrsqrt.f32 %v4938_v37 }
0x1437   : > { %v10834_v18 = vpop.eup %10833 }
0x1438   : > { %v4964_v55 = vmul.f32 %v10834_v18, %v12808_v31  ;;  %v4987_v31 = vmul.f32 %v12932_v62, %v4965_v44  ;;  %10845 = vrsqrt.f32 %v4939_v22 }
0x143a   : > { %v4986_v7 = vmul.f32 %v12932_v62, %v4964_v55 }
0x143b   : > { %v10836_v17 = vpop.eup %10835 }
0x143c   : > { %v12944_v52 = vadd.f32 %v12940_v30, %v4986_v7  ;;  %v4966_v12 = vmul.f32 %v10836_v17, %v12823_v32  ;;  %v10838_v10 = vpop.eup %10837  ;;  %v12957_v32 = vadd.f32 %v12940_v30, %v4987_v31 }
0x143d   : > { %v4967_v35 = vmul.f32 %v10838_v10, %v12816_v25 }
0x143e   : > { %15476 = vst [vmem:[#allocation8_spill] sm:$0xff] %v12944_v52  ;;  %8947 = vmatmul.mubr.msk.f32.vlgmr.msra.gmra.mxu1 %vm719_vm1, %v12944_v52  ;;  %8963 = vmatmul.mubr.msk.f32.vlgmr.msra.gmra.mxu0 %vm719_vm1, %v12944_v52  ;;  %15477 = vst [vmem:[#allocation9_spill] sm:$0xff] %v12957_v32  ;;  %v4988_v3 = vmul.f32 %v12932_v62, %v4966_v12 }
0x143f   : > { %5274 = vmatprep.mubr.f32.mxu1 %v15416_v51  ;;  %5435 = vmatprep.mubr.f32.mxu0 %v15416_v51  ;;  %v10840_v20 = vpop.eup %10839  ;;  %v4989_v25 = vmul.f32 %v12932_v62, %v4967_v35 }
0x1440   : > { %5553 = vmatpush1.msra.mxu1 %v5060_v26  ;;  %5714 = vmatpush1.msra.mxu0 %v5062_v28  ;;  %v12972_v15 = vadd.f32 %v12940_v30, %v4988_v3  ;;  %v4968_v5 = vmul.f32 %v10840_v20, %v12836_v36  ;;  %v10842_v40 = vpop.eup %10841 }
0x1441   : > { %5554 = vmatprep.subr.mxu1 %v5045_v16  ;;  %5715 = vmatprep.subr.mxu0 %v5047_v9  ;;  %v12982_v2 = vadd.f32 %v12940_v30, %v4989_v25  ;;  %v4969_v36 = vmul.f32 %v10842_v40, %v12830_v23 }
0x1442   : > { %8948 = vmatmul.mubr.msk.f32.gmra.mxu1 %vm719_vm1, %v12957_v32  ;;  %8964 = vmatmul.mubr.msk.f32.gmra.mxu0 %vm719_vm1, %v12957_v32  ;;  %15478 = vst [vmem:[#allocation11_spill] sm:$0xff] %v12972_v15  ;;  %v4990_v56 = vmul.f32 %v12932_v62, %v4968_v5 }
0x1443   : > { %5280 = vmatprep.mubr.f32.mxu1 %v15416_v51  ;;  %5441 = vmatprep.mubr.f32.mxu0 %v15416_v51  ;;  %15479 = vst [vmem:[#allocation13_spill] sm:$0xff] %v12982_v2  ;;  %v10844_v19 = vpop.eup %10843  ;;  %v4991_v6 = vmul.f32 %v12932_v62, %v4969_v36 }
0x1444   : > { %5555 = vmatpush1.msra.mxu1 %v5044_v1  ;;  %5716 = vmatpush1.msra.mxu0 %v5046_v50  ;;  %v12998_v23 = vadd.f32 %v12940_v30, %v4990_v56  ;;  %v4970_v11 = vmul.f32 %v10844_v19, %v12848_v29 }
0x1445   : > { %5556 = vmatprep.subr.mxu1 %v5029_v21  ;;  %5717 = vmatprep.subr.mxu0 %v5031_v24  ;;  %v10846_v39 = vpop.eup %10845  ;;  %v13008_v8 = vadd.f32 %v12940_v30, %v4991_v6 }
0x1446   : > { %8949 = vmatmul.mubr.msk.f32.gmra.mxu1 %vm719_vm1, %v12972_v15  ;;  %8965 = vmatmul.mubr.msk.f32.gmra.mxu0 %vm719_vm1, %v12972_v15  ;;  %15480 = vst [vmem:[#allocation10_spill] sm:$0xff] %v12998_v23  ;;  %v4971_v29 = vmul.f32 %v10846_v39, %v12842_v63  ;;  %v4992_v42 = vmul.f32 %v12932_v62, %v4970_v11  ;;  %v5067_v63 = vld [vmem:[%s11095_s29 + $0x158] sm:$0xff] }
0x1447   : > { %5286 = vmatprep.mubr.f32.mxu1 %v15416_v51  ;;  %5447 = vmatprep.mubr.f32.mxu0 %v15416_v51  ;;  %15481 = vst [vmem:[#allocation12_spill] sm:$0xff] %v13008_v8 }
0x1448   : > { %5557 = vmatpush1.msra.mxu1 %v5028_v45  ;;  %5718 = vmatpush1.msra.mxu0 %v5030_v13  ;;  %v4993_v49 = vmul.f32 %v12932_v62, %v4971_v29  ;;  %v13021_v53 = vadd.f32 %v12940_v30, %v4992_v42 }
0x1449   : > { %5874 = vmatprep.subr.mxu1 %v5065_v46  ;;  %6035 = vmatprep.subr.mxu0 %v5067_v63 }
0x144a   : > { %8950 = vmatmul.mubr.msk.f32.gmra.mxu1 %vm719_vm1, %v12982_v2  ;;  %8966 = vmatmul.mubr.msk.f32.gmra.mxu0 %vm719_vm1, %v12982_v2  ;;  %15482 = vst [vmem:[#allocation14_spill] sm:$0xff] %v13021_v53  ;;  %v13031_v61 = vadd.f32 %v12940_v30, %v4993_v49 }
0x144b   : > { %5292 = vmatprep.mubr.f32.mxu1 %v15416_v51  ;;  %5453 = vmatprep.mubr.f32.mxu0 %v15416_v51 }
0x144c   : > { %15483 = vst [vmem:[#allocation15_spill] sm:$0xff] %v13031_v61 }
0x144e   : > { %8951 = vmatmul.mubr.msk.f32.gmra.mxu1 %vm719_vm1, %v12998_v23  ;;  %8967 = vmatmul.mubr.msk.f32.gmra.mxu0 %vm719_vm1, %v12998_v23 }
0x144f   : > { %5298 = vmatprep.mubr.f32.mxu1 %v15416_v51  ;;  %5459 = vmatprep.mubr.f32.mxu0 %v15416_v51 }
0x1452   : > { %8952 = vmatmul.mubr.msk.f32.gmra.mxu1 %vm719_vm1, %v13008_v8  ;;  %8968 = vmatmul.mubr.msk.f32.gmra.mxu0 %vm719_vm1, %v13008_v8 }
0x1453   : > { %5304 = vmatprep.mubr.f32.mxu1 %v15416_v51  ;;  %5465 = vmatprep.mubr.f32.mxu0 %v15416_v51 }
0x1456   : > { %8953 = vmatmul.mubr.msk.f32.gmra.mxu1 %vm719_vm1, %v13021_v53  ;;  %8969 = vmatmul.mubr.msk.f32.gmra.mxu0 %vm719_vm1, %v13021_v53 }
0x1457   : > { %5310 = vmatprep.mubr.f32.mxu1 %v15416_v51  ;;  %5471 = vmatprep.mubr.f32.mxu0 %v15416_v51 }
0x145a   : > { %8954 = vmatmul.mubr.msk.f32.gmra.mxu1 %vm719_vm1, %v13031_v61  ;;  %8970 = vmatmul.mubr.msk.f32.gmra.mxu0 %vm719_vm1, %v13031_v61 }
0x145b   : > { %5316 = vmatprep.mubr.f32.mxu1 %v15416_v51  ;;  %5477 = vmatprep.mubr.f32.mxu0 %v15416_v51 }
0x1498   : > { %v4897_v14 = vpop.xlane.xlu0 %4896 }
0x1499   : > { %v4925_v33 = vmul.f32 0.041666668, %v4897_v14 }
0x149a   : > { %v4894_v48 = vpop.xlane.xlu1 %4893 }
0x149b   : > { %v4941_v41 = vadd.f32 1e-05, %v4925_v33  ;;  %v4924_v38 = vmul.f32 0.041666668, %v4894_v48 }
0x149d   : > { %10847 = vrsqrt.f32 %v4941_v41  ;;  %v4940_v60 = vadd.f32 1e-05, %v4924_v38  ;;  %v5066_v41 = vld [vmem:[%s11095_s29 + $0x150] sm:$0xff]  ;;  %v5051_v38 = vld [vmem:[%s11095_s29 + $0xd8] sm:$0xff] }
0x149f   : > { %10849 = vrsqrt.f32 %v4940_v60  ;;  %v5048_v60 = vld [vmem:[%s11095_s29 + $0xc0] sm:$0xff] }
0x14a0   : > { %v4903_v43 = vpop.xlane.xlu0 %4902 }
0x14a1   : > { %v4927_v18 = vmul.f32 0.041666668, %v4903_v43  ;;  %v5050_v43 = vld [vmem:[%s11095_s29 + $0xd0] sm:$0xff] }
0x14a2   : > { %v4900_v57 = vpop.xlane.xlu1 %4899 }
0x14a3   : > { %v4943_v44 = vadd.f32 1e-05, %v4927_v18  ;;  %v4926_v55 = vmul.f32 0.041666668, %v4900_v57  ;;  %v5033_v18 = vld [vmem:[%s11095_s29 + $0x48] sm:$0xff]  ;;  %v5035_v57 = vld [vmem:[%s11095_s29 + $0x58] sm:$0xff] }
0x14a5   : > { %10851 = vrsqrt.f32 %v4943_v44  ;;  %v4942_v37 = vadd.f32 1e-05, %v4926_v55  ;;  %v5032_v44 = vld [vmem:[%s11095_s29 + $0x40] sm:$0xff]  ;;  %v5034_v55 = vld [vmem:[%s11095_s29 + $0x50] sm:$0xff] }
0x14a7   : > { %10853 = vrsqrt.f32 %v4942_v37  ;;  %v5069_v37 = vld [vmem:[%s11095_s29 + $0x168] sm:$0xff] }
0x14a8   : > { %v4909_v7 = vpop.xlane.xlu0 %4908 }
0x14a9   : > { %v4929_v17 = vmul.f32 0.041666668, %v4909_v7  ;;  %v5071_v7 = vld [vmem:[%s11095_s29 + $0x178] sm:$0xff] }
0x14aa   : > { %v10848_v22 = vpop.eup %10847  ;;  %v4906_v31 = vpop.xlane.xlu1 %4905 }
0x14ab   : > { %v4945_v12 = vadd.f32 1e-05, %v4929_v17  ;;  %v4928_v10 = vmul.f32 0.041666668, %v4906_v31  ;;  %v4973_v28 = vmul.f32 %v10848_v22, %v12878_v0  ;;  %v5068_v17 = vld [vmem:[%s11095_s29 + $0x160] sm:$0xff]  ;;  %v5070_v22 = vld [vmem:[%s11095_s29 + $0x170] sm:$0xff] }
0x14ac   : > { %v10850_v26 = vpop.eup %10849  ;;  %v5053_v31 = vld [vmem:[%s11095_s29 + $0xe8] sm:$0xff] }
0x14ad   : > { %v4972_v16 = vmul.f32 %v10850_v26, %v12881_v54  ;;  %10855 = vrsqrt.f32 %v4945_v12  ;;  %v4944_v35 = vadd.f32 1e-05, %v4928_v10  ;;  %v4995_v20 = vmul.f32 %v12932_v62, %v4973_v28  ;;  %v5055_v12 = vld [vmem:[%s11095_s29 + $0xf8] sm:$0xff]  ;;  %v5052_v10 = vld [vmem:[%s11095_s29 + $0xe0] sm:$0xff]  ;;  %v5054_v26 = vld [vmem:[%s11095_s29 + $0xf0] sm:$0xff] }
0x14ae   : > { %v5037_v28 = vld [vmem:[%s11095_s29 + $0x68] sm:$0xff] }
0x14af   : > { %v4994_v3 = vmul.f32 %v12932_v62, %v4972_v16  ;;  %10857 = vrsqrt.f32 %v4944_v35  ;;  %v13051_v54 = vadd.f32 %v12940_v30, %v4995_v20  ;;  %v5039_v16 = vld [vmem:[%s11095_s29 + $0x78] sm:$0xff]  ;;  %v5036_v35 = vld [vmem:[%s11095_s29 + $0x60] sm:$0xff] }
0x14b0   : > { %v4915_v1 = vpop.xlane.xlu0 %4914  ;;  %v6779_v20 = vld [vmem:[%s11105_s21 + $0xf8] sm:$0xff] }
0x14b1   : > { %v13044_v9 = vadd.f32 %v12940_v30, %v4994_v3  ;;  %v4931_v50 = vmul.f32 0.041666668, %v4915_v1  ;;  %15485 = vst [vmem:[#allocation17_spill] sm:$0xff] %v13051_v54  ;;  %v5038_v3 = vld [vmem:[%s11095_s29 + $0x70] sm:$0xff]  ;;  %v6811_v1 = vld [vmem:[%s11105_s21 + $0x1f8] sm:$0xff] }
0x14b2   : > { %v10852_v25 = vpop.eup %10851  ;;  %v4912_v5 = vpop.xlane.xlu1 %4911 }
0x14b3   : > { %15484 = vst [vmem:[#allocation16_spill] sm:$0xff] %v13044_v9  ;;  %v4947_v40 = vadd.f32 1e-05, %v4931_v50  ;;  %v4930_v36 = vmul.f32 0.041666668, %v4912_v5  ;;  %8955 = vmatmul.mubr.msk.f32.gmra.mxu1 %vm719_vm1, %v13044_v9  ;;  %8971 = vmatmul.mubr.msk.f32.gmra.mxu0 %vm719_vm1, %v13044_v9  ;;  %v4975_v56 = vmul.f32 %v10852_v25, %v12890_v27 }
0x14b4   : > { %v10854_v0 = vpop.eup %10853  ;;  %5322 = vmatprep.mubr.f32.mxu1 %v15416_v51  ;;  %5483 = vmatprep.mubr.f32.mxu0 %v15416_v51 }
0x14b5   : > { %v4974_v19 = vmul.f32 %v10854_v0, %v12893_v34  ;;  %10859 = vrsqrt.f32 %v4947_v40  ;;  %v4946_v21 = vadd.f32 1e-05, %v4930_v36  ;;  %v4997_v45 = vmul.f32 %v12932_v62, %v4975_v56 }
0x14b7   : > { %v4996_v24 = vmul.f32 %v12932_v62, %v4974_v19  ;;  %10861 = vrsqrt.f32 %v4946_v21  ;;  %8956 = vmatmul.mubr.msk.f32.gmra.mxu1 %vm719_vm1, %v13051_v54  ;;  %8972 = vmatmul.mubr.msk.f32.gmra.mxu0 %vm719_vm1, %v13051_v54  ;;  %v13075_v6 = vadd.f32 %v12940_v30, %v4997_v45 }
0x14b8   : > { %5328 = vmatprep.mubr.f32.mxu1 %v15416_v51  ;;  %5489 = vmatprep.mubr.f32.mxu0 %v15416_v51 }
0x14b9   : > { %v13066_v27 = vadd.f32 %v12940_v30, %v4996_v24  ;;  %15487 = vst [vmem:[#allocation19_spill] sm:$0xff] %v13075_v6 }
0x14ba   : > { %v10856_v34 = vpop.eup %10855 }
0x14bb   : > { %15486 = vst [vmem:[#allocation18_spill] sm:$0xff] %v13066_v27  ;;  %8957 = vmatmul.mubr.msk.f32.gmra.mxu1 %vm719_vm1, %v13066_v27  ;;  %8973 = vmatmul.mubr.msk.f32.gmra.mxu0 %vm719_vm1, %v13066_v27  ;;  %v4977_v11 = vmul.f32 %v10856_v34, %v12902_v47 }
0x14bc   : > { %v10858_v13 = vpop.eup %10857  ;;  %5334 = vmatprep.mubr.f32.mxu1 %v15416_v51  ;;  %5495 = vmatprep.mubr.f32.mxu0 %v15416_v51 }
0x14bd   : > { %v4976_v39 = vmul.f32 %v10858_v13, %v12905_v59  ;;  %v4999_v42 = vmul.f32 %v12932_v62, %v4977_v11 }
0x14bf   : > { %v4998_v29 = vmul.f32 %v12932_v62, %v4976_v39  ;;  %8958 = vmatmul.mubr.msk.f32.gmra.mxu1 %vm719_vm1, %v13075_v6  ;;  %8974 = vmatmul.mubr.msk.f32.gmra.mxu0 %vm719_vm1, %v13075_v6  ;;  %v13097_v49 = vadd.f32 %v12940_v30, %v4999_v42  ;;  %v6763_v42 = vld [vmem:[%s11105_s21 + $0x78] sm:$0xff] }
0x14c0   : > { %5340 = vmatprep.mubr.f32.mxu1 %v15416_v51  ;;  %5501 = vmatprep.mubr.f32.mxu0 %v15416_v51 }
0x14c1   : > { %v13088_v46 = vadd.f32 %v12940_v30, %v4998_v29  ;;  %15489 = vst [vmem:[#allocation21_spill] sm:$0xff] %v13097_v49 }
0x14c2   : > { %v10860_v47 = vpop.eup %10859 }
0x14c3   : > { %15488 = vst [vmem:[#allocation20_spill] sm:$0xff] %v13088_v46  ;;  %8959 = vmatmul.mubr.msk.f32.gmra.mxu1 %vm719_vm1, %v13088_v46  ;;  %8975 = vmatmul.mubr.msk.f32.gmra.mxu0 %vm719_vm1, %v13088_v46  ;;  %v4979_v63 = vmul.f32 %v10860_v47, %v12914_v58  ;;  %v6795_v47 = vld [vmem:[%s11105_s21 + $0x178] sm:$0xff] }
0x14c4   : > { %v10862_v59 = vpop.eup %10861  ;;  %5346 = vmatprep.mubr.f32.mxu1 %v15416_v51  ;;  %5507 = vmatprep.mubr.f32.mxu0 %v15416_v51 }
0x14c5   : > { %v4978_v14 = vmul.f32 %v10862_v59, %v12917_v4  ;;  %v5001_v48 = vmul.f32 %v12932_v62, %v4979_v63  ;;  %v6778_v59 = vld [vmem:[%s11105_s21 + $0xf0] sm:$0xff] }
0x14c6   : > { %v6810_v63 = vld [vmem:[%s11105_s21 + $0x1f0] sm:$0xff] }
0x14c7   : > { %v5000_v33 = vmul.f32 %v12932_v62, %v4978_v14  ;;  %8960 = vmatmul.mubr.msk.f32.gmra.mxu1 %vm719_vm1, %v13097_v49  ;;  %8976 = vmatmul.mubr.msk.f32.gmra.mxu0 %vm719_vm1, %v13097_v49  ;;  %v13119_v4 = vadd.f32 %v12940_v30, %v5001_v48  ;;  %v5064_v62 = vld [vmem:[%s11095_s29 + $0x140] sm:$0xff]  ;;  %v6762_v48 = vld [vmem:[%s11105_s21 + $0x70] sm:$0xff] }
0x14c8   : > { %5352 = vmatprep.mubr.f32.mxu1 %v15416_v51  ;;  %5513 = vmatprep.mubr.f32.mxu0 %v15416_v51 }
0x14c9   : > { %v13110_v58 = vadd.f32 %v12940_v30, %v5000_v33  ;;  %15491 = vst [vmem:[#allocation23_spill] sm:$0xff] %v13119_v4  ;;  %v5049_v30 = vld [vmem:[%s11095_s29 + $0xc8] sm:$0xff] }
0x14cb   : > { %15490 = vst [vmem:[#allocation22_spill] sm:$0xff] %v13110_v58  ;;  %8961 = vmatmul.mubr.msk.f32.gmra.mxu1 %vm719_vm1, %v13110_v58  ;;  %8977 = vmatmul.mubr.msk.f32.gmra.mxu0 %vm719_vm1, %v13110_v58 }
0x14cc   : > { %5358 = vmatprep.mubr.f32.mxu1 %v15416_v51  ;;  %5519 = vmatprep.mubr.f32.mxu0 %v15416_v51 }
0x14cf   : > { %8962 = vmatmul.mubr.msk.f32.gmra.mxu1 %vm719_vm1, %v13119_v4  ;;  %8978 = vmatmul.mubr.msk.f32.gmra.mxu0 %vm719_vm1, %v13119_v4 }
0x14d0   : > { %5590 = vmatprep.mubr.f32.mxu1 %v15416_v51  ;;  %5751 = vmatprep.mubr.f32.mxu0 %v15416_v51 }
0x14d3   : > { %8979 = vmatmul.mubr.msk.f32.vlgmr.msra.gmra.mxu1 %vm719_vm1, %v12944_v52  ;;  %8995 = vmatmul.mubr.msk.f32.vlgmr.msra.gmra.mxu0 %vm719_vm1, %v12944_v52 }
0x14d4   : > { %5875 = vmatpush1.msra.mxu1 %v5064_v62  ;;  %5596 = vmatprep.mubr.f32.mxu1 %v15416_v51  ;;  %v6794_v62 = vld [vmem:[%s11105_s21 + $0x170] sm:$0xff] }
0x14d5   : > { %5757 = vmatprep.mubr.f32.mxu0 %v15416_v51  ;;  %6036 = vmatpush1.msra.mxu0 %v5066_v41  ;;  %v6777_v41 = vld [vmem:[%s11105_s21 + $0xe8] sm:$0xff] }
0x14d6   : > { %5876 = vmatprep.subr.mxu1 %v5049_v30  ;;  %6037 = vmatprep.subr.mxu0 %v5051_v38  ;;  %v6809_v30 = vld [vmem:[%s11105_s21 + $0x1e8] sm:$0xff] }
0x14d7   : > { %8980 = vmatmul.mubr.msk.f32.gmra.mxu1 %vm719_vm1, %v12957_v32  ;;  %8996 = vmatmul.mubr.msk.f32.gmra.mxu0 %vm719_vm1, %v12957_v32 }
0x14d8   : > { %5602 = vmatprep.mubr.f32.mxu1 %v15416_v51  ;;  %5763 = vmatprep.mubr.f32.mxu0 %v15416_v51 }
0x14d9   : > { %5877 = vmatpush1.msra.mxu1 %v5048_v60  ;;  %6038 = vmatpush1.msra.mxu0 %v5050_v43  ;;  %v6761_v43 = vld [vmem:[%s11105_s21 + $0x68] sm:$0xff] }
0x14da   : > { %5878 = vmatprep.subr.mxu1 %v5033_v18  ;;  %6039 = vmatprep.subr.mxu0 %v5035_v57  ;;  %v6793_v18 = vld [vmem:[%s11105_s21 + $0x168] sm:$0xff]  ;;  %v6776_v57 = vld [vmem:[%s11105_s21 + $0xe0] sm:$0xff] }
0x14db   : > { %8981 = vmatmul.mubr.msk.f32.gmra.mxu1 %vm719_vm1, %v12972_v15  ;;  %8997 = vmatmul.mubr.msk.f32.gmra.mxu0 %vm719_vm1, %v12972_v15 }
0x14dc   : > { %5608 = vmatprep.mubr.f32.mxu1 %v15416_v51  ;;  %5769 = vmatprep.mubr.f32.mxu0 %v15416_v51 }
0x14dd   : > { %5879 = vmatpush1.msra.mxu1 %v5032_v44  ;;  %6040 = vmatpush1.msra.mxu0 %v5034_v55  ;;  %v6808_v44 = vld [vmem:[%s11105_s21 + $0x1e0] sm:$0xff] }
0x14de   : > { %6196 = vmatprep.subr.mxu1 %v5069_v37  ;;  %6357 = vmatprep.subr.mxu0 %v5071_v7  ;;  %v6760_v7 = vld [vmem:[%s11105_s21 + $0x60] sm:$0xff] }
0x14df   : > { %8982 = vmatmul.mubr.msk.f32.gmra.mxu1 %vm719_vm1, %v12982_v2  ;;  %8998 = vmatmul.mubr.msk.f32.gmra.mxu0 %vm719_vm1, %v12982_v2 }
0x14e0   : > { %5614 = vmatprep.mubr.f32.mxu1 %v15416_v51  ;;  %5775 = vmatprep.mubr.f32.mxu0 %v15416_v51 }
0x14e3   : > { %8983 = vmatmul.mubr.msk.f32.gmra.mxu1 %vm719_vm1, %v12998_v23  ;;  %8999 = vmatmul.mubr.msk.f32.gmra.mxu0 %vm719_vm1, %v12998_v23 }
0x14e4   : > { %5620 = vmatprep.mubr.f32.mxu1 %v15416_v51  ;;  %5781 = vmatprep.mubr.f32.mxu0 %v15416_v51 }
0x14e7   : > { %8984 = vmatmul.mubr.msk.f32.gmra.mxu1 %vm719_vm1, %v13008_v8  ;;  %9000 = vmatmul.mubr.msk.f32.gmra.mxu0 %vm719_vm1, %v13008_v8 }
0x14e8   : > { %5626 = vmatprep.mubr.f32.mxu1 %v15416_v51  ;;  %5787 = vmatprep.mubr.f32.mxu0 %v15416_v51 }
0x14eb   : > { %8985 = vmatmul.mubr.msk.f32.gmra.mxu1 %vm719_vm1, %v13021_v53  ;;  %9001 = vmatmul.mubr.msk.f32.gmra.mxu0 %vm719_vm1, %v13021_v53 }
0x14ec   : > { %5632 = vmatprep.mubr.f32.mxu1 %v15416_v51  ;;  %5793 = vmatprep.mubr.f32.mxu0 %v15416_v51 }
0x14ef   : > { %8986 = vmatmul.mubr.msk.f32.gmra.mxu1 %vm719_vm1, %v13031_v61  ;;  %9002 = vmatmul.mubr.msk.f32.gmra.mxu0 %vm719_vm1, %v13031_v61 }
0x14f0   : > { %5638 = vmatprep.mubr.f32.mxu1 %v15416_v51  ;;  %5799 = vmatprep.mubr.f32.mxu0 %v15416_v51 }
0x14f3   : > { %8987 = vmatmul.mubr.msk.f32.gmra.mxu1 %vm719_vm1, %v13044_v9  ;;  %9003 = vmatmul.mubr.msk.f32.gmra.mxu0 %vm719_vm1, %v13044_v9 }
0x14f4   : > { %5644 = vmatprep.mubr.f32.mxu1 %v15416_v51  ;;  %5805 = vmatprep.mubr.f32.mxu0 %v15416_v51 }
0x14f7   : > { %8988 = vmatmul.mubr.msk.f32.gmra.mxu1 %vm719_vm1, %v13051_v54  ;;  %9004 = vmatmul.mubr.msk.f32.gmra.mxu0 %vm719_vm1, %v13051_v54 }
0x14f8   : > { %5650 = vmatprep.mubr.f32.mxu1 %v15416_v51  ;;  %5811 = vmatprep.mubr.f32.mxu0 %v15416_v51 }
0x14fb   : > { %8989 = vmatmul.mubr.msk.f32.gmra.mxu1 %vm719_vm1, %v13066_v27  ;;  %9005 = vmatmul.mubr.msk.f32.gmra.mxu0 %vm719_vm1, %v13066_v27 }
0x14fc   : > { %5656 = vmatprep.mubr.f32.mxu1 %v15416_v51  ;;  %5817 = vmatprep.mubr.f32.mxu0 %v15416_v51 }
0x14fe   : > { %v13301_v50 = vpop.f32.mrf.mxu1  ;;  %v13303_v25 = vpop.f32.mrf.mxu0 }
0x14ff   : > { %8990 = vmatmul.mubr.msk.f32.gmra.mxu1 %vm719_vm1, %v13075_v6  ;;  %9006 = vmatmul.mubr.msk.f32.gmra.mxu0 %vm719_vm1, %v13075_v6 }
0x1500   : > { %5662 = vmatprep.mubr.f32.mxu1 %v15416_v51  ;;  %5823 = vmatprep.mubr.f32.mxu0 %v15416_v51  ;;  %v13311_v5 = vpop.f32.mrf.mxu1  ;;  %v13313_v40 = vpop.f32.mrf.mxu0 }
0x1502   : > { %v13321_v36 = vpop.f32.mrf.mxu1  ;;  %v13323_v0 = vpop.f32.mrf.mxu0 }
0x1503   : > { %8991 = vmatmul.mubr.msk.f32.gmra.mxu1 %vm719_vm1, %v13088_v46  ;;  %9007 = vmatmul.mubr.msk.f32.gmra.mxu0 %vm719_vm1, %v13088_v46 }
0x1504   : > { %5668 = vmatprep.mubr.f32.mxu1 %v15416_v51  ;;  %5829 = vmatprep.mubr.f32.mxu0 %v15416_v51  ;;  %v13331_v56 = vpop.f32.mrf.mxu1  ;;  %v13333_v19 = vpop.f32.mrf.mxu0 }
0x1506   : > { %v13341_v21 = vpop.f32.mrf.mxu1  ;;  %v13343_v24 = vpop.f32.mrf.mxu0 }
0x1507   : > { %8992 = vmatmul.mubr.msk.f32.gmra.mxu1 %vm719_vm1, %v13097_v49  ;;  %9008 = vmatmul.mubr.msk.f32.gmra.mxu0 %vm719_vm1, %v13097_v49 }
0x1508   : > { %5674 = vmatprep.mubr.f32.mxu1 %v15416_v51  ;;  %5835 = vmatprep.mubr.f32.mxu0 %v15416_v51  ;;  %v13351_v45 = vpop.f32.mrf.mxu1  ;;  %v13353_v34 = vpop.f32.mrf.mxu0 }
0x150a   : > { %v13361_v13 = vpop.f32.mrf.mxu1  ;;  %v13363_v11 = vpop.f32.mrf.mxu0 }
0x150b   : > { %8993 = vmatmul.mubr.msk.f32.gmra.mxu1 %vm719_vm1, %v13110_v58  ;;  %9009 = vmatmul.mubr.msk.f32.gmra.mxu0 %vm719_vm1, %v13110_v58 }
0x150c   : > { %5680 = vmatprep.mubr.f32.mxu1 %v15416_v51  ;;  %5841 = vmatprep.mubr.f32.mxu0 %v15416_v51  ;;  %v13371_v39 = vpop.f32.mrf.mxu1  ;;  %v13373_v29 = vpop.f32.mrf.mxu0 }
0x150e   : > { %v13384_v14 = vpop.f32.mrf.mxu1  ;;  %v13386_v33 = vpop.f32.mrf.mxu0 }
0x150f   : > { %8994 = vmatmul.mubr.msk.f32.gmra.mxu1 %vm719_vm1, %v13119_v4  ;;  %9010 = vmatmul.mubr.msk.f32.gmra.mxu0 %vm719_vm1, %v13119_v4 }
0x1510   : > { %5912 = vmatprep.mubr.f32.mxu1 %v15416_v51  ;;  %6073 = vmatprep.mubr.f32.mxu0 %v15416_v51  ;;  %v13398_v38 = vpop.f32.mrf.mxu1  ;;  %v13400_v60 = vpop.f32.mrf.mxu0 }
0x1512   : > { %v13412_v55 = vpop.f32.mrf.mxu1  ;;  %v13414_v37 = vpop.f32.mrf.mxu0 }
0x1513   : > { %9011 = vmatmul.mubr.msk.f32.vlgmr.msra.gmra.mxu1 %vm719_vm1, %v12944_v52  ;;  %9027 = vmatmul.mubr.msk.f32.vlgmr.msra.gmra.mxu0 %vm719_vm1, %v12944_v52 }
0x1514   : > { %6197 = vmatpush1.msra.mxu1 %v5068_v17  ;;  %5918 = vmatprep.mubr.f32.mxu1 %v15416_v51  ;;  %v6792_v17 = vld [vmem:[%s11105_s21 + $0x160] sm:$0xff] }
0x1515   : > { %6079 = vmatprep.mubr.f32.mxu0 %v15416_v51  ;;  %6358 = vmatpush1.msra.mxu0 %v5070_v22  ;;  %v6775_v22 = vld [vmem:[%s11105_s21 + $0xd8] sm:$0xff] }
0x1516   : > { %6198 = vmatprep.subr.mxu1 %v5053_v31  ;;  %6359 = vmatprep.subr.mxu0 %v5055_v12  ;;  %v6807_v31 = vld [vmem:[%s11105_s21 + $0x1d8] sm:$0xff]  ;;  %v13426_v12 = vpop.f32.mrf.mxu1 }
0x1517   : > { %9012 = vmatmul.mubr.msk.f32.gmra.mxu1 %vm719_vm1, %v12957_v32  ;;  %9028 = vmatmul.mubr.msk.f32.gmra.mxu0 %vm719_vm1, %v12957_v32 }
0x1518   : > { %5924 = vmatprep.mubr.f32.mxu1 %v15416_v51  ;;  %6085 = vmatprep.mubr.f32.mxu0 %v15416_v51 }
0x1519   : > { %6199 = vmatpush1.msra.mxu1 %v5052_v10  ;;  %6360 = vmatpush1.msra.mxu0 %v5054_v26  ;;  %v13428_v10 = vpop.f32.mrf.mxu0  ;;  %v6759_v26 = vld [vmem:[%s11105_s21 + $0x58] sm:$0xff] }
0x151a   : > { %6200 = vmatprep.subr.mxu1 %v5037_v28  ;;  %6361 = vmatprep.subr.mxu0 %v5039_v16  ;;  %v6791_v28 = vld [vmem:[%s11105_s21 + $0x158] sm:$0xff]  ;;  %v6774_v16 = vld [vmem:[%s11105_s21 + $0xd0] sm:$0xff] }
0x151b   : > { %9013 = vmatmul.mubr.msk.f32.gmra.mxu1 %vm719_vm1, %v12972_v15  ;;  %9029 = vmatmul.mubr.msk.f32.gmra.mxu0 %vm719_vm1, %v12972_v15 }
0x151c   : > { %5930 = vmatprep.mubr.f32.mxu1 %v15416_v51  ;;  %6091 = vmatprep.mubr.f32.mxu0 %v15416_v51 }
0x151d   : > { %6201 = vmatpush1.msra.mxu1 %v5036_v35  ;;  %6362 = vmatpush1.msra.mxu0 %v5038_v3  ;;  %v6806_v35 = vld [vmem:[%s11105_s21 + $0x1d0] sm:$0xff]  ;;  %v13440_v3 = vpop.f32.mrf.mxu1 }
0x151e   : > { %9380 = vmatprep.subr.mxu1 %v6779_v20  ;;  %9460 = vmatprep.subr.mxu0 %v6811_v1  ;;  %v13442_v20 = vpop.f32.mrf.mxu0  ;;  %v6758_v1 = vld [vmem:[%s11105_s21 + $0x50] sm:$0xff] }
0x151f   : > { %9014 = vmatmul.mubr.msk.f32.gmra.mxu1 %vm719_vm1, %v12982_v2  ;;  %9030 = vmatmul.mubr.msk.f32.gmra.mxu0 %vm719_vm1, %v12982_v2 }
0x1520   : > { %5936 = vmatprep.mubr.f32.mxu1 %v15416_v51  ;;  %6097 = vmatprep.mubr.f32.mxu0 %v15416_v51 }
0x1523   : > { %9015 = vmatmul.mubr.msk.f32.gmra.mxu1 %vm719_vm1, %v12998_v23  ;;  %9031 = vmatmul.mubr.msk.f32.gmra.mxu0 %vm719_vm1, %v12998_v23 }
0x1524   : > { %5942 = vmatprep.mubr.f32.mxu1 %v15416_v51  ;;  %6103 = vmatprep.mubr.f32.mxu0 %v15416_v51 }
0x1527   : > { %9016 = vmatmul.mubr.msk.f32.gmra.mxu1 %vm719_vm1, %v13008_v8  ;;  %9032 = vmatmul.mubr.msk.f32.gmra.mxu0 %vm719_vm1, %v13008_v8 }
0x1528   : > { %5948 = vmatprep.mubr.f32.mxu1 %v15416_v51  ;;  %6109 = vmatprep.mubr.f32.mxu0 %v15416_v51 }
0x152b   : > { %9017 = vmatmul.mubr.msk.f32.gmra.mxu1 %vm719_vm1, %v13021_v53  ;;  %9033 = vmatmul.mubr.msk.f32.gmra.mxu0 %vm719_vm1, %v13021_v53 }
0x152c   : > { %5954 = vmatprep.mubr.f32.mxu1 %v15416_v51  ;;  %6115 = vmatprep.mubr.f32.mxu0 %v15416_v51 }
0x152f   : > { %9018 = vmatmul.mubr.msk.f32.gmra.mxu1 %vm719_vm1, %v13031_v61  ;;  %9034 = vmatmul.mubr.msk.f32.gmra.mxu0 %vm719_vm1, %v13031_v61 }
0x1530   : > { %5960 = vmatprep.mubr.f32.mxu1 %v15416_v51  ;;  %6121 = vmatprep.mubr.f32.mxu0 %v15416_v51 }
0x1533   : > { %9019 = vmatmul.mubr.msk.f32.gmra.mxu1 %vm719_vm1, %v13044_v9  ;;  %9035 = vmatmul.mubr.msk.f32.gmra.mxu0 %vm719_vm1, %v13044_v9 }
0x1534   : > { %5966 = vmatprep.mubr.f32.mxu1 %v15416_v51  ;;  %6127 = vmatprep.mubr.f32.mxu0 %v15416_v51 }
0x1537   : > { %9020 = vmatmul.mubr.msk.f32.gmra.mxu1 %vm719_vm1, %v13051_v54  ;;  %9036 = vmatmul.mubr.msk.f32.gmra.mxu0 %vm719_vm1, %v13051_v54 }
0x1538   : > { %5972 = vmatprep.mubr.f32.mxu1 %v15416_v51  ;;  %6133 = vmatprep.mubr.f32.mxu0 %v15416_v51 }
0x153b   : > { %9021 = vmatmul.mubr.msk.f32.gmra.mxu1 %vm719_vm1, %v13066_v27  ;;  %9037 = vmatmul.mubr.msk.f32.gmra.mxu0 %vm719_vm1, %v13066_v27 }
0x153c   : > { %5978 = vmatprep.mubr.f32.mxu1 %v15416_v51  ;;  %6139 = vmatprep.mubr.f32.mxu0 %v15416_v51 }
0x153f   : > { %9022 = vmatmul.mubr.msk.f32.gmra.mxu1 %vm719_vm1, %v13075_v6  ;;  %9038 = vmatmul.mubr.msk.f32.gmra.mxu0 %vm719_vm1, %v13075_v6 }
0x1540   : > { %5984 = vmatprep.mubr.f32.mxu1 %v15416_v51  ;;  %6145 = vmatprep.mubr.f32.mxu0 %v15416_v51 }
0x1543   : > { %9023 = vmatmul.mubr.msk.f32.gmra.mxu1 %vm719_vm1, %v13088_v46  ;;  %9039 = vmatmul.mubr.msk.f32.gmra.mxu0 %vm719_vm1, %v13088_v46 }
0x1544   : > { %5990 = vmatprep.mubr.f32.mxu1 %v15416_v51  ;;  %6151 = vmatprep.mubr.f32.mxu0 %v15416_v51 }
0x1547   : > { %9024 = vmatmul.mubr.msk.f32.gmra.mxu1 %vm719_vm1, %v13097_v49  ;;  %9040 = vmatmul.mubr.msk.f32.gmra.mxu0 %vm719_vm1, %v13097_v49 }
0x1548   : > { %5996 = vmatprep.mubr.f32.mxu1 %v15416_v51  ;;  %6157 = vmatprep.mubr.f32.mxu0 %v15416_v51 }
0x154b   : > { %9025 = vmatmul.mubr.msk.f32.gmra.mxu1 %vm719_vm1, %v13110_v58  ;;  %9041 = vmatmul.mubr.msk.f32.gmra.mxu0 %vm719_vm1, %v13110_v58 }
0x154c   : > { %6002 = vmatprep.mubr.f32.mxu1 %v15416_v51  ;;  %6163 = vmatprep.mubr.f32.mxu0 %v15416_v51 }
0x154f   : > { %9026 = vmatmul.mubr.msk.f32.gmra.mxu1 %vm719_vm1, %v13119_v4  ;;  %9042 = vmatmul.mubr.msk.f32.gmra.mxu0 %vm719_vm1, %v13119_v4 }
0x1550   : > { %6234 = vmatprep.mubr.f32.mxu1 %v15416_v51  ;;  %6395 = vmatprep.mubr.f32.mxu0 %v15416_v51 }
0x1553   : > { %9043 = vmatmul.mubr.msk.f32.vlgmr.msra.gmra.mxu1 %vm719_vm1, %v12944_v52  ;;  %9059 = vmatmul.mubr.msk.f32.vlgmr.msra.gmra.mxu0 %vm719_vm1, %v12944_v52  ;;  %v6798_v52 = vld [vmem:[%s11105_s21 + $0x190] sm:$0xff] }
0x1554   : > { %9381 = vmatpush3.msra.mxu1 %v6763_v42  ;;  %6240 = vmatprep.mubr.f32.mxu1 %v15416_v51  ;;  %v6790_v42 = vld [vmem:[%s11105_s21 + $0x150] sm:$0xff] }
0x1555   : > { %6401 = vmatprep.mubr.f32.mxu0 %v15416_v51  ;;  %9461 = vmatpush3.msra.mxu0 %v6795_v47  ;;  %v6773_v47 = vld [vmem:[%s11105_s21 + $0xc8] sm:$0xff] }
0x1556   : > { %9382 = vmatprep.subr.mxu1 %v6778_v59  ;;  %9462 = vmatprep.subr.mxu0 %v6810_v63  ;;  %v6805_v59 = vld [vmem:[%s11105_s21 + $0x1c8] sm:$0xff]  ;;  %v13454_v63 = vpop.f32.mrf.mxu1 }
0x1557   : > { %9044 = vmatmul.mubr.msk.f32.gmra.mxu1 %vm719_vm1, %v12957_v32  ;;  %9060 = vmatmul.mubr.msk.f32.gmra.mxu0 %vm719_vm1, %v12957_v32 }
0x1558   : > { %9383 = vmatpush3.msra.mxu1 %v6762_v48  ;;  %6246 = vmatprep.mubr.f32.mxu1 %v15416_v51  ;;  %v13456_v48 = vpop.f32.mrf.mxu0 }
0x1559   : > { %6407 = vmatprep.mubr.f32.mxu0 %v15416_v51  ;;  %9463 = vmatpush3.msra.mxu0 %v6794_v62  ;;  %v6757_v62 = vld [vmem:[%s11105_s21 + $0x48] sm:$0xff] }
0x155a   : > { %9384 = vmatprep.subr.mxu1 %v6777_v41  ;;  %9464 = vmatprep.subr.mxu0 %v6809_v30  ;;  %v6789_v41 = vld [vmem:[%s11105_s21 + $0x148] sm:$0xff]  ;;  %v6772_v30 = vld [vmem:[%s11105_s21 + $0xc0] sm:$0xff] }
0x155b   : > { %9045 = vmatmul.mubr.msk.f32.gmra.mxu1 %vm719_vm1, %v12972_v15  ;;  %9061 = vmatmul.mubr.msk.f32.gmra.mxu0 %vm719_vm1, %v12972_v15 }
0x155c   : > { %9385 = vmatpush3.msra.mxu1 %v6761_v43  ;;  %6252 = vmatprep.mubr.f32.mxu1 %v15416_v51  ;;  %v6804_v43 = vld [vmem:[%s11105_s21 + $0x1c0] sm:$0xff] }
0x155d   : > { %6413 = vmatprep.mubr.f32.mxu0 %v15416_v51  ;;  %9465 = vmatpush3.msra.mxu0 %v6793_v18  ;;  %v13468_v18 = vpop.f32.mrf.mxu1 }
0x155e   : > { %9386 = vmatprep.subr.mxu1 %v6776_v57  ;;  %9466 = vmatprep.subr.mxu0 %v6808_v44  ;;  %v13470_v57 = vpop.f32.mrf.mxu0  ;;  %v6756_v44 = vld [vmem:[%s11105_s21 + $0x40] sm:$0xff] }
0x155f   : > { %9046 = vmatmul.mubr.msk.f32.gmra.mxu1 %vm719_vm1, %v12982_v2  ;;  %9062 = vmatmul.mubr.msk.f32.gmra.mxu0 %vm719_vm1, %v12982_v2  ;;  %v6751_v2 = vld [vmem:[%s11105_s21 + $0x18] sm:$0xff] }
0x1560   : > { %9387 = vmatpush3.msra.mxu1 %v6760_v7  ;;  %6258 = vmatprep.mubr.f32.mxu1 %v15416_v51  ;;  %v6788_v7 = vld [vmem:[%s11105_s21 + $0x140] sm:$0xff] }
0x1561   : > { %6419 = vmatprep.mubr.f32.mxu0 %v15416_v51  ;;  %9467 = vmatpush3.msra.mxu0 %v6792_v17  ;;  %v6771_v17 = vld [vmem:[%s11105_s21 + $0xb8] sm:$0xff] }
0x1562   : > { %9388 = vmatprep.subr.mxu1 %v6775_v22  ;;  %9468 = vmatprep.subr.mxu0 %v6807_v31  ;;  %v6803_v22 = vld [vmem:[%s11105_s21 + $0x1b8] sm:$0xff]  ;;  %v13482_v31 = vpop.f32.mrf.mxu1 }
0x1563   : > { %9047 = vmatmul.mubr.msk.f32.gmra.mxu1 %vm719_vm1, %v12998_v23  ;;  %9063 = vmatmul.mubr.msk.f32.gmra.mxu0 %vm719_vm1, %v12998_v23  ;;  %v6799_v23 = vld [vmem:[%s11105_s21 + $0x198] sm:$0xff] }
0x1564   : > { %9389 = vmatpush3.msra.mxu1 %v6759_v26  ;;  %6264 = vmatprep.mubr.f32.mxu1 %v15416_v51  ;;  %v13484_v26 = vpop.f32.mrf.mxu0 }
0x1565   : > { %6425 = vmatprep.mubr.f32.mxu0 %v15416_v51  ;;  %9469 = vmatpush3.msra.mxu0 %v6791_v28  ;;  %v6755_v28 = vld [vmem:[%s11105_s21 + $0x38] sm:$0xff] }
0x1566   : > { %9390 = vmatprep.subr.mxu1 %v6774_v16  ;;  %9470 = vmatprep.subr.mxu0 %v6806_v35  ;;  %v6787_v16 = vld [vmem:[%s11105_s21 + $0x138] sm:$0xff] }
0x1567   : > { %9048 = vmatmul.mubr.msk.f32.gmra.mxu1 %vm719_vm1, %v13008_v8  ;;  %9064 = vmatmul.mubr.msk.f32.gmra.mxu0 %vm719_vm1, %v13008_v8 }
0x1568   : > { %9391 = vmatpush3.msra.mxu1 %v6758_v1  ;;  %6270 = vmatprep.mubr.f32.mxu1 %v15416_v51 }
0x1569   : > { %6431 = vmatprep.mubr.f32.mxu0 %v15416_v51  ;;  %9471 = vmatpush3.msra.mxu0 %v6790_v42  ;;  %v6770_v42 = vld [vmem:[%s11105_s21 + $0xb0] sm:$0xff] }
0x156a   : > { %9392 = vmatprep.subr.mxu1 %v6773_v47  ;;  %9472 = vmatprep.subr.mxu0 %v6805_v59  ;;  %v6802_v47 = vld [vmem:[%s11105_s21 + $0x1b0] sm:$0xff] }
0x156b   : > { %9049 = vmatmul.mubr.msk.f32.gmra.mxu1 %vm719_vm1, %v13021_v53  ;;  %9065 = vmatmul.mubr.msk.f32.gmra.mxu0 %vm719_vm1, %v13021_v53 }
0x156c   : > { %9393 = vmatpush3.msra.mxu1 %v6757_v62  ;;  %6276 = vmatprep.mubr.f32.mxu1 %v15416_v51 }
0x156d   : > { %6437 = vmatprep.mubr.f32.mxu0 %v15416_v51  ;;  %9473 = vmatpush3.msra.mxu0 %v6789_v41  ;;  %v6754_v41 = vld [vmem:[%s11105_s21 + $0x30] sm:$0xff] }
0x156e   : > { %9394 = vmatprep.subr.mxu1 %v6772_v30  ;;  %9474 = vmatprep.subr.mxu0 %v6804_v43  ;;  %v6786_v30 = vld [vmem:[%s11105_s21 + $0x130] sm:$0xff] }
0x156f   : > { %9050 = vmatmul.mubr.msk.f32.gmra.mxu1 %vm719_vm1, %v13031_v61  ;;  %9066 = vmatmul.mubr.msk.f32.gmra.mxu0 %vm719_vm1, %v13031_v61  ;;  %v6752_v61 = vld [vmem:[%s11105_s21 + $0x20] sm:$0xff] }
0x1570   : > { %9395 = vmatpush3.msra.mxu1 %v6756_v44  ;;  %6282 = vmatprep.mubr.f32.mxu1 %v15416_v51 }
0x1571   : > { %6443 = vmatprep.mubr.f32.mxu0 %v15416_v51  ;;  %9475 = vmatpush3.msra.mxu0 %v6788_v7  ;;  %v6769_v7 = vld [vmem:[%s11105_s21 + $0xa8] sm:$0xff] }
0x1572   : > { %9396 = vmatprep.subr.mxu1 %v6771_v17  ;;  %9476 = vmatprep.subr.mxu0 %v6803_v22  ;;  %v6801_v17 = vld [vmem:[%s11105_s21 + $0x1a8] sm:$0xff] }
0x1573   : > { %v13489_v35 = vpop.f32.mrf.mxu1  ;;  %v13491_v1 = vpop.f32.mrf.mxu0  ;;  %9051 = vmatmul.mubr.msk.f32.gmra.mxu1 %vm719_vm1, %v13044_v9  ;;  %9067 = vmatmul.mubr.msk.f32.gmra.mxu0 %vm719_vm1, %v13044_v9  ;;  %v6800_v9 = vld [vmem:[%s11105_s21 + $0x1a0] sm:$0xff] }
0x1574   : > { %9397 = vmatpush3.msra.mxu1 %v6755_v28  ;;  %6288 = vmatprep.mubr.f32.mxu1 %v15416_v51 }
0x1575   : > { %v13500_v59 = vpop.f32.mrf.mxu1  ;;  %v13502_v62 = vpop.f32.mrf.mxu0  ;;  %6449 = vmatprep.mubr.f32.mxu0 %v15416_v51  ;;  %9477 = vmatpush3.msra.mxu0 %v6787_v16  ;;  %v6753_v16 = vld [vmem:[%s11105_s21 + $0x28] sm:$0xff] }
0x1576   : > { %9398 = vmatprep.subr.mxu1 %v6770_v42  ;;  %9478 = vmatprep.subr.mxu0 %v6802_v47  ;;  %v6785_v42 = vld [vmem:[%s11105_s21 + $0x128] sm:$0xff] }
0x1577   : > { %v13507_v43 = vpop.f32.mrf.mxu1  ;;  %v13509_v44 = vpop.f32.mrf.mxu0  ;;  %9052 = vmatmul.mubr.msk.f32.gmra.mxu1 %vm719_vm1, %v13051_v54  ;;  %9068 = vmatmul.mubr.msk.f32.gmra.mxu0 %vm719_vm1, %v13051_v54 }
0x1578   : > { %9399 = vmatpush3.msra.mxu1 %v6754_v41  ;;  %6294 = vmatprep.mubr.f32.mxu1 %v15416_v51  ;;  %v6768_v41 = vld [vmem:[%s11105_s21 + $0xa0] sm:$0xff] }
0x1579   : > { %v13518_v22 = vpop.f32.mrf.mxu1  ;;  %v13520_v28 = vpop.f32.mrf.mxu0  ;;  %6455 = vmatprep.mubr.f32.mxu0 %v15416_v51  ;;  %9479 = vmatpush3.msra.mxu0 %v6786_v30  ;;  %v5076_v30 = vlaneseq }
0x157a   : > { %9400 = vmatprep.subr.mxu1 %v6769_v7  ;;  %9480 = vmatprep.subr.mxu0 %v6801_v17 }
0x157b   : > { %v13525_v47 = vpop.f32.mrf.mxu1  ;;  %v13527_v54 = vpop.f32.mrf.mxu0  ;;  %9053 = vmatmul.mubr.msk.f32.gmra.mxu1 %vm719_vm1, %v13066_v27  ;;  %9069 = vmatmul.mubr.msk.f32.gmra.mxu0 %vm719_vm1, %v13066_v27  ;;  %v6784_v27 = vld [vmem:[%s11105_s21 + $0x120] sm:$0xff] }
0x157c   : > { %9401 = vmatpush3.msra.mxu1 %v6753_v16  ;;  %6300 = vmatprep.mubr.f32.mxu1 %v15416_v51  ;;  %v6767_v16 = vld [vmem:[%s11105_s21 + $0x98] sm:$0xff] }
0x157d   : > { %v13536_v7 = vpop.f32.mrf.mxu1  ;;  %v13538_v17 = vpop.f32.mrf.mxu0  ;;  %6461 = vmatprep.mubr.f32.mxu0 %v15416_v51  ;;  %9481 = vmatpush3.msra.mxu0 %v6785_v42  ;;  %v13553_v51 = vshrl.u32 %v5076_v30, 7  ;;  %v15495_v42 = vmov 0.0   ;;  %v6783_v30 = vld [vmem:[%s11105_s21 + $0x118] sm:$0xff] }
0x157e   : > { %9402 = vmatprep.subr.mxu1 %v6768_v41  ;;  %9482 = vmatprep.subr.mxu0 %v6800_v9 }
0x157f   : > { %v13543_v53 = vpop.f32.mrf.mxu1  ;;  %v13545_v8 = vpop.f32.mrf.mxu0  ;;  %9054 = vmatmul.mubr.msk.f32.gmra.mxu1 %vm719_vm1, %v13075_v6  ;;  %9070 = vmatmul.mubr.msk.f32.gmra.mxu0 %vm719_vm1, %v13075_v6  ;;  %15494 = vst [vmem:[#allocation26_spill] sm:$0xff] %v13553_v51 }
0x1580   : > { %15492 = vst [vmem:[#allocation24_spill] sm:$0xff] %v13543_v53  ;;  %15493 = vst [vmem:[#allocation25_spill] sm:$0xff] %v13545_v8  ;;  %9403 = vmatpush3.msra.mxu1 %v6752_v61  ;;  %6306 = vmatprep.mubr.f32.mxu1 %v15495_v42  ;;  %v15502_v8 = vsub.s32 3, %v13553_v51 }
0x1581   : > { %v13556_v9 = vpop.f32.mrf.mxu1  ;;  %v13558_v41 = vpop.f32.mrf.mxu0  ;;  %6467 = vmatprep.mubr.f32.mxu0 %v15495_v42  ;;  %9483 = vmatpush3.msra.mxu0 %v6784_v27  ;;  %v6766_v27 = vld [vmem:[%s11105_s21 + $0x90] sm:$0xff] }
0x1582   : > { %9404 = vmatprep.subr.mxu1 %v6767_v16  ;;  %9484 = vmatprep.subr.mxu0 %v6799_v23  ;;  %v13577_v23 = vld [vmem:[%s11100_s30] sm:$0xff]  ;;  %v6782_v16 = vld [vmem:[%s11105_s21 + $0x110] sm:$0xff] }
0x1583   : > { %v13565_v15 = vpop.f32.mrf.mxu1  ;;  %v13567_v32 = vpop.f32.mrf.mxu0  ;;  %9055 = vmatmul.mubr.msk.f32.gmra.mxu1 %vm719_vm1, %v13088_v46  ;;  %9071 = vmatmul.mubr.msk.f32.gmra.mxu0 %vm719_vm1, %v13088_v46  ;;  %15498 = vst [vmem:[#allocation29_spill] sm:$0xff] %v13577_v23  ;;  %v6750_v46 = vld [vmem:[%s11105_s21 + $0x10] sm:$0xff]  ;;  %v13596_v61 = vrot.slane %v13577_v23, %v15502_v8 }
0x1584   : > { %15496 = vst [vmem:[#allocation27_spill] sm:$0xff] %v13565_v15  ;;  %15497 = vst [vmem:[#allocation28_spill] sm:$0xff] %v13567_v32  ;;  %9405 = vmatpush3.msra.mxu1 %v6751_v2  ;;  %6312 = vmatprep.mubr.f32.mxu1 %v15495_v42  ;;  %v15501_v2 = vsub.s32 1, %v13553_v51 }
0x1585   : > { %v13581_v6 = vpop.f32.mrf.mxu1  ;;  %v13583_v32 = vpop.f32.mrf.mxu0  ;;  %6473 = vmatprep.mubr.f32.mxu0 %v15495_v42  ;;  %9485 = vmatpush3.msra.mxu0 %v6783_v30  ;;  %v6765_v30 = vld [vmem:[%s11105_s21 + $0x88] sm:$0xff] }
0x1586   : > { %15499 = vst [vmem:[#allocation30_spill] sm:$0xff] %v13581_v6  ;;  %15500 = vst [vmem:[#allocation31_spill] sm:$0xff] %v13583_v32  ;;  %v13590_v15 = vrot.slane %v13577_v23, %v15501_v2  ;;  %9406 = vmatprep.subr.mxu1 %v6766_v27  ;;  %9486 = vmatprep.subr.mxu0 %v6798_v52  ;;  %v6797_v52 = vld [vmem:[%s11105_s21 + $0x188] sm:$0xff]  ;;  %v15505_v27 = vsub.s32 0, %v13553_v51  ;;  %v15506_v2 = vsub.s32 2, %v13553_v51 }
0x1587   : > { %v13598_v6 = vpop.f32.mrf.mxu1  ;;  %v13600_v32 = vpop.f32.mrf.mxu0  ;;  %9056 = vmatmul.mubr.msk.f32.gmra.mxu1 %vm719_vm1, %v13097_v49  ;;  %9072 = vmatmul.mubr.msk.f32.gmra.mxu0 %vm719_vm1, %v13097_v49 }
0x1588   : > { %15503 = vst [vmem:[#allocation32_spill] sm:$0xff] %v13598_v6  ;;  %15504 = vst [vmem:[#allocation33_spill] sm:$0xff] %v13600_v32  ;;  %9407 = vmatpush3.msra.mxu1 %v6750_v46  ;;  %6318 = vmatprep.mubr.f32.mxu1 %v15495_v42  ;;  %v13612_v8 = vrot.slane %v13577_v23, %v15505_v27  ;;  %v13617_v32 = vrot.slane %v13577_v23, %v15506_v2  ;;  %v6749_v46 = vld [vmem:[%s11105_s21 + $0x8] sm:$0xff] }
0x1589   : > { %v13619_v6 = vpop.f32.mrf.mxu1  ;;  %v13621_v49 = vpop.f32.mrf.mxu0  ;;  %6479 = vmatprep.mubr.f32.mxu0 %v15495_v42  ;;  %9487 = vmatpush3.msra.mxu0 %v6782_v16  ;;  %v5273_v53 = vadd.f32 %v13311_v5, %v13590_v15  ;;  %v6781_v27 = vld [vmem:[%s11105_s21 + $0x108] sm:$0xff]  ;;  %v5434_v2 = vadd.f32 %v13313_v40, %v13596_v61  ;;  %v6764_v16 = vld [vmem:[%s11105_s21 + $0x80] sm:$0xff] }
0x158a   : > { %15507 = vst [vmem:[#allocation34_spill] sm:$0xff] %v13619_v6  ;;  %15508 = vst [vmem:[#allocation35_spill] sm:$0xff] %v13621_v49  ;;  %9408 = vmatprep.subr.mxu1 %v6765_v30  ;;  %9488 = vmatprep.subr.mxu0 %v6797_v52  ;;  %v6796_v5 = vld [vmem:[%s11105_s21 + $0x180] sm:$0xff]  ;;  %v5271_v30 = vadd.f32 %v13301_v50, %v13612_v8  ;;  %v5432_v40 = vadd.f32 %v13303_v25, %v13617_v32 }
0x158b   : > { %v13630_v23 = vpop.f32.mrf.mxu1  ;;  %v13632_v51 = vpop.f32.mrf.mxu0  ;;  %9057 = vmatmul.mubr.msk.f32.gmra.mxu1 %vm719_vm1, %v13110_v58  ;;  %9073 = vmatmul.mubr.msk.f32.gmra.mxu0 %vm719_vm1, %v13110_v58  ;;  %v6748_v58 = vld [vmem:[%s11105_s21] sm:$0xff]  ;;  %v5440_v50 = vadd.f32 %v13333_v19, %v13596_v61  ;;  %v6495_v49 = vmax.f32 %v5434_v2, 0.0  ;;  %v5438_v2 = vadd.f32 %v13323_v0, %v13617_v32  ;;  %v6859_v0 = vld [vmem:[%s11105_s21 + $0x378] sm:$0xff] }
0x158c   : > { %15509 = vst [vmem:[#allocation36_spill] sm:$0xff] %v13630_v23  ;;  %15510 = vst [vmem:[#allocation37_spill] sm:$0xff] %v13632_v51  ;;  %9409 = vmatpush3.msra.mxu1 %v6749_v46  ;;  %6324 = vmatprep.mubr.f32.mxu1 %v15495_v42  ;;  %v6493_v23 = vmax.f32 %v5273_v53, 0.0  ;;  %v5279_v46 = vadd.f32 %v13331_v56, %v13590_v15  ;;  %v6780_v25 = vld [vmem:[%s11105_s21 + $0x100] sm:$0xff]  ;;  %v6843_v53 = vld [vmem:[%s11105_s21 + $0x2f8] sm:$0xff]  ;;  %v6492_v56 = vmax.f32 %v5271_v30, 0.0 }
0x158d   : > { %v13645_v52 = vpop.f32.mrf.mxu1  ;;  %v13647_v51 = vpop.f32.mrf.mxu0  ;;  %6485 = vmatprep.mubr.f32.mxu0 %v15495_v42  ;;  %9489 = vmatpush3.msra.mxu0 %v6781_v27  ;;  %v6875_v42 = vld [vmem:[%s11105_s21 + $0x3f8] sm:$0xff]  ;;  %v6494_v19 = vmax.f32 %v5432_v40, 0.0  ;;  %v5277_v27 = vadd.f32 %v13321_v36, %v13612_v8  ;;  %v5446_v30 = vadd.f32 %v13353_v34, %v13596_v61  ;;  %v5283_v34 = vadd.f32 %v13341_v21, %v13612_v8  ;;  %v6826_v21 = vld [vmem:[%s11105_s21 + $0x270] sm:$0xff] }
0x158e   : > { %15511 = vst [vmem:[#allocation38_spill] sm:$0xff] %v13645_v52  ;;  %9410 = vmatprep.subr.mxu1 %v6764_v16  ;;  %9490 = vmatprep.subr.mxu0 %v6796_v5  ;;  %v6827_v36 = vld [vmem:[%s11105_s21 + $0x278] sm:$0xff] }
0x158f   : > { %v13656_v52 = vpop.f32.mrf.mxu1  ;;  %v13658_v6 = vpop.f32.mrf.mxu0  ;;  %9058 = vmatmul.mubr.msk.f32.gmra.mxu1 %vm719_vm1, %v13119_v4  ;;  %9074 = vmatmul.mubr.msk.f32.gmra.mxu0 %vm719_vm1, %v13119_v4  ;;  %v6509_v4 = vmax.f32 %v5279_v46, 0.0  ;;  %v6510_v46 = vmax.f32 %v5438_v2, 0.0 }
0x1590   : > { %15512 = vst [vmem:[#allocation39_spill] sm:$0xff] %v13658_v6  ;;  %9411 = vmatpush3.msra.mxu1 %v6748_v58  ;;  %7075 = vmatprep.mubr.f32.mxu1 %v6493_v23  ;;  %v6511_v58 = vmax.f32 %v5440_v50, 0.0  ;;  %v5285_v23 = vadd.f32 %v13351_v45, %v13590_v15  ;;  %v6842_v6 = vld [vmem:[%s11105_s21 + $0x2f0] sm:$0xff]  ;;  %v6508_v45 = vmax.f32 %v5277_v27, 0.0  ;;  %v5444_v50 = vadd.f32 %v13343_v24, %v13617_v32 }
0x1591   : > { %7220 = vmatprep.mubr.f32.mxu0 %v6495_v49  ;;  %v13670_v16 = vpop.f32.mrf.mxu1  ;;  %v13672_v5 = vpop.f32.mrf.mxu0  ;;  %9491 = vmatpush3.msra.mxu0 %v6780_v25  ;;  %v6874_v25 = vld [vmem:[%s11105_s21 + $0x3f0] sm:$0xff]  ;;  %v5452_v27 = vadd.f32 %v13373_v29, %v13596_v61  ;;  %v5450_v29 = vadd.f32 %v13363_v11, %v13617_v32  ;;  %v6857_v11 = vld [vmem:[%s11105_s21 + $0x368] sm:$0xff] }
0x1592   : > { %9540 = vmatprep.subr.mxu1 %v6843_v53  ;;  %9620 = vmatprep.subr.mxu0 %v6875_v42  ;;  %v6858_v24 = vld [vmem:[%s11105_s21 + $0x370] sm:$0xff] }
0x1593   : > { %v13680_v49 = vpop.f32.mrf.mxu1  ;;  %v13682_v40 = vpop.f32.mrf.mxu0  ;;  %7076 = vmatmul.mubr.f32.vlgmr.msra.gmra.mxu1 %v6492_v56  ;;  %7221 = vmatmul.mubr.f32.vlgmr.msra.gmra.mxu0 %v6494_v19  ;;  %v6525_v56 = vmax.f32 %v5285_v23, 0.0  ;;  %v5291_v19 = vadd.f32 %v13371_v39, %v13590_v15  ;;  %v6524_v39 = vmax.f32 %v5283_v34, 0.0  ;;  %v6526_v23 = vmax.f32 %v5444_v50, 0.0 }
0x1594   : > { %7080 = vmatprep.mubr.f32.mxu1 %v6509_v4  ;;  %7225 = vmatprep.mubr.f32.mxu0 %v6511_v58  ;;  %v6527_v4 = vmax.f32 %v5446_v30, 0.0  ;;  %v5297_v34 = vadd.f32 %v13398_v38, %v13590_v15  ;;  %v5458_v50 = vadd.f32 %v13400_v60, %v13596_v61  ;;  %v5295_v60 = vadd.f32 %v13384_v14, %v13612_v8  ;;  %v6824_v14 = vld [vmem:[%s11105_s21 + $0x260] sm:$0xff] }
0x1595   : > { %9541 = vmatpush3.msra.mxu1 %v6827_v36  ;;  %v13690_v53 = vpop.f32.mrf.mxu1  ;;  %v13692_v42 = vpop.f32.mrf.mxu0  ;;  %9621 = vmatpush3.msra.mxu0 %v6859_v0  ;;  %v6841_v36 = vld [vmem:[%s11105_s21 + $0x2e8] sm:$0xff] }
0x1596   : > { %9542 = vmatprep.subr.mxu1 %v6842_v6  ;;  %9622 = vmatprep.subr.mxu0 %v6874_v25  ;;  %v6873_v0 = vld [vmem:[%s11105_s21 + $0x3e8] sm:$0xff]  ;;  %v5289_v6 = vadd.f32 %v13361_v13, %v13612_v8 }
0x1597   : > { %v13700_v2 = vpop.f32.mrf.mxu1  ;;  %v13702_v58 = vpop.f32.mrf.mxu0  ;;  %7081 = vmatmul.mubr.f32.gmra.mxu1 %v6508_v45  ;;  %7226 = vmatmul.mubr.f32.gmra.mxu0 %v6510_v46  ;;  %v6541_v45 = vmax.f32 %v5291_v19, 0.0  ;;  %v6543_v46 = vmax.f32 %v5452_v27, 0.0  ;;  %v6825_v13 = vld [vmem:[%s11105_s21 + $0x268] sm:$0xff]  ;;  %v6542_v19 = vmax.f32 %v5450_v29, 0.0  ;;  %v5456_v27 = vadd.f32 %v13386_v33, %v13617_v32  ;;  %v6856_v33 = vld [vmem:[%s11105_s21 + $0x360] sm:$0xff] }
0x1598   : > { %7085 = vmatprep.mubr.f32.mxu1 %v6525_v56  ;;  %7230 = vmatprep.mubr.f32.mxu0 %v6527_v4  ;;  %v6540_v38 = vmax.f32 %v5289_v6, 0.0  ;;  %v5303_v6 = vadd.f32 %v13426_v12, %v13590_v15  ;;  %v5464_v29 = vadd.f32 %v13428_v10, %v13596_v61  ;;  %v6556_v12 = vmax.f32 %v5295_v60, 0.0 }
0x1599   : > { %9543 = vmatpush3.msra.mxu1 %v6826_v21  ;;  %v13710_v30 = vpop.f32.mrf.mxu1  ;;  %v13712_v25 = vpop.f32.mrf.mxu0  ;;  %9623 = vmatpush3.msra.mxu0 %v6858_v24  ;;  %v6840_v21 = vld [vmem:[%s11105_s21 + $0x2e0] sm:$0xff]  ;;  %v5301_v10 = vadd.f32 %v13412_v55, %v13612_v8  ;;  %v5309_v60 = vadd.f32 %v13454_v63, %v13590_v15  ;;  %v6823_v55 = vld [vmem:[%s11105_s21 + $0x258] sm:$0xff] }
0x159a   : > { %9544 = vmatprep.subr.mxu1 %v6841_v36  ;;  %9624 = vmatprep.subr.mxu0 %v6873_v0  ;;  %v6872_v24 = vld [vmem:[%s11105_s21 + $0x3e0] sm:$0xff] }
0x159b   : > { %v13720_v56 = vpop.f32.mrf.mxu1  ;;  %v13722_v4 = vpop.f32.mrf.mxu0  ;;  %7086 = vmatmul.mubr.f32.gmra.mxu1 %v6524_v39  ;;  %7231 = vmatmul.mubr.f32.gmra.mxu0 %v6526_v23  ;;  %v6557_v39 = vmax.f32 %v5297_v34, 0.0  ;;  %v6559_v23 = vmax.f32 %v5458_v50, 0.0  ;;  %v6558_v34 = vmax.f32 %v5456_v27, 0.0  ;;  %v5462_v50 = vadd.f32 %v13414_v37, %v13617_v32  ;;  %v6855_v37 = vld [vmem:[%s11105_s21 + $0x358] sm:$0xff] }
0x159c   : > { %7090 = vmatprep.mubr.f32.mxu1 %v6541_v45  ;;  %7235 = vmatprep.mubr.f32.mxu0 %v6543_v46  ;;  %v5470_v27 = vadd.f32 %v13456_v48, %v13596_v61  ;;  %v6572_v63 = vmax.f32 %v5301_v10, 0.0  ;;  %v5307_v48 = vadd.f32 %v13440_v3, %v13612_v8  ;;  %v5315_v10 = vadd.f32 %v13482_v31, %v13590_v15  ;;  %v6822_v3 = vld [vmem:[%s11105_s21 + $0x250] sm:$0xff] }
0x159d   : > { %9545 = vmatpush3.msra.mxu1 %v6825_v13  ;;  %v13730_v36 = vpop.f32.mrf.mxu1  ;;  %v13732_v0 = vpop.f32.mrf.mxu0  ;;  %9625 = vmatpush3.msra.mxu0 %v6857_v11  ;;  %v6839_v13 = vld [vmem:[%s11105_s21 + $0x2d8] sm:$0xff] }
0x159e   : > { %9546 = vmatprep.subr.mxu1 %v6840_v21  ;;  %9626 = vmatprep.subr.mxu0 %v6872_v24  ;;  %v6871_v11 = vld [vmem:[%s11105_s21 + $0x3d8] sm:$0xff]  ;;  %v6588_v31 = vmax.f32 %v5307_v48, 0.0  ;;  %v5321_v48 = vadd.f32 %v13500_v59, %v13590_v15 }
0x159f   : > { %v13740_v45 = vpop.f32.mrf.mxu1  ;;  %v13742_v46 = vpop.f32.mrf.mxu0  ;;  %7091 = vmatmul.mubr.f32.gmra.mxu1 %v6540_v38  ;;  %7236 = vmatmul.mubr.f32.gmra.mxu0 %v6542_v19  ;;  %v6573_v38 = vmax.f32 %v5303_v6, 0.0  ;;  %v6575_v19 = vmax.f32 %v5464_v29, 0.0  ;;  %v6574_v6 = vmax.f32 %v5462_v50, 0.0  ;;  %v5468_v29 = vadd.f32 %v13442_v20, %v13617_v32  ;;  %v6854_v20 = vld [vmem:[%s11105_s21 + $0x350] sm:$0xff] }
0x15a0   : > { %7095 = vmatprep.mubr.f32.mxu1 %v6557_v39  ;;  %7240 = vmatprep.mubr.f32.mxu0 %v6559_v23  ;;  %v5476_v50 = vadd.f32 %v13484_v26, %v13596_v61  ;;  %v5313_v26 = vadd.f32 %v13468_v18, %v13612_v8  ;;  %v6821_v18 = vld [vmem:[%s11105_s21 + $0x248] sm:$0xff] }
0x15a1   : > { %9547 = vmatpush3.msra.mxu1 %v6824_v14  ;;  %v13750_v21 = vpop.f32.mrf.mxu1  ;;  %v13752_v24 = vpop.f32.mrf.mxu0  ;;  %9627 = vmatpush3.msra.mxu0 %v6856_v33  ;;  %v6838_v14 = vld [vmem:[%s11105_s21 + $0x2d0] sm:$0xff] }
0x15a2   : > { %9548 = vmatprep.subr.mxu1 %v6839_v13  ;;  %9628 = vmatprep.subr.mxu0 %v6871_v11  ;;  %v6870_v33 = vld [vmem:[%s11105_s21 + $0x3d0] sm:$0xff]  ;;  %v6604_v59 = vmax.f32 %v5313_v26, 0.0  ;;  %v5327_v26 = vadd.f32 %v13518_v22, %v13590_v15 }
0x15a3   : > { %v13760_v39 = vpop.f32.mrf.mxu1  ;;  %v13762_v23 = vpop.f32.mrf.mxu0  ;;  %7096 = vmatmul.mubr.f32.gmra.mxu1 %v6556_v12  ;;  %7241 = vmatmul.mubr.f32.gmra.mxu0 %v6558_v34  ;;  %v6589_v12 = vmax.f32 %v5309_v60, 0.0  ;;  %v6591_v34 = vmax.f32 %v5470_v27, 0.0  ;;  %v6590_v60 = vmax.f32 %v5468_v29, 0.0  ;;  %v5474_v27 = vadd.f32 %v13470_v57, %v13617_v32  ;;  %v6853_v57 = vld [vmem:[%s11105_s21 + $0x348] sm:$0xff] }
0x15a4   : > { %7100 = vmatprep.mubr.f32.mxu1 %v6573_v38  ;;  %7245 = vmatprep.mubr.f32.mxu0 %v6575_v19  ;;  %v5482_v29 = vadd.f32 %v13502_v62, %v13596_v61  ;;  %v5319_v62 = vadd.f32 %v13489_v35, %v13612_v8  ;;  %v6820_v35 = vld [vmem:[%s11105_s21 + $0x240] sm:$0xff] }
0x15a5   : > { %9549 = vmatpush3.msra.mxu1 %v6823_v55  ;;  %v13770_v13 = vpop.f32.mrf.mxu1  ;;  %v13772_v11 = vpop.f32.mrf.mxu0  ;;  %9629 = vmatpush3.msra.mxu0 %v6855_v37  ;;  %v6837_v55 = vld [vmem:[%s11105_s21 + $0x2c8] sm:$0xff] }
0x15a6   : > { %9550 = vmatprep.subr.mxu1 %v6838_v14  ;;  %9630 = vmatprep.subr.mxu0 %v6870_v33  ;;  %v6869_v37 = vld [vmem:[%s11105_s21 + $0x3c8] sm:$0xff]  ;;  %v6620_v22 = vmax.f32 %v5319_v62, 0.0  ;;  %v5333_v62 = vadd.f32 %v13536_v7, %v13590_v15 }
0x15a7   : > { %v13780_v38 = vpop.f32.mrf.mxu1  ;;  %v13782_v19 = vpop.f32.mrf.mxu0  ;;  %7101 = vmatmul.mubr.f32.gmra.mxu1 %v6572_v63  ;;  %7246 = vmatmul.mubr.f32.gmra.mxu0 %v6574_v6  ;;  %v6605_v63 = vmax.f32 %v5315_v10, 0.0  ;;  %v6607_v6 = vmax.f32 %v5476_v50, 0.0  ;;  %v6606_v10 = vmax.f32 %v5474_v27, 0.0  ;;  %v5480_v50 = vadd.f32 %v13491_v1, %v13617_v32  ;;  %v6852_v1 = vld [vmem:[%s11105_s21 + $0x340] sm:$0xff] }
0x15a8   : > { %7105 = vmatprep.mubr.f32.mxu1 %v6589_v12  ;;  %7250 = vmatprep.mubr.f32.mxu0 %v6591_v34  ;;  %v5488_v27 = vadd.f32 %v13520_v28, %v13596_v61  ;;  %v5325_v28 = vadd.f32 %v13507_v43, %v13612_v8  ;;  %v6819_v43 = vld [vmem:[%s11105_s21 + $0x238] sm:$0xff] }
0x15a9   : > { %9551 = vmatpush3.msra.mxu1 %v6822_v3  ;;  %v13790_v14 = vpop.f32.mrf.mxu1  ;;  %v13792_v33 = vpop.f32.mrf.mxu0  ;;  %9631 = vmatpush3.msra.mxu0 %v6854_v20  ;;  %v6836_v3 = vld [vmem:[%s11105_s21 + $0x2c0] sm:$0xff] }
0x15aa   : > { %9552 = vmatprep.subr.mxu1 %v6837_v55  ;;  %9632 = vmatprep.subr.mxu0 %v6869_v37  ;;  %v6868_v20 = vld [vmem:[%s11105_s21 + $0x3c0] sm:$0xff]  ;;  %v6636_v7 = vmax.f32 %v5325_v28, 0.0  ;;  %v5339_v28 = vadd.f32 %v13556_v9, %v13590_v15 }
0x15ab   : > { %v13800_v12 = vpop.f32.mrf.mxu1  ;;  %v13802_v34 = vpop.f32.mrf.mxu0  ;;  %7106 = vmatmul.mubr.f32.gmra.mxu1 %v6588_v31  ;;  %7251 = vmatmul.mubr.f32.gmra.mxu0 %v6590_v60  ;;  %v6621_v31 = vmax.f32 %v5321_v48, 0.0  ;;  %v6623_v60 = vmax.f32 %v5482_v29, 0.0  ;;  %v6622_v48 = vmax.f32 %v5480_v50, 0.0  ;;  %v5486_v29 = vadd.f32 %v13509_v44, %v13617_v32  ;;  %v6851_v44 = vld [vmem:[%s11105_s21 + $0x338] sm:$0xff] }
0x15ac   : > { %7110 = vmatprep.mubr.f32.mxu1 %v6605_v63  ;;  %7255 = vmatprep.mubr.f32.mxu0 %v6607_v6  ;;  %v5494_v50 = vadd.f32 %v13538_v17, %v13596_v61  ;;  %v5331_v17 = vadd.f32 %v13525_v47, %v13612_v8  ;;  %v6818_v47 = vld [vmem:[%s11105_s21 + $0x230] sm:$0xff] }
0x15ad   : > { %9553 = vmatpush3.msra.mxu1 %v6821_v18  ;;  %v13810_v55 = vpop.f32.mrf.mxu1  ;;  %v13812_v37 = vpop.f32.mrf.mxu0  ;;  %9633 = vmatpush3.msra.mxu0 %v6853_v57  ;;  %v6835_v18 = vld [vmem:[%s11105_s21 + $0x2b8] sm:$0xff] }
0x15ae   : > { %9554 = vmatprep.subr.mxu1 %v6836_v3  ;;  %9634 = vmatprep.subr.mxu0 %v6868_v20  ;;  %v6867_v57 = vld [vmem:[%s11105_s21 + $0x3b8] sm:$0xff]  ;;  %v6652_v9 = vmax.f32 %v5331_v17, 0.0 }
0x15af   : > { %v13820_v63 = vpop.f32.mrf.mxu1  ;;  %v13822_v6 = vpop.f32.mrf.mxu0  ;;  %7111 = vmatmul.mubr.f32.gmra.mxu1 %v6604_v59  ;;  %7256 = vmatmul.mubr.f32.gmra.mxu0 %v6606_v10  ;;  %v6637_v59 = vmax.f32 %v5327_v26, 0.0  ;;  %v6639_v10 = vmax.f32 %v5488_v27, 0.0  ;;  %v6638_v26 = vmax.f32 %v5486_v29, 0.0  ;;  %v5492_v27 = vadd.f32 %v13527_v54, %v13617_v32  ;;  %v6850_v54 = vld [vmem:[%s11105_s21 + $0x330] sm:$0xff] }
0x15b0   : > { %7115 = vmatprep.mubr.f32.mxu1 %v6621_v31  ;;  %7260 = vmatprep.mubr.f32.mxu0 %v6623_v60  ;;  %v5500_v29 = vadd.f32 %v13558_v41, %v13596_v61  ;;  %v15516_v41 = vld [vmem:[#allocation24_spill] sm:$0xff] }
0x15b1   : > { %9555 = vmatpush3.msra.mxu1 %v6820_v35  ;;  %v13830_v3 = vpop.f32.mrf.mxu1  ;;  %v13832_v20 = vpop.f32.mrf.mxu0  ;;  %9635 = vmatpush3.msra.mxu0 %v6852_v1  ;;  %v6834_v35 = vld [vmem:[%s11105_s21 + $0x2b0] sm:$0xff] }
0x15b2   : > { %9556 = vmatprep.subr.mxu1 %v6835_v18  ;;  %9636 = vmatprep.subr.mxu0 %v6867_v57  ;;  %v6866_v1 = vld [vmem:[%s11105_s21 + $0x3b0] sm:$0xff] }
0x15b3   : > { %v13840_v31 = vpop.f32.mrf.mxu1  ;;  %v13842_v60 = vpop.f32.mrf.mxu0  ;;  %7116 = vmatmul.mubr.f32.gmra.mxu1 %v6620_v22  ;;  %7261 = vmatmul.mubr.f32.gmra.mxu0 %v6622_v48  ;;  %v6653_v22 = vmax.f32 %v5333_v62, 0.0  ;;  %v6655_v48 = vmax.f32 %v5494_v50, 0.0  ;;  %v6654_v62 = vmax.f32 %v5492_v27, 0.0  ;;  %v5337_v50 = vadd.f32 %v15516_v41, %v13612_v8  ;;  %v15521_v27 = vld [vmem:[#allocation31_spill] sm:$0xff]  ;;  %v6817_v41 = vld [vmem:[%s11105_s21 + $0x228] sm:$0xff] }
0x15b4   : > { %15513 = vst [vmem:[#allocation40_spill] sm:$0xff] %v13842_v60  ;;  %7120 = vmatprep.mubr.f32.mxu1 %v6637_v59  ;;  %7265 = vmatprep.mubr.f32.mxu0 %v6639_v10 }
0x15b5   : > { %9557 = vmatpush3.msra.mxu1 %v6819_v43  ;;  %v13850_v18 = vpop.f32.mrf.mxu1  ;;  %v13852_v57 = vpop.f32.mrf.mxu0  ;;  %9637 = vmatpush3.msra.mxu0 %v6851_v44  ;;  %v6833_v43 = vld [vmem:[%s11105_s21 + $0x2a8] sm:$0xff] }
0x15b6   : > { %9558 = vmatprep.subr.mxu1 %v6834_v35  ;;  %9638 = vmatprep.subr.mxu0 %v6866_v1  ;;  %v6865_v44 = vld [vmem:[%s11105_s21 + $0x3a8] sm:$0xff] }
0x15b7   : > { %v13860_v59 = vpop.f32.mrf.mxu1  ;;  %v13862_v10 = vpop.f32.mrf.mxu0  ;;  %7121 = vmatmul.mubr.f32.gmra.mxu1 %v6636_v7  ;;  %7266 = vmatmul.mubr.f32.gmra.mxu0 %v6638_v26  ;;  %v15517_v35 = vld [vmem:[#allocation25_spill] sm:$0xff]  ;;  %v6669_v26 = vmax.f32 %v5339_v28, 0.0  ;;  %v6668_v28 = vmax.f32 %v5337_v50, 0.0 }
0x15b8   : > { %15514 = vst [vmem:[#allocation41_spill] sm:$0xff] %v13860_v59  ;;  %15515 = vst [vmem:[#allocation42_spill] sm:$0xff] %v13862_v10  ;;  %7125 = vmatprep.mubr.f32.mxu1 %v6653_v22  ;;  %7270 = vmatprep.mubr.f32.mxu0 %v6655_v48  ;;  %v5498_v1 = vadd.f32 %v15517_v35, %v13617_v32  ;;  %v6671_v22 = vmax.f32 %v5500_v29, 0.0  ;;  %v15520_v48 = vld [vmem:[#allocation30_spill] sm:$0xff]  ;;  %v5506_v10 = vadd.f32 %v15521_v27, %v13596_v61  ;;  %v6849_v35 = vld [vmem:[%s11105_s21 + $0x328] sm:$0xff] }
0x15b9   : > { %9559 = vmatpush3.msra.mxu1 %v6818_v47  ;;  %v13870_v59 = vpop.f32.mrf.mxu1  ;;  %v13872_v7 = vpop.f32.mrf.mxu0  ;;  %9639 = vmatpush3.msra.mxu0 %v6850_v54  ;;  %v5345_v17 = vadd.f32 %v15520_v48, %v13590_v15  ;;  %v6864_v54 = vld [vmem:[%s11105_s21 + $0x3a0] sm:$0xff] }
0x15ba   : > { %15518 = vst [vmem:[#allocation24_spill] sm:$0xff] %v13870_v59  ;;  %15519 = vst [vmem:[#allocation25_spill] sm:$0xff] %v13872_v7  ;;  %9560 = vmatprep.subr.mxu1 %v6833_v43  ;;  %9640 = vmatprep.subr.mxu0 %v6865_v44  ;;  %v6832_v7 = vld [vmem:[%s11105_s21 + $0x2a0] sm:$0xff]  ;;  %v6670_v29 = vmax.f32 %v5498_v1, 0.0 }
0x15bb   : > { %v13880_v47 = vpop.f32.mrf.mxu1  ;;  %v13882_v60 = vpop.f32.mrf.mxu0  ;;  %7126 = vmatmul.mubr.f32.gmra.mxu1 %v6652_v9  ;;  %7271 = vmatmul.mubr.f32.gmra.mxu0 %v6654_v62  ;;  %v15524_v48 = vld [vmem:[#allocation27_spill] sm:$0xff]  ;;  %v15525_v44 = vld [vmem:[#allocation28_spill] sm:$0xff]  ;;  %v6685_v62 = vmax.f32 %v5345_v17, 0.0  ;;  %v15532_v17 = vld [vmem:[#allocation26_spill] sm:$0xff] }
0x15bc   : > { %15522 = vst [vmem:[#allocation30_spill] sm:$0xff] %v13880_v47  ;;  %15523 = vst [vmem:[#allocation31_spill] sm:$0xff] %v13882_v60  ;;  %7130 = vmatprep.mubr.f32.mxu1 %v6669_v26  ;;  %7275 = vmatprep.mubr.f32.mxu0 %v6671_v22  ;;  %v5343_v43 = vadd.f32 %v15524_v48, %v13612_v8  ;;  %v5504_v27 = vadd.f32 %v15525_v44, %v13617_v32  ;;  %v6687_v26 = vmax.f32 %v5506_v10, 0.0  ;;  %v15528_v22 = vld [vmem:[#allocation34_spill] sm:$0xff]  ;;  %v15529_v1 = vld [vmem:[#allocation35_spill] sm:$0xff] }
0x15bd   : > { %9561 = vmatpush3.msra.mxu1 %v6817_v41  ;;  %v13890_v47 = vpop.f32.mrf.mxu1  ;;  %v13892_v9 = vpop.f32.mrf.mxu0  ;;  %9641 = vmatpush3.msra.mxu0 %v6849_v35  ;;  %v5351_v50 = vadd.f32 %v15528_v22, %v13590_v15  ;;  %v5512_v60 = vadd.f32 %v15529_v1, %v13596_v61  ;;  %v6816_v48 = vld [vmem:[%s11105_s21 + $0x220] sm:$0xff]  ;;  %v6863_v35 = vld [vmem:[%s11105_s21 + $0x398] sm:$0xff] }
0x15be   : > { %15526 = vst [vmem:[#allocation27_spill] sm:$0xff] %v13890_v47  ;;  %15527 = vst [vmem:[#allocation28_spill] sm:$0xff] %v13892_v9  ;;  %9562 = vmatprep.subr.mxu1 %v6832_v7  ;;  %9642 = vmatprep.subr.mxu0 %v6864_v54  ;;  %v6848_v44 = vld [vmem:[%s11105_s21 + $0x320] sm:$0xff]  ;;  %v6831_v9 = vld [vmem:[%s11105_s21 + $0x298] sm:$0xff]  ;;  %v6684_v22 = vmax.f32 %v5343_v43, 0.0  ;;  %v6686_v1 = vmax.f32 %v5504_v27, 0.0  ;;  %v5518_v27 = vadd.f32 %v13647_v51, %v13596_v61 }
0x15bf   : > { %v13900_v41 = vpop.f32.mrf.mxu1  ;;  %v13902_v59 = vpop.f32.mrf.mxu0  ;;  %7131 = vmatmul.mubr.f32.gmra.mxu1 %v6668_v28  ;;  %7276 = vmatmul.mubr.f32.gmra.mxu0 %v6670_v29  ;;  %v15533_v7 = vld [vmem:[#allocation32_spill] sm:$0xff]  ;;  %v15534_v47 = vld [vmem:[#allocation33_spill] sm:$0xff]  ;;  %v6701_v29 = vmax.f32 %v5351_v50, 0.0  ;;  %v15540_v51 = vsub.s32 5, %v15532_v17 }
0x15c0   : > { %15530 = vst [vmem:[#allocation34_spill] sm:$0xff] %v13900_v41  ;;  %15531 = vst [vmem:[#allocation35_spill] sm:$0xff] %v13902_v59  ;;  %7135 = vmatprep.mubr.f32.mxu1 %v6685_v62  ;;  %7280 = vmatprep.mubr.f32.mxu0 %v6687_v26  ;;  %v5349_v54 = vadd.f32 %v15533_v7, %v13612_v8  ;;  %v5510_v41 = vadd.f32 %v15534_v47, %v13617_v32  ;;  %v6703_v62 = vmax.f32 %v5512_v60, 0.0  ;;  %v15537_v26 = vld [vmem:[#allocation38_spill] sm:$0xff] }
0x15c1   : > { %9563 = vmatpush3.msra.mxu1 %v6816_v48  ;;  %v13911_v59 = vpop.f32.mrf.mxu1  ;;  %v13913_v28 = vpop.f32.mrf.mxu0  ;;  %9643 = vmatpush3.msra.mxu0 %v6848_v44  ;;  %v5357_v43 = vadd.f32 %v15537_v26, %v13590_v15  ;;  %v6815_v7 = vld [vmem:[%s11105_s21 + $0x218] sm:$0xff]  ;;  %v6830_v50 = vld [vmem:[%s11105_s21 + $0x290] sm:$0xff] }
0x15c2   : > { %15535 = vst [vmem:[#allocation32_spill] sm:$0xff] %v13911_v59  ;;  %15536 = vst [vmem:[#allocation33_spill] sm:$0xff] %v13913_v28  ;;  %9564 = vmatprep.subr.mxu1 %v6831_v9  ;;  %9644 = vmatprep.subr.mxu0 %v6863_v35  ;;  %v6847_v47 = vld [vmem:[%s11105_s21 + $0x318] sm:$0xff]  ;;  %v6862_v60 = vld [vmem:[%s11105_s21 + $0x390] sm:$0xff]  ;;  %v6700_v35 = vmax.f32 %v5349_v54, 0.0  ;;  %v6702_v48 = vmax.f32 %v5510_v41, 0.0  ;;  %v5363_v54 = vadd.f32 %v13670_v16, %v13590_v15 }
0x15c3   : > { %v13922_v10 = vpop.f32.mrf.mxu1  ;;  %v13924_v59 = vpop.f32.mrf.mxu0  ;;  %7136 = vmatmul.mubr.f32.gmra.mxu1 %v6684_v22  ;;  %7281 = vmatmul.mubr.f32.gmra.mxu0 %v6686_v1  ;;  %v15541_v9 = vld [vmem:[#allocation29_spill] sm:$0xff]  ;;  %v15542_v22 = vld [vmem:[#allocation36_spill] sm:$0xff]  ;;  %v5524_v41 = vadd.f32 %v13672_v5, %v13596_v61  ;;  %v15546_v16 = vsub.s32 4, %v15532_v17  ;;  %v15547_v5 = vsub.s32 6, %v15532_v17 }
0x15c4   : > { %15538 = vst [vmem:[#allocation38_spill] sm:$0xff] %v13922_v10  ;;  %15539 = vst [vmem:[#allocation43_spill] sm:$0xff] %v13924_v59  ;;  %v13933_v28 = vrot.slane %v15541_v9, %v15540_v51  ;;  %7140 = vmatprep.mubr.f32.mxu1 %v6701_v29  ;;  %7285 = vmatprep.mubr.f32.mxu0 %v6703_v62  ;;  %v5355_v1 = vadd.f32 %v15542_v22, %v13612_v8  ;;  %v15543_v59 = vld [vmem:[#allocation37_spill] sm:$0xff]  ;;  %v6717_v51 = vmax.f32 %v5357_v43, 0.0 }
0x15c5   : > { %v5516_v10 = vadd.f32 %v15543_v59, %v13617_v32  ;;  %9565 = vmatpush3.msra.mxu1 %v6815_v7  ;;  %v13939_v44 = vpop.f32.mrf.mxu1  ;;  %v13941_v26 = vpop.f32.mrf.mxu0  ;;  %9645 = vmatpush3.msra.mxu0 %v6847_v47  ;;  %v6719_v29 = vmax.f32 %v5518_v27, 0.0  ;;  %v6814_v62 = vld [vmem:[%s11105_s21 + $0x210] sm:$0xff]  ;;  %v15545_v7 = vsub.s32 7, %v15532_v17  ;;  %v6829_v43 = vld [vmem:[%s11105_s21 + $0x288] sm:$0xff]  ;;  %v13963_v61 = vrot.slane %v15541_v9, %v15546_v16 }
0x15c6   : > { %15544 = vst [vmem:[#allocation29_spill] sm:$0xff] %v13941_v26  ;;  %9566 = vmatprep.subr.mxu1 %v6830_v50  ;;  %9646 = vmatprep.subr.mxu0 %v6862_v60  ;;  %v6846_v59 = vld [vmem:[%s11105_s21 + $0x310] sm:$0xff]  ;;  %v6861_v15 = vld [vmem:[%s11105_s21 + $0x388] sm:$0xff]  ;;  %v13968_v27 = vrot.slane %v15541_v9, %v15547_v5  ;;  %v6716_v50 = vmax.f32 %v5355_v1, 0.0  ;;  %v5595_v1 = vadd.f32 %v13690_v53, %v13933_v28  ;;  %v6812_v5 = vld [vmem:[%s11105_s21 + $0x200] sm:$0xff] }
0x15c7   : > { %v13952_v22 = vrot.slane %v15541_v9, %v15545_v7  ;;  %v13954_v26 = vpop.f32.mrf.mxu1  ;;  %v13956_v47 = vpop.f32.mrf.mxu0  ;;  %7141 = vmatmul.mubr.f32.gmra.mxu1 %v6700_v35  ;;  %7286 = vmatmul.mubr.f32.gmra.mxu0 %v6702_v48  ;;  %v6718_v60 = vmax.f32 %v5516_v10, 0.0  ;;  %v5361_v48 = vadd.f32 %v13656_v52, %v13612_v8  ;;  %v15548_v35 = vld [vmem:[#allocation39_spill] sm:$0xff]  ;;  %v6733_v9 = vmax.f32 %v5363_v54, 0.0  ;;  %v6813_v10 = vld [vmem:[%s11105_s21 + $0x208] sm:$0xff] }
0x15c8   : > { %7145 = vmatprep.mubr.f32.mxu1 %v6717_v51  ;;  %7290 = vmatprep.mubr.f32.mxu0 %v6719_v29  ;;  %v5522_v7 = vadd.f32 %v15548_v35, %v13617_v32  ;;  %v6735_v51 = vmax.f32 %v5524_v41, 0.0  ;;  %v6845_v8 = vld [vmem:[%s11105_s21 + $0x308] sm:$0xff]  ;;  %v6860_v54 = vld [vmem:[%s11105_s21 + $0x380] sm:$0xff] }
0x15c9   : > { %9567 = vmatpush3.msra.mxu1 %v6814_v62  ;;  %v13974_v16 = vpop.f32.mrf.mxu1  ;;  %v13976_v17 = vpop.f32.mrf.mxu0  ;;  %9647 = vmatpush3.msra.mxu0 %v6846_v59  ;;  %v5756_v32 = vadd.f32 %v13692_v42, %v13952_v22  ;;  %v6828_v62 = vld [vmem:[%s11105_s21 + $0x280] sm:$0xff]  ;;  %v6732_v53 = vmax.f32 %v5361_v48, 0.0  ;;  %v5593_v59 = vadd.f32 %v13680_v49, %v13963_v61  ;;  %v5754_v42 = vadd.f32 %v13682_v40, %v13968_v27 }
0x15ca   : > { %9568 = vmatprep.subr.mxu1 %v6829_v43  ;;  %9648 = vmatprep.subr.mxu0 %v6861_v15  ;;  %v6734_v41 = vmax.f32 %v5522_v7, 0.0  ;;  %v5762_v48 = vadd.f32 %v13712_v25, %v13952_v22  ;;  %v6844_v49 = vld [vmem:[%s11105_s21 + $0x300] sm:$0xff]  ;;  %v5599_v25 = vadd.f32 %v13700_v2, %v13963_v61  ;;  %v6891_v2 = vld [vmem:[%s11105_s21 + $0x478] sm:$0xff] }
0x15cb   : > { %v13984_v52 = vpop.f32.mrf.mxu1  ;;  %v13986_v29 = vpop.f32.mrf.mxu0  ;;  %7146 = vmatmul.mubr.f32.gmra.mxu1 %v6716_v50  ;;  %7291 = vmatmul.mubr.f32.gmra.mxu0 %v6718_v60  ;;  %v6497_v50 = vmax.f32 %v5595_v1, 0.0  ;;  %v5601_v60 = vadd.f32 %v13710_v30, %v13933_v28  ;;  %v6499_v40 = vmax.f32 %v5756_v32, 0.0  ;;  %v6496_v30 = vmax.f32 %v5593_v59, 0.0 }
0x15cc   : > { %7150 = vmatprep.mubr.f32.mxu1 %v6733_v9  ;;  %7295 = vmatprep.mubr.f32.mxu0 %v6735_v51  ;;  %v6907_v9 = vld [vmem:[%s11105_s21 + $0x4f8] sm:$0xff]  ;;  %v6498_v1 = vmax.f32 %v5754_v42, 0.0 }
0x15cd   : > { %9569 = vmatpush3.msra.mxu1 %v6813_v10  ;;  %v13994_v43 = vpop.f32.mrf.mxu1  ;;  %v13996_v15 = vpop.f32.mrf.mxu0  ;;  %9649 = vmatpush3.msra.mxu0 %v6845_v8  ;;  %v6939_v51 = vld [vmem:[%s11105_s21 + $0x5f8] sm:$0xff]  ;;  %v5760_v10 = vadd.f32 %v13702_v58, %v13968_v27 }
0x15ce   : > { %9570 = vmatprep.subr.mxu1 %v6828_v62  ;;  %9650 = vmatprep.subr.mxu0 %v6860_v54  ;;  %v6513_v62 = vmax.f32 %v5601_v60, 0.0  ;;  %v6515_v54 = vmax.f32 %v5762_v48, 0.0  ;;  %v6923_v58 = vld [vmem:[%s11105_s21 + $0x578] sm:$0xff]  ;;  %v5766_v48 = vadd.f32 %v13722_v4, %v13968_v27  ;;  %v6922_v4 = vld [vmem:[%s11105_s21 + $0x570] sm:$0xff] }
0x15cf   : > { %v14004_v35 = vpop.f32.mrf.mxu1  ;;  %v14006_v7 = vpop.f32.mrf.mxu0  ;;  %7151 = vmatmul.mubr.f32.gmra.mxu1 %v6732_v53  ;;  %7296 = vmatmul.mubr.f32.gmra.mxu0 %v6734_v41  ;;  %v5607_v53 = vadd.f32 %v13730_v36, %v13933_v28  ;;  %v5768_v41 = vadd.f32 %v13732_v0, %v13952_v22  ;;  %v6512_v36 = vmax.f32 %v5599_v25, 0.0  ;;  %v6514_v60 = vmax.f32 %v5760_v10, 0.0 }
0x15d0   : > { %9571 = vmatpush3.msra.mxu1 %v6812_v5  ;;  %7365 = vmatprep.mubr.f32.mxu1 %v6497_v50  ;;  %v6906_v5 = vld [vmem:[%s11105_s21 + $0x4f0] sm:$0xff]  ;;  %v5605_v0 = vadd.f32 %v13720_v56, %v13963_v61 }
0x15d1   : > { %7510 = vmatprep.mubr.f32.mxu0 %v6499_v40  ;;  %v14014_v8 = vpop.f32.mrf.mxu1  ;;  %v14016_v32 = vpop.f32.mrf.mxu0  ;;  %9651 = vmatpush3.msra.mxu0 %v6844_v49  ;;  %v6938_v50 = vld [vmem:[%s11105_s21 + $0x5f0] sm:$0xff] }
0x15d2   : > { %9700 = vmatprep.subr.mxu1 %v6907_v9  ;;  %9780 = vmatprep.subr.mxu0 %v6939_v51  ;;  %v6529_v9 = vmax.f32 %v5607_v53, 0.0  ;;  %v6531_v51 = vmax.f32 %v5768_v41, 0.0  ;;  %v6890_v56 = vld [vmem:[%s11105_s21 + $0x470] sm:$0xff]  ;;  %v6530_v53 = vmax.f32 %v5766_v48, 0.0  ;;  %v5772_v41 = vadd.f32 %v13742_v46, %v13968_v27  ;;  %v6921_v46 = vld [vmem:[%s11105_s21 + $0x568] sm:$0xff] }
0x15d3   : > { %v14024_v59 = vpop.f32.mrf.mxu1  ;;  %v14026_v42 = vpop.f32.mrf.mxu0  ;;  %7366 = vmatmul.mubr.f32.vlgmr.msra.gmra.mxu1 %v6496_v30  ;;  %7511 = vmatmul.mubr.f32.vlgmr.msra.gmra.mxu0 %v6498_v1  ;;  %v5613_v30 = vadd.f32 %v13750_v21, %v13933_v28  ;;  %v5774_v1 = vadd.f32 %v13752_v24, %v13952_v22  ;;  %v6528_v21 = vmax.f32 %v5605_v0, 0.0  ;;  %v5611_v24 = vadd.f32 %v13740_v45, %v13963_v61  ;;  %v6889_v45 = vld [vmem:[%s11105_s21 + $0x468] sm:$0xff] }
0x15d4   : > { %7370 = vmatprep.mubr.f32.mxu1 %v6513_v62  ;;  %7515 = vmatprep.mubr.f32.mxu0 %v6515_v54  ;;  %v6905_v62 = vld [vmem:[%s11105_s21 + $0x4e8] sm:$0xff] }
0x15d5   : > { %9701 = vmatpush3.msra.mxu1 %v6891_v2  ;;  %v14034_v49 = vpop.f32.mrf.mxu1  ;;  %v14036_v40 = vpop.f32.mrf.mxu0  ;;  %9781 = vmatpush3.msra.mxu0 %v6923_v58  ;;  %v6937_v54 = vld [vmem:[%s11105_s21 + $0x5e8] sm:$0xff] }
0x15d6   : > { %9702 = vmatprep.subr.mxu1 %v6906_v5  ;;  %9782 = vmatprep.subr.mxu0 %v6938_v50  ;;  %v6545_v5 = vmax.f32 %v5613_v30, 0.0  ;;  %v6547_v50 = vmax.f32 %v5774_v1, 0.0  ;;  %v6546_v30 = vmax.f32 %v5772_v41, 0.0  ;;  %v5778_v1 = vadd.f32 %v13762_v23, %v13968_v27  ;;  %v6920_v23 = vld [vmem:[%s11105_s21 + $0x560] sm:$0xff] }
0x15d7   : > { %v14044_v25 = vpop.f32.mrf.mxu1  ;;  %v14046_v10 = vpop.f32.mrf.mxu0  ;;  %7371 = vmatmul.mubr.f32.gmra.mxu1 %v6512_v36  ;;  %7516 = vmatmul.mubr.f32.gmra.mxu0 %v6514_v60  ;;  %v5619_v36 = vadd.f32 %v13770_v13, %v13933_v28  ;;  %v5780_v60 = vadd.f32 %v13772_v11, %v13952_v22  ;;  %v6544_v13 = vmax.f32 %v5611_v24, 0.0  ;;  %v5617_v11 = vadd.f32 %v13760_v39, %v13963_v61  ;;  %v6888_v39 = vld [vmem:[%s11105_s21 + $0x460] sm:$0xff] }
0x15d8   : > { %7375 = vmatprep.mubr.f32.mxu1 %v6529_v9  ;;  %7520 = vmatprep.mubr.f32.mxu0 %v6531_v51  ;;  %v6904_v9 = vld [vmem:[%s11105_s21 + $0x4e0] sm:$0xff] }
0x15d9   : > { %9703 = vmatpush3.msra.mxu1 %v6890_v56  ;;  %v14054_v2 = vpop.f32.mrf.mxu1  ;;  %v14056_v58 = vpop.f32.mrf.mxu0  ;;  %9783 = vmatpush3.msra.mxu0 %v6922_v4  ;;  %v6936_v51 = vld [vmem:[%s11105_s21 + $0x5e0] sm:$0xff] }
0x15da   : > { %9704 = vmatprep.subr.mxu1 %v6905_v62  ;;  %9784 = vmatprep.subr.mxu0 %v6937_v54  ;;  %v6561_v62 = vmax.f32 %v5619_v36, 0.0  ;;  %v6563_v54 = vmax.f32 %v5780_v60, 0.0  ;;  %v6562_v36 = vmax.f32 %v5778_v1, 0.0  ;;  %v5784_v60 = vadd.f32 %v13782_v19, %v13968_v27  ;;  %v6919_v19 = vld [vmem:[%s11105_s21 + $0x558] sm:$0xff] }
0x15db   : > { %v14064_v0 = vpop.f32.mrf.mxu1  ;;  %v14066_v48 = vpop.f32.mrf.mxu0  ;;  %7376 = vmatmul.mubr.f32.gmra.mxu1 %v6528_v21  ;;  %7521 = vmatmul.mubr.f32.gmra.mxu0 %v6530_v53  ;;  %v5625_v21 = vadd.f32 %v13790_v14, %v13933_v28  ;;  %v5786_v53 = vadd.f32 %v13792_v33, %v13952_v22  ;;  %v6560_v14 = vmax.f32 %v5617_v11, 0.0  ;;  %v5623_v33 = vadd.f32 %v13780_v38, %v13963_v61  ;;  %v6887_v38 = vld [vmem:[%s11105_s21 + $0x458] sm:$0xff] }
0x15dc   : > { %7380 = vmatprep.mubr.f32.mxu1 %v6545_v5  ;;  %7525 = vmatprep.mubr.f32.mxu0 %v6547_v50  ;;  %v6903_v5 = vld [vmem:[%s11105_s21 + $0x4d8] sm:$0xff] }
0x15dd   : > { %9705 = vmatpush3.msra.mxu1 %v6889_v45  ;;  %v14074_v56 = vpop.f32.mrf.mxu1  ;;  %v14076_v4 = vpop.f32.mrf.mxu0  ;;  %9785 = vmatpush3.msra.mxu0 %v6921_v46  ;;  %v6935_v50 = vld [vmem:[%s11105_s21 + $0x5d8] sm:$0xff] }
0x15de   : > { %9706 = vmatprep.subr.mxu1 %v6904_v9  ;;  %9786 = vmatprep.subr.mxu0 %v6936_v51  ;;  %v6577_v9 = vmax.f32 %v5625_v21, 0.0  ;;  %v6579_v51 = vmax.f32 %v5786_v53, 0.0  ;;  %v6578_v21 = vmax.f32 %v5784_v60, 0.0  ;;  %v5790_v53 = vadd.f32 %v13802_v34, %v13968_v27  ;;  %v6918_v34 = vld [vmem:[%s11105_s21 + $0x550] sm:$0xff] }
0x15df   : > { %v14084_v24 = vpop.f32.mrf.mxu1  ;;  %v14086_v41 = vpop.f32.mrf.mxu0  ;;  %7381 = vmatmul.mubr.f32.gmra.mxu1 %v6544_v13  ;;  %7526 = vmatmul.mubr.f32.gmra.mxu0 %v6546_v30  ;;  %v5631_v13 = vadd.f32 %v13810_v55, %v13933_v28  ;;  %v5792_v30 = vadd.f32 %v13812_v37, %v13952_v22  ;;  %v6576_v55 = vmax.f32 %v5623_v33, 0.0  ;;  %v5629_v37 = vadd.f32 %v13800_v12, %v13963_v61  ;;  %v6886_v12 = vld [vmem:[%s11105_s21 + $0x450] sm:$0xff] }
0x15e0   : > { %7385 = vmatprep.mubr.f32.mxu1 %v6561_v62  ;;  %7530 = vmatprep.mubr.f32.mxu0 %v6563_v54  ;;  %v6902_v62 = vld [vmem:[%s11105_s21 + $0x4d0] sm:$0xff] }
0x15e1   : > { %9707 = vmatpush3.msra.mxu1 %v6888_v39  ;;  %v14094_v45 = vpop.f32.mrf.mxu1  ;;  %v14096_v46 = vpop.f32.mrf.mxu0  ;;  %9787 = vmatpush3.msra.mxu0 %v6920_v23  ;;  %v6934_v54 = vld [vmem:[%s11105_s21 + $0x5d0] sm:$0xff] }
0x15e2   : > { %9708 = vmatprep.subr.mxu1 %v6903_v5  ;;  %9788 = vmatprep.subr.mxu0 %v6935_v50  ;;  %v6593_v5 = vmax.f32 %v5631_v13, 0.0  ;;  %v6595_v50 = vmax.f32 %v5792_v30, 0.0  ;;  %v6594_v13 = vmax.f32 %v5790_v53, 0.0  ;;  %v5796_v30 = vadd.f32 %v13822_v6, %v13968_v27  ;;  %v6917_v6 = vld [vmem:[%s11105_s21 + $0x548] sm:$0xff] }
0x15e3   : > { %v14104_v11 = vpop.f32.mrf.mxu1  ;;  %v14106_v1 = vpop.f32.mrf.mxu0  ;;  %7386 = vmatmul.mubr.f32.gmra.mxu1 %v6560_v14  ;;  %7531 = vmatmul.mubr.f32.gmra.mxu0 %v6562_v36  ;;  %v5637_v14 = vadd.f32 %v13830_v3, %v13933_v28  ;;  %v5798_v36 = vadd.f32 %v13832_v20, %v13952_v22  ;;  %v6592_v3 = vmax.f32 %v5629_v37, 0.0  ;;  %v5635_v20 = vadd.f32 %v13820_v63, %v13963_v61  ;;  %v6885_v63 = vld [vmem:[%s11105_s21 + $0x448] sm:$0xff] }
0x15e4   : > { %7390 = vmatprep.mubr.f32.mxu1 %v6577_v9  ;;  %7535 = vmatprep.mubr.f32.mxu0 %v6579_v51  ;;  %v6901_v9 = vld [vmem:[%s11105_s21 + $0x4c8] sm:$0xff] }
0x15e5   : > { %9709 = vmatpush3.msra.mxu1 %v6887_v38  ;;  %v14114_v39 = vpop.f32.mrf.mxu1  ;;  %v14116_v23 = vpop.f32.mrf.mxu0  ;;  %9789 = vmatpush3.msra.mxu0 %v6919_v19  ;;  %v6933_v51 = vld [vmem:[%s11105_s21 + $0x5c8] sm:$0xff] }
0x15e6   : > { %9710 = vmatprep.subr.mxu1 %v6902_v62  ;;  %9790 = vmatprep.subr.mxu0 %v6934_v54  ;;  %v6609_v62 = vmax.f32 %v5637_v14, 0.0  ;;  %v6611_v54 = vmax.f32 %v5798_v36, 0.0  ;;  %v6610_v14 = vmax.f32 %v5796_v30, 0.0  ;;  %v15551_v36 = vld [vmem:[#allocation40_spill] sm:$0xff]  ;;  %v15553_v30 = vld [vmem:[#allocation25_spill] sm:$0xff] }
0x15e7   : > { %v14124_v33 = vpop.f32.mrf.mxu1  ;;  %v14126_v60 = vpop.f32.mrf.mxu0  ;;  %7391 = vmatmul.mubr.f32.gmra.mxu1 %v6576_v55  ;;  %7536 = vmatmul.mubr.f32.gmra.mxu0 %v6578_v21  ;;  %v5643_v55 = vadd.f32 %v13850_v18, %v13933_v28  ;;  %v5804_v21 = vadd.f32 %v13852_v57, %v13952_v22  ;;  %v6608_v18 = vmax.f32 %v5635_v20, 0.0  ;;  %v5641_v57 = vadd.f32 %v13840_v31, %v13963_v61  ;;  %v6884_v31 = vld [vmem:[%s11105_s21 + $0x440] sm:$0xff] }
0x15e8   : > { %7395 = vmatprep.mubr.f32.mxu1 %v6593_v5  ;;  %7540 = vmatprep.mubr.f32.mxu0 %v6595_v50  ;;  %v6900_v5 = vld [vmem:[%s11105_s21 + $0x4c0] sm:$0xff] }
0x15e9   : > { %9711 = vmatpush3.msra.mxu1 %v6886_v12  ;;  %v14134_v38 = vpop.f32.mrf.mxu1  ;;  %v14136_v19 = vpop.f32.mrf.mxu0  ;;  %9791 = vmatpush3.msra.mxu0 %v6918_v34  ;;  %v6932_v50 = vld [vmem:[%s11105_s21 + $0x5c0] sm:$0xff]  ;;  %v5802_v12 = vadd.f32 %v15551_v36, %v13968_v27 }
0x15ea   : > { %9712 = vmatprep.subr.mxu1 %v6901_v9  ;;  %9792 = vmatprep.subr.mxu0 %v6933_v51  ;;  %v6625_v51 = vmax.f32 %v5643_v55, 0.0  ;;  %v6624_v55 = vmax.f32 %v5641_v57, 0.0 }
0x15eb   : > { %v14144_v37 = vpop.f32.mrf.mxu1  ;;  %v14146_v53 = vpop.f32.mrf.mxu0  ;;  %7396 = vmatmul.mubr.f32.gmra.mxu1 %v6592_v3  ;;  %7541 = vmatmul.mubr.f32.gmra.mxu0 %v6594_v13  ;;  %v6627_v3 = vmax.f32 %v5804_v21, 0.0  ;;  %v15552_v13 = vld [vmem:[#allocation24_spill] sm:$0xff]  ;;  %v6626_v21 = vmax.f32 %v5802_v12, 0.0 }
0x15ec   : > { %15549 = vst [vmem:[#allocation36_spill] sm:$0xff] %v14144_v37  ;;  %15550 = vst [vmem:[#allocation37_spill] sm:$0xff] %v14146_v53  ;;  %7400 = vmatprep.mubr.f32.mxu1 %v6609_v62  ;;  %7545 = vmatprep.mubr.f32.mxu0 %v6611_v54  ;;  %v5649_v20 = vadd.f32 %v15552_v13, %v13933_v28  ;;  %v5810_v62 = vadd.f32 %v15553_v30, %v13952_v22  ;;  %v6916_v54 = vld [vmem:[%s11105_s21 + $0x540] sm:$0xff]  ;;  %v6899_v53 = vld [vmem:[%s11105_s21 + $0x4b8] sm:$0xff] }
0x15ed   : > { %9713 = vmatpush3.msra.mxu1 %v6885_v63  ;;  %v14154_v34 = vpop.f32.mrf.mxu1  ;;  %v14156_v9 = vpop.f32.mrf.mxu0  ;;  %9793 = vmatpush3.msra.mxu0 %v6917_v6  ;;  %v6931_v6 = vld [vmem:[%s11105_s21 + $0x5b8] sm:$0xff]  ;;  %v15556_v13 = vld [vmem:[#allocation41_spill] sm:$0xff]  ;;  %v15561_v12 = vld [vmem:[#allocation28_spill] sm:$0xff] }
0x15ee   : > { %9714 = vmatprep.subr.mxu1 %v6900_v5  ;;  %9794 = vmatprep.subr.mxu0 %v6932_v50  ;;  %v5647_v5 = vadd.f32 %v15556_v13, %v13963_v61  ;;  %v15557_v50 = vld [vmem:[#allocation42_spill] sm:$0xff] }
0x15ef   : > { %v14164_v63 = vpop.f32.mrf.mxu1  ;;  %v14166_v36 = vpop.f32.mrf.mxu0  ;;  %7401 = vmatmul.mubr.f32.gmra.mxu1 %v6608_v18  ;;  %7546 = vmatmul.mubr.f32.gmra.mxu0 %v6610_v14  ;;  %v5808_v30 = vadd.f32 %v15557_v50, %v13968_v27  ;;  %v6641_v14 = vmax.f32 %v5649_v20, 0.0  ;;  %v6883_v13 = vld [vmem:[%s11105_s21 + $0x438] sm:$0xff] }
0x15f0   : > { %15554 = vst [vmem:[#allocation39_spill] sm:$0xff] %v14164_v63  ;;  %15555 = vst [vmem:[#allocation40_spill] sm:$0xff] %v14166_v36  ;;  %7405 = vmatprep.mubr.f32.mxu1 %v6625_v51  ;;  %7550 = vmatprep.mubr.f32.mxu0 %v6627_v3  ;;  %v6643_v51 = vmax.f32 %v5810_v62, 0.0  ;;  %v15560_v3 = vld [vmem:[#allocation27_spill] sm:$0xff]  ;;  %v5816_v36 = vadd.f32 %v15561_v12, %v13952_v22  ;;  %v6640_v20 = vmax.f32 %v5647_v5, 0.0 }
0x15f1   : > { %9715 = vmatpush3.msra.mxu1 %v6884_v31  ;;  %v14174_v63 = vpop.f32.mrf.mxu1  ;;  %v14176_v18 = vpop.f32.mrf.mxu0  ;;  %9795 = vmatpush3.msra.mxu0 %v6916_v54  ;;  %v5655_v57 = vadd.f32 %v15560_v3, %v13933_v28  ;;  %v6915_v50 = vld [vmem:[%s11105_s21 + $0x538] sm:$0xff]  ;;  %v6930_v54 = vld [vmem:[%s11105_s21 + $0x5b0] sm:$0xff]  ;;  %v6642_v62 = vmax.f32 %v5808_v30, 0.0 }
0x15f2   : > { %15558 = vst [vmem:[#allocation24_spill] sm:$0xff] %v14174_v63  ;;  %15559 = vst [vmem:[#allocation25_spill] sm:$0xff] %v14176_v18  ;;  %9716 = vmatprep.subr.mxu1 %v6899_v53  ;;  %9796 = vmatprep.subr.mxu0 %v6931_v6  ;;  %v6898_v18 = vld [vmem:[%s11105_s21 + $0x4b0] sm:$0xff]  ;;  %v15565_v6 = vld [vmem:[#allocation31_spill] sm:$0xff] }
0x15f3   : > { %v14184_v31 = vpop.f32.mrf.mxu1  ;;  %v14186_v37 = vpop.f32.mrf.mxu0  ;;  %7406 = vmatmul.mubr.f32.gmra.mxu1 %v6624_v55  ;;  %7551 = vmatmul.mubr.f32.gmra.mxu0 %v6626_v21  ;;  %v15564_v3 = vld [vmem:[#allocation30_spill] sm:$0xff]  ;;  %v5814_v12 = vadd.f32 %v15565_v6, %v13968_v27  ;;  %v6657_v21 = vmax.f32 %v5655_v57, 0.0  ;;  %v15568_v30 = vld [vmem:[#allocation33_spill] sm:$0xff] }
0x15f4   : > { %15562 = vst [vmem:[#allocation41_spill] sm:$0xff] %v14184_v31  ;;  %15563 = vst [vmem:[#allocation42_spill] sm:$0xff] %v14186_v37  ;;  %7410 = vmatprep.mubr.f32.mxu1 %v6641_v14  ;;  %7555 = vmatprep.mubr.f32.mxu0 %v6643_v51  ;;  %v5653_v53 = vadd.f32 %v15564_v3, %v13963_v61  ;;  %v6659_v14 = vmax.f32 %v5816_v36, 0.0  ;;  %v15567_v51 = vld [vmem:[#allocation32_spill] sm:$0xff]  ;;  %v5822_v37 = vadd.f32 %v15568_v30, %v13952_v22  ;;  %v6882_v3 = vld [vmem:[%s11105_s21 + $0x430] sm:$0xff] }
0x15f5   : > { %9717 = vmatpush3.msra.mxu1 %v6883_v13  ;;  %v14194_v31 = vpop.f32.mrf.mxu1  ;;  %v14196_v55 = vpop.f32.mrf.mxu0  ;;  %9797 = vmatpush3.msra.mxu0 %v6915_v50  ;;  %v5661_v5 = vadd.f32 %v15567_v51, %v13933_v28  ;;  %v6914_v6 = vld [vmem:[%s11105_s21 + $0x530] sm:$0xff]  ;;  %v6929_v50 = vld [vmem:[%s11105_s21 + $0x5a8] sm:$0xff]  ;;  %v6658_v57 = vmax.f32 %v5814_v12, 0.0 }
0x15f6   : > { %15566 = vst [vmem:[#allocation27_spill] sm:$0xff] %v14196_v55  ;;  %9718 = vmatprep.subr.mxu1 %v6898_v18  ;;  %9798 = vmatprep.subr.mxu0 %v6930_v54  ;;  %v6897_v55 = vld [vmem:[%s11105_s21 + $0x4a8] sm:$0xff]  ;;  %v6656_v36 = vmax.f32 %v5653_v53, 0.0  ;;  %v15571_v51 = vld [vmem:[#allocation34_spill] sm:$0xff]  ;;  %v15572_v54 = vld [vmem:[#allocation35_spill] sm:$0xff]  ;;  %v5667_v53 = vadd.f32 %v13939_v44, %v13933_v28 }
0x15f7   : > { %v14204_v13 = vpop.f32.mrf.mxu1  ;;  %v14206_v63 = vpop.f32.mrf.mxu0  ;;  %7411 = vmatmul.mubr.f32.gmra.mxu1 %v6640_v20  ;;  %7556 = vmatmul.mubr.f32.gmra.mxu0 %v6642_v62  ;;  %v5659_v18 = vadd.f32 %v15571_v51, %v13963_v61  ;;  %v5820_v30 = vadd.f32 %v15572_v54, %v13968_v27  ;;  %v6673_v62 = vmax.f32 %v5661_v5, 0.0  ;;  %v15574_v12 = vld [vmem:[#allocation29_spill] sm:$0xff]  ;;  %v15577_v5 = vld [vmem:[#allocation38_spill] sm:$0xff] }
0x15f8   : > { %15569 = vst [vmem:[#allocation28_spill] sm:$0xff] %v14204_v13  ;;  %15570 = vst [vmem:[#allocation30_spill] sm:$0xff] %v14206_v63  ;;  %7415 = vmatprep.mubr.f32.mxu1 %v6657_v21  ;;  %7560 = vmatprep.mubr.f32.mxu0 %v6659_v14  ;;  %v6675_v21 = vmax.f32 %v5822_v37, 0.0  ;;  %v5828_v14 = vadd.f32 %v15574_v12, %v13952_v22  ;;  %v6881_v51 = vld [vmem:[%s11105_s21 + $0x428] sm:$0xff] }
0x15f9   : > { %9719 = vmatpush3.msra.mxu1 %v6882_v3  ;;  %v14214_v13 = vpop.f32.mrf.mxu1  ;;  %v14216_v20 = vpop.f32.mrf.mxu0  ;;  %9799 = vmatpush3.msra.mxu0 %v6914_v6  ;;  %v6913_v54 = vld [vmem:[%s11105_s21 + $0x528] sm:$0xff]  ;;  %v6928_v6 = vld [vmem:[%s11105_s21 + $0x5a0] sm:$0xff]  ;;  %v6672_v44 = vmax.f32 %v5659_v18, 0.0  ;;  %v6674_v37 = vmax.f32 %v5820_v30, 0.0  ;;  %v5673_v18 = vadd.f32 %v13974_v16, %v13933_v28  ;;  %v5834_v30 = vadd.f32 %v13976_v17, %v13952_v22 }
0x15fa   : > { %15573 = vst [vmem:[#allocation31_spill] sm:$0xff] %v14216_v20  ;;  %9720 = vmatprep.subr.mxu1 %v6897_v55  ;;  %9800 = vmatprep.subr.mxu0 %v6929_v50  ;;  %v6896_v20 = vld [vmem:[%s11105_s21 + $0x4a0] sm:$0xff]  ;;  %v5665_v55 = vadd.f32 %v15577_v5, %v13963_v61  ;;  %v5671_v17 = vadd.f32 %v13954_v26, %v13963_v61  ;;  %v6879_v26 = vld [vmem:[%s11105_s21 + $0x418] sm:$0xff] }
0x15fb   : > { %v14224_v3 = vpop.f32.mrf.mxu1  ;;  %v14226_v63 = vpop.f32.mrf.mxu0  ;;  %7416 = vmatmul.mubr.f32.gmra.mxu1 %v6656_v36  ;;  %7561 = vmatmul.mubr.f32.gmra.mxu0 %v6658_v57  ;;  %v15578_v50 = vld [vmem:[#allocation43_spill] sm:$0xff]  ;;  %v6689_v57 = vmax.f32 %v5667_v53, 0.0 }
0x15fc   : > { %15575 = vst [vmem:[#allocation32_spill] sm:$0xff] %v14224_v3  ;;  %15576 = vst [vmem:[#allocation33_spill] sm:$0xff] %v14226_v63  ;;  %7420 = vmatprep.mubr.f32.mxu1 %v6673_v62  ;;  %7565 = vmatprep.mubr.f32.mxu0 %v6675_v21  ;;  %v5826_v12 = vadd.f32 %v15578_v50, %v13968_v27  ;;  %v6691_v62 = vmax.f32 %v5828_v14, 0.0  ;;  %v6880_v21 = vld [vmem:[%s11105_s21 + $0x420] sm:$0xff]  ;;  %v6895_v63 = vld [vmem:[%s11105_s21 + $0x498] sm:$0xff]  ;;  %v6688_v16 = vmax.f32 %v5665_v55, 0.0 }
0x15fd   : > { %9721 = vmatpush3.msra.mxu1 %v6881_v51  ;;  %v14234_v3 = vpop.f32.mrf.mxu1  ;;  %v14236_v36 = vpop.f32.mrf.mxu0  ;;  %9801 = vmatpush3.msra.mxu0 %v6913_v54  ;;  %v6912_v5 = vld [vmem:[%s11105_s21 + $0x520] sm:$0xff]  ;;  %v6927_v54 = vld [vmem:[%s11105_s21 + $0x598] sm:$0xff]  ;;  %v5679_v55 = vadd.f32 %v13994_v43, %v13933_v28 }
0x15fe   : > { %9722 = vmatprep.subr.mxu1 %v6896_v20  ;;  %9802 = vmatprep.subr.mxu0 %v6928_v6  ;;  %v6690_v53 = vmax.f32 %v5826_v12, 0.0  ;;  %v5832_v20 = vadd.f32 %v13956_v47, %v13968_v27  ;;  %v5840_v12 = vadd.f32 %v13996_v15, %v13952_v22  ;;  %v6911_v47 = vld [vmem:[%s11105_s21 + $0x518] sm:$0xff]  ;;  %v6704_v15 = vmax.f32 %v5671_v17, 0.0 }
0x15ff   : > { %v14244_v51 = vpop.f32.mrf.mxu1  ;;  %v14246_v50 = vpop.f32.mrf.mxu0  ;;  %7421 = vmatmul.mubr.f32.gmra.mxu1 %v6672_v44  ;;  %7566 = vmatmul.mubr.f32.gmra.mxu0 %v6674_v37  ;;  %v6705_v44 = vmax.f32 %v5673_v18, 0.0  ;;  %v6707_v37 = vmax.f32 %v5834_v30, 0.0  ;;  %v6894_v18 = vld [vmem:[%s11105_s21 + $0x490] sm:$0xff]  ;;  %v5685_v17 = vadd.f32 %v14014_v8, %v13933_v28  ;;  %v6925_v28 = vld [vmem:[%s11105_s21 + $0x588] sm:$0xff] }
0x1600   : > { %15579 = vst [vmem:[#allocation34_spill] sm:$0xff] %v14246_v50  ;;  %7425 = vmatprep.mubr.f32.mxu1 %v6689_v57  ;;  %7570 = vmatprep.mubr.f32.mxu0 %v6691_v62  ;;  %v14265_v57 = vld [vmem:[%s11100_s30 + $0x8] sm:$0xff]  ;;  %v6926_v30 = vld [vmem:[%s11105_s21 + $0x590] sm:$0xff] }
0x1601   : > { %9723 = vmatpush3.msra.mxu1 %v6880_v21  ;;  %v14254_v14 = vpop.f32.mrf.mxu1  ;;  %v14256_v6 = vpop.f32.mrf.mxu0  ;;  %9803 = vmatpush3.msra.mxu0 %v6912_v5  ;;  %v15582_v5 = vld [vmem:[#allocation26_spill] sm:$0xff] }
0x1602   : > { %9724 = vmatprep.subr.mxu1 %v6895_v63  ;;  %9804 = vmatprep.subr.mxu0 %v6927_v54  ;;  %v15583_v50 = vsub.s32 1, %v15582_v5  ;;  %v6706_v63 = vmax.f32 %v5832_v20, 0.0  ;;  %v5677_v54 = vadd.f32 %v13984_v52, %v13963_v61  ;;  %v5846_v20 = vadd.f32 %v14016_v32, %v13952_v22  ;;  %v6878_v52 = vld [vmem:[%s11105_s21 + $0x410] sm:$0xff] }
0x1603   : > { %v14267_v62 = vpop.f32.mrf.mxu1  ;;  %v14269_v21 = vpop.f32.mrf.mxu0  ;;  %7426 = vmatmul.mubr.f32.gmra.mxu1 %v6688_v16  ;;  %7571 = vmatmul.mubr.f32.gmra.mxu0 %v6690_v53  ;;  %v5838_v16 = vadd.f32 %v13986_v29, %v13968_v27  ;;  %v6910_v29 = vld [vmem:[%s11105_s21 + $0x510] sm:$0xff]  ;;  %v15585_v8 = vsub.s32 0, %v15582_v5  ;;  %v15586_v32 = vsub.s32 2, %v15582_v5 }
0x1604   : > { %15580 = vst [vmem:[#allocation35_spill] sm:$0xff] %v14267_v62  ;;  %15581 = vst [vmem:[#allocation29_spill] sm:$0xff] %v14269_v21  ;;  %v14276_v43 = vrot.slane %v14265_v57, %v15583_v50  ;;  %7430 = vmatprep.mubr.f32.mxu1 %v6705_v44  ;;  %7575 = vmatprep.mubr.f32.mxu0 %v6707_v37  ;;  %v6721_v50 = vmax.f32 %v5679_v55, 0.0  ;;  %v6723_v44 = vmax.f32 %v5840_v12, 0.0  ;;  %v15584_v37 = vsub.s32 3, %v15582_v5  ;;  %v6893_v55 = vld [vmem:[%s11105_s21 + $0x488] sm:$0xff] }
0x1605   : > { %9725 = vmatpush3.msra.mxu1 %v6879_v26  ;;  %v14282_v53 = vpop.f32.mrf.mxu1  ;;  %v14284_v21 = vpop.f32.mrf.mxu0  ;;  %9805 = vmatpush3.msra.mxu0 %v6911_v47  ;;  %v14306_v22 = vrot.slane %v14265_v57, %v15585_v8  ;;  %v14311_v12 = vrot.slane %v14265_v57, %v15586_v32  ;;  %v6737_v32 = vmax.f32 %v5685_v17, 0.0  ;;  %v6924_v17 = vld [vmem:[%s11105_s21 + $0x580] sm:$0xff] }
0x1606   : > { %9726 = vmatprep.subr.mxu1 %v6894_v18  ;;  %9806 = vmatprep.subr.mxu0 %v6926_v30  ;;  %v14295_v26 = vrot.slane %v14265_v57, %v15584_v37  ;;  %v6720_v18 = vmax.f32 %v5677_v54, 0.0  ;;  %v6722_v30 = vmax.f32 %v5838_v16, 0.0  ;;  %v5917_v54 = vadd.f32 %v14034_v49, %v14276_v43  ;;  %v6877_v16 = vld [vmem:[%s11105_s21 + $0x408] sm:$0xff] }
0x1607   : > { %v14297_v62 = vpop.f32.mrf.mxu1  ;;  %v14299_v47 = vpop.f32.mrf.mxu0  ;;  %7431 = vmatmul.mubr.f32.gmra.mxu1 %v6704_v15  ;;  %7576 = vmatmul.mubr.f32.gmra.mxu0 %v6706_v63  ;;  %v5683_v15 = vadd.f32 %v14004_v35, %v13963_v61  ;;  %v5844_v63 = vadd.f32 %v14006_v7, %v13968_v27  ;;  %v6909_v61 = vld [vmem:[%s11105_s21 + $0x508] sm:$0xff] }
0x1608   : > { %7435 = vmatprep.mubr.f32.mxu1 %v6721_v50  ;;  %7580 = vmatprep.mubr.f32.mxu0 %v6723_v44  ;;  %v6739_v50 = vmax.f32 %v5846_v20, 0.0  ;;  %v6078_v27 = vadd.f32 %v14036_v40, %v14295_v26  ;;  %v6892_v44 = vld [vmem:[%s11105_s21 + $0x480] sm:$0xff]  ;;  %v6076_v40 = vadd.f32 %v14026_v42, %v14311_v12 }
0x1609   : > { %9727 = vmatpush3.msra.mxu1 %v6878_v52  ;;  %v14317_v37 = vpop.f32.mrf.mxu1  ;;  %v14319_v8 = vpop.f32.mrf.mxu0  ;;  %9807 = vmatpush3.msra.mxu0 %v6910_v29  ;;  %v6736_v49 = vmax.f32 %v5683_v15, 0.0  ;;  %v6738_v20 = vmax.f32 %v5844_v63, 0.0  ;;  %v5915_v52 = vadd.f32 %v14024_v59, %v14306_v22  ;;  %v6084_v15 = vadd.f32 %v14056_v58, %v14295_v26  ;;  %v6908_v59 = vld [vmem:[%s11105_s21 + $0x500] sm:$0xff] }
0x160a   : > { %9728 = vmatprep.subr.mxu1 %v6893_v55  ;;  %9808 = vmatprep.subr.mxu0 %v6925_v28  ;;  %v6876_v28 = vld [vmem:[%s11105_s21 + $0x400] sm:$0xff]  ;;  %v6503_v42 = vmax.f32 %v6078_v27, 0.0  ;;  %v5921_v58 = vadd.f32 %v14044_v25, %v14306_v22  ;;  %v6955_v25 = vld [vmem:[%s11105_s21 + $0x678] sm:$0xff] }
0x160b   : > { %v14327_v35 = vpop.f32.mrf.mxu1  ;;  %v14329_v7 = vpop.f32.mrf.mxu0  ;;  %7436 = vmatmul.mubr.f32.gmra.mxu1 %v6720_v18  ;;  %7581 = vmatmul.mubr.f32.gmra.mxu0 %v6722_v30  ;;  %v6501_v18 = vmax.f32 %v5917_v54, 0.0  ;;  %v5923_v30 = vadd.f32 %v14054_v2, %v14276_v43  ;;  %v6500_v2 = vmax.f32 %v5915_v52, 0.0  ;;  %v6502_v54 = vmax.f32 %v6076_v40, 0.0 }
0x160c   : > { %7440 = vmatprep.mubr.f32.mxu1 %v6737_v32  ;;  %7585 = vmatprep.mubr.f32.mxu0 %v6739_v50  ;;  %v6971_v50 = vld [vmem:[%s11105_s21 + $0x6f8] sm:$0xff]  ;;  %v6090_v52 = vadd.f32 %v14076_v4, %v14295_v26  ;;  %v5927_v4 = vadd.f32 %v14064_v0, %v14306_v22  ;;  %v6954_v0 = vld [vmem:[%s11105_s21 + $0x670] sm:$0xff] }
0x160d   : > { %9729 = vmatpush3.msra.mxu1 %v6877_v16  ;;  %v14337_v29 = vpop.f32.mrf.mxu1  ;;  %v14339_v55 = vpop.f32.mrf.mxu0  ;;  %9809 = vmatpush3.msra.mxu0 %v6909_v61  ;;  %v7003_v16 = vld [vmem:[%s11105_s21 + $0x7f8] sm:$0xff]  ;;  %v6082_v61 = vadd.f32 %v14046_v10, %v14311_v12 }
0x160e   : > { %9730 = vmatprep.subr.mxu1 %v6892_v44  ;;  %9810 = vmatprep.subr.mxu0 %v6924_v17  ;;  %v6517_v17 = vmax.f32 %v5923_v30, 0.0  ;;  %v6987_v10 = vld [vmem:[%s11105_s21 + $0x778] sm:$0xff] }
0x160f   : > { %v14347_v63 = vpop.f32.mrf.mxu1  ;;  %v14349_v32 = vpop.f32.mrf.mxu0  ;;  %7441 = vmatmul.mubr.f32.gmra.mxu1 %v6736_v49  ;;  %7586 = vmatmul.mubr.f32.gmra.mxu0 %v6738_v20  ;;  %v6519_v49 = vmax.f32 %v6084_v15, 0.0  ;;  %v5929_v20 = vadd.f32 %v14074_v56, %v14276_v43  ;;  %v6516_v56 = vmax.f32 %v5921_v58, 0.0  ;;  %v6518_v30 = vmax.f32 %v6082_v61, 0.0 }
0x1610   : > { %9731 = vmatpush3.msra.mxu1 %v6876_v28  ;;  %7655 = vmatprep.mubr.f32.mxu1 %v6501_v18  ;;  %v6970_v18 = vld [vmem:[%s11105_s21 + $0x6f0] sm:$0xff]  ;;  %v6088_v15 = vadd.f32 %v14066_v48, %v14311_v12  ;;  %v6096_v58 = vadd.f32 %v14096_v46, %v14295_v26  ;;  %v5933_v46 = vadd.f32 %v14084_v24, %v14306_v22  ;;  %v6953_v24 = vld [vmem:[%s11105_s21 + $0x668] sm:$0xff] }
0x1611   : > { %7800 = vmatprep.mubr.f32.mxu0 %v6503_v42  ;;  %v14357_v27 = vpop.f32.mrf.mxu1  ;;  %v14359_v44 = vpop.f32.mrf.mxu0  ;;  %9811 = vmatpush3.msra.mxu0 %v6908_v59  ;;  %v7002_v59 = vld [vmem:[%s11105_s21 + $0x7f0] sm:$0xff] }
0x1612   : > { %9860 = vmatprep.subr.mxu1 %v6971_v50  ;;  %9940 = vmatprep.subr.mxu0 %v7003_v16  ;;  %v6533_v16 = vmax.f32 %v5929_v20, 0.0  ;;  %v6986_v48 = vld [vmem:[%s11105_s21 + $0x770] sm:$0xff]  ;;  %v6534_v20 = vmax.f32 %v6088_v15, 0.0 }
0x1613   : > { %v14367_v40 = vpop.f32.mrf.mxu1  ;;  %v14369_v28 = vpop.f32.mrf.mxu0  ;;  %7656 = vmatmul.mubr.f32.vlgmr.msra.gmra.mxu1 %v6500_v2  ;;  %7801 = vmatmul.mubr.f32.vlgmr.msra.gmra.mxu0 %v6502_v54  ;;  %v6535_v2 = vmax.f32 %v6090_v52, 0.0  ;;  %v5935_v54 = vadd.f32 %v14094_v45, %v14276_v43  ;;  %v6532_v45 = vmax.f32 %v5927_v4, 0.0  ;;  %v6094_v52 = vadd.f32 %v14086_v41, %v14311_v12  ;;  %v6985_v41 = vld [vmem:[%s11105_s21 + $0x768] sm:$0xff] }
0x1614   : > { %7660 = vmatprep.mubr.f32.mxu1 %v6517_v17  ;;  %7805 = vmatprep.mubr.f32.mxu0 %v6519_v49  ;;  %v6969_v49 = vld [vmem:[%s11105_s21 + $0x6e8] sm:$0xff]  ;;  %v6102_v4 = vadd.f32 %v14116_v23, %v14295_v26  ;;  %v5939_v23 = vadd.f32 %v14104_v11, %v14306_v22  ;;  %v6952_v11 = vld [vmem:[%s11105_s21 + $0x660] sm:$0xff] }
0x1615   : > { %9861 = vmatpush3.msra.mxu1 %v6955_v25  ;;  %v14377_v42 = vpop.f32.mrf.mxu1  ;;  %v14379_v50 = vpop.f32.mrf.mxu0  ;;  %9941 = vmatpush3.msra.mxu0 %v6987_v10  ;;  %v7001_v25 = vld [vmem:[%s11105_s21 + $0x7e8] sm:$0xff] }
0x1616   : > { %9862 = vmatprep.subr.mxu1 %v6970_v18  ;;  %9942 = vmatprep.subr.mxu0 %v7002_v59  ;;  %v6549_v59 = vmax.f32 %v5935_v54, 0.0  ;;  %v6550_v54 = vmax.f32 %v6094_v52, 0.0 }
0x1617   : > { %v14387_v61 = vpop.f32.mrf.mxu1  ;;  %v14389_v17 = vpop.f32.mrf.mxu0  ;;  %7661 = vmatmul.mubr.f32.gmra.mxu1 %v6516_v56  ;;  %7806 = vmatmul.mubr.f32.gmra.mxu0 %v6518_v30  ;;  %v6551_v56 = vmax.f32 %v6096_v58, 0.0  ;;  %v5941_v30 = vadd.f32 %v14114_v39, %v14276_v43  ;;  %v6548_v39 = vmax.f32 %v5933_v46, 0.0  ;;  %v6100_v58 = vadd.f32 %v14106_v1, %v14311_v12  ;;  %v6984_v1 = vld [vmem:[%s11105_s21 + $0x760] sm:$0xff] }
0x1618   : > { %7665 = vmatprep.mubr.f32.mxu1 %v6533_v16  ;;  %7810 = vmatprep.mubr.f32.mxu0 %v6535_v2  ;;  %v6968_v2 = vld [vmem:[%s11105_s21 + $0x6e0] sm:$0xff]  ;;  %v6108_v46 = vadd.f32 %v14136_v19, %v14295_v26  ;;  %v5945_v19 = vadd.f32 %v14124_v33, %v14306_v22  ;;  %v6951_v33 = vld [vmem:[%s11105_s21 + $0x658] sm:$0xff] }
0x1619   : > { %9863 = vmatpush3.msra.mxu1 %v6954_v0  ;;  %v14397_v10 = vpop.f32.mrf.mxu1  ;;  %v14399_v18 = vpop.f32.mrf.mxu0  ;;  %9943 = vmatpush3.msra.mxu0 %v6986_v48  ;;  %v7000_v0 = vld [vmem:[%s11105_s21 + $0x7e0] sm:$0xff] }
0x161a   : > { %9864 = vmatprep.subr.mxu1 %v6969_v49  ;;  %9944 = vmatprep.subr.mxu0 %v7001_v25  ;;  %v6565_v25 = vmax.f32 %v5941_v30, 0.0  ;;  %v6566_v30 = vmax.f32 %v6100_v58, 0.0 }
0x161b   : > { %v14407_v15 = vpop.f32.mrf.mxu1  ;;  %v14409_v16 = vpop.f32.mrf.mxu0  ;;  %7666 = vmatmul.mubr.f32.gmra.mxu1 %v6532_v45  ;;  %7811 = vmatmul.mubr.f32.gmra.mxu0 %v6534_v20  ;;  %v6567_v45 = vmax.f32 %v6102_v4, 0.0  ;;  %v5947_v20 = vadd.f32 %v14134_v38, %v14276_v43  ;;  %v6564_v38 = vmax.f32 %v5939_v23, 0.0  ;;  %v6106_v4 = vadd.f32 %v14126_v60, %v14311_v12  ;;  %v6983_v60 = vld [vmem:[%s11105_s21 + $0x758] sm:$0xff] }
0x161c   : > { %7670 = vmatprep.mubr.f32.mxu1 %v6549_v59  ;;  %7815 = vmatprep.mubr.f32.mxu0 %v6551_v56  ;;  %v6967_v56 = vld [vmem:[%s11105_s21 + $0x6d8] sm:$0xff]  ;;  %v6114_v23 = vadd.f32 %v14156_v9, %v14295_v26  ;;  %v15589_v9 = vld [vmem:[#allocation36_spill] sm:$0xff] }
0x161d   : > { %9865 = vmatpush3.msra.mxu1 %v6953_v24  ;;  %v14417_v48 = vpop.f32.mrf.mxu1  ;;  %v14419_v49 = vpop.f32.mrf.mxu0  ;;  %9945 = vmatpush3.msra.mxu0 %v6985_v41  ;;  %v6999_v24 = vld [vmem:[%s11105_s21 + $0x7d8] sm:$0xff] }
0x161e   : > { %9866 = vmatprep.subr.mxu1 %v6968_v2  ;;  %9946 = vmatprep.subr.mxu0 %v7000_v0  ;;  %v6581_v0 = vmax.f32 %v5947_v20, 0.0  ;;  %v6582_v20 = vmax.f32 %v6106_v4, 0.0  ;;  %v15593_v4 = vld [vmem:[#allocation25_spill] sm:$0xff] }
0x161f   : > { %v14427_v52 = vpop.f32.mrf.mxu1  ;;  %v14429_v59 = vpop.f32.mrf.mxu0  ;;  %7671 = vmatmul.mubr.f32.gmra.mxu1 %v6548_v39  ;;  %7816 = vmatmul.mubr.f32.gmra.mxu0 %v6550_v54  ;;  %v6583_v39 = vmax.f32 %v6108_v46, 0.0  ;;  %v5953_v54 = vadd.f32 %v14154_v34, %v14276_v43  ;;  %v6580_v34 = vmax.f32 %v5945_v19, 0.0  ;;  %v5951_v46 = vadd.f32 %v15589_v9, %v14306_v22  ;;  %v6950_v9 = vld [vmem:[%s11105_s21 + $0x650] sm:$0xff] }
0x1620   : > { %7675 = vmatprep.mubr.f32.mxu1 %v6565_v25  ;;  %7820 = vmatprep.mubr.f32.mxu0 %v6567_v45  ;;  %v6966_v45 = vld [vmem:[%s11105_s21 + $0x6d0] sm:$0xff] }
0x1621   : > { %9867 = vmatpush3.msra.mxu1 %v6952_v11  ;;  %v14437_v41 = vpop.f32.mrf.mxu1  ;;  %v14439_v2 = vpop.f32.mrf.mxu0  ;;  %9947 = vmatpush3.msra.mxu0 %v6984_v1  ;;  %v6998_v11 = vld [vmem:[%s11105_s21 + $0x7d0] sm:$0xff] }
0x1622   : > { %9868 = vmatprep.subr.mxu1 %v6967_v56  ;;  %9948 = vmatprep.subr.mxu0 %v6999_v24  ;;  %v15590_v1 = vld [vmem:[#allocation37_spill] sm:$0xff] }
0x1623   : > { %v14447_v58 = vpop.f32.mrf.mxu1  ;;  %v14449_v25 = vpop.f32.mrf.mxu0  ;;  %7676 = vmatmul.mubr.f32.gmra.mxu1 %v6564_v38  ;;  %7821 = vmatmul.mubr.f32.gmra.mxu0 %v6566_v30  ;;  %v6112_v56 = vadd.f32 %v15590_v1, %v14311_v12  ;;  %v6597_v30 = vmax.f32 %v5953_v54, 0.0  ;;  %v6982_v1 = vld [vmem:[%s11105_s21 + $0x750] sm:$0xff]  ;;  %v6596_v54 = vmax.f32 %v5951_v46, 0.0  ;;  %v5965_v46 = vadd.f32 %v14194_v31, %v14276_v43 }
0x1624   : > { %15587 = vst [vmem:[#allocation38_spill] sm:$0xff] %v14447_v58  ;;  %15588 = vst [vmem:[#allocation43_spill] sm:$0xff] %v14449_v25  ;;  %7680 = vmatprep.mubr.f32.mxu1 %v6581_v0  ;;  %7825 = vmatprep.mubr.f32.mxu0 %v6583_v39  ;;  %v6599_v0 = vmax.f32 %v6114_v23, 0.0  ;;  %v15592_v39 = vld [vmem:[#allocation24_spill] sm:$0xff]  ;;  %v6120_v25 = vadd.f32 %v15593_v4, %v14295_v26 }
0x1625   : > { %9869 = vmatpush3.msra.mxu1 %v6951_v33  ;;  %v14457_v24 = vpop.f32.mrf.mxu1  ;;  %v14459_v38 = vpop.f32.mrf.mxu0  ;;  %9949 = vmatpush3.msra.mxu0 %v6983_v60  ;;  %v5959_v19 = vadd.f32 %v15592_v39, %v14276_v43  ;;  %v6997_v60 = vld [vmem:[%s11105_s21 + $0x7c8] sm:$0xff]  ;;  %v6598_v23 = vmax.f32 %v6112_v56, 0.0  ;;  %v15596_v39 = vld [vmem:[#allocation39_spill] sm:$0xff] }
0x1626   : > { %15591 = vst [vmem:[#allocation26_spill] sm:$0xff] %v14459_v38  ;;  %9870 = vmatprep.subr.mxu1 %v6966_v45  ;;  %9950 = vmatprep.subr.mxu0 %v6998_v11  ;;  %v6965_v38 = vld [vmem:[%s11105_s21 + $0x6c8] sm:$0xff]  ;;  %v5957_v45 = vadd.f32 %v15596_v39, %v14306_v22  ;;  %v15599_v56 = vld [vmem:[#allocation27_spill] sm:$0xff] }
0x1627   : > { %v14467_v33 = vpop.f32.mrf.mxu1  ;;  %v14469_v58 = vpop.f32.mrf.mxu0  ;;  %7681 = vmatmul.mubr.f32.gmra.mxu1 %v6580_v34  ;;  %7826 = vmatmul.mubr.f32.gmra.mxu0 %v6582_v20  ;;  %v15597_v11 = vld [vmem:[#allocation40_spill] sm:$0xff]  ;;  %v6613_v20 = vmax.f32 %v5959_v19, 0.0  ;;  %v15602_v19 = vld [vmem:[#allocation41_spill] sm:$0xff] }
0x1628   : > { %15594 = vst [vmem:[#allocation36_spill] sm:$0xff] %v14467_v33  ;;  %15595 = vst [vmem:[#allocation37_spill] sm:$0xff] %v14469_v58  ;;  %7685 = vmatprep.mubr.f32.mxu1 %v6597_v30  ;;  %7830 = vmatprep.mubr.f32.mxu0 %v6599_v0  ;;  %v6118_v4 = vadd.f32 %v15597_v11, %v14311_v12  ;;  %v6615_v30 = vmax.f32 %v6120_v25, 0.0  ;;  %v6126_v0 = vadd.f32 %v15599_v56, %v14295_v26  ;;  %v6949_v39 = vld [vmem:[%s11105_s21 + $0x648] sm:$0xff] }
0x1629   : > { %9871 = vmatpush3.msra.mxu1 %v6950_v9  ;;  %v14477_v33 = vpop.f32.mrf.mxu1  ;;  %v14479_v34 = vpop.f32.mrf.mxu0  ;;  %9951 = vmatpush3.msra.mxu0 %v6982_v1  ;;  %v6981_v11 = vld [vmem:[%s11105_s21 + $0x748] sm:$0xff]  ;;  %v6996_v1 = vld [vmem:[%s11105_s21 + $0x7c0] sm:$0xff]  ;;  %v6612_v31 = vmax.f32 %v5957_v45, 0.0  ;;  %v5971_v45 = vadd.f32 %v14214_v13, %v14276_v43 }
0x162a   : > { %15598 = vst [vmem:[#allocation24_spill] sm:$0xff] %v14479_v34  ;;  %9872 = vmatprep.subr.mxu1 %v6965_v38  ;;  %9952 = vmatprep.subr.mxu0 %v6997_v60  ;;  %v6964_v34 = vld [vmem:[%s11105_s21 + $0x6c0] sm:$0xff]  ;;  %v6614_v25 = vmax.f32 %v6118_v4, 0.0  ;;  %v5963_v38 = vadd.f32 %v15602_v19, %v14306_v22  ;;  %v15603_v60 = vld [vmem:[#allocation42_spill] sm:$0xff] }
0x162b   : > { %v14487_v9 = vpop.f32.mrf.mxu1  ;;  %v14489_v58 = vpop.f32.mrf.mxu0  ;;  %7686 = vmatmul.mubr.f32.gmra.mxu1 %v6596_v54  ;;  %7831 = vmatmul.mubr.f32.gmra.mxu0 %v6598_v23  ;;  %v6124_v56 = vadd.f32 %v15603_v60, %v14311_v12  ;;  %v6629_v23 = vmax.f32 %v5965_v46, 0.0  ;;  %v15605_v4 = vld [vmem:[#allocation31_spill] sm:$0xff] }
0x162c   : > { %15600 = vst [vmem:[#allocation25_spill] sm:$0xff] %v14487_v9  ;;  %15601 = vst [vmem:[#allocation39_spill] sm:$0xff] %v14489_v58  ;;  %7690 = vmatprep.mubr.f32.mxu1 %v6613_v20  ;;  %7835 = vmatprep.mubr.f32.mxu0 %v6615_v30  ;;  %v6631_v20 = vmax.f32 %v6126_v0, 0.0  ;;  %v6132_v30 = vadd.f32 %v15605_v4, %v14295_v26  ;;  %v6948_v19 = vld [vmem:[%s11105_s21 + $0x640] sm:$0xff]  ;;  %v6628_v13 = vmax.f32 %v5963_v38, 0.0 }
0x162d   : > { %9873 = vmatpush3.msra.mxu1 %v6949_v39  ;;  %v14497_v9 = vpop.f32.mrf.mxu1  ;;  %v14499_v54 = vpop.f32.mrf.mxu0  ;;  %9953 = vmatpush3.msra.mxu0 %v6981_v11  ;;  %v6980_v60 = vld [vmem:[%s11105_s21 + $0x740] sm:$0xff]  ;;  %v6995_v11 = vld [vmem:[%s11105_s21 + $0x7b8] sm:$0xff]  ;;  %v6630_v46 = vmax.f32 %v6124_v56, 0.0  ;;  %v5977_v38 = vadd.f32 %v14234_v3, %v14276_v43  ;;  %v6138_v56 = vadd.f32 %v14236_v36, %v14295_v26 }
0x162e   : > { %15604 = vst [vmem:[#allocation40_spill] sm:$0xff] %v14499_v54  ;;  %9874 = vmatprep.subr.mxu1 %v6964_v34  ;;  %9954 = vmatprep.subr.mxu0 %v6996_v1  ;;  %v6963_v54 = vld [vmem:[%s11105_s21 + $0x6b8] sm:$0xff]  ;;  %v15608_v0 = vld [vmem:[#allocation28_spill] sm:$0xff] }
0x162f   : > { %v14507_v39 = vpop.f32.mrf.mxu1  ;;  %v14509_v58 = vpop.f32.mrf.mxu0  ;;  %7691 = vmatmul.mubr.f32.gmra.mxu1 %v6612_v31  ;;  %7836 = vmatmul.mubr.f32.gmra.mxu0 %v6614_v25  ;;  %v5969_v34 = vadd.f32 %v15608_v0, %v14306_v22  ;;  %v15609_v1 = vld [vmem:[#allocation30_spill] sm:$0xff]  ;;  %v6645_v25 = vmax.f32 %v5971_v45, 0.0  ;;  %v15612_v36 = vld [vmem:[#allocation32_spill] sm:$0xff] }
0x1630   : > { %15606 = vst [vmem:[#allocation27_spill] sm:$0xff] %v14507_v39  ;;  %15607 = vst [vmem:[#allocation41_spill] sm:$0xff] %v14509_v58  ;;  %7695 = vmatprep.mubr.f32.mxu1 %v6629_v23  ;;  %7840 = vmatprep.mubr.f32.mxu0 %v6631_v20  ;;  %v6130_v4 = vadd.f32 %v15609_v1, %v14311_v12  ;;  %v6647_v23 = vmax.f32 %v6132_v30, 0.0  ;;  %v6947_v20 = vld [vmem:[%s11105_s21 + $0x638] sm:$0xff]  ;;  %v6962_v58 = vld [vmem:[%s11105_s21 + $0x6b0] sm:$0xff] }
0x1631   : > { %9875 = vmatpush3.msra.mxu1 %v6948_v19  ;;  %v14517_v39 = vpop.f32.mrf.mxu1  ;;  %v14519_v31 = vpop.f32.mrf.mxu0  ;;  %9955 = vmatpush3.msra.mxu0 %v6980_v60  ;;  %v6979_v0 = vld [vmem:[%s11105_s21 + $0x738] sm:$0xff]  ;;  %v6994_v60 = vld [vmem:[%s11105_s21 + $0x7b0] sm:$0xff]  ;;  %v6644_v3 = vmax.f32 %v5969_v34, 0.0  ;;  %v5983_v34 = vadd.f32 %v14254_v14, %v14276_v43 }
0x1632   : > { %9876 = vmatprep.subr.mxu1 %v6963_v54  ;;  %9956 = vmatprep.subr.mxu0 %v6995_v11  ;;  %v6646_v45 = vmax.f32 %v6130_v4, 0.0  ;;  %v5975_v54 = vadd.f32 %v15612_v36, %v14306_v22  ;;  %v15613_v30 = vld [vmem:[#allocation33_spill] sm:$0xff]  ;;  %v6144_v4 = vadd.f32 %v14256_v6, %v14295_v26  ;;  %v5981_v6 = vadd.f32 %v14244_v51, %v14306_v22 }
0x1633   : > { %v14527_v19 = vpop.f32.mrf.mxu1  ;;  %v14529_v1 = vpop.f32.mrf.mxu0  ;;  %7696 = vmatmul.mubr.f32.gmra.mxu1 %v6628_v13  ;;  %7841 = vmatmul.mubr.f32.gmra.mxu0 %v6630_v46  ;;  %v6136_v11 = vadd.f32 %v15613_v30, %v14311_v12  ;;  %v6661_v46 = vmax.f32 %v5977_v38, 0.0  ;;  %v6978_v36 = vld [vmem:[%s11105_s21 + $0x730] sm:$0xff]  ;;  %v6945_v51 = vld [vmem:[%s11105_s21 + $0x628] sm:$0xff] }
0x1634   : > { %15610 = vst [vmem:[#allocation42_spill] sm:$0xff] %v14527_v19  ;;  %15611 = vst [vmem:[#allocation31_spill] sm:$0xff] %v14529_v1  ;;  %7700 = vmatprep.mubr.f32.mxu1 %v6645_v25  ;;  %7845 = vmatprep.mubr.f32.mxu0 %v6647_v23  ;;  %v6663_v25 = vmax.f32 %v6138_v56, 0.0  ;;  %v6946_v23 = vld [vmem:[%s11105_s21 + $0x630] sm:$0xff]  ;;  %v6961_v1 = vld [vmem:[%s11105_s21 + $0x6a8] sm:$0xff]  ;;  %v6660_v14 = vmax.f32 %v5975_v54, 0.0  ;;  %v5989_v54 = vadd.f32 %v14282_v53, %v14276_v43 }
0x1635   : > { %9877 = vmatpush3.msra.mxu1 %v6947_v20  ;;  %v14537_v19 = vpop.f32.mrf.mxu1  ;;  %v14539_v13 = vpop.f32.mrf.mxu0  ;;  %9957 = vmatpush3.msra.mxu0 %v6979_v0  ;;  %v6993_v0 = vld [vmem:[%s11105_s21 + $0x7a8] sm:$0xff]  ;;  %v6662_v38 = vmax.f32 %v6136_v11, 0.0  ;;  %v6150_v11 = vadd.f32 %v14284_v21, %v14295_v26  ;;  %v6676_v53 = vmax.f32 %v5981_v6, 0.0  ;;  %v15618_v21 = vld [vmem:[#allocation35_spill] sm:$0xff]  ;;  %v5995_v6 = vadd.f32 %v14317_v37, %v14276_v43 }
0x1636   : > { %9878 = vmatprep.subr.mxu1 %v6962_v58  ;;  %9958 = vmatprep.subr.mxu0 %v6994_v60  ;;  %v15615_v58 = vld [vmem:[#allocation34_spill] sm:$0xff] }
0x1637   : > { %v14547_v20 = vpop.f32.mrf.mxu1  ;;  %v14549_v30 = vpop.f32.mrf.mxu0  ;;  %7701 = vmatmul.mubr.f32.gmra.mxu1 %v6644_v3  ;;  %7846 = vmatmul.mubr.f32.gmra.mxu0 %v6646_v45  ;;  %v6142_v56 = vadd.f32 %v15615_v58, %v14311_v12  ;;  %v6677_v45 = vmax.f32 %v5983_v34, 0.0 }
0x1638   : > { %15614 = vst [vmem:[#allocation28_spill] sm:$0xff] %v14549_v30  ;;  %7705 = vmatprep.mubr.f32.mxu1 %v6661_v46  ;;  %7850 = vmatprep.mubr.f32.mxu0 %v6663_v25  ;;  %v6679_v46 = vmax.f32 %v6144_v4, 0.0  ;;  %v6977_v25 = vld [vmem:[%s11105_s21 + $0x728] sm:$0xff]  ;;  %v6960_v30 = vld [vmem:[%s11105_s21 + $0x6a0] sm:$0xff] }
0x1639   : > { %9879 = vmatpush3.msra.mxu1 %v6946_v23  ;;  %v14557_v60 = vpop.f32.mrf.mxu1  ;;  %v14559_v3 = vpop.f32.mrf.mxu0  ;;  %9959 = vmatpush3.msra.mxu0 %v6978_v36  ;;  %v6992_v36 = vld [vmem:[%s11105_s21 + $0x7a0] sm:$0xff]  ;;  %v6678_v34 = vmax.f32 %v6142_v56, 0.0  ;;  %v15619_v4 = vld [vmem:[#allocation29_spill] sm:$0xff]  ;;  %v6156_v56 = vadd.f32 %v14319_v8, %v14295_v26  ;;  %v5993_v8 = vadd.f32 %v14297_v62, %v14306_v22  ;;  %v6943_v62 = vld [vmem:[%s11105_s21 + $0x618] sm:$0xff] }
0x163a   : > { %9880 = vmatprep.subr.mxu1 %v6961_v1  ;;  %9960 = vmatprep.subr.mxu0 %v6993_v0  ;;  %v5987_v1 = vadd.f32 %v15618_v21, %v14306_v22  ;;  %v6148_v0 = vadd.f32 %v15619_v4, %v14311_v12  ;;  %v6976_v21 = vld [vmem:[%s11105_s21 + $0x720] sm:$0xff] }
0x163b   : > { %v14567_v23 = vpop.f32.mrf.mxu1  ;;  %v14569_v58 = vpop.f32.mrf.mxu0  ;;  %7706 = vmatmul.mubr.f32.gmra.mxu1 %v6660_v14  ;;  %7851 = vmatmul.mubr.f32.gmra.mxu0 %v6662_v38  ;;  %v6693_v38 = vmax.f32 %v5989_v54, 0.0 }
0x163c   : > { %15616 = vst [vmem:[#allocation30_spill] sm:$0xff] %v14567_v23  ;;  %15617 = vst [vmem:[#allocation32_spill] sm:$0xff] %v14569_v58  ;;  %7710 = vmatprep.mubr.f32.mxu1 %v6677_v45  ;;  %7855 = vmatprep.mubr.f32.mxu0 %v6679_v46  ;;  %v6695_v45 = vmax.f32 %v6150_v11, 0.0  ;;  %v6944_v46 = vld [vmem:[%s11105_s21 + $0x620] sm:$0xff]  ;;  %v6959_v58 = vld [vmem:[%s11105_s21 + $0x698] sm:$0xff]  ;;  %v6692_v37 = vmax.f32 %v5987_v1, 0.0  ;;  %v6001_v1 = vadd.f32 %v14337_v29, %v14276_v43 }
0x163d   : > { %9881 = vmatpush3.msra.mxu1 %v6945_v51  ;;  %v14577_v23 = vpop.f32.mrf.mxu1  ;;  %v14579_v14 = vpop.f32.mrf.mxu0  ;;  %9961 = vmatpush3.msra.mxu0 %v6977_v25  ;;  %v6991_v25 = vld [vmem:[%s11105_s21 + $0x798] sm:$0xff]  ;;  %v6694_v54 = vmax.f32 %v6148_v0, 0.0  ;;  %v6162_v0 = vadd.f32 %v14339_v55, %v14295_v26  ;;  %v6708_v29 = vmax.f32 %v5993_v8, 0.0  ;;  %v6007_v8 = vadd.f32 %v14357_v27, %v14276_v43  ;;  %v6989_v43 = vld [vmem:[%s11105_s21 + $0x788] sm:$0xff] }
0x163e   : > { %9882 = vmatprep.subr.mxu1 %v6960_v30  ;;  %9962 = vmatprep.subr.mxu0 %v6992_v36  ;;  %v6154_v30 = vadd.f32 %v14299_v47, %v14311_v12  ;;  %v6975_v47 = vld [vmem:[%s11105_s21 + $0x718] sm:$0xff]  ;;  %v15623_v27 = vsub.s32 4, %v15582_v5 }
0x163f   : > { %v14587_v51 = vpop.f32.mrf.mxu1  ;;  %v14589_v4 = vpop.f32.mrf.mxu0  ;;  %7711 = vmatmul.mubr.f32.gmra.mxu1 %v6676_v53  ;;  %7856 = vmatmul.mubr.f32.gmra.mxu0 %v6678_v34  ;;  %v6709_v53 = vmax.f32 %v5995_v6, 0.0  ;;  %v6711_v34 = vmax.f32 %v6156_v56, 0.0  ;;  %v15621_v6 = vsub.s32 5, %v15582_v5 }
0x1640   : > { %7715 = vmatprep.mubr.f32.mxu1 %v6693_v38  ;;  %7860 = vmatprep.mubr.f32.mxu0 %v6695_v45  ;;  %v6710_v55 = vmax.f32 %v6154_v30, 0.0  ;;  %v6168_v30 = vadd.f32 %v14359_v44, %v14295_v26  ;;  %v14646_v26 = vrot.slane %v14265_v57, %v15623_v27  ;;  %v15624_v44 = vsub.s32 6, %v15582_v5 }
0x1641   : > { %9883 = vmatpush3.msra.mxu1 %v6944_v46  ;;  %v14597_v11 = vpop.f32.mrf.mxu1  ;;  %v14599_v36 = vpop.f32.mrf.mxu0  ;;  %9963 = vmatpush3.msra.mxu0 %v6976_v21  ;;  %v6958_v46 = vld [vmem:[%s11105_s21 + $0x690] sm:$0xff]  ;;  %v14616_v56 = vrot.slane %v14265_v57, %v15621_v6  ;;  %v6725_v6 = vmax.f32 %v6001_v1, 0.0  ;;  %v6957_v1 = vld [vmem:[%s11105_s21 + $0x688] sm:$0xff] }
0x1642   : > { %9884 = vmatprep.subr.mxu1 %v6959_v58  ;;  %9964 = vmatprep.subr.mxu0 %v6991_v25  ;;  %v6990_v21 = vld [vmem:[%s11105_s21 + $0x790] sm:$0xff]  ;;  %v5999_v58 = vadd.f32 %v14327_v35, %v14306_v22  ;;  %v6160_v25 = vadd.f32 %v14329_v7, %v14311_v12 }
0x1643   : > { %v14607_v38 = vpop.f32.mrf.mxu1  ;;  %v14609_v45 = vpop.f32.mrf.mxu0  ;;  %7716 = vmatmul.mubr.f32.gmra.mxu1 %v6692_v37  ;;  %7861 = vmatmul.mubr.f32.gmra.mxu0 %v6694_v54  ;;  %v6942_v35 = vld [vmem:[%s11105_s21 + $0x610] sm:$0xff] }
0x1644   : > { %15620 = vst [vmem:[#allocation33_spill] sm:$0xff] %v14609_v45  ;;  %7720 = vmatprep.mubr.f32.mxu1 %v6709_v53  ;;  %7865 = vmatprep.mubr.f32.mxu0 %v6711_v34  ;;  %v6727_v53 = vmax.f32 %v6162_v0, 0.0  ;;  %v6974_v7 = vld [vmem:[%s11105_s21 + $0x710] sm:$0xff]  ;;  %v15622_v34 = vsub.s32 7, %v15582_v5  ;;  %v14651_v0 = vrot.slane %v14265_v57, %v15624_v44  ;;  %v6245_v44 = vadd.f32 %v14397_v10, %v14616_v56 }
0x1645   : > { %9885 = vmatpush3.msra.mxu1 %v6943_v62  ;;  %v14622_v37 = vpop.f32.mrf.mxu1  ;;  %v14624_v54 = vpop.f32.mrf.mxu0  ;;  %9965 = vmatpush3.msra.mxu0 %v6975_v47 }
0x1646   : > { %9886 = vmatprep.subr.mxu1 %v6958_v46  ;;  %9966 = vmatprep.subr.mxu0 %v6990_v21  ;;  %v14635_v62 = vrot.slane %v14265_v57, %v15622_v34  ;;  %v6724_v46 = vmax.f32 %v5999_v58, 0.0  ;;  %v6726_v21 = vmax.f32 %v6160_v25, 0.0  ;;  %v6741_v57 = vmax.f32 %v6007_v8, 0.0  ;;  %v6941_v25 = vld [vmem:[%s11105_s21 + $0x608] sm:$0xff]  ;;  %v6988_v8 = vld [vmem:[%s11105_s21 + $0x780] sm:$0xff] }
0x1647   : > { %v14637_v45 = vpop.f32.mrf.mxu1  ;;  %v14639_v47 = vpop.f32.mrf.mxu0  ;;  %7721 = vmatmul.mubr.f32.gmra.mxu1 %v6708_v29  ;;  %7866 = vmatmul.mubr.f32.gmra.mxu0 %v6710_v55  ;;  %v6005_v29 = vadd.f32 %v14347_v63, %v14306_v22  ;;  %v6166_v55 = vadd.f32 %v14349_v32, %v14311_v12  ;;  %v6239_v58 = vadd.f32 %v14377_v42, %v14616_v56  ;;  %v6973_v22 = vld [vmem:[%s11105_s21 + $0x708] sm:$0xff] }
0x1648   : > { %7725 = vmatprep.mubr.f32.mxu1 %v6725_v6  ;;  %7870 = vmatprep.mubr.f32.mxu0 %v6727_v53  ;;  %v6743_v6 = vmax.f32 %v6168_v30, 0.0  ;;  %v6400_v12 = vadd.f32 %v14379_v50, %v14635_v62  ;;  %v6956_v53 = vld [vmem:[%s11105_s21 + $0x680] sm:$0xff]  ;;  %v6398_v50 = vadd.f32 %v14369_v28, %v14651_v0 }
0x1649   : > { %9887 = vmatpush3.msra.mxu1 %v6942_v35  ;;  %v14657_v34 = vpop.f32.mrf.mxu1  ;;  %v14659_v5 = vpop.f32.mrf.mxu0  ;;  %9967 = vmatpush3.msra.mxu0 %v6974_v7  ;;  %v6740_v42 = vmax.f32 %v6005_v29, 0.0  ;;  %v6742_v30 = vmax.f32 %v6166_v55, 0.0  ;;  %v6237_v35 = vadd.f32 %v14367_v40, %v14646_v26  ;;  %v6505_v27 = vmax.f32 %v6239_v58, 0.0  ;;  %v6972_v40 = vld [vmem:[%s11105_s21 + $0x700] sm:$0xff] }
0x164a   : > { %9888 = vmatprep.subr.mxu1 %v6957_v1  ;;  %9968 = vmatprep.subr.mxu0 %v6989_v43  ;;  %v6940_v43 = vld [vmem:[%s11105_s21 + $0x600] sm:$0xff]  ;;  %v6243_v55 = vadd.f32 %v14387_v61, %v14646_v26  ;;  %v6506_v10 = vmax.f32 %v6398_v50, 0.0  ;;  %v6412_v61 = vadd.f32 %v14419_v49, %v14635_v62  ;;  %v6257_v50 = vadd.f32 %v14437_v41, %v14616_v56 }
0x164b   : > { %v14667_v63 = vpop.f32.mrf.mxu1  ;;  %v14669_v32 = vpop.f32.mrf.mxu0  ;;  %7726 = vmatmul.mubr.f32.gmra.mxu1 %v6724_v46  ;;  %7871 = vmatmul.mubr.f32.gmra.mxu0 %v6726_v21  ;;  %v6406_v46 = vadd.f32 %v14399_v18, %v14635_v62  ;;  %v6507_v21 = vmax.f32 %v6400_v12, 0.0  ;;  %v6404_v18 = vadd.f32 %v14389_v17, %v14651_v0  ;;  %v14714_v49 = vld [vmem:[%s649_s2] ss:$0 sm:$0xff]  ;;  %v6255_v41 = vadd.f32 %v14427_v52, %v14646_v26 }
0x164c   : > { %7730 = vmatprep.mubr.f32.mxu1 %v6741_v57  ;;  %7875 = vmatprep.mubr.f32.mxu0 %v6743_v6  ;;  %v6504_v57 = vmax.f32 %v6237_v35, 0.0  ;;  %v6251_v6 = vadd.f32 %v14417_v48, %v14616_v56  ;;  %v6520_v17 = vmax.f32 %v6243_v55, 0.0  ;;  %v6249_v48 = vadd.f32 %v14407_v15, %v14646_v26 }
0x164d   : > { %9889 = vmatpush3.msra.mxu1 %v6941_v25  ;;  %v14677_v7 = vpop.f32.mrf.mxu1  ;;  %v14679_v1 = vpop.f32.mrf.mxu0  ;;  %9969 = vmatpush3.msra.mxu0 %v6973_v22  ;;  %v6521_v22 = vmax.f32 %v6245_v44, 0.0  ;;  %v6523_v12 = vmax.f32 %v6406_v46, 0.0  ;;  %v6539_v44 = vmax.f32 %v6412_v61, 0.0  ;;  %v6418_v15 = vadd.f32 %v14439_v2, %v14635_v62 }
0x164e   : > { %9890 = vmatprep.subr.mxu1 %v6956_v53  ;;  %9970 = vmatprep.subr.mxu0 %v6988_v8  ;;  %v6537_v35 = vmax.f32 %v6251_v6, 0.0  ;;  %v6536_v55 = vmax.f32 %v6249_v48, 0.0  ;;  %v6553_v6 = vmax.f32 %v6257_v50, 0.0  ;;  %v6263_v2 = vadd.f32 %v14457_v24, %v14616_v56  ;;  %v15626_v50 = vld [vmem:[#allocation38_spill] sm:$0xff] }
0x164f   : > { %v14687_v29 = vpop.f32.mrf.mxu1  ;;  %v14689_v28 = vpop.f32.mrf.mxu0  ;;  %7731 = vmatmul.mubr.f32.gmra.mxu1 %v6740_v42  ;;  %7876 = vmatmul.mubr.f32.gmra.mxu0 %v6742_v30  ;;  %v6522_v42 = vmax.f32 %v6404_v18, 0.0  ;;  %v6410_v30 = vadd.f32 %v14409_v16, %v14651_v0 }
0x1650   : > { %9891 = vmatpush3.msra.mxu1 %v6940_v43  ;;  %7945 = vmatprep.mubr.f32.mxu1 %v6505_v27 }
0x1651   : > { %8090 = vmatprep.mubr.f32.mxu0 %v6507_v21  ;;  %v14697_v58 = vpop.f32.mrf.mxu1  ;;  %v14699_v25 = vpop.f32.mrf.mxu0  ;;  %9971 = vmatpush3.msra.mxu0 %v6972_v40  ;;  %v6538_v18 = vmax.f32 %v6410_v30, 0.0 }
0x1653   : > { %v9412_v53 = vpop.f32.mrf.mxu1  ;;  %v9492_v8 = vpop.f32.mrf.mxu0  ;;  %7946 = vmatmul.mubr.f32.vlgmr.msra.gmra.mxu1 %v6504_v57  ;;  %8091 = vmatmul.mubr.f32.vlgmr.msra.gmra.mxu0 %v6506_v10  ;;  %v6416_v57 = vadd.f32 %v14429_v59, %v14651_v0 }
0x1654   : > { %7950 = vmatprep.mubr.f32.mxu1 %v6521_v22  ;;  %8095 = vmatprep.mubr.f32.mxu0 %v6523_v12  ;;  %v15625_v22 = vld [vmem:[#allocation26_spill] sm:$0xff] }
0x1655   : > { %v9413_v43 = vpop.f32.mrf.mxu1  ;;  %v9493_v27 = vpop.f32.mrf.mxu0  ;;  %v6424_v12 = vadd.f32 %v15625_v22, %v14635_v62  ;;  %v6554_v30 = vmax.f32 %v6416_v57, 0.0 }
0x1656   : > { %v9414_v46 = vadd.f32 %v9413_v43, %v9412_v53  ;;  %v9494_v40 = vadd.f32 %v9493_v27, %v9492_v8  ;;  %v6555_v8 = vmax.f32 %v6418_v15, 0.0  ;;  %v6261_v43 = vadd.f32 %v15626_v50, %v14646_v26  ;;  %v15627_v27 = vld [vmem:[#allocation43_spill] sm:$0xff] }
0x1657   : > { %v9415_v21 = vpop.f32.mrf.mxu1  ;;  %v9495_v16 = vpop.f32.mrf.mxu0  ;;  %7951 = vmatmul.mubr.f32.gmra.mxu1 %v6520_v17  ;;  %8096 = vmatmul.mubr.f32.gmra.mxu0 %v6522_v42  ;;  %v6569_v15 = vmax.f32 %v6263_v2, 0.0  ;;  %v15629_v2 = vld [vmem:[#allocation36_spill] sm:$0xff] }
0x1658   : > { %v7078_v10 = vadd.f32 %v9414_v46, %v14714_v49  ;;  %7955 = vmatprep.mubr.f32.mxu1 %v6537_v35  ;;  %8100 = vmatprep.mubr.f32.mxu0 %v6539_v44  ;;  %v6552_v35 = vmax.f32 %v6255_v41, 0.0  ;;  %v6422_v44 = vadd.f32 %v15627_v27, %v14651_v0  ;;  %v6571_v46 = vmax.f32 %v6424_v12, 0.0 }
0x1659   : > { %v9416_v61 = vpop.f32.mrf.mxu1  ;;  %v9496_v53 = vpop.f32.mrf.mxu0  ;;  %v6267_v12 = vadd.f32 %v15629_v2, %v14646_v26 }
0x165a   : > { %v14727_v17 = vadd.f32 %v9494_v40, %v7078_v10  ;;  %v9417_v52 = vadd.f32 %v9416_v61, %v9415_v21  ;;  %v9497_v48 = vadd.f32 %v9496_v53, %v9495_v16  ;;  %v6269_v40 = vadd.f32 %v14477_v33, %v14616_v56  ;;  %v15630_v53 = vld [vmem:[#allocation37_spill] sm:$0xff] }
0x165b   : > { %v9418_v59 = vpop.f32.mrf.mxu1  ;;  %v9498_v42 = vpop.f32.mrf.mxu0  ;;  %7956 = vmatmul.mubr.f32.gmra.mxu1 %v6536_v55  ;;  %8101 = vmatmul.mubr.f32.gmra.mxu0 %v6538_v18  ;;  %v15628_v55 = vld [vmem:[#allocation24_spill] sm:$0xff]  ;;  %v6568_v61 = vmax.f32 %v6261_v43, 0.0  ;;  %v6428_v33 = vadd.f32 %v15630_v53, %v14651_v0 }
0x165c   : > { %v7083_v24 = vadd.f32 %v9417_v52, %v14714_v49  ;;  %7960 = vmatprep.mubr.f32.mxu1 %v6553_v6  ;;  %8105 = vmatprep.mubr.f32.mxu0 %v6555_v8  ;;  %v6430_v41 = vadd.f32 %v15628_v55, %v14635_v62  ;;  %v6570_v52 = vmax.f32 %v6422_v44, 0.0 }
0x165d   : > { %v9419_v21 = vpop.f32.mrf.mxu1  ;;  %v9499_v16 = vpop.f32.mrf.mxu0  ;;  %v6586_v44 = vmax.f32 %v6428_v33, 0.0 }
0x165e   : > { %v14738_v57 = vadd.f32 %v9497_v48, %v7083_v24  ;;  %v9420_v10 = vadd.f32 %v9419_v21, %v9418_v59  ;;  %v9500_v18 = vadd.f32 %v9499_v16, %v9498_v42  ;;  %v6585_v48 = vmax.f32 %v6269_v40, 0.0  ;;  %v15631_v42 = vld [vmem:[#allocation40_spill] sm:$0xff] }
0x165f   : > { %v9421_v22 = vpop.f32.mrf.mxu1  ;;  %v9501_v6 = vpop.f32.mrf.mxu0  ;;  %7961 = vmatmul.mubr.f32.gmra.mxu1 %v6552_v35  ;;  %8106 = vmatmul.mubr.f32.gmra.mxu0 %v6554_v30  ;;  %v6275_v59 = vadd.f32 %v14497_v9, %v14616_v56  ;;  %v6436_v35 = vadd.f32 %v15631_v42, %v14635_v62  ;;  %v6587_v43 = vmax.f32 %v6430_v41, 0.0 }
0x1660   : > { %v7088_v8 = vadd.f32 %v9420_v10, %v14714_v49  ;;  %7965 = vmatprep.mubr.f32.mxu1 %v6569_v15  ;;  %8110 = vmatprep.mubr.f32.mxu0 %v6571_v46  ;;  %v6584_v15 = vmax.f32 %v6267_v12, 0.0  ;;  %v15632_v46 = vld [vmem:[#allocation25_spill] sm:$0xff]  ;;  %v15633_v10 = vld [vmem:[#allocation39_spill] sm:$0xff]  ;;  %v6442_v12 = vadd.f32 %v14519_v31, %v14635_v62 }
0x1661   : > { %v9422_v30 = vpop.f32.mrf.mxu1  ;;  %v9502_v50 = vpop.f32.mrf.mxu0  ;;  %v6273_v40 = vadd.f32 %v15632_v46, %v14646_v26  ;;  %v6434_v41 = vadd.f32 %v15633_v10, %v14651_v0  ;;  %v6603_v2 = vmax.f32 %v6436_v35, 0.0 }
0x1662   : > { %v14749_v24 = vadd.f32 %v9500_v18, %v7088_v8  ;;  %v9423_v27 = vadd.f32 %v9422_v30, %v9421_v22  ;;  %v9503_v21 = vadd.f32 %v9502_v50, %v9501_v6  ;;  %v6601_v18 = vmax.f32 %v6275_v59, 0.0  ;;  %v15634_v59 = vld [vmem:[#allocation27_spill] sm:$0xff]  ;;  %v15635_v30 = vld [vmem:[#allocation41_spill] sm:$0xff] }
0x1663   : > { %v9424_v16 = vpop.f32.mrf.mxu1  ;;  %v9504_v55 = vpop.f32.mrf.mxu0  ;;  %7966 = vmatmul.mubr.f32.gmra.mxu1 %v6568_v61  ;;  %8111 = vmatmul.mubr.f32.gmra.mxu0 %v6570_v52  ;;  %v6281_v22 = vadd.f32 %v14517_v39, %v14616_v56  ;;  %v6600_v42 = vmax.f32 %v6273_v40, 0.0  ;;  %v6279_v35 = vadd.f32 %v15634_v59, %v14646_v26  ;;  %v6440_v39 = vadd.f32 %v15635_v30, %v14651_v0 }
0x1664   : > { %v7093_v9 = vadd.f32 %v9423_v27, %v14714_v49  ;;  %7970 = vmatprep.mubr.f32.mxu1 %v6585_v48  ;;  %8115 = vmatprep.mubr.f32.mxu0 %v6587_v43  ;;  %v6602_v31 = vmax.f32 %v6434_v41, 0.0  ;;  %v6287_v27 = vadd.f32 %v14537_v19, %v14616_v56 }
0x1665   : > { %v9425_v6 = vpop.f32.mrf.mxu1  ;;  %v9505_v61 = vpop.f32.mrf.mxu0  ;;  %v6617_v43 = vmax.f32 %v6281_v22, 0.0  ;;  %v6618_v41 = vmax.f32 %v6440_v39, 0.0 }
0x1666   : > { %v14760_v53 = vadd.f32 %v9503_v21, %v7093_v9  ;;  %v9426_v33 = vadd.f32 %v9425_v6, %v9424_v16  ;;  %v9506_v8 = vadd.f32 %v9505_v61, %v9504_v55  ;;  %v6448_v21 = vadd.f32 %v14539_v13, %v14635_v62  ;;  %v15637_v13 = vld [vmem:[#allocation31_spill] sm:$0xff] }
0x1667   : > { %v9427_v52 = vpop.f32.mrf.mxu1  ;;  %v9507_v48 = vpop.f32.mrf.mxu0  ;;  %7971 = vmatmul.mubr.f32.gmra.mxu1 %v6584_v15  ;;  %8116 = vmatmul.mubr.f32.gmra.mxu0 %v6586_v44  ;;  %v6619_v15 = vmax.f32 %v6442_v12, 0.0  ;;  %v6446_v6 = vadd.f32 %v15637_v13, %v14651_v0  ;;  %v6633_v61 = vmax.f32 %v6287_v27, 0.0 }
0x1668   : > { %v7098_v50 = vadd.f32 %v9426_v33, %v14714_v49  ;;  %7975 = vmatprep.mubr.f32.mxu1 %v6601_v18  ;;  %8120 = vmatprep.mubr.f32.mxu0 %v6603_v2  ;;  %v6616_v18 = vmax.f32 %v6279_v35, 0.0  ;;  %v15636_v2 = vld [vmem:[#allocation42_spill] sm:$0xff]  ;;  %v6635_v12 = vmax.f32 %v6448_v21, 0.0  ;;  %v6293_v33 = vadd.f32 %v14557_v60, %v14616_v56 }
0x1669   : > { %v9428_v16 = vpop.f32.mrf.mxu1  ;;  %v9508_v55 = vpop.f32.mrf.mxu0  ;;  %v6285_v22 = vadd.f32 %v15636_v2, %v14646_v26 }
0x166a   : > { %v14771_v44 = vadd.f32 %v9506_v8, %v7098_v50  ;;  %v9429_v46 = vadd.f32 %v9428_v16, %v9427_v52  ;;  %v9509_v40 = vadd.f32 %v9508_v55, %v9507_v48  ;;  %v6454_v48 = vadd.f32 %v14559_v3, %v14635_v62 }
0x166b   : > { %v9430_v9 = vpop.f32.mrf.mxu1  ;;  %v9510_v10 = vpop.f32.mrf.mxu0  ;;  %7976 = vmatmul.mubr.f32.gmra.mxu1 %v6600_v42  ;;  %8121 = vmatmul.mubr.f32.gmra.mxu0 %v6602_v31  ;;  %v6632_v50 = vmax.f32 %v6285_v22, 0.0  ;;  %v6291_v31 = vadd.f32 %v14547_v20, %v14646_v26  ;;  %v6634_v3 = vmax.f32 %v6446_v6, 0.0  ;;  %v6649_v21 = vmax.f32 %v6293_v33, 0.0 }
0x166c   : > { %v7103_v19 = vadd.f32 %v9429_v46, %v14714_v49  ;;  %7980 = vmatprep.mubr.f32.mxu1 %v6617_v43  ;;  %8125 = vmatprep.mubr.f32.mxu0 %v6619_v15  ;;  %v15638_v43 = vld [vmem:[#allocation28_spill] sm:$0xff]  ;;  %v6299_v16 = vadd.f32 %v14577_v23, %v14616_v56  ;;  %v6460_v55 = vadd.f32 %v14579_v14, %v14635_v62 }
0x166d   : > { %v9431_v8 = vpop.f32.mrf.mxu1  ;;  %v9511_v52 = vpop.f32.mrf.mxu0  ;;  %v6452_v60 = vadd.f32 %v15638_v43, %v14651_v0  ;;  %v6648_v2 = vmax.f32 %v6291_v31, 0.0  ;;  %v15640_v14 = vld [vmem:[#allocation32_spill] sm:$0xff]  ;;  %v6305_v33 = vadd.f32 %v14597_v11, %v14616_v56  ;;  %v6303_v43 = vadd.f32 %v14587_v51, %v14646_v26 }
0x166e   : > { %v14782_v42 = vadd.f32 %v9509_v40, %v7103_v19  ;;  %v9432_v59 = vadd.f32 %v9431_v8, %v9430_v9  ;;  %v9512_v35 = vadd.f32 %v9511_v52, %v9510_v10  ;;  %v6651_v40 = vmax.f32 %v6454_v48, 0.0  ;;  %v15639_v19 = vld [vmem:[#allocation30_spill] sm:$0xff] }
0x166f   : > { %v9433_v30 = vpop.f32.mrf.mxu1  ;;  %v9513_v39 = vpop.f32.mrf.mxu0  ;;  %7981 = vmatmul.mubr.f32.gmra.mxu1 %v6616_v18  ;;  %8126 = vmatmul.mubr.f32.gmra.mxu0 %v6618_v41  ;;  %v6650_v22 = vmax.f32 %v6452_v60, 0.0  ;;  %v6297_v13 = vadd.f32 %v15639_v19, %v14646_v26  ;;  %v6458_v6 = vadd.f32 %v15640_v14, %v14651_v0  ;;  %v6466_v48 = vadd.f32 %v14599_v36, %v14635_v62 }
0x1670   : > { %v7108_v27 = vadd.f32 %v9432_v59, %v14714_v49  ;;  %7985 = vmatprep.mubr.f32.mxu1 %v6633_v61  ;;  %8130 = vmatprep.mubr.f32.mxu0 %v6635_v12  ;;  %v6665_v61 = vmax.f32 %v6299_v16, 0.0  ;;  %v6667_v12 = vmax.f32 %v6460_v55, 0.0  ;;  %v6464_v11 = vadd.f32 %v14589_v4, %v14651_v0 }
0x1671   : > { %v9434_v15 = vpop.f32.mrf.mxu1  ;;  %v9514_v46 = vpop.f32.mrf.mxu0  ;;  %v6664_v31 = vmax.f32 %v6297_v13, 0.0  ;;  %v6666_v36 = vmax.f32 %v6458_v6, 0.0  ;;  %v6317_v13 = vadd.f32 %v14657_v34, %v14616_v56  ;;  %v6478_v6 = vadd.f32 %v14659_v5, %v14635_v62 }
0x1672   : > { %v14793_v9 = vadd.f32 %v9512_v35, %v7108_v27  ;;  %v9435_v20 = vadd.f32 %v9434_v15, %v9433_v30  ;;  %v9515_v10 = vadd.f32 %v9514_v46, %v9513_v39  ;;  %v6681_v27 = vmax.f32 %v6305_v33, 0.0 }
0x1673   : > { %v9436_v18 = vpop.f32.mrf.mxu1  ;;  %v9516_v41 = vpop.f32.mrf.mxu0  ;;  %7986 = vmatmul.mubr.f32.gmra.mxu1 %v6632_v50  ;;  %8131 = vmatmul.mubr.f32.gmra.mxu0 %v6634_v3  ;;  %v6311_v3 = vadd.f32 %v14622_v37, %v14616_v56  ;;  %v6683_v15 = vmax.f32 %v6466_v48, 0.0  ;;  %v6315_v48 = vadd.f32 %v14637_v45, %v14646_v26  ;;  %v6476_v34 = vadd.f32 %v14639_v47, %v14651_v0 }
0x1674   : > { %v7113_v23 = vadd.f32 %v9435_v20, %v14714_v49  ;;  %7990 = vmatprep.mubr.f32.mxu1 %v6649_v21  ;;  %8135 = vmatprep.mubr.f32.mxu0 %v6651_v40  ;;  %v6472_v21 = vadd.f32 %v14624_v54, %v14635_v62  ;;  %v15641_v54 = vld [vmem:[#allocation33_spill] sm:$0xff] }
0x1675   : > { %v9437_v8 = vpop.f32.mrf.mxu1  ;;  %v9517_v52 = vpop.f32.mrf.mxu0 }
0x1676   : > { %v14804_v59 = vadd.f32 %v9515_v10, %v7113_v23  ;;  %v9438_v35 = vadd.f32 %v9437_v8, %v9436_v18  ;;  %v9518_v30 = vadd.f32 %v9517_v52, %v9516_v41  ;;  %v6680_v10 = vmax.f32 %v6303_v43, 0.0 }
0x1677   : > { %v9439_v39 = vpop.f32.mrf.mxu1  ;;  %v9519_v50 = vpop.f32.mrf.mxu0  ;;  %7991 = vmatmul.mubr.f32.gmra.mxu1 %v6648_v2  ;;  %8136 = vmatmul.mubr.f32.gmra.mxu0 %v6650_v22  ;;  %v6682_v18 = vmax.f32 %v6464_v11, 0.0  ;;  %v6309_v41 = vadd.f32 %v14607_v38, %v14646_v26  ;;  %v6470_v2 = vadd.f32 %v15641_v54, %v14651_v0  ;;  %v6697_v22 = vmax.f32 %v6311_v3, 0.0 }
0x1678   : > { %v7118_v60 = vadd.f32 %v9438_v35, %v14714_v49  ;;  %7995 = vmatprep.mubr.f32.mxu1 %v6665_v61  ;;  %8140 = vmatprep.mubr.f32.mxu0 %v6667_v12  ;;  %v6699_v19 = vmax.f32 %v6472_v21, 0.0  ;;  %v6715_v11 = vmax.f32 %v6478_v6, 0.0  ;;  %v6712_v3 = vmax.f32 %v6315_v48, 0.0 }
0x1679   : > { %v9440_v16 = vpop.f32.mrf.mxu1  ;;  %v9520_v55 = vpop.f32.mrf.mxu0  ;;  %v6696_v52 = vmax.f32 %v6309_v41, 0.0  ;;  %v6698_v5 = vmax.f32 %v6470_v2, 0.0  ;;  %v6714_v21 = vmax.f32 %v6476_v34, 0.0 }
0x167a   : > { %v14815_v46 = vadd.f32 %v9518_v30, %v7118_v60  ;;  %v9441_v51 = vadd.f32 %v9440_v16, %v9439_v39  ;;  %v9521_v40 = vadd.f32 %v9520_v55, %v9519_v50  ;;  %v6713_v30 = vmax.f32 %v6317_v13, 0.0 }
0x167b   : > { %v9442_v4 = vpop.f32.mrf.mxu1  ;;  %v9522_v20 = vpop.f32.mrf.mxu0  ;;  %7996 = vmatmul.mubr.f32.gmra.mxu1 %v6664_v31  ;;  %8141 = vmatmul.mubr.f32.gmra.mxu0 %v6666_v36  ;;  %v6323_v39 = vadd.f32 %v14677_v7, %v14616_v56  ;;  %v6484_v50 = vadd.f32 %v14679_v1, %v14635_v62  ;;  %v6321_v16 = vadd.f32 %v14667_v63, %v14646_v26 }
0x167c   : > { %v7123_v37 = vadd.f32 %v9441_v51, %v14714_v49  ;;  %8000 = vmatprep.mubr.f32.mxu1 %v6681_v27  ;;  %8145 = vmatprep.mubr.f32.mxu0 %v6683_v15  ;;  %v6482_v1 = vadd.f32 %v14669_v32, %v14651_v0  ;;  %v6329_v51 = vadd.f32 %v14697_v58, %v14616_v56 }
0x167d   : > { %v9443_v23 = vpop.f32.mrf.mxu1  ;;  %v9523_v14 = vpop.f32.mrf.mxu0  ;;  %v6729_v55 = vmax.f32 %v6323_v39, 0.0  ;;  %v6731_v15 = vmax.f32 %v6484_v50, 0.0  ;;  %v6728_v54 = vmax.f32 %v6321_v16, 0.0  ;;  %v6327_v56 = vadd.f32 %v14687_v29, %v14646_v26 }
0x167e   : > { %v14826_v61 = vadd.f32 %v9521_v40, %v7123_v37  ;;  %v9444_v38 = vadd.f32 %v9443_v23, %v9442_v4  ;;  %v9524_v12 = vadd.f32 %v9523_v14, %v9522_v20  ;;  %v6490_v20 = vadd.f32 %v14699_v25, %v14635_v62 }
0x167f   : > { %v9445_v33 = vpop.f32.mrf.mxu1  ;;  %v9525_v8 = vpop.f32.mrf.mxu0  ;;  %8001 = vmatmul.mubr.f32.gmra.mxu1 %v6680_v10  ;;  %8146 = vmatmul.mubr.f32.gmra.mxu0 %v6682_v18  ;;  %v6730_v2 = vmax.f32 %v6482_v1, 0.0  ;;  %v6488_v62 = vadd.f32 %v14689_v28, %v14651_v0  ;;  %v6745_v58 = vmax.f32 %v6329_v51, 0.0  ;;  %v6744_v26 = vmax.f32 %v6327_v56, 0.0 }
0x1680   : > { %v7128_v35 = vadd.f32 %v9444_v38, %v14714_v49  ;;  %8005 = vmatprep.mubr.f32.mxu1 %v6697_v22  ;;  %8150 = vmatprep.mubr.f32.mxu0 %v6699_v19  ;;  %v6747_v19 = vmax.f32 %v6490_v20, 0.0 }
0x1681   : > { %v9446_v31 = vpop.f32.mrf.mxu1  ;;  %v9526_v43 = vpop.f32.mrf.mxu0  ;;  %v6746_v29 = vmax.f32 %v6488_v62, 0.0 }
0x1682   : > { %v14837_v60 = vadd.f32 %v9524_v12, %v7128_v35  ;;  %v9447_v45 = vadd.f32 %v9446_v31, %v9445_v33  ;;  %v9527_v36 = vadd.f32 %v9526_v43, %v9525_v8 }
0x1683   : > { %v9448_v47 = vpop.f32.mrf.mxu1  ;;  %v9528_v27 = vpop.f32.mrf.mxu0  ;;  %8006 = vmatmul.mubr.f32.gmra.mxu1 %v6696_v52  ;;  %8151 = vmatmul.mubr.f32.gmra.mxu0 %v6698_v5 }
0x1684   : > { %v7133_v7 = vadd.f32 %v9447_v45, %v14714_v49  ;;  %8010 = vmatprep.mubr.f32.mxu1 %v6713_v30  ;;  %8155 = vmatprep.mubr.f32.mxu0 %v6715_v11 }
0x1685   : > { %v9449_v40 = vpop.f32.mrf.mxu1  ;;  %v9529_v4 = vpop.f32.mrf.mxu0 }
0x1686   : > { %v14848_v10 = vadd.f32 %v9527_v36, %v7133_v7  ;;  %v9450_v63 = vadd.f32 %v9449_v40, %v9448_v47  ;;  %v9530_v18 = vadd.f32 %v9529_v4, %v9528_v27 }
0x1687   : > { %v9451_v41 = vpop.f32.mrf.mxu1  ;;  %v9531_v37 = vpop.f32.mrf.mxu0  ;;  %8011 = vmatmul.mubr.f32.gmra.mxu1 %v6712_v3  ;;  %8156 = vmatmul.mubr.f32.gmra.mxu0 %v6714_v21 }
0x1688   : > { %v7138_v32 = vadd.f32 %v9450_v63, %v14714_v49  ;;  %8015 = vmatprep.mubr.f32.mxu1 %v6729_v55  ;;  %8160 = vmatprep.mubr.f32.mxu0 %v6731_v15 }
0x1689   : > { %v9452_v25 = vpop.f32.mrf.mxu1  ;;  %v9532_v22 = vpop.f32.mrf.mxu0 }
0x168a   : > { %v14855_v13 = vadd.f32 %v9530_v18, %v7138_v32  ;;  %v9453_v23 = vadd.f32 %v9452_v25, %v9451_v41  ;;  %v9533_v14 = vadd.f32 %v9532_v22, %v9531_v37 }
0x168b   : > { %v9454_v6 = vpop.f32.mrf.mxu1  ;;  %v9534_v38 = vpop.f32.mrf.mxu0  ;;  %8016 = vmatmul.mubr.f32.gmra.mxu1 %v6728_v54  ;;  %8161 = vmatmul.mubr.f32.gmra.mxu0 %v6730_v2 }
0x168c   : > { %v7143_v12 = vadd.f32 %v9453_v23, %v14714_v49  ;;  %8020 = vmatprep.mubr.f32.mxu1 %v6745_v58  ;;  %8165 = vmatprep.mubr.f32.mxu0 %v6747_v19 }
0x168d   : > { %v9455_v33 = vpop.f32.mrf.mxu1  ;;  %v9535_v0 = vpop.f32.mrf.mxu0 }
0x168e   : > { %v14858_v28 = vadd.f32 %v9533_v14, %v7143_v12  ;;  %v9456_v8 = vadd.f32 %v9455_v33, %v9454_v6  ;;  %v9536_v52 = vadd.f32 %v9535_v0, %v9534_v38 }
0x168f   : > { %v9457_v48 = vpop.f32.mrf.mxu1  ;;  %v9537_v34 = vpop.f32.mrf.mxu0  ;;  %8021 = vmatmul.mubr.f32.gmra.mxu1 %v6744_v26  ;;  %8166 = vmatmul.mubr.f32.gmra.mxu0 %v6746_v29 }
0x1690   : > { %v7148_v35 = vadd.f32 %v9456_v8, %v14714_v49 }
0x1691   : > { %v9458_v5 = vpop.f32.mrf.mxu1  ;;  %v9538_v30 = vpop.f32.mrf.mxu0 }
0x1692   : > { %v14861_v39 = vadd.f32 %v9536_v52, %v7148_v35  ;;  %v9459_v50 = vadd.f32 %v9458_v5, %v9457_v48  ;;  %v9539_v31 = vadd.f32 %v9538_v30, %v9537_v34 }
0x1693   : > { %v9572_v43 = vpop.f32.mrf.mxu1  ;;  %v9652_v11 = vpop.f32.mrf.mxu0 }
0x1694   : > { %v7153_v45 = vadd.f32 %v9459_v50, %v14714_v49 }
0x1695   : > { %v9573_v36 = vpop.f32.mrf.mxu1  ;;  %v9653_v47 = vpop.f32.mrf.mxu0 }
0x1696   : > { %v14864_v27 = vadd.f32 %v9539_v31, %v7153_v45  ;;  %v9574_v3 = vadd.f32 %v9573_v36, %v9572_v43  ;;  %v9654_v21 = vadd.f32 %v9653_v47, %v9652_v11 }
0x1697   : > { %v9575_v16 = vpop.f32.mrf.mxu1  ;;  %v9655_v7 = vpop.f32.mrf.mxu0 }
0x1698   : > { %v7368_v1 = vadd.f32 %v9574_v3, %v14727_v17 }
0x1699   : > { %v9576_v55 = vpop.f32.mrf.mxu1  ;;  %v9656_v15 = vpop.f32.mrf.mxu0 }
0x169a   : > { %v14867_v51 = vadd.f32 %v9654_v21, %v7368_v1  ;;  %v9577_v40 = vadd.f32 %v9576_v55, %v9575_v16  ;;  %v9657_v4 = vadd.f32 %v9656_v15, %v9655_v7 }
0x169b   : > { %v9578_v20 = vpop.f32.mrf.mxu1  ;;  %v9658_v63 = vpop.f32.mrf.mxu0 }
0x169c   : > { %v7373_v49 = vadd.f32 %v9577_v40, %v14738_v57 }
0x169d   : > { %v9579_v18 = vpop.f32.mrf.mxu1  ;;  %v9659_v41 = vpop.f32.mrf.mxu0 }
0x169e   : > { %v14870_v37 = vadd.f32 %v9657_v4, %v7373_v49  ;;  %v9580_v54 = vadd.f32 %v9579_v18, %v9578_v20  ;;  %v9660_v32 = vadd.f32 %v9659_v41, %v9658_v63 }
0x169f   : > { %v9581_v2 = vpop.f32.mrf.mxu1  ;;  %v9661_v56 = vpop.f32.mrf.mxu0 }
0x16a0   : > { %v7378_v17 = vadd.f32 %v9580_v54, %v14749_v24 }
0x16a1   : > { %v9582_v62 = vpop.f32.mrf.mxu1  ;;  %v9662_v58 = vpop.f32.mrf.mxu0 }
0x16a2   : > { %v14873_v25 = vadd.f32 %v9660_v32, %v7378_v17  ;;  %v9583_v22 = vadd.f32 %v9582_v62, %v9581_v2  ;;  %v9663_v19 = vadd.f32 %v9662_v58, %v9661_v56 }
0x16a3   : > { %v9584_v23 = vpop.f32.mrf.mxu1  ;;  %v9664_v14 = vpop.f32.mrf.mxu0 }
0x16a4   : > { %v7383_v57 = vadd.f32 %v9583_v22, %v14760_v53 }
0x16a5   : > { %v9585_v6 = vpop.f32.mrf.mxu1  ;;  %v9665_v38 = vpop.f32.mrf.mxu0 }
0x16a6   : > { %v14876_v12 = vadd.f32 %v9663_v19, %v7383_v57  ;;  %v9586_v26 = vadd.f32 %v9585_v6, %v9584_v23  ;;  %v9666_v29 = vadd.f32 %v9665_v38, %v9664_v14 }
0x16a7   : > { %v9587_v33 = vpop.f32.mrf.mxu1  ;;  %v9667_v0 = vpop.f32.mrf.mxu0 }
0x16a8   : > { %v7388_v24 = vadd.f32 %v9586_v26, %v14771_v44 }
0x16a9   : > { %v9588_v8 = vpop.f32.mrf.mxu1  ;;  %v9668_v52 = vpop.f32.mrf.mxu0 }
0x16aa   : > { %v14879_v48 = vadd.f32 %v9666_v29, %v7388_v24  ;;  %v9589_v34 = vadd.f32 %v9588_v8, %v9587_v33  ;;  %v9669_v35 = vadd.f32 %v9668_v52, %v9667_v0 }
0x16ab   : > { %v9590_v5 = vpop.f32.mrf.mxu1  ;;  %v9670_v30 = vpop.f32.mrf.mxu0 }
0x16ac   : > { %v7393_v53 = vadd.f32 %v9589_v34, %v14782_v42 }
0x16ad   : > { %v9591_v50 = vpop.f32.mrf.mxu1  ;;  %v9671_v31 = vpop.f32.mrf.mxu0 }
0x16ae   : > { %v14882_v43 = vadd.f32 %v9669_v35, %v7393_v53  ;;  %v9592_v11 = vadd.f32 %v9591_v50, %v9590_v5  ;;  %v9672_v45 = vadd.f32 %v9671_v31, %v9670_v30 }
0x16af   : > { %v9593_v36 = vpop.f32.mrf.mxu1  ;;  %v9673_v47 = vpop.f32.mrf.mxu0 }
0x16b0   : > { %v7398_v44 = vadd.f32 %v9592_v11, %v14793_v9 }
0x16b1   : > { %v9594_v3 = vpop.f32.mrf.mxu1  ;;  %v9674_v21 = vpop.f32.mrf.mxu0 }
0x16b2   : > { %v14885_v16 = vadd.f32 %v9672_v45, %v7398_v44  ;;  %v9595_v7 = vadd.f32 %v9594_v3, %v9593_v36  ;;  %v9675_v1 = vadd.f32 %v9674_v21, %v9673_v47 }
0x16b3   : > { %v9596_v55 = vpop.f32.mrf.mxu1  ;;  %v9676_v15 = vpop.f32.mrf.mxu0 }
0x16b4   : > { %v7403_v42 = vadd.f32 %v9595_v7, %v14804_v59 }
0x16b5   : > { %v9597_v40 = vpop.f32.mrf.mxu1  ;;  %v9677_v4 = vpop.f32.mrf.mxu0 }
0x16b6   : > { %v14888_v20 = vadd.f32 %v9675_v1, %v7403_v42  ;;  %v9598_v63 = vadd.f32 %v9597_v40, %v9596_v55  ;;  %v9678_v49 = vadd.f32 %v9677_v4, %v9676_v15 }
0x16b7   : > { %v9599_v18 = vpop.f32.mrf.mxu1  ;;  %v9679_v41 = vpop.f32.mrf.mxu0 }
0x16b8   : > { %v7408_v9 = vadd.f32 %v9598_v63, %v14815_v46 }
0x16b9   : > { %v9600_v54 = vpop.f32.mrf.mxu1  ;;  %v9680_v32 = vpop.f32.mrf.mxu0 }
0x16ba   : > { %v14891_v2 = vadd.f32 %v9678_v49, %v7408_v9  ;;  %v9601_v56 = vadd.f32 %v9600_v54, %v9599_v18  ;;  %v9681_v17 = vadd.f32 %v9680_v32, %v9679_v41 }
0x16bb   : > { %v9602_v62 = vpop.f32.mrf.mxu1  ;;  %v9682_v58 = vpop.f32.mrf.mxu0 }
0x16bc   : > { %v7413_v59 = vadd.f32 %v9601_v56, %v14826_v61 }
0x16bd   : > { %v9603_v22 = vpop.f32.mrf.mxu1  ;;  %v9683_v19 = vpop.f32.mrf.mxu0 }
0x16be   : > { %v14894_v23 = vadd.f32 %v9681_v17, %v7413_v59  ;;  %v9604_v14 = vadd.f32 %v9603_v22, %v9602_v62  ;;  %v9684_v57 = vadd.f32 %v9683_v19, %v9682_v58 }
0x16bf   : > { %v9605_v6 = vpop.f32.mrf.mxu1  ;;  %v9685_v38 = vpop.f32.mrf.mxu0 }
0x16c0   : > { %15642 = vst [vmem:[#allocation34_spill] sm:$0xff] %v14894_v23  ;;  %v7418_v46 = vadd.f32 %v9604_v14, %v14837_v60 }
0x16c1   : > { %v9606_v26 = vpop.f32.mrf.mxu1  ;;  %v9686_v29 = vpop.f32.mrf.mxu0 }
0x16c2   : > { %v14897_v33 = vadd.f32 %v9684_v57, %v7418_v46  ;;  %v9607_v0 = vadd.f32 %v9606_v26, %v9605_v6  ;;  %v9687_v24 = vadd.f32 %v9686_v29, %v9685_v38 }
0x16c3   : > { %v9608_v8 = vpop.f32.mrf.mxu1  ;;  %v9688_v52 = vpop.f32.mrf.mxu0 }
0x16c4   : > { %15643 = vst [vmem:[#allocation35_spill] sm:$0xff] %v14897_v33  ;;  %v7423_v61 = vadd.f32 %v9607_v0, %v14848_v10 }
0x16c5   : > { %v9609_v34 = vpop.f32.mrf.mxu1  ;;  %v9689_v35 = vpop.f32.mrf.mxu0 }
0x16c6   : > { %v14900_v5 = vadd.f32 %v9687_v24, %v7423_v61  ;;  %v9610_v30 = vadd.f32 %v9609_v34, %v9608_v8  ;;  %v9690_v53 = vadd.f32 %v9689_v35, %v9688_v52 }
0x16c7   : > { %v9611_v50 = vpop.f32.mrf.mxu1  ;;  %v9691_v31 = vpop.f32.mrf.mxu0 }
0x16c8   : > { %15644 = vst [vmem:[#allocation29_spill] sm:$0xff] %v14900_v5  ;;  %v7428_v60 = vadd.f32 %v9610_v30, %v14855_v13 }
0x16c9   : > { %v9612_v11 = vpop.f32.mrf.mxu1  ;;  %v9692_v45 = vpop.f32.mrf.mxu0 }
0x16ca   : > { %v14903_v36 = vadd.f32 %v9690_v53, %v7428_v60  ;;  %v9613_v47 = vadd.f32 %v9612_v11, %v9611_v50  ;;  %v9693_v44 = vadd.f32 %v9692_v45, %v9691_v31 }
0x16cb   : > { %v9614_v3 = vpop.f32.mrf.mxu1  ;;  %v9694_v21 = vpop.f32.mrf.mxu0 }
0x16cc   : > { %15645 = vst [vmem:[#allocation26_spill] sm:$0xff] %v14903_v36  ;;  %v7433_v10 = vadd.f32 %v9613_v47, %v14858_v28 }
0x16cd   : > { %v9615_v7 = vpop.f32.mrf.mxu1  ;;  %v9695_v1 = vpop.f32.mrf.mxu0 }
0x16ce   : > { %v14906_v55 = vadd.f32 %v9693_v44, %v7433_v10  ;;  %v9616_v15 = vadd.f32 %v9615_v7, %v9614_v3  ;;  %v9696_v42 = vadd.f32 %v9695_v1, %v9694_v21 }
0x16cf   : > { %v9617_v40 = vpop.f32.mrf.mxu1  ;;  %v9697_v4 = vpop.f32.mrf.mxu0 }
0x16d0   : > { %15646 = vst [vmem:[#allocation38_spill] sm:$0xff] %v14906_v55  ;;  %v7438_v13 = vadd.f32 %v9616_v15, %v14861_v39 }
0x16d1   : > { %v9618_v63 = vpop.f32.mrf.mxu1  ;;  %v9698_v49 = vpop.f32.mrf.mxu0 }
0x16d2   : > { %v14909_v18 = vadd.f32 %v9696_v42, %v7438_v13  ;;  %v9619_v41 = vadd.f32 %v9618_v63, %v9617_v40  ;;  %v9699_v9 = vadd.f32 %v9698_v49, %v9697_v4 }
0x16d3   : > { %v9732_v54 = vpop.f32.mrf.mxu1  ;;  %v14911_v32 = vpop.f32.mrf.mxu0 }
0x16d4   : > { %15647 = vst [vmem:[#allocation43_spill] sm:$0xff] %v14909_v18  ;;  %v7443_v28 = vadd.f32 %v9619_v41, %v14864_v27 }
0x16d5   : > { %v9733_v56 = vpop.f32.mrf.mxu1  ;;  %v14914_v17 = vpop.f32.mrf.mxu0 }
0x16d6   : > { %v14916_v62 = vadd.f32 %v9699_v9, %v7443_v28 }
0x16d7   : > { %v9735_v58 = vpop.f32.mrf.mxu1  ;;  %v14918_v59 = vpop.f32.mrf.mxu0 }
0x16d8   : > { %15648 = vst [vmem:[#allocation24_spill] sm:$0xff] %v14916_v62 }
0x16d9   : > { %v9736_v39 = vpop.f32.mrf.mxu1  ;;  %v14920_v22 = vpop.f32.mrf.mxu0 }
0x16db   : > { %v9738_v19 = vpop.f32.mrf.mxu1  ;;  %v14922_v14 = vpop.f32.mrf.mxu0 }
0x16dd   : > { %v9739_v57 = vpop.f32.mrf.mxu1  ;;  %v14924_v6 = vpop.f32.mrf.mxu0 }
0x16df   : > { %v14926_v38 = vpop.f32.mrf.mxu1  ;;  %v14928_v27 = vpop.f32.mrf.mxu0 }
0x16e1   : > { %v14930_v46 = vpop.f32.mrf.mxu1  ;;  %v14932_v26 = vpop.f32.mrf.mxu0 }
0x16e3   : > { %v14934_v29 = vpop.f32.mrf.mxu1  ;;  %v14936_v0 = vpop.f32.mrf.mxu0 }
0x16e5   : > { %v14938_v24 = vpop.f32.mrf.mxu1  ;;  %v14940_v8 = vpop.f32.mrf.mxu0 }
0x16e7   : > { %v14942_v52 = vpop.f32.mrf.mxu1  ;;  %v14944_v61 = vpop.f32.mrf.mxu0 }
0x16e9   : > { %v14946_v34 = vpop.f32.mrf.mxu1  ;;  %v14948_v35 = vpop.f32.mrf.mxu0 }
0x16eb   : > { %v14950_v30 = vpop.f32.mrf.mxu1  ;;  %v14952_v53 = vpop.f32.mrf.mxu0 }
0x16ed   : > { %v14954_v50 = vpop.f32.mrf.mxu1  ;;  %v14956_v31 = vpop.f32.mrf.mxu0 }
0x16ef   : > { %v14958_v60 = vpop.f32.mrf.mxu1  ;;  %v14960_v11 = vpop.f32.mrf.mxu0 }
0x16f1   : > { %v14962_v45 = vpop.f32.mrf.mxu1  ;;  %v14964_v47 = vpop.f32.mrf.mxu0 }
0x16f3   : > { %v14966_v44 = vpop.f32.mrf.mxu1  ;;  %v14968_v3 = vpop.f32.mrf.mxu0 }
0x16f5   : > { %v14970_v21 = vpop.f32.mrf.mxu1  ;;  %v14972_v10 = vpop.f32.mrf.mxu0 }
0x16f7   : > { %v14974_v7 = vpop.f32.mrf.mxu1  ;;  %v14976_v1 = vpop.f32.mrf.mxu0 }
0x16f8   : > { %15649 = vst [vmem:[#allocation36_spill] sm:$0xff] %v14976_v1 }
0x16f9   : > { %v14978_v15 = vpop.f32.mrf.mxu1  ;;  %v14980_v42 = vpop.f32.mrf.mxu0 }
0x16fa   : > { %15650 = vst [vmem:[#allocation37_spill] sm:$0xff] %v14980_v42 }
0x16fb   : > { %v14982_v40 = vpop.f32.mrf.mxu1  ;;  %v14984_v4 = vpop.f32.mrf.mxu0 }
0x16fc   : > { %15651 = vst [vmem:[#allocation40_spill] sm:$0xff] %v14984_v4 }
0x16fd   : > { %v14986_v13 = vpop.f32.mrf.mxu1  ;;  %v14988_v63 = vpop.f32.mrf.mxu0 }
0x16fe   : > { %15652 = vst [vmem:[#allocation25_spill] sm:$0xff] %v14988_v63 }
0x16ff   : > { %v14990_v49 = vpop.f32.mrf.mxu1  ;;  %v14992_v41 = vpop.f32.mrf.mxu0 }
0x1700   : > { %15653 = vst [vmem:[#allocation39_spill] sm:$0xff] %v14990_v49  ;;  %15654 = vst [vmem:[#allocation27_spill] sm:$0xff] %v14992_v41 }
0x1701   : > { %v14994_v9 = vpop.f32.mrf.mxu1  ;;  %v14996_v28 = vpop.f32.mrf.mxu0 }
0x1702   : > { %15655 = vst [vmem:[#allocation41_spill] sm:$0xff] %v14994_v9  ;;  %15656 = vst [vmem:[#allocation42_spill] sm:$0xff] %v14996_v28 }
0x1703   : > { %v14998_v62 = vpop.f32.mrf.mxu1  ;;  %v15000_v18 = vpop.f32.mrf.mxu0 }
0x1704   : > { %15657 = vst [vmem:[#allocation31_spill] sm:$0xff] %v14998_v62  ;;  %15658 = vst [vmem:[#allocation28_spill] sm:$0xff] %v15000_v18  ;;  %v9734_v18 = vadd.f32 %v9733_v56, %v9732_v54 }
0x1705   : > { %v15002_v55 = vpop.f32.mrf.mxu1  ;;  %v15004_v36 = vpop.f32.mrf.mxu0 }
0x1706   : > { %15659 = vst [vmem:[#allocation30_spill] sm:$0xff] %v15002_v55  ;;  %15660 = vst [vmem:[#allocation32_spill] sm:$0xff] %v15004_v36 }
0x1707   : > { %v15006_v5 = vpop.f32.mrf.mxu1  ;;  %v15008_v4 = vpop.f32.mrf.mxu0 }
0x1708   : > { %15661 = vst [vmem:[#allocation33_spill] sm:$0xff] %v15006_v5  ;;  %15662 = vst [vmem:[#allocation44_spill] sm:$0xff] %v15008_v4 }
0x1709   : > { %v15010_v63 = vpop.f32.mrf.mxu1  ;;  %v15012_v49 = vpop.f32.mrf.mxu0 }
0x170a   : > { %15663 = vst [vmem:[#allocation45_spill] sm:$0xff] %v15010_v63  ;;  %15664 = vst [vmem:[#allocation46_spill] sm:$0xff] %v15012_v49  ;;  %v7658_v63 = vadd.f32 %v9734_v18, %v14867_v51  ;;  %v9737_v49 = vadd.f32 %v9736_v39, %v9735_v58 }
0x170b   : > { %v15014_v41 = vpop.f32.mrf.mxu1  ;;  %v15016_v9 = vpop.f32.mrf.mxu0 }
0x170c   : > { %15665 = vst [vmem:[#allocation47_spill] sm:$0xff] %v15014_v41  ;;  %15666 = vst [vmem:[#allocation48_spill] sm:$0xff] %v15016_v9  ;;  %v9814_v9 = vadd.f32 %v14914_v17, %v14911_v32  ;;  %v7663_v56 = vadd.f32 %v9737_v49, %v14870_v37  ;;  %v9743_v32 = vadd.f32 %v14930_v46, %v14926_v38 }
0x170d   : > { %v15018_v28 = vpop.f32.mrf.mxu1  ;;  %v15020_v62 = vpop.f32.mrf.mxu0  ;;  %v9820_v37 = vadd.f32 %v14924_v6, %v14922_v14 }
0x170e   : > { %15667 = vst [vmem:[#allocation49_spill] sm:$0xff] %v15018_v28  ;;  %15668 = vst [vmem:[#allocation50_spill] sm:$0xff] %v15020_v62  ;;  %v9740_v28 = vadd.f32 %v9739_v57, %v9738_v19  ;;  %v7803_v54 = vadd.f32 %v9814_v9, %v7658_v63  ;;  %v7673_v38 = vadd.f32 %v9743_v32, %v14876_v12 }
0x170f   : > { %v15022_v55 = vpop.f32.mrf.mxu1  ;;  %v15024_v36 = vpop.f32.mrf.mxu0  ;;  %v9749_v12 = vadd.f32 %v14946_v34, %v14942_v52 }
0x1710   : > { %15669 = vst [vmem:[#allocation51_spill] sm:$0xff] %v15022_v55  ;;  %15670 = vst [vmem:[#allocation52_spill] sm:$0xff] %v15024_v36  ;;  %v7668_v18 = vadd.f32 %v9740_v28, %v14873_v25  ;;  %v9746_v25 = vadd.f32 %v14938_v24, %v14934_v29 }
0x1711   : > { %v15026_v5 = vpop.f32.mrf.mxu1  ;;  %v15028_v4 = vpop.f32.mrf.mxu0  ;;  %v7683_v34 = vadd.f32 %v9749_v12, %v14882_v43 }
0x1712   : > { %15671 = vst [vmem:[#allocation53_spill] sm:$0xff] %v15026_v5  ;;  %15672 = vst [vmem:[#allocation54_spill] sm:$0xff] %v15028_v4  ;;  %v9817_v4 = vadd.f32 %v14920_v22, %v14918_v59  ;;  %v15673_v59 = vld [vmem:[#allocation8_spill] sm:$0xff]  ;;  %v7678_v29 = vadd.f32 %v9746_v25, %v14879_v48  ;;  %v15675_v48 = vld [vmem:[#allocation11_spill] sm:$0xff] }
0x1713   : > { %v9892_v33 = vpop.f32.mrf.mxu1  ;;  %v9972_v41 = vpop.f32.mrf.mxu0 }
0x1714   : > { %v7808_v23 = vadd.f32 %v9817_v4, %v7663_v56 }
0x1715   : > { %v9893_v42 = vpop.f32.mrf.mxu1  ;;  %v9973_v62 = vpop.f32.mrf.mxu0 }
0x1716   : > { %v9894_v55 = vadd.f32 %v9893_v42, %v9892_v33  ;;  %v9974_v51 = vadd.f32 %v9973_v62, %v9972_v41  ;;  %v7813_v62 = vadd.f32 %v9820_v37, %v7668_v18  ;;  %v15674_v41 = vld [vmem:[#allocation9_spill] sm:$0xff] }
0x1717   : > { %v9895_v36 = vpop.f32.mrf.mxu1  ;;  %v9975_v1 = vpop.f32.mrf.mxu0 }
0x1718   : > { %v7948_v5 = vadd.f32 %v9894_v55, %v7803_v54 }
0x1719   : > { %v9896_v58 = vpop.f32.mrf.mxu1  ;;  %v9976_v39 = vpop.f32.mrf.mxu0 }
0x171a   : > { %v8093_v17 = vadd.f32 %v9974_v51, %v7948_v5  ;;  %v9897_v19 = vadd.f32 %v9896_v58, %v9895_v36  ;;  %v9977_v63 = vadd.f32 %v9976_v39, %v9975_v1 }
0x171b   : > { %v9898_v33 = vpop.f32.mrf.mxu1  ;;  %v9978_v57 = vpop.f32.mrf.mxu0 }
0x171c   : > { %v7953_v42 = vadd.f32 %v9897_v19, %v7808_v23  ;;  %v15042_v55 = vadd.f32 %v8093_v17, %v15673_v59  ;;  %v9823_v23 = vadd.f32 %v14932_v26, %v14928_v27  ;;  %v9826_v27 = vadd.f32 %v14940_v8, %v14936_v0 }
0x171d   : > { %v9899_v22 = vpop.f32.mrf.mxu1  ;;  %v9979_v4 = vpop.f32.mrf.mxu0  ;;  %v9829_v8 = vadd.f32 %v14948_v35, %v14944_v61 }
0x171e   : > { %v8098_v5 = vadd.f32 %v9977_v63, %v7953_v42  ;;  %v9900_v36 = vadd.f32 %v9899_v22, %v9898_v33  ;;  %v8189_v14 = vsel %vm719_vm1, %v15042_v55, 0.0  ;;  %v9980_v49 = vadd.f32 %v9979_v4, %v9978_v57  ;;  %v15676_v22 = vld [vmem:[#allocation13_spill] sm:$0xff] }
0x171f   : > { %v9901_v6 = vpop.f32.mrf.mxu1  ;;  %v9981_v46 = vpop.f32.mrf.mxu0  ;;  %8190 = vadd.xlane.f32.xlu1 %v8189_v14  ;;  %v7818_v54 = vadd.f32 %v9823_v23, %v7673_v38  ;;  %v7823_v52 = vadd.f32 %v9826_v27, %v7678_v29  ;;  %v9752_v33 = vadd.f32 %v14954_v50, %v14950_v30  ;;  %v7828_v4 = vadd.f32 %v9829_v8, %v7683_v34 }
0x1720   : > { %v7958_v1 = vadd.f32 %v9900_v36, %v7813_v62  ;;  %v15052_v9 = vadd.f32 %v8098_v5, %v15674_v41  ;;  %v9755_v30 = vadd.f32 %v14962_v45, %v14958_v60 }
0x1721   : > { %v9902_v24 = vpop.f32.mrf.mxu1  ;;  %v9982_v28 = vpop.f32.mrf.mxu0  ;;  %v7688_v5 = vadd.f32 %v9752_v33, %v14885_v16  ;;  %v9758_v16 = vadd.f32 %v14970_v21, %v14966_v44  ;;  %v15679_v33 = vld [vmem:[#allocation14_spill] sm:$0xff] }
0x1722   : > { %v8103_v56 = vadd.f32 %v9980_v49, %v7958_v1  ;;  %v9903_v51 = vadd.f32 %v9902_v24, %v9901_v6  ;;  %v8192_v18 = vsel %vm719_vm1, %v15052_v9, 0.0  ;;  %v9983_v32 = vadd.f32 %v9982_v28, %v9981_v46  ;;  %v15677_v49 = vld [vmem:[#allocation10_spill] sm:$0xff] }
0x1723   : > { %v9904_v26 = vpop.f32.mrf.mxu1  ;;  %v9984_v58 = vpop.f32.mrf.mxu0  ;;  %8193 = vadd.xlane.f32.xlu0 %v8192_v18  ;;  %v9832_v46 = vadd.f32 %v14956_v31, %v14952_v53  ;;  %v7693_v60 = vadd.f32 %v9755_v30, %v14888_v20  ;;  %v9835_v53 = vadd.f32 %v14964_v47, %v14960_v11  ;;  %v15678_v20 = vld [vmem:[#allocation12_spill] sm:$0xff]  ;;  %v7698_v21 = vadd.f32 %v9758_v16, %v14891_v2  ;;  %v15688_v16 = vld [vmem:[#allocation25_spill] sm:$0xff] }
0x1724   : > { %v7963_v39 = vadd.f32 %v9903_v51, %v7818_v54  ;;  %v15062_v17 = vadd.f32 %v8103_v56, %v15675_v48  ;;  %v9838_v47 = vadd.f32 %v14972_v10, %v14968_v3 }
0x1725   : > { %v9905_v19 = vpop.f32.mrf.mxu1  ;;  %v9985_v37 = vpop.f32.mrf.mxu0  ;;  %v7833_v12 = vadd.f32 %v9832_v46, %v7688_v5  ;;  %v7838_v44 = vadd.f32 %v9835_v53, %v7693_v60  ;;  %v15687_v60 = vld [vmem:[#allocation40_spill] sm:$0xff] }
0x1726   : > { %v8108_v57 = vadd.f32 %v9983_v32, %v7963_v39  ;;  %v9906_v42 = vadd.f32 %v9905_v19, %v9904_v26  ;;  %v8195_v0 = vsel %vm719_vm1, %v15062_v17, 0.0  ;;  %v9986_v25 = vadd.f32 %v9985_v37, %v9984_v58 }
0x1727   : > { %v9907_v63 = vpop.f32.mrf.mxu1  ;;  %v9987_v59 = vpop.f32.mrf.mxu0  ;;  %8196 = vadd.xlane.f32.xlu1 %v8195_v0  ;;  %v9761_v39 = vadd.f32 %v14978_v15, %v14974_v7  ;;  %v9764_v7 = vadd.f32 %v14986_v13, %v14982_v40  ;;  %v15680_v0 = vld [vmem:[#allocation34_spill] sm:$0xff]  ;;  %v15684_v40 = vld [vmem:[#allocation35_spill] sm:$0xff] }
0x1728   : > { %v7968_v62 = vadd.f32 %v9906_v42, %v7823_v52  ;;  %v15072_v43 = vadd.f32 %v8108_v57, %v15676_v22  ;;  %v7843_v57 = vadd.f32 %v9838_v47, %v7698_v21  ;;  %v15682_v22 = vld [vmem:[#allocation37_spill] sm:$0xff]  ;;  %v15692_v21 = vld [vmem:[#allocation30_spill] sm:$0xff] }
0x1729   : > { %v9908_v50 = vpop.f32.mrf.mxu1  ;;  %v9988_v38 = vpop.f32.mrf.mxu0  ;;  %v7703_v8 = vadd.f32 %v9761_v39, %v15680_v0  ;;  %v7708_v13 = vadd.f32 %v9764_v7, %v15684_v40 }
0x172a   : > { %v8113_v36 = vadd.f32 %v9986_v25, %v7968_v62  ;;  %v9909_v14 = vadd.f32 %v9908_v50, %v9907_v63  ;;  %v8198_v61 = vsel %vm719_vm1, %v15072_v43, 0.0  ;;  %v9989_v1 = vadd.f32 %v9988_v38, %v9987_v59  ;;  %v15681_v25 = vld [vmem:[#allocation36_spill] sm:$0xff]  ;;  %v15683_v38 = vld [vmem:[#allocation15_spill] sm:$0xff] }
0x172b   : > { %v9910_v35 = vpop.f32.mrf.mxu1  ;;  %v9990_v6 = vpop.f32.mrf.mxu0  ;;  %8199 = vadd.xlane.f32.xlu0 %v8198_v61 }
0x172c   : > { %v7973_v23 = vadd.f32 %v9909_v14, %v7828_v4  ;;  %v15082_v41 = vadd.f32 %v8113_v36, %v15677_v49  ;;  %v9841_v4 = vadd.f32 %v15682_v22, %v15681_v25  ;;  %v15685_v36 = vld [vmem:[#allocation39_spill] sm:$0xff]  ;;  %v15686_v14 = vld [vmem:[#allocation41_spill] sm:$0xff] }
0x172d   : > { %v9911_v45 = vpop.f32.mrf.mxu1  ;;  %v9991_v29 = vpop.f32.mrf.mxu0  ;;  %v9767_v61 = vadd.f32 %v15686_v14, %v15685_v36  ;;  %v15701_v36 = vld [vmem:[#allocation18_spill] sm:$0xff] }
0x172e   : > { %v8118_v24 = vadd.f32 %v9989_v1, %v7973_v23  ;;  %v9912_v28 = vadd.f32 %v9911_v45, %v9910_v35  ;;  %v8201_v54 = vsel %vm719_vm1, %v15082_v41, 0.0  ;;  %v9992_v18 = vadd.f32 %v9991_v29, %v9990_v6 }
0x172f   : > { %v9913_v31 = vpop.f32.mrf.mxu1  ;;  %v9993_v56 = vpop.f32.mrf.mxu0  ;;  %8202 = vadd.xlane.f32.xlu1 %v8201_v54  ;;  %v7848_v46 = vadd.f32 %v9841_v4, %v7703_v8  ;;  %v9844_v45 = vadd.f32 %v15688_v16, %v15687_v60  ;;  %v15689_v54 = vld [vmem:[#allocation16_spill] sm:$0xff] }
0x1730   : > { %v7978_v51 = vadd.f32 %v9912_v28, %v7833_v12  ;;  %v15092_v27 = vadd.f32 %v8118_v24, %v15678_v20 }
0x1731   : > { %v9914_v26 = vpop.f32.mrf.mxu1  ;;  %v9994_v58 = vpop.f32.mrf.mxu0 }
0x1732   : > { %v8123_v32 = vadd.f32 %v9992_v18, %v7978_v51  ;;  %v9915_v48 = vadd.f32 %v9914_v26, %v9913_v31  ;;  %v8204_v11 = vsel %vm719_vm1, %v15092_v27, 0.0  ;;  %v9995_v37 = vadd.f32 %v9994_v58, %v9993_v56  ;;  %v15690_v56 = vld [vmem:[#allocation29_spill] sm:$0xff] }
0x1733   : > { %v9916_v52 = vpop.f32.mrf.mxu1  ;;  %v9996_v34 = vpop.f32.mrf.mxu0  ;;  %8205 = vadd.xlane.f32.xlu0 %v8204_v11  ;;  %v7853_v31 = vadd.f32 %v9844_v45, %v7708_v13  ;;  %v7713_v51 = vadd.f32 %v9767_v61, %v15690_v56  ;;  %v15694_v11 = vld [vmem:[#allocation42_spill] sm:$0xff] }
0x1734   : > { %v7983_v19 = vadd.f32 %v9915_v48, %v7838_v44  ;;  %v15102_v2 = vadd.f32 %v8123_v32, %v15679_v33  ;;  %v15691_v44 = vld [vmem:[#allocation31_spill] sm:$0xff]  ;;  %v15695_v33 = vld [vmem:[#allocation17_spill] sm:$0xff]  ;;  %v15702_v61 = vld [vmem:[#allocation38_spill] sm:$0xff] }
0x1735   : > { %v9917_v15 = vpop.f32.mrf.mxu1  ;;  %v9997_v42 = vpop.f32.mrf.mxu0  ;;  %v9770_v26 = vadd.f32 %v15692_v21, %v15691_v44  ;;  %v15693_v48 = vld [vmem:[#allocation27_spill] sm:$0xff] }
0x1736   : > { %v8128_v63 = vadd.f32 %v9995_v37, %v7983_v19  ;;  %v9918_v59 = vadd.f32 %v9917_v15, %v9916_v52  ;;  %v8207_v3 = vsel %vm719_vm1, %v15102_v2, 0.0  ;;  %v9998_v50 = vadd.f32 %v9997_v42, %v9996_v34  ;;  %v15696_v15 = vld [vmem:[#allocation33_spill] sm:$0xff]  ;;  %v15708_v21 = vld [vmem:[#allocation43_spill] sm:$0xff] }
0x1737   : > { %v9919_v10 = vpop.f32.mrf.mxu1  ;;  %v9999_v62 = vpop.f32.mrf.mxu0  ;;  %8208 = vadd.xlane.f32.xlu1 %v8207_v3  ;;  %v9847_v47 = vadd.f32 %v15694_v11, %v15693_v48  ;;  %v15697_v42 = vld [vmem:[#allocation45_spill] sm:$0xff] }
0x1738   : > { %v7988_v30 = vadd.f32 %v9918_v59, %v7843_v57  ;;  %v15112_v5 = vadd.f32 %v8128_v63, %v15683_v38  ;;  %v9773_v0 = vadd.f32 %v15697_v42, %v15696_v15  ;;  %v15698_v59 = vld [vmem:[#allocation26_spill] sm:$0xff]  ;;  %v15710_v48 = vld [vmem:[#allocation53_spill] sm:$0xff] }
0x1739   : > { %v9920_v35 = vpop.f32.mrf.mxu1  ;;  %v10000_v6 = vpop.f32.mrf.mxu0  ;;  %v7858_v7 = vadd.f32 %v9847_v47, %v7713_v51  ;;  %v7718_v3 = vadd.f32 %v9770_v26, %v15698_v59 }
0x173a   : > { %v8133_v23 = vadd.f32 %v9998_v50, %v7988_v30  ;;  %v9921_v1 = vadd.f32 %v9920_v35, %v9919_v10  ;;  %v8210_v49 = vsel %vm719_vm1, %v15112_v5, 0.0  ;;  %v10001_v28 = vadd.f32 %v10000_v6, %v9999_v62  ;;  %v15699_v30 = vld [vmem:[#allocation28_spill] sm:$0xff]  ;;  %v15703_v6 = vld [vmem:[#allocation47_spill] sm:$0xff] }
0x173b   : > { %v9922_v29 = vpop.f32.mrf.mxu1  ;;  %v10002_v12 = vpop.f32.mrf.mxu0  ;;  %8211 = vadd.xlane.f32.xlu0 %v8210_v49  ;;  %v15700_v50 = vld [vmem:[#allocation32_spill] sm:$0xff]  ;;  %v7723_v35 = vadd.f32 %v9773_v0, %v15702_v61 }
0x173c   : > { %v7993_v24 = vadd.f32 %v9921_v1, %v7848_v46  ;;  %v15122_v53 = vadd.f32 %v8133_v23, %v15689_v54  ;;  %v9850_v38 = vadd.f32 %v15700_v50, %v15699_v30  ;;  %v15704_v46 = vld [vmem:[#allocation49_spill] sm:$0xff] }
0x173d   : > { %v9923_v18 = vpop.f32.mrf.mxu1  ;;  %v10003_v20 = vpop.f32.mrf.mxu0  ;;  %v9776_v23 = vadd.f32 %v15704_v46, %v15703_v6  ;;  %v15717_v6 = vld [vmem:[#allocation21_spill] sm:$0xff] }
0x173e   : > { %v8138_v58 = vadd.f32 %v10001_v28, %v7993_v24  ;;  %v9924_v39 = vadd.f32 %v9923_v18, %v9922_v29  ;;  %v8213_v32 = vsel %vm719_vm1, %v15122_v53, 0.0  ;;  %v10004_v37 = vadd.f32 %v10003_v20, %v10002_v12  ;;  %v15705_v12 = vld [vmem:[#allocation44_spill] sm:$0xff]  ;;  %v15706_v24 = vld [vmem:[#allocation46_spill] sm:$0xff]  ;;  %v15707_v18 = vld [vmem:[#allocation19_spill] sm:$0xff] }
0x173f   : > { %v9925_v52 = vpop.f32.mrf.mxu1  ;;  %v10005_v34 = vpop.f32.mrf.mxu0  ;;  %8214 = vadd.xlane.f32.xlu1 %v8213_v32  ;;  %v7863_v60 = vadd.f32 %v9850_v38, %v7718_v3  ;;  %v9853_v28 = vadd.f32 %v15706_v24, %v15705_v12  ;;  %v7728_v26 = vadd.f32 %v9776_v23, %v15708_v21  ;;  %v15709_v32 = vld [vmem:[#allocation51_spill] sm:$0xff]  ;;  %v15718_v24 = vld [vmem:[#allocation22_spill] sm:$0xff] }
0x1740   : > { %v7998_v19 = vadd.f32 %v9924_v39, %v7853_v31  ;;  %v15132_v57 = vadd.f32 %v8138_v58, %v15695_v33  ;;  %v9779_v11 = vadd.f32 %v15710_v48, %v15709_v32 }
0x1741   : > { %v9926_v8 = vpop.f32.mrf.mxu1  ;;  %v10006_v63 = vpop.f32.mrf.mxu0  ;;  %v7868_v44 = vadd.f32 %v9853_v28, %v7723_v35 }
0x1742   : > { %v8143_v10 = vadd.f32 %v10004_v37, %v7998_v19  ;;  %v9927_v62 = vadd.f32 %v9926_v8, %v9925_v52  ;;  %v8216_v25 = vsel %vm719_vm1, %v15132_v57, 0.0  ;;  %v10007_v13 = vadd.f32 %v10006_v63, %v10005_v34  ;;  %v15711_v19 = vld [vmem:[#allocation48_spill] sm:$0xff]  ;;  %v15712_v37 = vld [vmem:[#allocation50_spill] sm:$0xff] }
0x1743   : > { %v9928_v22 = vpop.f32.mrf.mxu1  ;;  %v10008_v4 = vpop.f32.mrf.mxu0  ;;  %8217 = vadd.xlane.f32.xlu0 %v8216_v25  ;;  %v9856_v33 = vadd.f32 %v15712_v37, %v15711_v19  ;;  %v15713_v8 = vld [vmem:[#allocation20_spill] sm:$0xff] }
0x1744   : > { %v8003_v40 = vadd.f32 %v9927_v62, %v7858_v7  ;;  %v15142_v14 = vadd.f32 %v8143_v10, %v15701_v36  ;;  %v15714_v62 = vld [vmem:[#allocation24_spill] sm:$0xff] }
0x1745   : > { %v9929_v1 = vpop.f32.mrf.mxu1  ;;  %v10009_v49 = vpop.f32.mrf.mxu0  ;;  %v7873_v59 = vadd.f32 %v9856_v33, %v7728_v26  ;;  %v7733_v25 = vadd.f32 %v9779_v11, %v15714_v62 }
0x1746   : > { %v8148_v16 = vadd.f32 %v10007_v13, %v8003_v40  ;;  %v9930_v45 = vadd.f32 %v9929_v1, %v9928_v22  ;;  %v8219_v29 = vsel %vm719_vm1, %v15142_v14, 0.0  ;;  %v10010_v51 = vadd.f32 %v10009_v49, %v10008_v4  ;;  %v15715_v40 = vld [vmem:[#allocation52_spill] sm:$0xff]  ;;  %v15716_v13 = vld [vmem:[#allocation54_spill] sm:$0xff] }
0x1747   : > { %v9931_v54 = vpop.f32.mrf.mxu1  ;;  %v10011_v31 = vpop.f32.mrf.mxu0  ;;  %8220 = vadd.xlane.f32.xlu1 %v8219_v29  ;;  %v9859_v36 = vadd.f32 %v15716_v13, %v15715_v40 }
0x1748   : > { %v8008_v56 = vadd.f32 %v9930_v45, %v7863_v60  ;;  %v15152_v20 = vadd.f32 %v8148_v16, %v15707_v18 }
0x1749   : > { %v9932_v58 = vpop.f32.mrf.mxu1  ;;  %v10012_v39 = vpop.f32.mrf.mxu0  ;;  %v7878_v49 = vadd.f32 %v9859_v36, %v7733_v25 }
0x174a   : > { %v8153_v47 = vadd.f32 %v10010_v51, %v8008_v56  ;;  %v9933_v52 = vadd.f32 %v9932_v58, %v9931_v54  ;;  %v8222_v34 = vsel %vm719_vm1, %v15152_v20, 0.0  ;;  %v10013_v0 = vadd.f32 %v10012_v39, %v10011_v31  ;;  %v15719_v56 = vld [vmem:[#allocation23_spill] sm:$0xff] }
0x174b   : > { %v9934_v7 = vpop.f32.mrf.mxu1  ;;  %v10014_v15 = vpop.f32.mrf.mxu0  ;;  %8223 = vadd.xlane.f32.xlu0 %v8222_v34 }
0x174c   : > { %v8013_v42 = vadd.f32 %v9933_v52, %v7868_v44  ;;  %v15162_v63 = vadd.f32 %v8153_v47, %v15713_v8 }
0x174d   : > { %v9935_v3 = vpop.f32.mrf.mxu1  ;;  %v10015_v10 = vpop.f32.mrf.mxu0 }
0x174e   : > { %v8158_v22 = vadd.f32 %v10013_v0, %v8013_v42  ;;  %v9936_v4 = vadd.f32 %v9935_v3, %v9934_v7  ;;  %v8225_v30 = vsel %vm719_vm1, %v15162_v63, 0.0  ;;  %v10016_v35 = vadd.f32 %v10015_v10, %v10014_v15 }
0x174f   : > { %v9937_v50 = vpop.f32.mrf.mxu1  ;;  %v10017_v38 = vpop.f32.mrf.mxu0  ;;  %8226 = vadd.xlane.f32.xlu1 %v8225_v30 }
0x1750   : > { %v8018_v61 = vadd.f32 %v9936_v4, %v7873_v59  ;;  %v15170_v46 = vadd.f32 %v8158_v22, %v15717_v6 }
0x1751   : > { %v9938_v23 = vpop.f32.mrf.mxu1  ;;  %v10018_v1 = vpop.f32.mrf.mxu0 }
0x1752   : > { %v8163_v60 = vadd.f32 %v10016_v35, %v8018_v61  ;;  %v9939_v16 = vadd.f32 %v9938_v23, %v9937_v50  ;;  %v8228_v45 = vsel %vm719_vm1, %v15170_v46, 0.0  ;;  %v10019_v12 = vadd.f32 %v10018_v1, %v10017_v38 }
0x1753   : > { %8229 = vadd.xlane.f32.xlu0 %v8228_v45 }
0x1754   : > { %v8023_v29 = vadd.f32 %v9939_v16, %v7878_v49  ;;  %v15175_v28 = vadd.f32 %v8163_v60, %v15718_v24 }
0x1756   : > { %v8168_v54 = vadd.f32 %v10019_v12, %v8023_v29  ;;  %v8231_v31 = vsel %vm719_vm1, %v15175_v28, 0.0 }
0x1757   : > { %8232 = vadd.xlane.f32.xlu1 %v8231_v31 }
0x1758   : > { %v15180_v51 = vadd.f32 %v8168_v54, %v15719_v56 }
0x175a   : > { %v8234_v18 = vsel %vm719_vm1, %v15180_v51, 0.0 }
0x175b   : > { %8235 = vadd.xlane.f32.xlu0 %v8234_v18 }
0x17a8   : > { %v8191_v44 = vpop.xlane.xlu1 %8190 }
0x17a9   : > { %v8237_v21 = vmul.f32 0.041666668, %v8191_v44 }
0x17ab   : > { %v15185_v26 = vsub.f32 %v15042_v55, %v8237_v21 }
0x17ac   : > { %v8194_v58 = vpop.xlane.xlu0 %8193 }
0x17ad   : > { %v8238_v39 = vmul.f32 0.041666668, %v8194_v58  ;;  %v8269_v32 = vmul.f32 %v15185_v26, %v15185_v26 }
0x17af   : > { %v15190_v48 = vsub.f32 %v15052_v9, %v8238_v39  ;;  %v8285_v11 = vsel %vm719_vm1, %v8269_v32, 0.0 }
0x17b0   : > { %v8197_v47 = vpop.xlane.xlu1 %8196  ;;  %8286 = vadd.xlane.f32.xlu1 %v8285_v11 }
0x17b1   : > { %v8239_v52 = vmul.f32 0.041666668, %v8197_v47  ;;  %v8270_v34 = vmul.f32 %v15190_v48, %v15190_v48 }
0x17b3   : > { %v15196_v19 = vsub.f32 %v15062_v17, %v8239_v52  ;;  %v8288_v55 = vsel %vm719_vm1, %v8270_v34, 0.0 }
0x17b4   : > { %v8200_v37 = vpop.xlane.xlu0 %8199  ;;  %8289 = vadd.xlane.f32.xlu0 %v8288_v55 }
0x17b5   : > { %v8240_v33 = vmul.f32 0.041666668, %v8200_v37  ;;  %v8271_v9 = vmul.f32 %v15196_v19, %v15196_v19 }
0x17b7   : > { %v15202_v7 = vsub.f32 %v15072_v43, %v8240_v33  ;;  %v8291_v15 = vsel %vm719_vm1, %v8271_v9, 0.0 }
0x17b8   : > { %v8203_v42 = vpop.xlane.xlu1 %8202  ;;  %8292 = vadd.xlane.f32.xlu1 %v8291_v15 }
0x17b9   : > { %v8241_v0 = vmul.f32 0.041666668, %v8203_v42  ;;  %v8272_v17 = vmul.f32 %v15202_v7, %v15202_v7 }
0x17bb   : > { %v15208_v8 = vsub.f32 %v15082_v41, %v8241_v0  ;;  %v8294_v59 = vsel %vm719_vm1, %v8272_v17, 0.0 }
0x17bc   : > { %v8206_v3 = vpop.xlane.xlu0 %8205  ;;  %8295 = vadd.xlane.f32.xlu0 %v8294_v59 }
0x17bd   : > { %v8242_v10 = vmul.f32 0.041666668, %v8206_v3  ;;  %v8273_v43 = vmul.f32 %v15208_v8, %v15208_v8 }
0x17bf   : > { %v15214_v62 = vsub.f32 %v15092_v27, %v8242_v10  ;;  %v8297_v25 = vsel %vm719_vm1, %v8273_v43, 0.0 }
0x17c0   : > { %v8209_v22 = vpop.xlane.xlu1 %8208  ;;  %8298 = vadd.xlane.f32.xlu1 %v8297_v25 }
0x17c1   : > { %v8243_v4 = vmul.f32 0.041666668, %v8209_v22  ;;  %v8274_v41 = vmul.f32 %v15214_v62, %v15214_v62 }
0x17c3   : > { %v15220_v30 = vsub.f32 %v15102_v2, %v8243_v4  ;;  %v8300_v50 = vsel %vm719_vm1, %v8274_v41, 0.0 }
0x17c4   : > { %v8212_v38 = vpop.xlane.xlu0 %8211  ;;  %8301 = vadd.xlane.f32.xlu0 %v8300_v50 }
0x17c5   : > { %v8244_v40 = vmul.f32 0.041666668, %v8212_v38  ;;  %v8275_v27 = vmul.f32 %v15220_v30, %v15220_v30 }
0x17c7   : > { %v15226_v13 = vsub.f32 %v15112_v5, %v8244_v40  ;;  %v8303_v36 = vsel %vm719_vm1, %v8275_v27, 0.0 }
0x17c8   : > { %v8215_v61 = vpop.xlane.xlu1 %8214  ;;  %8304 = vadd.xlane.f32.xlu1 %v8303_v36 }
0x17c9   : > { %v8245_v35 = vmul.f32 0.041666668, %v8215_v61  ;;  %v8276_v2 = vmul.f32 %v15226_v13, %v15226_v13 }
0x17cb   : > { %v15232_v6 = vsub.f32 %v15122_v53, %v8245_v35  ;;  %v8306_v23 = vsel %vm719_vm1, %v8276_v2, 0.0  ;;  %v15285_v35 = vld [vmem:[%s652_s4] ss:$0 sm:$0xff]  ;;  %s15720_s4 = sld [smem:[#allocation60_spill]] (!%p9078_p5) }
0x17cc   : > { %v8218_v1 = vpop.xlane.xlu0 %8217  ;;  %8307 = vadd.xlane.f32.xlu0 %v8306_v23 }
0x17cd   : > { %v8246_v49 = vmul.f32 0.041666668, %v8218_v1  ;;  %v8277_v5 = vmul.f32 %v15232_v6, %v15232_v6  ;;  %v15293_v1 = vld [vmem:[%s655_s7] ss:$0 sm:$0xff] }
0x17cf   : > { %v15238_v60 = vsub.f32 %v15132_v57, %v8246_v49  ;;  %v8309_v16 = vsel %vm719_vm1, %v8277_v5, 0.0 }
0x17d0   : > { %v8221_v45 = vpop.xlane.xlu1 %8220  ;;  %8310 = vadd.xlane.f32.xlu1 %v8309_v16 }
0x17d1   : > { %v8247_v29 = vmul.f32 0.041666668, %v8221_v45  ;;  %v8278_v53 = vmul.f32 %v15238_v60, %v15238_v60 }
0x17d3   : > { %v15244_v12 = vsub.f32 %v15142_v14, %v8247_v29  ;;  %v8312_v24 = vsel %vm719_vm1, %v8278_v53, 0.0 }
0x17d4   : > { %v8224_v54 = vpop.xlane.xlu0 %8223  ;;  %8313 = vadd.xlane.f32.xlu0 %v8312_v24 }
0x17d5   : > { %v8248_v31 = vmul.f32 0.041666668, %v8224_v54  ;;  %v8279_v57 = vmul.f32 %v15244_v12, %v15244_v12 }
0x17d7   : > { %v15250_v56 = vsub.f32 %v15152_v20, %v8248_v31  ;;  %v8315_v18 = vsel %vm719_vm1, %v8279_v57, 0.0 }
0x17d8   : > { %v8227_v44 = vpop.xlane.xlu1 %8226  ;;  %8316 = vadd.xlane.f32.xlu1 %v8315_v18 }
0x17d9   : > { %v8249_v21 = vmul.f32 0.041666668, %v8227_v44  ;;  %v8280_v14 = vmul.f32 %v15250_v56, %v15250_v56 }
0x17db   : > { %v15256_v58 = vsub.f32 %v15162_v63, %v8249_v21  ;;  %v8318_v39 = vsel %vm719_vm1, %v8280_v14, 0.0 }
0x17dc   : > { %v8230_v32 = vpop.xlane.xlu0 %8229  ;;  %8319 = vadd.xlane.f32.xlu0 %v8318_v39 }
0x17dd   : > { %v8250_v11 = vmul.f32 0.041666668, %v8230_v32  ;;  %v8281_v20 = vmul.f32 %v15256_v58, %v15256_v58 }
0x17df   : > { %v15262_v47 = vsub.f32 %v15170_v46, %v8250_v11  ;;  %v8321_v52 = vsel %vm719_vm1, %v8281_v20, 0.0 }
0x17e0   : > { %8322 = vadd.xlane.f32.xlu1 %v8321_v52  ;;  %v8233_v34 = vpop.xlane.xlu1 %8232 }
0x17e1   : > { %v8251_v55 = vmul.f32 0.041666668, %v8233_v34  ;;  %v8282_v63 = vmul.f32 %v15262_v47, %v15262_v47 }
0x17e3   : > { %v15268_v37 = vsub.f32 %v15175_v28, %v8251_v55  ;;  %v8324_v33 = vsel %vm719_vm1, %v8282_v63, 0.0 }
0x17e4   : > { %8325 = vadd.xlane.f32.xlu0 %v8324_v33  ;;  %v8236_v9 = vpop.xlane.xlu0 %8235 }
0x17e5   : > { %v8252_v15 = vmul.f32 0.041666668, %v8236_v9  ;;  %v8283_v46 = vmul.f32 %v15268_v37, %v15268_v37 }
0x17e7   : > { %v15274_v42 = vsub.f32 %v15180_v51, %v8252_v15  ;;  %v8327_v0 = vsel %vm719_vm1, %v8283_v46, 0.0 }
0x17e8   : > { %8328 = vadd.xlane.f32.xlu1 %v8327_v0 }
0x17e9   : > { %v8284_v17 = vmul.f32 %v15274_v42, %v15274_v42 }
0x17eb   : > { %v8330_v28 = vsel %vm719_vm1, %v8284_v17, 0.0 }
0x17ec   : > { %8331 = vadd.xlane.f32.xlu0 %v8330_v28 }
0x1839   : > { %v8287_v59 = vpop.xlane.xlu1 %8286 }
0x183a   : > { %v8333_v3 = vmul.f32 0.041666668, %v8287_v59 }
0x183c   : > { %v8349_v10 = vadd.f32 1e-05, %v8333_v3 }
0x183d   : > { %v8290_v43 = vpop.xlane.xlu0 %8289 }
0x183e   : > { %10863 = vrsqrt.f32 %v8349_v10  ;;  %v8334_v25 = vmul.f32 0.041666668, %v8290_v43 }
0x1840   : > { %v8350_v22 = vadd.f32 1e-05, %v8334_v25 }
0x1841   : > { %v8293_v51 = vpop.xlane.xlu1 %8292 }
0x1842   : > { %10865 = vrsqrt.f32 %v8350_v22  ;;  %v8335_v4 = vmul.f32 0.041666668, %v8293_v51 }
0x1844   : > { %v8351_v41 = vadd.f32 1e-05, %v8335_v4 }
0x1845   : > { %v8296_v50 = vpop.xlane.xlu0 %8295 }
0x1846   : > { %10867 = vrsqrt.f32 %v8351_v41  ;;  %v8336_v38 = vmul.f32 0.041666668, %v8296_v50 }
0x1848   : > { %v8352_v40 = vadd.f32 1e-05, %v8336_v38 }
0x1849   : > { %v8299_v27 = vpop.xlane.xlu1 %8298 }
0x184a   : > { %10869 = vrsqrt.f32 %v8352_v40  ;;  %v8337_v36 = vmul.f32 0.041666668, %v8299_v27 }
0x184b   : > { %v10864_v61 = vpop.eup %10863 }
0x184c   : > { %v8381_v2 = vmul.f32 %v10864_v61, %v15185_v26  ;;  %v8353_v23 = vadd.f32 1e-05, %v8337_v36 }
0x184d   : > { %v8302_v49 = vpop.xlane.xlu0 %8301 }
0x184e   : > { %v8403_v5 = vmul.f32 %v15285_v35, %v8381_v2  ;;  %10871 = vrsqrt.f32 %v8353_v23  ;;  %v8338_v16 = vmul.f32 0.041666668, %v8302_v49 }
0x184f   : > { %v10866_v45 = vpop.eup %10865 }
0x1850   : > { %v8425_v29 = vadd.f32 %v15293_v1, %v8403_v5  ;;  %v8382_v53 = vmul.f32 %v10866_v45, %v15190_v48  ;;  %v8354_v24 = vadd.f32 1e-05, %v8338_v16 }
0x1851   : > { %v8305_v54 = vpop.xlane.xlu1 %8304 }
0x1852   : > { %8441 = vst.msk [vmem:[#allocation2] sm:$0xff] %vm719_vm1, %v8425_v29  ;;  %v8404_v26 = vmul.f32 %v15285_v35, %v8382_v53  ;;  %10873 = vrsqrt.f32 %v8354_v24  ;;  %v8339_v31 = vmul.f32 0.041666668, %v8305_v54 }
0x1853   : > { %v10868_v57 = vpop.eup %10867 }
0x1854   : > { %v8426_v18 = vadd.f32 %v15293_v1, %v8404_v26  ;;  %v8383_v44 = vmul.f32 %v10868_v57, %v15196_v19  ;;  %v8355_v21 = vadd.f32 1e-05, %v8339_v31 }
0x1855   : > { %v8308_v14 = vpop.xlane.xlu0 %8307 }
0x1856   : > { %8442 = vst.msk [vmem:[#allocation2 + $0x8] sm:$0xff] %vm719_vm1, %v8426_v18  ;;  %v8405_v39 = vmul.f32 %v15285_v35, %v8383_v44  ;;  %10875 = vrsqrt.f32 %v8355_v21  ;;  %v8340_v48 = vmul.f32 0.041666668, %v8308_v14 }
0x1857   : > { %v10870_v32 = vpop.eup %10869 }
0x1858   : > { %v8427_v11 = vadd.f32 %v15293_v1, %v8405_v39  ;;  %v8384_v20 = vmul.f32 %v10870_v32, %v15202_v7  ;;  %v8356_v52 = vadd.f32 1e-05, %v8340_v48 }
0x1859   : > { %v8311_v34 = vpop.xlane.xlu1 %8310 }
0x185a   : > { %8443 = vst.msk [vmem:[#allocation2 + $0x10] sm:$0xff] %vm719_vm1, %v8427_v11  ;;  %v8406_v55 = vmul.f32 %v15285_v35, %v8384_v20  ;;  %10877 = vrsqrt.f32 %v8356_v52  ;;  %v8341_v19 = vmul.f32 0.041666668, %v8311_v34 }
0x185b   : > { %v10872_v63 = vpop.eup %10871 }
0x185c   : > { %v8428_v33 = vadd.f32 %v15293_v1, %v8406_v55  ;;  %v8385_v9 = vmul.f32 %v10872_v63, %v15208_v8  ;;  %v8357_v15 = vadd.f32 1e-05, %v8341_v19 }
0x185d   : > { %v8314_v46 = vpop.xlane.xlu0 %8313 }
0x185e   : > { %8444 = vst.msk [vmem:[#allocation2 + $0x18] sm:$0xff] %vm719_vm1, %v8428_v33  ;;  %v8407_v0 = vmul.f32 %v15285_v35, %v8385_v9  ;;  %10879 = vrsqrt.f32 %v8357_v15  ;;  %v8342_v7 = vmul.f32 0.041666668, %v8314_v46 }
0x185f   : > { %v10874_v17 = vpop.eup %10873 }
0x1860   : > { %v15313_v28 = vadd.f32 %v15293_v1, %v8407_v0  ;;  %v8386_v59 = vmul.f32 %v10874_v17, %v15214_v62  ;;  %v8358_v3 = vadd.f32 1e-05, %v8342_v7 }
0x1861   : > { %v8317_v10 = vpop.xlane.xlu1 %8316 }
0x1862   : > { %8445 = vst.msk [vmem:[#allocation2 + $0x20] sm:$0xff] %vm719_vm1, %v15313_v28  ;;  %v8408_v8 = vmul.f32 %v15285_v35, %v8386_v59  ;;  %10881 = vrsqrt.f32 %v8358_v3  ;;  %v8343_v43 = vmul.f32 0.041666668, %v8317_v10 }
0x1863   : > { %v10876_v25 = vpop.eup %10875 }
0x1864   : > { %v8430_v22 = vadd.f32 %v15293_v1, %v8408_v8  ;;  %v8387_v51 = vmul.f32 %v10876_v25, %v15220_v30  ;;  %v8359_v4 = vadd.f32 1e-05, %v8343_v43 }
0x1865   : > { %v8320_v41 = vpop.xlane.xlu0 %8319 }
0x1866   : > { %8446 = vst.msk [vmem:[#allocation2 + $0x28] sm:$0xff] %vm719_vm1, %v8430_v22  ;;  %v8409_v62 = vmul.f32 %v15285_v35, %v8387_v51  ;;  %10883 = vrsqrt.f32 %v8359_v4  ;;  %v8344_v50 = vmul.f32 0.041666668, %v8320_v41 }
0x1867   : > { %v10878_v38 = vpop.eup %10877 }
0x1868   : > { %v8431_v40 = vadd.f32 %v15293_v1, %v8409_v62  ;;  %v8388_v27 = vmul.f32 %v10878_v38, %v15226_v13  ;;  %v8360_v36 = vadd.f32 1e-05, %v8344_v50 }
0x1869   : > { %v8323_v61 = vpop.xlane.xlu1 %8322 }
0x186a   : > { %8447 = vst.msk [vmem:[#allocation2 + $0x30] sm:$0xff] %vm719_vm1, %v8431_v40  ;;  %v8410_v2 = vmul.f32 %v15285_v35, %v8388_v27  ;;  %10885 = vrsqrt.f32 %v8360_v36  ;;  %v8345_v30 = vmul.f32 0.041666668, %v8323_v61 }
0x186b   : > { %v10880_v23 = vpop.eup %10879 }
0x186c   : > { %v8432_v49 = vadd.f32 %v15293_v1, %v8410_v2  ;;  %v8389_v5 = vmul.f32 %v10880_v23, %v15232_v6  ;;  %v8361_v16 = vadd.f32 1e-05, %v8345_v30 }
0x186d   : > { %v8326_v45 = vpop.xlane.xlu0 %8325 }
0x186e   : > { %8448 = vst.msk [vmem:[#allocation2 + $0x38] sm:$0xff] %vm719_vm1, %v8432_v49  ;;  %v8411_v29 = vmul.f32 %v15285_v35, %v8389_v5  ;;  %10887 = vrsqrt.f32 %v8361_v16  ;;  %v8346_v13 = vmul.f32 0.041666668, %v8326_v45 }
0x186f   : > { %v10882_v53 = vpop.eup %10881 }
0x1870   : > { %v8433_v24 = vadd.f32 %v15293_v1, %v8411_v29  ;;  %v8390_v54 = vmul.f32 %v10882_v53, %v15238_v60  ;;  %v8362_v26 = vadd.f32 1e-05, %v8346_v13 }
0x1871   : > { %v8329_v31 = vpop.xlane.xlu1 %8328 }
0x1872   : > { %8449 = vst.msk [vmem:[#allocation2 + $0x40] sm:$0xff] %vm719_vm1, %v8433_v24  ;;  %v8412_v57 = vmul.f32 %v15285_v35, %v8390_v54  ;;  %10889 = vrsqrt.f32 %v8362_v26  ;;  %v8347_v6 = vmul.f32 0.041666668, %v8329_v31 }
0x1873   : > { %v10884_v18 = vpop.eup %10883 }
0x1874   : > { %v8434_v44 = vadd.f32 %v15293_v1, %v8412_v57  ;;  %v8391_v21 = vmul.f32 %v10884_v18, %v15244_v12  ;;  %v8363_v14 = vadd.f32 1e-05, %v8347_v6 }
0x1875   : > { %v8332_v39 = vpop.xlane.xlu0 %8331 }
0x1876   : > { %8450 = vst.msk [vmem:[#allocation2 + $0x48] sm:$0xff] %vm719_vm1, %v8434_v44  ;;  %v8413_v48 = vmul.f32 %v15285_v35, %v8391_v21  ;;  %10891 = vrsqrt.f32 %v8363_v14  ;;  %v8348_v60 = vmul.f32 0.041666668, %v8332_v39 }
0x1877   : > { %v10886_v32 = vpop.eup %10885 }
0x1878   : > { %v8435_v11 = vadd.f32 %v15293_v1, %v8413_v48  ;;  %v8392_v20 = vmul.f32 %v10886_v32, %v15250_v56  ;;  %v8364_v52 = vadd.f32 1e-05, %v8348_v60 }
0x187a   : > { %8451 = vst.msk [vmem:[#allocation2 + $0x50] sm:$0xff] %vm719_vm1, %v8435_v11  ;;  %v8414_v34 = vmul.f32 %v15285_v35, %v8392_v20  ;;  %10893 = vrsqrt.f32 %v8364_v52 }
0x187b   : > { %v10888_v12 = vpop.eup %10887 }
0x187c   : > { %v8436_v55 = vadd.f32 %v15293_v1, %v8414_v34  ;;  %v8393_v19 = vmul.f32 %v10888_v12, %v15256_v58 }
0x187e   : > { %8452 = vst.msk [vmem:[#allocation2 + $0x58] sm:$0xff] %vm719_vm1, %v8436_v55  ;;  %v8415_v63 = vmul.f32 %v15285_v35, %v8393_v19 }
0x187f   : > { %v10890_v33 = vpop.eup %10889 }
0x1880   : > { %v8437_v9 = vadd.f32 %v15293_v1, %v8415_v63  ;;  %v8394_v56 = vmul.f32 %v10890_v33, %v15262_v47 }
0x1882   : > { %8453 = vst.msk [vmem:[#allocation2 + $0x60] sm:$0xff] %vm719_vm1, %v8437_v9  ;;  %v8416_v15 = vmul.f32 %v15285_v35, %v8394_v56 }
0x1883   : > { %v10892_v46 = vpop.eup %10891 }
0x1884   : > { %v8438_v0 = vadd.f32 %v15293_v1, %v8416_v15  ;;  %v8395_v7 = vmul.f32 %v10892_v46, %v15268_v37 }
0x1886   : > { %8454 = vst.msk [vmem:[#allocation2 + $0x68] sm:$0xff] %vm719_vm1, %v8438_v0  ;;  %v8417_v58 = vmul.f32 %v15285_v35, %v8395_v7 }
0x1887   : > { %v10894_v17 = vpop.eup %10893 }
0x1888   : > { %v8439_v59 = vadd.f32 %v15293_v1, %v8417_v58  ;;  %v8396_v3 = vmul.f32 %v10894_v17, %v15274_v42 }
0x188a   : > { %8455 = vst.msk [vmem:[#allocation2 + $0x70] sm:$0xff] %vm719_vm1, %v8439_v59  ;;  %v8418_v47 = vmul.f32 %v15285_v35, %v8396_v3  ;;  %8460 = sbr.rel (%p9078_p5) target bundleno = 6490 (0x195a), region = 88 }
0x188c   : > { %v8440_v10 = vadd.f32 %v15293_v1, %v8418_v47 }
0x188e   : > { %8456 = vst.msk [vmem:[#allocation2 + $0x78] sm:$0xff] %vm719_vm1, %v8440_v10 }
0x188f   : > { %v8468_v37 = vld [vmem:[%s15720_s4 + $0x10] sm:$0xff]  ;;  %v8462_v8 = vrot.slane %v8437_v9, 7  ;;  %v10963_v43 = vmov 0.0   ;;  %v8467_v42 = vld [vmem:[%s15720_s4 + $0x8] sm:$0xff]  ;;  %vm10964_vm7 = vmmov 0   ;;  %vm8464_vm8 = vcmask 1040384  }
0x1890   : > { %10532 = vmatprep.subr.mxu0 %v10963_v43  ;;  %10538 = vmatprep.mubr.msk.f32.mxu0 %vm10964_vm7, %v10963_v43  ;;  %v8466_v35 = vld [vmem:[%s15720_s4] sm:$0xff]  ;;  %vm8549_vm9 = vcmask 25600  }
0x1891   : > { %10533 = vmatpush3.msra.mxu0 %v8468_v37  ;;  %v8465_v1 = vsel %vm8464_vm8, %v15313_v28, %v8462_v8  ;;  %v9079_v25 = vld [vmem:[%s15721_s23] ss:$0 sm:$0xff] }
0x1892   : > { %10534 = vmatprep.subr.mxu0 %v10963_v43 }
0x1893   : > { %10535 = vmatpush3.msra.mxu0 %v8467_v42 }
0x1894   : > { %10536 = vmatprep.subr.mxu0 %v10963_v43 }
0x1895   : > { %10537 = vmatpush3.msra.mxu0 %v8466_v35 }
0x1896   : > { %10539 = vmatmul.mubr.msk.f32.vlgmr.msra.gmra.mxu0 %vm719_vm1, %v8465_v1 }
0x1956   : > { %v8545_v22 = vpop.f32.mrf.mxu0 }
0x1957   : > { %v8546_v51 = vadd.f32 %v9079_v25, %v8545_v22 }
0x1958   : > { %v10540_v4 = vpop.f32.mrf.mxu0 }
0x1959   : > { %8550 = vst.msk [vmem:[#allocation4] sm:$0x3] %vm8549_vm9, %v8546_v51 }
0x195a PF: > { %p10547_p6 = scmp.eq.s32.totalorder %s11052_s19, 1  ;;  %s10965_s25 = smov [#allocation4]  }
0x195b   : > { %s8558_s28 = sshll.u32 %s10965_s25, 4  ;;  %s8559_s28 = int_to_ptr.vmem [resolvable:$true] %s8558_s28 }
0x195c   : > { %s10912_s26 = scalar_lea.vmem %s8559_s28, 32  ;;  %p10919_p10 = scmp.lt.s32.totalorder %s8559_s28, %s8559_s28 }
0x195d   : > { %p10913_p7 = scmp.ne.s32.totalorder %s8559_s28, %s10912_s26  ;;  %p10920_p11 = scmp.lt.s32.totalorder %s10912_s26, %s10912_s26 }
0x195f   : > { %p10914_p8 = pnand %p10913_p7, %p10547_p6  ;;  %p10921_p12 = por %p10920_p11, %p10919_p10 }
0x1961   : > { %p10915_p9 = pneg %p10914_p8 }
0x1963   : > { %p10922_p13 = pnand %p10921_p12, %p10915_p9 }
0x1965   : > { %10925 = shalt.err (!%p10922_p13)
}
0x1966   : > { %s15722_s17 = sld [smem:[#allocation62_spill]] }
0x196c   : > { %10544 = dma.vmem_to_hbm [thread:$0]  (%p10547_p6), %s8559_s28, 32, %s15722_s17, [#allocation5]  }
0x196d   : > { %10941 = dma.done.wait (%p10547_p6), [#allocation5], 32  }
0x196e   : > { %10943 = vsyncadd (%p10547_p6), [#allocation5], 4294967264 }
0x196f PF: > { %s15723_s30 = sld [smem:[#allocation7_spill]] }
0x1975   : > { %s26_s18 = sadd.s32 1, %s15723_s30  }
0x1976   : > { %p23_p0 = scmp.ge.s32.totalorder %s26_s18, 4  }
0x1978   :  { %25 = sbr.rel (!%p23_p0) target bundleno = 10 (0xa), region = 148 }
0x197d   :  { %8571 = vsyncpa [#allocation5], 1 }
0x197e   :  { %8573 = vsyncpa [#allocation5 + $0x1], 1 }

</bundles_post_ra>
